<compile_context>
chip_gen: v5e
topology: v5e:2x2
jax: 0.10.0
libtpu: 0.0.40
codegen_flags: <defaults>
</compile_context>

<pallas_src>
import functools

import jax
import jax.numpy as jnp
from jax.experimental import pallas as pl
from jax.experimental.pallas import tpu as pltpu


# ----------------------------------------------------------------------------
# Fused kernel. grid = (B // bag_block, depth); depth axis is 'arbitrary'.
# One grid step = one transformer layer applied to `bag_block` bags.
# ----------------------------------------------------------------------------
def _t_mil_kernel(x_ref, w1_ref, b1_ref, wqkv_ref, wo_ref, bo_ref,
                  wh_ref, bh_ref, o_ref, h_ref, attn_out_ref,
                  *, heads, n_tiles, inv_n):
    bf16 = jnp.bfloat16
    f32 = jnp.float32

    layer = pl.program_id(1)
    n_layers = pl.num_programs(1)

    M = x_ref.shape[0]                     # bag_block * n_tiles
    D = w1_ref.shape[1]
    dh = D // heads
    bag_block = M // n_tiles

    # ---- fc1 + ReLU, only on the first layer-step of each bag block ----
    @pl.when(layer == 0)
    def _():
        h0 = jnp.dot(x_ref[...], w1_ref[...], preferred_element_type=f32)
        h_ref[...] = jnp.maximum(h0 + b1_ref[...], 0.0)          # (M, D) f32

    # ---- one transformer layer (Attention + residual) ----
    hb = h_ref[...].astype(bf16)                                 # single bf16 copy
    # lane-dense QKV projection: (M, D) @ (D, 3D); softmax scale folded in q cols
    qkv = jnp.dot(hb, wqkv_ref[0], preferred_element_type=f32)   # (M, 3D)
    qkv_b = qkv.astype(bf16)                                     # single bf16 copy

    for h_i in range(heads):
        q_h = qkv_b[:,          h_i * dh:          (h_i + 1) * dh]   # (M, dh)
        k_h = qkv_b[:,     D + h_i * dh:     D + (h_i + 1) * dh]
        v_h = qkv_b[:, 2 * D + h_i * dh: 2 * D + (h_i + 1) * dh]
        for b in range(bag_block):
            r = slice(b * n_tiles, (b + 1) * n_tiles)
            # scores for one (head, bag): only one (N, N) tile live at a time
            s = jax.lax.dot_general(q_h[r], k_h[r], (((1,), (1,)), ((), ())),
                                    preferred_element_type=f32)       # (N, N)
            s = s - jnp.max(s, axis=-1, keepdims=True)
            e = jnp.exp(s)
            attn = e * pl.reciprocal(jnp.sum(e, axis=-1, keepdims=True),
                                     approx=True)
            out_bh = jnp.dot(attn.astype(bf16), v_h[r],
                             preferred_element_type=f32)              # (N, dh)
            # head-major merge 'b h n d -> b n (h d)' via lane-offset store
            attn_out_ref[r, h_i * dh:(h_i + 1) * dh] = out_bh

    # full-K (K = D = 512) output projection + bias + residual
    out_cat = attn_out_ref[...].astype(bf16)                          # (M, D)
    proj = jnp.dot(out_cat, wo_ref[0], preferred_element_type=f32)    # (M, D)
    h_ref[...] = h_ref[...] + proj + bo_ref[0]

    # ---- mean over tiles + mlp_head, only after the last layer ----
    @pl.when(layer == n_layers - 1)
    def _():
        h_fin = h_ref[...]
        for b in range(bag_block):
            emb = jnp.sum(h_fin[b * n_tiles:(b + 1) * n_tiles],
                          axis=0, keepdims=True) * inv_n              # (1, D)
            logit = jnp.dot(emb.astype(bf16), wh_ref[...],
                            preferred_element_type=f32) + bh_ref[...]
            o_ref[b] = logit                                          # (1, C_pad)


# ----------------------------------------------------------------------------
# One-time parameter packing (bf16 cast, softmax scale folded into q columns,
# classifier padded to a lane-dense width).
# ----------------------------------------------------------------------------
def pack_params(params, *, heads):
    fc1_w = params["fc1_w"]
    D = fc1_w.shape[1]
    dh = D // heads
    scale = dh ** -0.5

    wqkv_list, wo_list, bo_list = [], [], []
    for (wqkv, wo, bo) in params["layers"]:
        # wqkv: (D, 3D), columns ordered [q | k | v], each head-major (h*dh + e)
        wqkv_list.append(wqkv.at[:, :D].multiply(scale))   # fold scale into q
        wo_list.append(wo)                                 # (D, D), rows head-major
        bo_list.append(bo)                                 # (1, D)

    C = params["head_w"].shape[1]
    C_pad = max(128, ((C + 127) // 128) * 128)
    head_w = jnp.zeros((D, C_pad), jnp.float32).at[:, :C].set(params["head_w"])
    head_b = jnp.zeros((1, C_pad), jnp.float32).at[:, :C].set(params["head_b"])

    return {
        "fc1_w": fc1_w.astype(jnp.bfloat16),                    # (F, D)
        "fc1_b": params["fc1_b"].astype(jnp.float32),           # (1, D)
        "wqkv": jnp.stack(wqkv_list).astype(jnp.bfloat16),      # (depth, D, 3D)
        "wo": jnp.stack(wo_list).astype(jnp.bfloat16),          # (depth, D, D)
        "bo": jnp.stack(bo_list).astype(jnp.float32),           # (depth, 1, D)
        "head_w": head_w.astype(jnp.bfloat16),                  # (D, C_pad)
        "head_b": head_b,                                       # (1, C_pad)
        "n_classes": C,
    }


# ----------------------------------------------------------------------------
# T_MIL forward (GA_MIL) — single fused pallas_call
# ----------------------------------------------------------------------------
def t_mil_forward(x, packed, *, heads, depth, bag_block=None):
    B, N, F = x.shape
    D = packed["fc1_w"].shape[1]
    C_pad = packed["head_w"].shape[1]

    if bag_block is None:
        # block small bags together (fills MXU rows) but keep >= 2 parallel
        # grid steps when possible (v7x megacore).
        bag_block = 1
        for cand in range(min(B, 8), 0, -1):
            if B % cand == 0 and (cand * N) % 8 == 0 and B // cand >= 2:
                bag_block = cand
                break
    assert B % bag_block == 0 and (bag_block * N) % 8 == 0, (B, N, bag_block)
    M = bag_block * N

    # stream activations in bf16 (kernel only ever uses bf16 operands)
    x_flat = x.astype(jnp.bfloat16).reshape(B * N, F)

    kernel = functools.partial(_t_mil_kernel, heads=heads, n_tiles=N,
                               inv_n=1.0 / N)

    out = pl.pallas_call(
        kernel,
        out_shape=jax.ShapeDtypeStruct((B, 1, C_pad), jnp.float32),
        grid_spec=pltpu.PrefetchScalarGridSpec(
            num_scalar_prefetch=0,
            grid=(B // bag_block, depth),
            in_specs=[
                pl.BlockSpec((M, F), lambda b, l: (b, 0)),               # x (bf16)
                pl.BlockSpec((F, D), lambda b, l: (0, 0)),               # fc1_w
                pl.BlockSpec((1, D), lambda b, l: (0, 0)),               # fc1_b
                pl.BlockSpec((1, D, 3 * D), lambda b, l: (l, 0, 0)),     # wqkv[l]
                pl.BlockSpec((1, D, D), lambda b, l: (l, 0, 0)),         # wo[l]
                pl.BlockSpec((1, 1, D), lambda b, l: (l, 0, 0)),         # bo[l]
                pl.BlockSpec((D, C_pad), lambda b, l: (0, 0)),           # head_w
                pl.BlockSpec((1, C_pad), lambda b, l: (0, 0)),           # head_b
            ],
            out_specs=pl.BlockSpec((bag_block, 1, C_pad), lambda b, l: (b, 0, 0)),
            scratch_shapes=[
                pltpu.VMEM((M, D), jnp.float32),    # residual stream h
                pltpu.VMEM((M, D), jnp.float32),    # merged attention output
            ],
        ),
        compiler_params=pltpu.CompilerParams(
            dimension_semantics=("parallel", "arbitrary"),
            # plenty at these sizes; raise toward ~100 MiB on v5e/v6e for large N
            vmem_limit_bytes=32 * 1024 * 1024,
        ),
    )(x_flat, packed["fc1_w"], packed["fc1_b"], packed["wqkv"], packed["wo"],
      packed["bo"], packed["head_w"], packed["head_b"])

    logits = out[:, 0, :packed["n_classes"]]
    return [logits]                    # matches the module's `out` list


# ----------------------------------------------------------------------------
# pure-JAX (f32) reference for correctness checking
# ----------------------------------------------------------------------------
def t_mil_reference(x, params, *, heads):
    B, N, _ = x.shape
    h = jnp.maximum(x @ params["fc1_w"] + params["fc1_b"], 0.0)
    D = h.shape[-1]
    dh = D // heads
    for (wqkv, wo, bo) in params["layers"]:
        qkv = h @ wqkv
        q, k, v = jnp.split(qkv, 3, axis=-1)

        def hview(t):
            return t.reshape(B, N, heads, dh).transpose(0, 2, 1, 3)

        q, k, v = hview(q), hview(k), hview(v)
        dots = jnp.einsum("bhnd,bhmd->bhnm", q, k) * (dh ** -0.5)
        attn = jax.nn.softmax(dots, axis=-1)
        out = jnp.einsum("bhnm,bhmd->bhnd", attn, v)
        out = out.transpose(0, 2, 1, 3).reshape(B, N, D)
        h = h + (out @ wo + bo)
    emb = h.mean(axis=1)
    return emb @ params["head_w"] + params["head_b"]


if __name__ == "__main__":
    # small shapes consistent with the module (feat_dim scaled down; dim=512 is
    # hard-coded in the module's internal layers)
    B, N = 4, 8                 # bags, tiles-per-bag (sequence length)
    FEAT = 256                  # feat_dim (scaled down from 1024)
    DIM = 512                   # latent / transformer dim (fixed by module code)
    HEADS = 8
    DEPTH = 2
    NCLS = 4

    key = jax.random.PRNGKey(0)
    keys = jax.random.split(key, 3 + 3 * DEPTH + 2)
    ki = iter(keys)

    def init(k, shape, fan_in):
        return jax.random.normal(k, shape, jnp.float32) / (fan_in ** 0.5)

    x = jax.random.normal(next(ki), (B, N, FEAT), jnp.float32)

    params = {
        "fc1_w": init(next(ki), (FEAT, DIM), FEAT),
        "fc1_b": init(next(ki), (1, DIM), FEAT),
        "layers": [],
        "head_w": None,
        "head_b": None,
    }
    for _ in range(DEPTH):
        wqkv = init(next(ki), (DIM, 3 * DIM), DIM)   # to_qkv, bias=False
        wo = init(next(ki), (DIM, DIM), DIM)         # to_out Linear
        bo = init(next(ki), (1, DIM), DIM)
        params["layers"].append((wqkv, wo, bo))
    params["head_w"] = init(next(ki), (DIM, NCLS), DIM)
    params["head_b"] = init(next(ki), (1, NCLS), DIM)

    packed = pack_params(params, heads=HEADS)

    out = t_mil_forward(x, packed, heads=HEADS, depth=DEPTH)
    logits = jax.block_until_ready(out[0])

    ref = jax.block_until_ready(t_mil_reference(x, params, heads=HEADS))
    assert logits.shape == (B, NCLS)
    # bf16 MXU operands + approx reciprocal -> looser tolerance than f32
    assert jnp.allclose(logits, ref, rtol=5e-2, atol=5e-2), (
        "mismatch vs reference: " + str(jnp.max(jnp.abs(logits - ref))))

    print("KERNEL_OK")
</pallas_src>

<mosaic_0001>
module attributes {stable_mosaic.version = 11 : i64} {
  func.func @_t_mil_kernel(%arg0: i32, %arg1: i32, %arg2: memref<16x256xbf16, #tpu.memory_space<vmem>>, %arg3: memref<256x512xbf16, #tpu.memory_space<vmem>>, %arg4: memref<1x512xf32, #tpu.memory_space<vmem>>, %arg5: memref<1x512x1536xbf16, #tpu.memory_space<vmem>>, %arg6: memref<1x512x512xbf16, #tpu.memory_space<vmem>>, %arg7: memref<1x1x512xf32, #tpu.memory_space<vmem>>, %arg8: memref<512x128xbf16, #tpu.memory_space<vmem>>, %arg9: memref<1x128xf32, #tpu.memory_space<vmem>>, %arg10: memref<2x1x128xf32, #tpu.memory_space<vmem>>, %arg11: memref<16x512xf32, #tpu.memory_space<vmem>>, %arg12: memref<16x512xf32, #tpu.memory_space<vmem>>) attributes {dimension_semantics = [#tpu.dimension_semantics<parallel>, #tpu.dimension_semantics<arbitrary>], iteration_bounds = array<i64: 2, 2>, scalar_prefetch = 0 : i64, scratch_operands = 2 : i64, tpu.core_type = #tpu.core_type<tc>, window_params = [{transform_indices = @transform_0, window_bounds = array<i64: 16, 256>}, {pipeline_mode = #tpu.pipeline_mode<synchronous>, transform_indices = @transform_1, window_bounds = array<i64: 256, 512>}, {pipeline_mode = #tpu.pipeline_mode<synchronous>, transform_indices = @transform_2, window_bounds = array<i64: 1, 512>}, {transform_indices = @transform_3, window_bounds = array<i64: 1, 512, 1536>}, {transform_indices = @transform_4, window_bounds = array<i64: 1, 512, 512>}, {transform_indices = @transform_5, window_bounds = array<i64: 1, 1, 512>}, {pipeline_mode = #tpu.pipeline_mode<synchronous>, transform_indices = @transform_6, window_bounds = array<i64: 512, 128>}, {pipeline_mode = #tpu.pipeline_mode<synchronous>, transform_indices = @transform_7, window_bounds = array<i64: 1, 128>}, {transform_indices = @transform_8, window_bounds = array<i64: 2, 1, 128>}]} {
    %c0_i32 = arith.constant 0 : i32
    %0 = arith.cmpi eq, %arg1, %c0_i32 : i32
    %1 = arith.extui %0 : i1 to i32
    %c0_i32_0 = arith.constant 0 : i32
    %2 = arith.cmpi ne, %1, %c0_i32_0 : i32
    scf.if %2 {
      %c0_107 = arith.constant 0 : index
      %c0_108 = arith.constant 0 : index
      %320 = vector.load %arg2[%c0_107, %c0_108] : memref<16x256xbf16, #tpu.memory_space<vmem>>, vector<16x256xbf16>
      %c0_109 = arith.constant 0 : index
      %c0_110 = arith.constant 0 : index
      %321 = vector.load %arg3[%c0_109, %c0_110] : memref<256x512xbf16, #tpu.memory_space<vmem>>, vector<256x512xbf16>
      %cst_111 = arith.constant dense<0.000000e+00> : vector<16x512xf32>
      %322 = tpu.matmul %320, %321, %cst_111 {dimension_numbers = #tpu.dot_dimension_numbers<[1], [0], [0], [1], [0, 0, 1, 1], [], []>} : vector<16x256xbf16>, vector<256x512xbf16>, vector<16x512xf32> -> vector<16x512xf32>
      %c0_112 = arith.constant 0 : index
      %c0_113 = arith.constant 0 : index
      %323 = vector.load %arg4[%c0_112, %c0_113] : memref<1x512xf32, #tpu.memory_space<vmem>>, vector<1x512xf32>
      %324 = vector.broadcast %323 : vector<1x512xf32> to vector<16x512xf32>
      %325 = arith.addf %322, %324 : vector<16x512xf32>
      %cst_114 = arith.constant 0.000000e+00 : f32
      %326 = vector.broadcast %cst_114 : f32 to vector<16x512xf32>
      %327 = arith.maximumf %325, %326 : vector<16x512xf32>
      %c0_115 = arith.constant 0 : index
      %c0_116 = arith.constant 0 : index
      %328 = vector.load %arg11[%c0_115, %c0_116] : memref<16x512xf32, #tpu.memory_space<vmem>>, vector<16x512xf32>
      tpu.vector_store %arg11[%c0_115, %c0_116], %327 {strides = array<i32>} : memref<16x512xf32, #tpu.memory_space<vmem>>, vector<16x512xf32>,
    } else {
    }
    %c0 = arith.constant 0 : index
    %c0_1 = arith.constant 0 : index
    %3 = vector.load %arg11[%c0, %c0_1] : memref<16x512xf32, #tpu.memory_space<vmem>>, vector<16x512xf32>
    %4 = arith.truncf %3 : vector<16x512xf32> to vector<16x512xbf16>
    %c0_2 = arith.constant 0 : index
    %c0_3 = arith.constant 0 : index
    %c0_4 = arith.constant 0 : index
    %5 = vector.load %arg5[%c0_2, %c0_3, %c0_4] : memref<1x512x1536xbf16, #tpu.memory_space<vmem>>, vector<1x512x1536xbf16>
    %6 = vector.shape_cast %5 : vector<1x512x1536xbf16> to vector<512x1536xbf16>
    %cst = arith.constant dense<0.000000e+00> : vector<16x1536xf32>
    %7 = tpu.matmul %4, %6, %cst {dimension_numbers = #tpu.dot_dimension_numbers<[1], [0], [0], [1], [0, 0, 1, 1], [], []>} : vector<16x512xbf16>, vector<512x1536xbf16>, vector<16x1536xf32> -> vector<16x1536xf32>
    %8 = arith.truncf %7 : vector<16x1536xf32> to vector<16x1536xbf16>
    %9 = vector.extract_strided_slice %8 {offsets = [0, 0], sizes = [16, 64], strides = [1, 1]} : vector<16x1536xbf16> to vector<16x64xbf16>
    %10 = vector.extract_strided_slice %8 {offsets = [0, 512], sizes = [16, 64], strides = [1, 1]} : vector<16x1536xbf16> to vector<16x64xbf16>
    %11 = vector.extract_strided_slice %8 {offsets = [0, 1024], sizes = [16, 64], strides = [1, 1]} : vector<16x1536xbf16> to vector<16x64xbf16>
    %12 = vector.extract_strided_slice %9 {offsets = [0, 0], sizes = [8, 64], strides = [1, 1]} : vector<16x64xbf16> to vector<8x64xbf16>
    %13 = vector.extract_strided_slice %10 {offsets = [0, 0], sizes = [8, 64], strides = [1, 1]} : vector<16x64xbf16> to vector<8x64xbf16>
    %cst_5 = arith.constant dense<0.000000e+00> : vector<8x8xf32>
    %14 = tpu.matmul %12, %13, %cst_5 {dimension_numbers = #tpu.dot_dimension_numbers<[1], [1], [0], [0], [0, 0, 1, 0], [], []>} : vector<8x64xbf16>, vector<8x64xbf16>, vector<8x8xf32> -> vector<8x8xf32>
    %cst_6 = arith.constant dense<0xFF800000> : vector<8xf32>
    %15 = vector.multi_reduction <maximumf>, %14, %cst_6 [1] : vector<8x8xf32> to vector<8xf32>
    %16 = vector.shape_cast %15 : vector<8xf32> to vector<8x1xf32>
    %17 = vector.broadcast %16 : vector<8x1xf32> to vector<8x8xf32>
    %18 = arith.subf %14, %17 : vector<8x8xf32>
    %19 = math.exp %18 : vector<8x8xf32>
    %cst_7 = arith.constant dense<0.000000e+00> : vector<8xf32>
    %20 = vector.multi_reduction <add>, %19, %cst_7 [1] : vector<8x8xf32> to vector<8xf32>
    %21 = vector.shape_cast %20 : vector<8xf32> to vector<8x1xf32>
    %22 = tpu.reciprocal %21 {approx = true} : vector<8x1xf32> -> vector<8x1xf32>
    %23 = vector.broadcast %22 : vector<8x1xf32> to vector<8x8xf32>
    %24 = arith.mulf %19, %23 : vector<8x8xf32>
    %25 = arith.truncf %24 : vector<8x8xf32> to vector<8x8xbf16>
    %26 = vector.extract_strided_slice %11 {offsets = [0, 0], sizes = [8, 64], strides = [1, 1]} : vector<16x64xbf16> to vector<8x64xbf16>
    %cst_8 = arith.constant dense<0.000000e+00> : vector<8x64xf32>
    %27 = tpu.matmul %25, %26, %cst_8 {dimension_numbers = #tpu.dot_dimension_numbers<[1], [0], [0], [1], [0, 0, 1, 1], [], []>} : vector<8x8xbf16>, vector<8x64xbf16>, vector<8x64xf32> -> vector<8x64xf32>
    %c0_9 = arith.constant 0 : index
    %c0_10 = arith.constant 0 : index
    %28 = vector.load %arg12[%c0_9, %c0_10] : memref<16x512xf32, #tpu.memory_space<vmem>>, vector<8x64xf32>
    tpu.vector_store %arg12[%c0_9, %c0_10], %27 {strides = array<i32>} : memref<16x512xf32, #tpu.memory_space<vmem>>, vector<8x64xf32>,
    %29 = vector.extract_strided_slice %9 {offsets = [8, 0], sizes = [8, 64], strides = [1, 1]} : vector<16x64xbf16> to vector<8x64xbf16>
    %30 = vector.extract_strided_slice %10 {offsets = [8, 0], sizes = [8, 64], strides = [1, 1]} : vector<16x64xbf16> to vector<8x64xbf16>
    %cst_11 = arith.constant dense<0.000000e+00> : vector<8x8xf32>
    %31 = tpu.matmul %29, %30, %cst_11 {dimension_numbers = #tpu.dot_dimension_numbers<[1], [1], [0], [0], [0, 0, 1, 0], [], []>} : vector<8x64xbf16>, vector<8x64xbf16>, vector<8x8xf32> -> vector<8x8xf32>
    %cst_12 = arith.constant dense<0xFF800000> : vector<8xf32>
    %32 = vector.multi_reduction <maximumf>, %31, %cst_12 [1] : vector<8x8xf32> to vector<8xf32>
    %33 = vector.shape_cast %32 : vector<8xf32> to vector<8x1xf32>
    %34 = vector.broadcast %33 : vector<8x1xf32> to vector<8x8xf32>
    %35 = arith.subf %31, %34 : vector<8x8xf32>
    %36 = math.exp %35 : vector<8x8xf32>
    %cst_13 = arith.constant dense<0.000000e+00> : vector<8xf32>
    %37 = vector.multi_reduction <add>, %36, %cst_13 [1] : vector<8x8xf32> to vector<8xf32>
    %38 = vector.shape_cast %37 : vector<8xf32> to vector<8x1xf32>
    %39 = tpu.reciprocal %38 {approx = true} : vector<8x1xf32> -> vector<8x1xf32>
    %40 = vector.broadcast %39 : vector<8x1xf32> to vector<8x8xf32>
    %41 = arith.mulf %36, %40 : vector<8x8xf32>
    %42 = arith.truncf %41 : vector<8x8xf32> to vector<8x8xbf16>
    %43 = vector.extract_strided_slice %11 {offsets = [8, 0], sizes = [8, 64], strides = [1, 1]} : vector<16x64xbf16> to vector<8x64xbf16>
    %cst_14 = arith.constant dense<0.000000e+00> : vector<8x64xf32>
    %44 = tpu.matmul %42, %43, %cst_14 {dimension_numbers = #tpu.dot_dimension_numbers<[1], [0], [0], [1], [0, 0, 1, 1], [], []>} : vector<8x8xbf16>, vector<8x64xbf16>, vector<8x64xf32> -> vector<8x64xf32>
    %c8 = arith.constant 8 : index
    %c0_15 = arith.constant 0 : index
    %45 = vector.load %arg12[%c8, %c0_15] : memref<16x512xf32, #tpu.memory_space<vmem>>, vector<8x64xf32>
    tpu.vector_store %arg12[%c8, %c0_15], %44 {strides = array<i32>} : memref<16x512xf32, #tpu.memory_space<vmem>>, vector<8x64xf32>,
    %46 = vector.extract_strided_slice %8 {offsets = [0, 64], sizes = [16, 64], strides = [1, 1]} : vector<16x1536xbf16> to vector<16x64xbf16>
    %47 = vector.extract_strided_slice %8 {offsets = [0, 576], sizes = [16, 64], strides = [1, 1]} : vector<16x1536xbf16> to vector<16x64xbf16>
    %48 = vector.extract_strided_slice %8 {offsets = [0, 1088], sizes = [16, 64], strides = [1, 1]} : vector<16x1536xbf16> to vector<16x64xbf16>
    %49 = vector.extract_strided_slice %46 {offsets = [0, 0], sizes = [8, 64], strides = [1, 1]} : vector<16x64xbf16> to vector<8x64xbf16>
    %50 = vector.extract_strided_slice %47 {offsets = [0, 0], sizes = [8, 64], strides = [1, 1]} : vector<16x64xbf16> to vector<8x64xbf16>
    %cst_16 = arith.constant dense<0.000000e+00> : vector<8x8xf32>
    %51 = tpu.matmul %49, %50, %cst_16 {dimension_numbers = #tpu.dot_dimension_numbers<[1], [1], [0], [0], [0, 0, 1, 0], [], []>} : vector<8x64xbf16>, vector<8x64xbf16>, vector<8x8xf32> -> vector<8x8xf32>
    %cst_17 = arith.constant dense<0xFF800000> : vector<8xf32>
    %52 = vector.multi_reduction <maximumf>, %51, %cst_17 [1] : vector<8x8xf32> to vector<8xf32>
    %53 = vector.shape_cast %52 : vector<8xf32> to vector<8x1xf32>
    %54 = vector.broadcast %53 : vector<8x1xf32> to vector<8x8xf32>
    %55 = arith.subf %51, %54 : vector<8x8xf32>
    %56 = math.exp %55 : vector<8x8xf32>
    %cst_18 = arith.constant dense<0.000000e+00> : vector<8xf32>
    %57 = vector.multi_reduction <add>, %56, %cst_18 [1] : vector<8x8xf32> to vector<8xf32>
    %58 = vector.shape_cast %57 : vector<8xf32> to vector<8x1xf32>
    %59 = tpu.reciprocal %58 {approx = true} : vector<8x1xf32> -> vector<8x1xf32>
    %60 = vector.broadcast %59 : vector<8x1xf32> to vector<8x8xf32>
    %61 = arith.mulf %56, %60 : vector<8x8xf32>
    %62 = arith.truncf %61 : vector<8x8xf32> to vector<8x8xbf16>
    %63 = vector.extract_strided_slice %48 {offsets = [0, 0], sizes = [8, 64], strides = [1, 1]} : vector<16x64xbf16> to vector<8x64xbf16>
    %cst_19 = arith.constant dense<0.000000e+00> : vector<8x64xf32>
    %64 = tpu.matmul %62, %63, %cst_19 {dimension_numbers = #tpu.dot_dimension_numbers<[1], [0], [0], [1], [0, 0, 1, 1], [], []>} : vector<8x8xbf16>, vector<8x64xbf16>, vector<8x64xf32> -> vector<8x64xf32>
    %c0_20 = arith.constant 0 : index
    %c64 = arith.constant 64 : index
    %65 = vector.load %arg12[%c0_20, %c64] : memref<16x512xf32, #tpu.memory_space<vmem>>, vector<8x64xf32>
    tpu.vector_store %arg12[%c0_20, %c64], %64 {strides = array<i32>} : memref<16x512xf32, #tpu.memory_space<vmem>>, vector<8x64xf32>,
    %66 = vector.extract_strided_slice %46 {offsets = [8, 0], sizes = [8, 64], strides = [1, 1]} : vector<16x64xbf16> to vector<8x64xbf16>
    %67 = vector.extract_strided_slice %47 {offsets = [8, 0], sizes = [8, 64], strides = [1, 1]} : vector<16x64xbf16> to vector<8x64xbf16>
    %cst_21 = arith.constant dense<0.000000e+00> : vector<8x8xf32>
    %68 = tpu.matmul %66, %67, %cst_21 {dimension_numbers = #tpu.dot_dimension_numbers<[1], [1], [0], [0], [0, 0, 1, 0], [], []>} : vector<8x64xbf16>, vector<8x64xbf16>, vector<8x8xf32> -> vector<8x8xf32>
    %cst_22 = arith.constant dense<0xFF800000> : vector<8xf32>
    %69 = vector.multi_reduction <maximumf>, %68, %cst_22 [1] : vector<8x8xf32> to vector<8xf32>
    %70 = vector.shape_cast %69 : vector<8xf32> to vector<8x1xf32>
    %71 = vector.broadcast %70 : vector<8x1xf32> to vector<8x8xf32>
    %72 = arith.subf %68, %71 : vector<8x8xf32>
    %73 = math.exp %72 : vector<8x8xf32>
    %cst_23 = arith.constant dense<0.000000e+00> : vector<8xf32>
    %74 = vector.multi_reduction <add>, %73, %cst_23 [1] : vector<8x8xf32> to vector<8xf32>
    %75 = vector.shape_cast %74 : vector<8xf32> to vector<8x1xf32>
    %76 = tpu.reciprocal %75 {approx = true} : vector<8x1xf32> -> vector<8x1xf32>
    %77 = vector.broadcast %76 : vector<8x1xf32> to vector<8x8xf32>
    %78 = arith.mulf %73, %77 : vector<8x8xf32>
    %79 = arith.truncf %78 : vector<8x8xf32> to vector<8x8xbf16>
    %80 = vector.extract_strided_slice %48 {offsets = [8, 0], sizes = [8, 64], strides = [1, 1]} : vector<16x64xbf16> to vector<8x64xbf16>
    %cst_24 = arith.constant dense<0.000000e+00> : vector<8x64xf32>
    %81 = tpu.matmul %79, %80, %cst_24 {dimension_numbers = #tpu.dot_dimension_numbers<[1], [0], [0], [1], [0, 0, 1, 1], [], []>} : vector<8x8xbf16>, vector<8x64xbf16>, vector<8x64xf32> -> vector<8x64xf32>
    %c8_25 = arith.constant 8 : index
    %c64_26 = arith.constant 64 : index
    %82 = vector.load %arg12[%c8_25, %c64_26] : memref<16x512xf32, #tpu.memory_space<vmem>>, vector<8x64xf32>
    tpu.vector_store %arg12[%c8_25, %c64_26], %81 {strides = array<i32>} : memref<16x512xf32, #tpu.memory_space<vmem>>, vector<8x64xf32>,
    %83 = vector.extract_strided_slice %8 {offsets = [0, 128], sizes = [16, 64], strides = [1, 1]} : vector<16x1536xbf16> to vector<16x64xbf16>
    %84 = vector.extract_strided_slice %8 {offsets = [0, 640], sizes = [16, 64], strides = [1, 1]} : vector<16x1536xbf16> to vector<16x64xbf16>
    %85 = vector.extract_strided_slice %8 {offsets = [0, 1152], sizes = [16, 64], strides = [1, 1]} : vector<16x1536xbf16> to vector<16x64xbf16>
    %86 = vector.extract_strided_slice %83 {offsets = [0, 0], sizes = [8, 64], strides = [1, 1]} : vector<16x64xbf16> to vector<8x64xbf16>
    %87 = vector.extract_strided_slice %84 {offsets = [0, 0], sizes = [8, 64], strides = [1, 1]} : vector<16x64xbf16> to vector<8x64xbf16>
    %cst_27 = arith.constant dense<0.000000e+00> : vector<8x8xf32>
    %88 = tpu.matmul %86, %87, %cst_27 {dimension_numbers = #tpu.dot_dimension_numbers<[1], [1], [0], [0], [0, 0, 1, 0], [], []>} : vector<8x64xbf16>, vector<8x64xbf16>, vector<8x8xf32> -> vector<8x8xf32>
    %cst_28 = arith.constant dense<0xFF800000> : vector<8xf32>
    %89 = vector.multi_reduction <maximumf>, %88, %cst_28 [1] : vector<8x8xf32> to vector<8xf32>
    %90 = vector.shape_cast %89 : vector<8xf32> to vector<8x1xf32>
    %91 = vector.broadcast %90 : vector<8x1xf32> to vector<8x8xf32>
    %92 = arith.subf %88, %91 : vector<8x8xf32>
    %93 = math.exp %92 : vector<8x8xf32>
    %cst_29 = arith.constant dense<0.000000e+00> : vector<8xf32>
    %94 = vector.multi_reduction <add>, %93, %cst_29 [1] : vector<8x8xf32> to vector<8xf32>
    %95 = vector.shape_cast %94 : vector<8xf32> to vector<8x1xf32>
    %96 = tpu.reciprocal %95 {approx = true} : vector<8x1xf32> -> vector<8x1xf32>
    %97 = vector.broadcast %96 : vector<8x1xf32> to vector<8x8xf32>
    %98 = arith.mulf %93, %97 : vector<8x8xf32>
    %99 = arith.truncf %98 : vector<8x8xf32> to vector<8x8xbf16>
    %100 = vector.extract_strided_slice %85 {offsets = [0, 0], sizes = [8, 64], strides = [1, 1]} : vector<16x64xbf16> to vector<8x64xbf16>
    %cst_30 = arith.constant dense<0.000000e+00> : vector<8x64xf32>
    %101 = tpu.matmul %99, %100, %cst_30 {dimension_numbers = #tpu.dot_dimension_numbers<[1], [0], [0], [1], [0, 0, 1, 1], [], []>} : vector<8x8xbf16>, vector<8x64xbf16>, vector<8x64xf32> -> vector<8x64xf32>
    %c0_31 = arith.constant 0 : index
    %c128 = arith.constant 128 : index
    %102 = vector.load %arg12[%c0_31, %c128] : memref<16x512xf32, #tpu.memory_space<vmem>>, vector<8x64xf32>
    tpu.vector_store %arg12[%c0_31, %c128], %101 {strides = array<i32>} : memref<16x512xf32, #tpu.memory_space<vmem>>, vector<8x64xf32>,
    %103 = vector.extract_strided_slice %83 {offsets = [8, 0], sizes = [8, 64], strides = [1, 1]} : vector<16x64xbf16> to vector<8x64xbf16>
    %104 = vector.extract_strided_slice %84 {offsets = [8, 0], sizes = [8, 64], strides = [1, 1]} : vector<16x64xbf16> to vector<8x64xbf16>
    %cst_32 = arith.constant dense<0.000000e+00> : vector<8x8xf32>
    %105 = tpu.matmul %103, %104, %cst_32 {dimension_numbers = #tpu.dot_dimension_numbers<[1], [1], [0], [0], [0, 0, 1, 0], [], []>} : vector<8x64xbf16>, vector<8x64xbf16>, vector<8x8xf32> -> vector<8x8xf32>
    %cst_33 = arith.constant dense<0xFF800000> : vector<8xf32>
    %106 = vector.multi_reduction <maximumf>, %105, %cst_33 [1] : vector<8x8xf32> to vector<8xf32>
    %107 = vector.shape_cast %106 : vector<8xf32> to vector<8x1xf32>
    %108 = vector.broadcast %107 : vector<8x1xf32> to vector<8x8xf32>
    %109 = arith.subf %105, %108 : vector<8x8xf32>
    %110 = math.exp %109 : vector<8x8xf32>
    %cst_34 = arith.constant dense<0.000000e+00> : vector<8xf32>
    %111 = vector.multi_reduction <add>, %110, %cst_34 [1] : vector<8x8xf32> to vector<8xf32>
    %112 = vector.shape_cast %111 : vector<8xf32> to vector<8x1xf32>
    %113 = tpu.reciprocal %112 {approx = true} : vector<8x1xf32> -> vector<8x1xf32>
    %114 = vector.broadcast %113 : vector<8x1xf32> to vector<8x8xf32>
    %115 = arith.mulf %110, %114 : vector<8x8xf32>
    %116 = arith.truncf %115 : vector<8x8xf32> to vector<8x8xbf16>
    %117 = vector.extract_strided_slice %85 {offsets = [8, 0], sizes = [8, 64], strides = [1, 1]} : vector<16x64xbf16> to vector<8x64xbf16>
    %cst_35 = arith.constant dense<0.000000e+00> : vector<8x64xf32>
    %118 = tpu.matmul %116, %117, %cst_35 {dimension_numbers = #tpu.dot_dimension_numbers<[1], [0], [0], [1], [0, 0, 1, 1], [], []>} : vector<8x8xbf16>, vector<8x64xbf16>, vector<8x64xf32> -> vector<8x64xf32>
    %c8_36 = arith.constant 8 : index
    %c128_37 = arith.constant 128 : index
    %119 = vector.load %arg12[%c8_36, %c128_37] : memref<16x512xf32, #tpu.memory_space<vmem>>, vector<8x64xf32>
    tpu.vector_store %arg12[%c8_36, %c128_37], %118 {strides = array<i32>} : memref<16x512xf32, #tpu.memory_space<vmem>>, vector<8x64xf32>,
    %120 = vector.extract_strided_slice %8 {offsets = [0, 192], sizes = [16, 64], strides = [1, 1]} : vector<16x1536xbf16> to vector<16x64xbf16>
    %121 = vector.extract_strided_slice %8 {offsets = [0, 704], sizes = [16, 64], strides = [1, 1]} : vector<16x1536xbf16> to vector<16x64xbf16>
    %122 = vector.extract_strided_slice %8 {offsets = [0, 1216], sizes = [16, 64], strides = [1, 1]} : vector<16x1536xbf16> to vector<16x64xbf16>
    %123 = vector.extract_strided_slice %120 {offsets = [0, 0], sizes = [8, 64], strides = [1, 1]} : vector<16x64xbf16> to vector<8x64xbf16>
    %124 = vector.extract_strided_slice %121 {offsets = [0, 0], sizes = [8, 64], strides = [1, 1]} : vector<16x64xbf16> to vector<8x64xbf16>
    %cst_38 = arith.constant dense<0.000000e+00> : vector<8x8xf32>
    %125 = tpu.matmul %123, %124, %cst_38 {dimension_numbers = #tpu.dot_dimension_numbers<[1], [1], [0], [0], [0, 0, 1, 0], [], []>} : vector<8x64xbf16>, vector<8x64xbf16>, vector<8x8xf32> -> vector<8x8xf32>
    %cst_39 = arith.constant dense<0xFF800000> : vector<8xf32>
    %126 = vector.multi_reduction <maximumf>, %125, %cst_39 [1] : vector<8x8xf32> to vector<8xf32>
    %127 = vector.shape_cast %126 : vector<8xf32> to vector<8x1xf32>
    %128 = vector.broadcast %127 : vector<8x1xf32> to vector<8x8xf32>
    %129 = arith.subf %125, %128 : vector<8x8xf32>
    %130 = math.exp %129 : vector<8x8xf32>
    %cst_40 = arith.constant dense<0.000000e+00> : vector<8xf32>
    %131 = vector.multi_reduction <add>, %130, %cst_40 [1] : vector<8x8xf32> to vector<8xf32>
    %132 = vector.shape_cast %131 : vector<8xf32> to vector<8x1xf32>
    %133 = tpu.reciprocal %132 {approx = true} : vector<8x1xf32> -> vector<8x1xf32>
    %134 = vector.broadcast %133 : vector<8x1xf32> to vector<8x8xf32>
    %135 = arith.mulf %130, %134 : vector<8x8xf32>
    %136 = arith.truncf %135 : vector<8x8xf32> to vector<8x8xbf16>
    %137 = vector.extract_strided_slice %122 {offsets = [0, 0], sizes = [8, 64], strides = [1, 1]} : vector<16x64xbf16> to vector<8x64xbf16>
    %cst_41 = arith.constant dense<0.000000e+00> : vector<8x64xf32>
    %138 = tpu.matmul %136, %137, %cst_41 {dimension_numbers = #tpu.dot_dimension_numbers<[1], [0], [0], [1], [0, 0, 1, 1], [], []>} : vector<8x8xbf16>, vector<8x64xbf16>, vector<8x64xf32> -> vector<8x64xf32>
    %c0_42 = arith.constant 0 : index
    %c192 = arith.constant 192 : index
    %139 = vector.load %arg12[%c0_42, %c192] : memref<16x512xf32, #tpu.memory_space<vmem>>, vector<8x64xf32>
    tpu.vector_store %arg12[%c0_42, %c192], %138 {strides = array<i32>} : memref<16x512xf32, #tpu.memory_space<vmem>>, vector<8x64xf32>,
    %140 = vector.extract_strided_slice %120 {offsets = [8, 0], sizes = [8, 64], strides = [1, 1]} : vector<16x64xbf16> to vector<8x64xbf16>
    %141 = vector.extract_strided_slice %121 {offsets = [8, 0], sizes = [8, 64], strides = [1, 1]} : vector<16x64xbf16> to vector<8x64xbf16>
    %cst_43 = arith.constant dense<0.000000e+00> : vector<8x8xf32>
    %142 = tpu.matmul %140, %141, %cst_43 {dimension_numbers = #tpu.dot_dimension_numbers<[1], [1], [0], [0], [0, 0, 1, 0], [], []>} : vector<8x64xbf16>, vector<8x64xbf16>, vector<8x8xf32> -> vector<8x8xf32>
    %cst_44 = arith.constant dense<0xFF800000> : vector<8xf32>
    %143 = vector.multi_reduction <maximumf>, %142, %cst_44 [1] : vector<8x8xf32> to vector<8xf32>
    %144 = vector.shape_cast %143 : vector<8xf32> to vector<8x1xf32>
    %145 = vector.broadcast %144 : vector<8x1xf32> to vector<8x8xf32>
    %146 = arith.subf %142, %145 : vector<8x8xf32>
    %147 = math.exp %146 : vector<8x8xf32>
    %cst_45 = arith.constant dense<0.000000e+00> : vector<8xf32>
    %148 = vector.multi_reduction <add>, %147, %cst_45 [1] : vector<8x8xf32> to vector<8xf32>
    %149 = vector.shape_cast %148 : vector<8xf32> to vector<8x1xf32>
    %150 = tpu.reciprocal %149 {approx = true} : vector<8x1xf32> -> vector<8x1xf32>
    %151 = vector.broadcast %150 : vector<8x1xf32> to vector<8x8xf32>
    %152 = arith.mulf %147, %151 : vector<8x8xf32>
    %153 = arith.truncf %152 : vector<8x8xf32> to vector<8x8xbf16>
    %154 = vector.extract_strided_slice %122 {offsets = [8, 0], sizes = [8, 64], strides = [1, 1]} : vector<16x64xbf16> to vector<8x64xbf16>
    %cst_46 = arith.constant dense<0.000000e+00> : vector<8x64xf32>
    %155 = tpu.matmul %153, %154, %cst_46 {dimension_numbers = #tpu.dot_dimension_numbers<[1], [0], [0], [1], [0, 0, 1, 1], [], []>} : vector<8x8xbf16>, vector<8x64xbf16>, vector<8x64xf32> -> vector<8x64xf32>
    %c8_47 = arith.constant 8 : index
    %c192_48 = arith.constant 192 : index
    %156 = vector.load %arg12[%c8_47, %c192_48] : memref<16x512xf32, #tpu.memory_space<vmem>>, vector<8x64xf32>
    tpu.vector_store %arg12[%c8_47, %c192_48], %155 {strides = array<i32>} : memref<16x512xf32, #tpu.memory_space<vmem>>, vector<8x64xf32>,
    %157 = vector.extract_strided_slice %8 {offsets = [0, 256], sizes = [16, 64], strides = [1, 1]} : vector<16x1536xbf16> to vector<16x64xbf16>
    %158 = vector.extract_strided_slice %8 {offsets = [0, 768], sizes = [16, 64], strides = [1, 1]} : vector<16x1536xbf16> to vector<16x64xbf16>
    %159 = vector.extract_strided_slice %8 {offsets = [0, 1280], sizes = [16, 64], strides = [1, 1]} : vector<16x1536xbf16> to vector<16x64xbf16>
    %160 = vector.extract_strided_slice %157 {offsets = [0, 0], sizes = [8, 64], strides = [1, 1]} : vector<16x64xbf16> to vector<8x64xbf16>
    %161 = vector.extract_strided_slice %158 {offsets = [0, 0], sizes = [8, 64], strides = [1, 1]} : vector<16x64xbf16> to vector<8x64xbf16>
    %cst_49 = arith.constant dense<0.000000e+00> : vector<8x8xf32>
    %162 = tpu.matmul %160, %161, %cst_49 {dimension_numbers = #tpu.dot_dimension_numbers<[1], [1], [0], [0], [0, 0, 1, 0], [], []>} : vector<8x64xbf16>, vector<8x64xbf16>, vector<8x8xf32> -> vector<8x8xf32>
    %cst_50 = arith.constant dense<0xFF800000> : vector<8xf32>
    %163 = vector.multi_reduction <maximumf>, %162, %cst_50 [1] : vector<8x8xf32> to vector<8xf32>
    %164 = vector.shape_cast %163 : vector<8xf32> to vector<8x1xf32>
    %165 = vector.broadcast %164 : vector<8x1xf32> to vector<8x8xf32>
    %166 = arith.subf %162, %165 : vector<8x8xf32>
    %167 = math.exp %166 : vector<8x8xf32>
    %cst_51 = arith.constant dense<0.000000e+00> : vector<8xf32>
    %168 = vector.multi_reduction <add>, %167, %cst_51 [1] : vector<8x8xf32> to vector<8xf32>
    %169 = vector.shape_cast %168 : vector<8xf32> to vector<8x1xf32>
    %170 = tpu.reciprocal %169 {approx = true} : vector<8x1xf32> -> vector<8x1xf32>
    %171 = vector.broadcast %170 : vector<8x1xf32> to vector<8x8xf32>
    %172 = arith.mulf %167, %171 : vector<8x8xf32>
    %173 = arith.truncf %172 : vector<8x8xf32> to vector<8x8xbf16>
    %174 = vector.extract_strided_slice %159 {offsets = [0, 0], sizes = [8, 64], strides = [1, 1]} : vector<16x64xbf16> to vector<8x64xbf16>
    %cst_52 = arith.constant dense<0.000000e+00> : vector<8x64xf32>
    %175 = tpu.matmul %173, %174, %cst_52 {dimension_numbers = #tpu.dot_dimension_numbers<[1], [0], [0], [1], [0, 0, 1, 1], [], []>} : vector<8x8xbf16>, vector<8x64xbf16>, vector<8x64xf32> -> vector<8x64xf32>
    %c0_53 = arith.constant 0 : index
    %c256 = arith.constant 256 : index
    %176 = vector.load %arg12[%c0_53, %c256] : memref<16x512xf32, #tpu.memory_space<vmem>>, vector<8x64xf32>
    tpu.vector_store %arg12[%c0_53, %c256], %175 {strides = array<i32>} : memref<16x512xf32, #tpu.memory_space<vmem>>, vector<8x64xf32>,
    %177 = vector.extract_strided_slice %157 {offsets = [8, 0], sizes = [8, 64], strides = [1, 1]} : vector<16x64xbf16> to vector<8x64xbf16>
    %178 = vector.extract_strided_slice %158 {offsets = [8, 0], sizes = [8, 64], strides = [1, 1]} : vector<16x64xbf16> to vector<8x64xbf16>
    %cst_54 = arith.constant dense<0.000000e+00> : vector<8x8xf32>
    %179 = tpu.matmul %177, %178, %cst_54 {dimension_numbers = #tpu.dot_dimension_numbers<[1], [1], [0], [0], [0, 0, 1, 0], [], []>} : vector<8x64xbf16>, vector<8x64xbf16>, vector<8x8xf32> -> vector<8x8xf32>
    %cst_55 = arith.constant dense<0xFF800000> : vector<8xf32>
    %180 = vector.multi_reduction <maximumf>, %179, %cst_55 [1] : vector<8x8xf32> to vector<8xf32>
    %181 = vector.shape_cast %180 : vector<8xf32> to vector<8x1xf32>
    %182 = vector.broadcast %181 : vector<8x1xf32> to vector<8x8xf32>
    %183 = arith.subf %179, %182 : vector<8x8xf32>
    %184 = math.exp %183 : vector<8x8xf32>
    %cst_56 = arith.constant dense<0.000000e+00> : vector<8xf32>
    %185 = vector.multi_reduction <add>, %184, %cst_56 [1] : vector<8x8xf32> to vector<8xf32>
    %186 = vector.shape_cast %185 : vector<8xf32> to vector<8x1xf32>
    %187 = tpu.reciprocal %186 {approx = true} : vector<8x1xf32> -> vector<8x1xf32>
    %188 = vector.broadcast %187 : vector<8x1xf32> to vector<8x8xf32>
    %189 = arith.mulf %184, %188 : vector<8x8xf32>
    %190 = arith.truncf %189 : vector<8x8xf32> to vector<8x8xbf16>
    %191 = vector.extract_strided_slice %159 {offsets = [8, 0], sizes = [8, 64], strides = [1, 1]} : vector<16x64xbf16> to vector<8x64xbf16>
    %cst_57 = arith.constant dense<0.000000e+00> : vector<8x64xf32>
    %192 = tpu.matmul %190, %191, %cst_57 {dimension_numbers = #tpu.dot_dimension_numbers<[1], [0], [0], [1], [0, 0, 1, 1], [], []>} : vector<8x8xbf16>, vector<8x64xbf16>, vector<8x64xf32> -> vector<8x64xf32>
    %c8_58 = arith.constant 8 : index
    %c256_59 = arith.constant 256 : index
    %193 = vector.load %arg12[%c8_58, %c256_59] : memref<16x512xf32, #tpu.memory_space<vmem>>, vector<8x64xf32>
    tpu.vector_store %arg12[%c8_58, %c256_59], %192 {strides = array<i32>} : memref<16x512xf32, #tpu.memory_space<vmem>>, vector<8x64xf32>,
    %194 = vector.extract_strided_slice %8 {offsets = [0, 320], sizes = [16, 64], strides = [1, 1]} : vector<16x1536xbf16> to vector<16x64xbf16>
    %195 = vector.extract_strided_slice %8 {offsets = [0, 832], sizes = [16, 64], strides = [1, 1]} : vector<16x1536xbf16> to vector<16x64xbf16>
    %196 = vector.extract_strided_slice %8 {offsets = [0, 1344], sizes = [16, 64], strides = [1, 1]} : vector<16x1536xbf16> to vector<16x64xbf16>
    %197 = vector.extract_strided_slice %194 {offsets = [0, 0], sizes = [8, 64], strides = [1, 1]} : vector<16x64xbf16> to vector<8x64xbf16>
    %198 = vector.extract_strided_slice %195 {offsets = [0, 0], sizes = [8, 64], strides = [1, 1]} : vector<16x64xbf16> to vector<8x64xbf16>
    %cst_60 = arith.constant dense<0.000000e+00> : vector<8x8xf32>
    %199 = tpu.matmul %197, %198, %cst_60 {dimension_numbers = #tpu.dot_dimension_numbers<[1], [1], [0], [0], [0, 0, 1, 0], [], []>} : vector<8x64xbf16>, vector<8x64xbf16>, vector<8x8xf32> -> vector<8x8xf32>
    %cst_61 = arith.constant dense<0xFF800000> : vector<8xf32>
    %200 = vector.multi_reduction <maximumf>, %199, %cst_61 [1] : vector<8x8xf32> to vector<8xf32>
    %201 = vector.shape_cast %200 : vector<8xf32> to vector<8x1xf32>
    %202 = vector.broadcast %201 : vector<8x1xf32> to vector<8x8xf32>
    %203 = arith.subf %199, %202 : vector<8x8xf32>
    %204 = math.exp %203 : vector<8x8xf32>
    %cst_62 = arith.constant dense<0.000000e+00> : vector<8xf32>
    %205 = vector.multi_reduction <add>, %204, %cst_62 [1] : vector<8x8xf32> to vector<8xf32>
    %206 = vector.shape_cast %205 : vector<8xf32> to vector<8x1xf32>
    %207 = tpu.reciprocal %206 {approx = true} : vector<8x1xf32> -> vector<8x1xf32>
    %208 = vector.broadcast %207 : vector<8x1xf32> to vector<8x8xf32>
    %209 = arith.mulf %204, %208 : vector<8x8xf32>
    %210 = arith.truncf %209 : vector<8x8xf32> to vector<8x8xbf16>
    %211 = vector.extract_strided_slice %196 {offsets = [0, 0], sizes = [8, 64], strides = [1, 1]} : vector<16x64xbf16> to vector<8x64xbf16>
    %cst_63 = arith.constant dense<0.000000e+00> : vector<8x64xf32>
    %212 = tpu.matmul %210, %211, %cst_63 {dimension_numbers = #tpu.dot_dimension_numbers<[1], [0], [0], [1], [0, 0, 1, 1], [], []>} : vector<8x8xbf16>, vector<8x64xbf16>, vector<8x64xf32> -> vector<8x64xf32>
    %c0_64 = arith.constant 0 : index
    %c320 = arith.constant 320 : index
    %213 = vector.load %arg12[%c0_64, %c320] : memref<16x512xf32, #tpu.memory_space<vmem>>, vector<8x64xf32>
    tpu.vector_store %arg12[%c0_64, %c320], %212 {strides = array<i32>} : memref<16x512xf32, #tpu.memory_space<vmem>>, vector<8x64xf32>,
    %214 = vector.extract_strided_slice %194 {offsets = [8, 0], sizes = [8, 64], strides = [1, 1]} : vector<16x64xbf16> to vector<8x64xbf16>
    %215 = vector.extract_strided_slice %195 {offsets = [8, 0], sizes = [8, 64], strides = [1, 1]} : vector<16x64xbf16> to vector<8x64xbf16>
    %cst_65 = arith.constant dense<0.000000e+00> : vector<8x8xf32>
    %216 = tpu.matmul %214, %215, %cst_65 {dimension_numbers = #tpu.dot_dimension_numbers<[1], [1], [0], [0], [0, 0, 1, 0], [], []>} : vector<8x64xbf16>, vector<8x64xbf16>, vector<8x8xf32> -> vector<8x8xf32>
    %cst_66 = arith.constant dense<0xFF800000> : vector<8xf32>
    %217 = vector.multi_reduction <maximumf>, %216, %cst_66 [1] : vector<8x8xf32> to vector<8xf32>
    %218 = vector.shape_cast %217 : vector<8xf32> to vector<8x1xf32>
    %219 = vector.broadcast %218 : vector<8x1xf32> to vector<8x8xf32>
    %220 = arith.subf %216, %219 : vector<8x8xf32>
    %221 = math.exp %220 : vector<8x8xf32>
    %cst_67 = arith.constant dense<0.000000e+00> : vector<8xf32>
    %222 = vector.multi_reduction <add>, %221, %cst_67 [1] : vector<8x8xf32> to vector<8xf32>
    %223 = vector.shape_cast %222 : vector<8xf32> to vector<8x1xf32>
    %224 = tpu.reciprocal %223 {approx = true} : vector<8x1xf32> -> vector<8x1xf32>
    %225 = vector.broadcast %224 : vector<8x1xf32> to vector<8x8xf32>
    %226 = arith.mulf %221, %225 : vector<8x8xf32>
    %227 = arith.truncf %226 : vector<8x8xf32> to vector<8x8xbf16>
    %228 = vector.extract_strided_slice %196 {offsets = [8, 0], sizes = [8, 64], strides = [1, 1]} : vector<16x64xbf16> to vector<8x64xbf16>
    %cst_68 = arith.constant dense<0.000000e+00> : vector<8x64xf32>
    %229 = tpu.matmul %227, %228, %cst_68 {dimension_numbers = #tpu.dot_dimension_numbers<[1], [0], [0], [1], [0, 0, 1, 1], [], []>} : vector<8x8xbf16>, vector<8x64xbf16>, vector<8x64xf32> -> vector<8x64xf32>
    %c8_69 = arith.constant 8 : index
    %c320_70 = arith.constant 320 : index
    %230 = vector.load %arg12[%c8_69, %c320_70] : memref<16x512xf32, #tpu.memory_space<vmem>>, vector<8x64xf32>
    tpu.vector_store %arg12[%c8_69, %c320_70], %229 {strides = array<i32>} : memref<16x512xf32, #tpu.memory_space<vmem>>, vector<8x64xf32>,
    %231 = vector.extract_strided_slice %8 {offsets = [0, 384], sizes = [16, 64], strides = [1, 1]} : vector<16x1536xbf16> to vector<16x64xbf16>
    %232 = vector.extract_strided_slice %8 {offsets = [0, 896], sizes = [16, 64], strides = [1, 1]} : vector<16x1536xbf16> to vector<16x64xbf16>
    %233 = vector.extract_strided_slice %8 {offsets = [0, 1408], sizes = [16, 64], strides = [1, 1]} : vector<16x1536xbf16> to vector<16x64xbf16>
    %234 = vector.extract_strided_slice %231 {offsets = [0, 0], sizes = [8, 64], strides = [1, 1]} : vector<16x64xbf16> to vector<8x64xbf16>
    %235 = vector.extract_strided_slice %232 {offsets = [0, 0], sizes = [8, 64], strides = [1, 1]} : vector<16x64xbf16> to vector<8x64xbf16>
    %cst_71 = arith.constant dense<0.000000e+00> : vector<8x8xf32>
    %236 = tpu.matmul %234, %235, %cst_71 {dimension_numbers = #tpu.dot_dimension_numbers<[1], [1], [0], [0], [0, 0, 1, 0], [], []>} : vector<8x64xbf16>, vector<8x64xbf16>, vector<8x8xf32> -> vector<8x8xf32>
    %cst_72 = arith.constant dense<0xFF800000> : vector<8xf32>
    %237 = vector.multi_reduction <maximumf>, %236, %cst_72 [1] : vector<8x8xf32> to vector<8xf32>
    %238 = vector.shape_cast %237 : vector<8xf32> to vector<8x1xf32>
    %239 = vector.broadcast %238 : vector<8x1xf32> to vector<8x8xf32>
    %240 = arith.subf %236, %239 : vector<8x8xf32>
    %241 = math.exp %240 : vector<8x8xf32>
    %cst_73 = arith.constant dense<0.000000e+00> : vector<8xf32>
    %242 = vector.multi_reduction <add>, %241, %cst_73 [1] : vector<8x8xf32> to vector<8xf32>
    %243 = vector.shape_cast %242 : vector<8xf32> to vector<8x1xf32>
    %244 = tpu.reciprocal %243 {approx = true} : vector<8x1xf32> -> vector<8x1xf32>
    %245 = vector.broadcast %244 : vector<8x1xf32> to vector<8x8xf32>
    %246 = arith.mulf %241, %245 : vector<8x8xf32>
    %247 = arith.truncf %246 : vector<8x8xf32> to vector<8x8xbf16>
    %248 = vector.extract_strided_slice %233 {offsets = [0, 0], sizes = [8, 64], strides = [1, 1]} : vector<16x64xbf16> to vector<8x64xbf16>
    %cst_74 = arith.constant dense<0.000000e+00> : vector<8x64xf32>
    %249 = tpu.matmul %247, %248, %cst_74 {dimension_numbers = #tpu.dot_dimension_numbers<[1], [0], [0], [1], [0, 0, 1, 1], [], []>} : vector<8x8xbf16>, vector<8x64xbf16>, vector<8x64xf32> -> vector<8x64xf32>
    %c0_75 = arith.constant 0 : index
    %c384 = arith.constant 384 : index
    %250 = vector.load %arg12[%c0_75, %c384] : memref<16x512xf32, #tpu.memory_space<vmem>>, vector<8x64xf32>
    tpu.vector_store %arg12[%c0_75, %c384], %249 {strides = array<i32>} : memref<16x512xf32, #tpu.memory_space<vmem>>, vector<8x64xf32>,
    %251 = vector.extract_strided_slice %231 {offsets = [8, 0], sizes = [8, 64], strides = [1, 1]} : vector<16x64xbf16> to vector<8x64xbf16>
    %252 = vector.extract_strided_slice %232 {offsets = [8, 0], sizes = [8, 64], strides = [1, 1]} : vector<16x64xbf16> to vector<8x64xbf16>
    %cst_76 = arith.constant dense<0.000000e+00> : vector<8x8xf32>
    %253 = tpu.matmul %251, %252, %cst_76 {dimension_numbers = #tpu.dot_dimension_numbers<[1], [1], [0], [0], [0, 0, 1, 0], [], []>} : vector<8x64xbf16>, vector<8x64xbf16>, vector<8x8xf32> -> vector<8x8xf32>
    %cst_77 = arith.constant dense<0xFF800000> : vector<8xf32>
    %254 = vector.multi_reduction <maximumf>, %253, %cst_77 [1] : vector<8x8xf32> to vector<8xf32>
    %255 = vector.shape_cast %254 : vector<8xf32> to vector<8x1xf32>
    %256 = vector.broadcast %255 : vector<8x1xf32> to vector<8x8xf32>
    %257 = arith.subf %253, %256 : vector<8x8xf32>
    %258 = math.exp %257 : vector<8x8xf32>
    %cst_78 = arith.constant dense<0.000000e+00> : vector<8xf32>
    %259 = vector.multi_reduction <add>, %258, %cst_78 [1] : vector<8x8xf32> to vector<8xf32>
    %260 = vector.shape_cast %259 : vector<8xf32> to vector<8x1xf32>
    %261 = tpu.reciprocal %260 {approx = true} : vector<8x1xf32> -> vector<8x1xf32>
    %262 = vector.broadcast %261 : vector<8x1xf32> to vector<8x8xf32>
    %263 = arith.mulf %258, %262 : vector<8x8xf32>
    %264 = arith.truncf %263 : vector<8x8xf32> to vector<8x8xbf16>
    %265 = vector.extract_strided_slice %233 {offsets = [8, 0], sizes = [8, 64], strides = [1, 1]} : vector<16x64xbf16> to vector<8x64xbf16>
    %cst_79 = arith.constant dense<0.000000e+00> : vector<8x64xf32>
    %266 = tpu.matmul %264, %265, %cst_79 {dimension_numbers = #tpu.dot_dimension_numbers<[1], [0], [0], [1], [0, 0, 1, 1], [], []>} : vector<8x8xbf16>, vector<8x64xbf16>, vector<8x64xf32> -> vector<8x64xf32>
    %c8_80 = arith.constant 8 : index
    %c384_81 = arith.constant 384 : index
    %267 = vector.load %arg12[%c8_80, %c384_81] : memref<16x512xf32, #tpu.memory_space<vmem>>, vector<8x64xf32>
    tpu.vector_store %arg12[%c8_80, %c384_81], %266 {strides = array<i32>} : memref<16x512xf32, #tpu.memory_space<vmem>>, vector<8x64xf32>,
    %268 = vector.extract_strided_slice %8 {offsets = [0, 448], sizes = [16, 64], strides = [1, 1]} : vector<16x1536xbf16> to vector<16x64xbf16>
    %269 = vector.extract_strided_slice %8 {offsets = [0, 960], sizes = [16, 64], strides = [1, 1]} : vector<16x1536xbf16> to vector<16x64xbf16>
    %270 = vector.extract_strided_slice %8 {offsets = [0, 1472], sizes = [16, 64], strides = [1, 1]} : vector<16x1536xbf16> to vector<16x64xbf16>
    %271 = vector.extract_strided_slice %268 {offsets = [0, 0], sizes = [8, 64], strides = [1, 1]} : vector<16x64xbf16> to vector<8x64xbf16>
    %272 = vector.extract_strided_slice %269 {offsets = [0, 0], sizes = [8, 64], strides = [1, 1]} : vector<16x64xbf16> to vector<8x64xbf16>
    %cst_82 = arith.constant dense<0.000000e+00> : vector<8x8xf32>
    %273 = tpu.matmul %271, %272, %cst_82 {dimension_numbers = #tpu.dot_dimension_numbers<[1], [1], [0], [0], [0, 0, 1, 0], [], []>} : vector<8x64xbf16>, vector<8x64xbf16>, vector<8x8xf32> -> vector<8x8xf32>
    %cst_83 = arith.constant dense<0xFF800000> : vector<8xf32>
    %274 = vector.multi_reduction <maximumf>, %273, %cst_83 [1] : vector<8x8xf32> to vector<8xf32>
    %275 = vector.shape_cast %274 : vector<8xf32> to vector<8x1xf32>
    %276 = vector.broadcast %275 : vector<8x1xf32> to vector<8x8xf32>
    %277 = arith.subf %273, %276 : vector<8x8xf32>
    %278 = math.exp %277 : vector<8x8xf32>
    %cst_84 = arith.constant dense<0.000000e+00> : vector<8xf32>
    %279 = vector.multi_reduction <add>, %278, %cst_84 [1] : vector<8x8xf32> to vector<8xf32>
    %280 = vector.shape_cast %279 : vector<8xf32> to vector<8x1xf32>
    %281 = tpu.reciprocal %280 {approx = true} : vector<8x1xf32> -> vector<8x1xf32>
    %282 = vector.broadcast %281 : vector<8x1xf32> to vector<8x8xf32>
    %283 = arith.mulf %278, %282 : vector<8x8xf32>
    %284 = arith.truncf %283 : vector<8x8xf32> to vector<8x8xbf16>
    %285 = vector.extract_strided_slice %270 {offsets = [0, 0], sizes = [8, 64], strides = [1, 1]} : vector<16x64xbf16> to vector<8x64xbf16>
    %cst_85 = arith.constant dense<0.000000e+00> : vector<8x64xf32>
    %286 = tpu.matmul %284, %285, %cst_85 {dimension_numbers = #tpu.dot_dimension_numbers<[1], [0], [0], [1], [0, 0, 1, 1], [], []>} : vector<8x8xbf16>, vector<8x64xbf16>, vector<8x64xf32> -> vector<8x64xf32>
    %c0_86 = arith.constant 0 : index
    %c448 = arith.constant 448 : index
    %287 = vector.load %arg12[%c0_86, %c448] : memref<16x512xf32, #tpu.memory_space<vmem>>, vector<8x64xf32>
    tpu.vector_store %arg12[%c0_86, %c448], %286 {strides = array<i32>} : memref<16x512xf32, #tpu.memory_space<vmem>>, vector<8x64xf32>,
    %288 = vector.extract_strided_slice %268 {offsets = [8, 0], sizes = [8, 64], strides = [1, 1]} : vector<16x64xbf16> to vector<8x64xbf16>
    %289 = vector.extract_strided_slice %269 {offsets = [8, 0], sizes = [8, 64], strides = [1, 1]} : vector<16x64xbf16> to vector<8x64xbf16>
    %cst_87 = arith.constant dense<0.000000e+00> : vector<8x8xf32>
    %290 = tpu.matmul %288, %289, %cst_87 {dimension_numbers = #tpu.dot_dimension_numbers<[1], [1], [0], [0], [0, 0, 1, 0], [], []>} : vector<8x64xbf16>, vector<8x64xbf16>, vector<8x8xf32> -> vector<8x8xf32>
    %cst_88 = arith.constant dense<0xFF800000> : vector<8xf32>
    %291 = vector.multi_reduction <maximumf>, %290, %cst_88 [1] : vector<8x8xf32> to vector<8xf32>
    %292 = vector.shape_cast %291 : vector<8xf32> to vector<8x1xf32>
    %293 = vector.broadcast %292 : vector<8x1xf32> to vector<8x8xf32>
    %294 = arith.subf %290, %293 : vector<8x8xf32>
    %295 = math.exp %294 : vector<8x8xf32>
    %cst_89 = arith.constant dense<0.000000e+00> : vector<8xf32>
    %296 = vector.multi_reduction <add>, %295, %cst_89 [1] : vector<8x8xf32> to vector<8xf32>
    %297 = vector.shape_cast %296 : vector<8xf32> to vector<8x1xf32>
    %298 = tpu.reciprocal %297 {approx = true} : vector<8x1xf32> -> vector<8x1xf32>
    %299 = vector.broadcast %298 : vector<8x1xf32> to vector<8x8xf32>
    %300 = arith.mulf %295, %299 : vector<8x8xf32>
    %301 = arith.truncf %300 : vector<8x8xf32> to vector<8x8xbf16>
    %302 = vector.extract_strided_slice %270 {offsets = [8, 0], sizes = [8, 64], strides = [1, 1]} : vector<16x64xbf16> to vector<8x64xbf16>
    %cst_90 = arith.constant dense<0.000000e+00> : vector<8x64xf32>
    %303 = tpu.matmul %301, %302, %cst_90 {dimension_numbers = #tpu.dot_dimension_numbers<[1], [0], [0], [1], [0, 0, 1, 1], [], []>} : vector<8x8xbf16>, vector<8x64xbf16>, vector<8x64xf32> -> vector<8x64xf32>
    %c8_91 = arith.constant 8 : index
    %c448_92 = arith.constant 448 : index
    %304 = vector.load %arg12[%c8_91, %c448_92] : memref<16x512xf32, #tpu.memory_space<vmem>>, vector<8x64xf32>
    tpu.vector_store %arg12[%c8_91, %c448_92], %303 {strides = array<i32>} : memref<16x512xf32, #tpu.memory_space<vmem>>, vector<8x64xf32>,
    %c0_93 = arith.constant 0 : index
    %c0_94 = arith.constant 0 : index
    %305 = vector.load %arg12[%c0_93, %c0_94] : memref<16x512xf32, #tpu.memory_space<vmem>>, vector<16x512xf32>
    %306 = arith.truncf %305 : vector<16x512xf32> to vector<16x512xbf16>
    %c0_95 = arith.constant 0 : index
    %c0_96 = arith.constant 0 : index
    %c0_97 = arith.constant 0 : index
    %307 = vector.load %arg6[%c0_95, %c0_96, %c0_97] : memref<1x512x512xbf16, #tpu.memory_space<vmem>>, vector<1x512x512xbf16>
    %308 = vector.shape_cast %307 : vector<1x512x512xbf16> to vector<512x512xbf16>
    %cst_98 = arith.constant dense<0.000000e+00> : vector<16x512xf32>
    %309 = tpu.matmul %306, %308, %cst_98 {dimension_numbers = #tpu.dot_dimension_numbers<[1], [0], [0], [1], [0, 0, 1, 1], [], []>} : vector<16x512xbf16>, vector<512x512xbf16>, vector<16x512xf32> -> vector<16x512xf32>
    %c0_99 = arith.constant 0 : index
    %c0_100 = arith.constant 0 : index
    %310 = vector.load %arg11[%c0_99, %c0_100] : memref<16x512xf32, #tpu.memory_space<vmem>>, vector<16x512xf32>
    %311 = arith.addf %310, %309 : vector<16x512xf32>
    %c0_101 = arith.constant 0 : index
    %c0_102 = arith.constant 0 : index
    %c0_103 = arith.constant 0 : index
    %312 = vector.load %arg7[%c0_101, %c0_102, %c0_103] : memref<1x1x512xf32, #tpu.memory_space<vmem>>, vector<1x1x512xf32>
    %313 = vector.shape_cast %312 : vector<1x1x512xf32> to vector<1x512xf32>
    %314 = vector.broadcast %313 : vector<1x512xf32> to vector<16x512xf32>
    %315 = arith.addf %311, %314 : vector<16x512xf32>
    %c0_104 = arith.constant 0 : index
    %c0_105 = arith.constant 0 : index
    %316 = vector.load %arg11[%c0_104, %c0_105] : memref<16x512xf32, #tpu.memory_space<vmem>>, vector<16x512xf32>
    tpu.vector_store %arg11[%c0_104, %c0_105], %315 {strides = array<i32>} : memref<16x512xf32, #tpu.memory_space<vmem>>, vector<16x512xf32>,
    %c1_i32 = arith.constant 1 : i32
    %317 = arith.cmpi eq, %arg1, %c1_i32 : i32
    %318 = arith.extui %317 : i1 to i32
    %c0_i32_106 = arith.constant 0 : i32
    %319 = arith.cmpi ne, %318, %c0_i32_106 : i32
    scf.if %319 {
      %c0_107 = arith.constant 0 : index
      %c0_108 = arith.constant 0 : index
      %320 = vector.load %arg11[%c0_107, %c0_108] : memref<16x512xf32, #tpu.memory_space<vmem>>, vector<16x512xf32>
      %321 = vector.extract_strided_slice %320 {offsets = [0, 0], sizes = [8, 512], strides = [1, 1]} : vector<16x512xf32> to vector<8x512xf32>
      %cst_109 = arith.constant dense<0.000000e+00> : vector<512xf32>
      %322 = vector.multi_reduction <add>, %321, %cst_109 [0] : vector<8x512xf32> to vector<512xf32>
      %323 = vector.shape_cast %322 : vector<512xf32> to vector<1x512xf32>
      %cst_110 = arith.constant 1.250000e-01 : f32
      %324 = vector.broadcast %cst_110 : f32 to vector<1x512xf32>
      %325 = arith.mulf %323, %324 : vector<1x512xf32>
      %326 = arith.truncf %325 : vector<1x512xf32> to vector<1x512xbf16>
      %c0_111 = arith.constant 0 : index
      %c0_112 = arith.constant 0 : index
      %327 = vector.load %arg8[%c0_111, %c0_112] : memref<512x128xbf16, #tpu.memory_space<vmem>>, vector<512x128xbf16>
      %cst_113 = arith.constant dense<0.000000e+00> : vector<1x128xf32>
      %328 = tpu.matmul %326, %327, %cst_113 {dimension_numbers = #tpu.dot_dimension_numbers<[1], [0], [0], [1], [0, 0, 1, 1], [], []>} : vector<1x512xbf16>, vector<512x128xbf16>, vector<1x128xf32> -> vector<1x128xf32>
      %c0_114 = arith.constant 0 : index
      %c0_115 = arith.constant 0 : index
      %329 = vector.load %arg9[%c0_114, %c0_115] : memref<1x128xf32, #tpu.memory_space<vmem>>, vector<1x128xf32>
      %330 = arith.addf %328, %329 : vector<1x128xf32>
      %c0_116 = arith.constant 0 : index
      %c0_117 = arith.constant 0 : index
      %c0_118 = arith.constant 0 : index
      %331 = vector.load %arg10[%c0_116, %c0_117, %c0_118] : memref<2x1x128xf32, #tpu.memory_space<vmem>>, vector<1x1x128xf32>
      %332 = vector.shape_cast %331 : vector<1x1x128xf32> to vector<1x128xf32>
      %333 = vector.shape_cast %330 : vector<1x128xf32> to vector<1x1x128xf32>
      tpu.vector_store %arg10[%c0_116, %c0_117, %c0_118], %333 {strides = array<i32>} : memref<2x1x128xf32, #tpu.memory_space<vmem>>, vector<1x1x128xf32>,
      %334 = vector.extract_strided_slice %320 {offsets = [8, 0], sizes = [8, 512], strides = [1, 1]} : vector<16x512xf32> to vector<8x512xf32>
      %cst_119 = arith.constant dense<0.000000e+00> : vector<512xf32>
      %335 = vector.multi_reduction <add>, %334, %cst_119 [0] : vector<8x512xf32> to vector<512xf32>
      %336 = vector.shape_cast %335 : vector<512xf32> to vector<1x512xf32>
      %cst_120 = arith.constant 1.250000e-01 : f32
      %337 = vector.broadcast %cst_120 : f32 to vector<1x512xf32>
      %338 = arith.mulf %336, %337 : vector<1x512xf32>
      %339 = arith.truncf %338 : vector<1x512xf32> to vector<1x512xbf16>
      %c0_121 = arith.constant 0 : index
      %c0_122 = arith.constant 0 : index
      %340 = vector.load %arg8[%c0_121, %c0_122] : memref<512x128xbf16, #tpu.memory_space<vmem>>, vector<512x128xbf16>
      %cst_123 = arith.constant dense<0.000000e+00> : vector<1x128xf32>
      %341 = tpu.matmul %339, %340, %cst_123 {dimension_numbers = #tpu.dot_dimension_numbers<[1], [0], [0], [1], [0, 0, 1, 1], [], []>} : vector<1x512xbf16>, vector<512x128xbf16>, vector<1x128xf32> -> vector<1x128xf32>
      %c0_124 = arith.constant 0 : index
      %c0_125 = arith.constant 0 : index
      %342 = vector.load %arg9[%c0_124, %c0_125] : memref<1x128xf32, #tpu.memory_space<vmem>>, vector<1x128xf32>
      %343 = arith.addf %341, %342 : vector<1x128xf32>
      %c1 = arith.constant 1 : index
      %c0_126 = arith.constant 0 : index
      %c0_127 = arith.constant 0 : index
      %344 = vector.load %arg10[%c1, %c0_126, %c0_127] : memref<2x1x128xf32, #tpu.memory_space<vmem>>, vector<1x1x128xf32>
      %345 = vector.shape_cast %344 : vector<1x1x128xf32> to vector<1x128xf32>
      %346 = vector.shape_cast %343 : vector<1x128xf32> to vector<1x1x128xf32>
      tpu.vector_store %arg10[%c1, %c0_126, %c0_127], %346 {strides = array<i32>} : memref<2x1x128xf32, #tpu.memory_space<vmem>>, vector<1x1x128xf32>,
    } else {
    }
    return
  }
  func.func @transform_0(%arg0: i32, %arg1: i32) -> (i32, i32) {
    %c0_i32 = arith.constant 0 : i32
    %c0_i32_0 = arith.constant 0 : i32
    return %arg0, %c0_i32 : i32, i32
  }
  func.func @transform_1(%arg0: i32, %arg1: i32) -> (i32, i32) {
    %c0_i32 = arith.constant 0 : i32
    %c0_i32_0 = arith.constant 0 : i32
    %c0_i32_1 = arith.constant 0 : i32
    return %c0_i32, %c0_i32_0 : i32, i32
  }
  func.func @transform_2(%arg0: i32, %arg1: i32) -> (i32, i32) {
    %c0_i32 = arith.constant 0 : i32
    %c0_i32_0 = arith.constant 0 : i32
    %c0_i32_1 = arith.constant 0 : i32
    return %c0_i32, %c0_i32_0 : i32, i32
  }
  func.func @transform_3(%arg0: i32, %arg1: i32) -> (i32, i32, i32) {
    %c0_i32 = arith.constant 0 : i32
    %c0_i32_0 = arith.constant 0 : i32
    %c0_i32_1 = arith.constant 0 : i32
    return %arg1, %c0_i32, %c0_i32_0 : i32, i32, i32
  }
  func.func @transform_4(%arg0: i32, %arg1: i32) -> (i32, i32, i32) {
    %c0_i32 = arith.constant 0 : i32
    %c0_i32_0 = arith.constant 0 : i32
    %c0_i32_1 = arith.constant 0 : i32
    return %arg1, %c0_i32, %c0_i32_0 : i32, i32, i32
  }
  func.func @transform_5(%arg0: i32, %arg1: i32) -> (i32, i32, i32) {
    %c0_i32 = arith.constant 0 : i32
    %c0_i32_0 = arith.constant 0 : i32
    %c0_i32_1 = arith.constant 0 : i32
    return %arg1, %c0_i32, %c0_i32_0 : i32, i32, i32
  }
  func.func @transform_6(%arg0: i32, %arg1: i32) -> (i32, i32) {
    %c0_i32 = arith.constant 0 : i32
    %c0_i32_0 = arith.constant 0 : i32
    %c0_i32_1 = arith.constant 0 : i32
    return %c0_i32, %c0_i32_0 : i32, i32
  }
  func.func @transform_7(%arg0: i32, %arg1: i32) -> (i32, i32) {
    %c0_i32 = arith.constant 0 : i32
    %c0_i32_0 = arith.constant 0 : i32
    %c0_i32_1 = arith.constant 0 : i32
    return %c0_i32, %c0_i32_0 : i32, i32
  }
  func.func @transform_8(%arg0: i32, %arg1: i32) -> (i32, i32, i32) {
    %c0_i32 = arith.constant 0 : i32
    %c0_i32_0 = arith.constant 0 : i32
    %c0_i32_1 = arith.constant 0 : i32
    return %arg0, %c0_i32, %c0_i32_0 : i32, i32, i32
  }
}

</mosaic_0001>

<bundles_post_ra>
// kernel: tpu_custom_call.1
= control target key start
LH: loop header
LB: loop body
LE: loop exit
PB: predicated region body
PF: predicated region fallthrough
CT: control target
= control target key end

     0   :  { %s12830_s0 = inlined_call_operand.hbm [shape: bf16[32,256], index: 0, kind: input, shape index: {}]   ;;  %s12831_s1 = inlined_call_operand.hbm [shape: bf16[256,512], index: 1, kind: input, shape index: {}]   ;;  %s12832_s2 = inlined_call_operand.hbm [shape: f32[1,512], index: 2, kind: input, shape index: {}]   ;;  %s12833_s3 = inlined_call_operand.hbm [shape: bf16[2,512,1536], index: 3, kind: input, shape index: {}]   ;;  %s12834_s4 = inlined_call_operand.hbm [shape: bf16[2,512,512], index: 4, kind: input, shape index: {}]   ;;  %s12835_s5 = inlined_call_operand.hbm [shape: f32[2,1,512], index: 5, kind: input, shape index: {}]   ;;  %s12836_s6 = inlined_call_operand.hbm [shape: bf16[512,128], index: 6, kind: input, shape index: {}]   ;;  %s12837_s7 = inlined_call_operand.hbm [shape: f32[1,128], index: 7, kind: input, shape index: {}]   ;;  %s12838_s8 = inlined_call_operand.hbm [shape: f32[4,1,128], index: 8, kind: output, shape index: {}]  }
   0x1   :  { %12851 = sst [smem:[#allocation37_spill]] %s12830_s0 }
   0x2   :  { %12852 = sst [smem:[#allocation38_spill]] %s12831_s1 }
   0x3   :  { %12853 = sst [smem:[#allocation39_spill]] %s12832_s2 }
   0x4   :  { %12854 = sst [smem:[#allocation40_spill]] %s12833_s3 }
   0x5   :  { %12855 = sst [smem:[#allocation41_spill]] %s12836_s6 }
   0x6   :  { %12856 = sst [smem:[#allocation42_spill]] %s12837_s7 }
   0x7   :  { %12857 = sst [smem:[#allocation43_spill]] %s12838_s8 }
   0x8   :  { %13 = vsyncpa [#allocation5], 0 }
   0x9   :  { %15 = vsyncpa [#allocation5 + $0x1], 0 }
   0xa   :  { %16 = vsyncpa [#allocation8], 0 }
   0xb   :  { %17 = vsyncpa [#allocation11], 0 }
   0xc   :  { %19 = vsyncpa [#allocation11 + $0x1], 0 }
   0xd   :  { %20 = vsyncpa [#allocation14], 0 }
   0xe   :  { %22 = vsyncpa [#allocation14 + $0x1], 0 }
   0xf   :  { %23 = vsyncpa [#allocation17], 0 }
  0x10   :  { %24 = vsyncpa [#allocation6], 0 }
  0x11   :  { %26 = vsyncpa [#allocation6 + $0x1], 0  ;;  %s10927_s27 = smov 0   ;;  %s10929_s28 = smov 0  }
  0x12   :  { %s10931_s29 = smov 0   ;;  %s10933_s30 = smov 0  }
  0x13   :  { %s10935_s9 = smov 0   ;;  %s10937_s10 = smov 0  }
  0x14   :  { %s10939_s11 = smov 0   ;;  %s10941_s12 = smov 0  }
  0x15   :  { %s10943_s13 = smov 0   ;;  %s10945_s14 = smov 0  }
  0x16   :  { %s10947_s15 = smov 0  }
  0x17 LB: > { %12858 = sst [smem:[#allocation26_spill]] %s10829_s28  ;;  %s10983_s16 = sadd.s32 4294967295, %s10865_s15   ;;  %s10865_s15 = sphi %s10947_s15, %s32_s15   ;;  %s10861_s14 = sphi %s10945_s14, %s12902_s14   ;;  %s10857_s13 = sphi %s10943_s13, %s12906_s13   ;;  %s10853_s12 = sphi %s10941_s12, %s12900_s12   ;;  %s10849_s11 = sphi %s10939_s11, %s12905_s11   ;;  %s10845_s10 = sphi %s10937_s10, %s12899_s10   ;;  %s10841_s9 = sphi %s10935_s9, %s12904_s9   ;;  %s10837_s30 = sphi %s10933_s30, %s12903_s30   ;;  %s10833_s29 = sphi %s10931_s29, %s12897_s29   ;;  %s10829_s28 = sphi %s10929_s28, %s12896_s28   ;;  %s10825_s27 = sphi %s10927_s27, %s12895_s27  }
  0x18   : > { %12859 = sst [smem:[#allocation27_spill]] %s10833_s29  ;;  %p6970_p0 = scmp.ge.s32.totalorder %s10865_s15, 1 }
  0x19   : > { %12860 = sst [smem:[#allocation28_spill]] %s10845_s10  ;;  %p65_p1 = scmp.eq.s32.totalorder %s10983_s16, 0 }
  0x1a   : > { %12861 = sst [smem:[#allocation29_spill]] %s10849_s11  ;;  %p250_p2 = scmp.eq.s32.totalorder %s10983_s16, 3 }
  0x1b   : > { %12862 = sst [smem:[#allocation30_spill]] %s10853_s12  ;;  %p263_p3 = scmp.lt.s32.totalorder %s10865_s15, 5 }
  0x1c   : > { %12863 = sst [smem:[#allocation31_spill]] %s10861_s14  ;;  %s10867_s21 = smov [#allocation7]  }
  0x1d   : > { %s12864_s1 = sld [smem:[#allocation38_spill]]  ;;  %p10992_p4 = pnand %p6970_p0, %p263_p3 }
  0x1e   : > { %s276_s22 = sshll.u32 %s10867_s21, 4  ;;  %s12867_s6 = sld [smem:[#allocation41_spill]]  ;;  %s277_s22 = int_to_ptr.vmem [resolvable:$true] %s276_s22 }
  0x1f   : > { %p10276_p5 = pneg %p10992_p4  ;;  %s10868_s17 = smov [#allocation15]  }
  0x20   : > { %s302_s18 = sshll.u32 %s10868_s17, 4  ;;  %s12840_s21 = smov 256   ;;  %s303_s18 = int_to_ptr.vmem [resolvable:$true] %s302_s18 }
  0x21   : > { %p11000_p6 = pnand %p10276_p5, %p65_p1  ;;  %s10871_s24 = smov 64  }
  0x22   : > { %s10872_s25 = smov 4   ;;  %p59_p8 = scmp.eq.s32.totalorder %s10865_s15, 0 }
  0x23   : > { %s274_s19 = sshll.u32 %s12864_s1, 4  ;;  %s12841_s1 = smov 16   ;;  %s275_s19 = int_to_ptr.hbm [resolvable:$true] %s274_s19 }
  0x24   : > { %s300_s26 = sshll.u32 %s12867_s6, 4  ;;  %s41_s6 = sadd.s32 1, %s10857_s13  ;;  %s301_s26 = int_to_ptr.hbm [resolvable:$true] %s300_s26 }
  0x25   : > { %10279 = dma.hbm_to_vmem [thread:$0]  (!%p11000_p6), %s275_s19, 8192, %s277_s22, [#allocation8], %s12840_s21, %s12840_s21, %s12841_s1  }
  0x26   : > { %10285 = dma.hbm_to_vmem [thread:$0]  (!%p11000_p6), %s301_s26, 4096, %s303_s18, [#allocation14], %s10871_s24, %s10871_s24, %s10872_s25  }
  0x27   : > { %p11015_p7 = scmp.ge.s32.totalorder %s41_s6, 2  ;;  %s119_s8 = sadd.s32 1, %s10833_s29 }
  0x28   : > { %p126_p9 = scmp.ne.s32.totalorder %s10833_s29, %s10829_s28  ;;  %p132_p11 = scmp.ne.s32.totalorder %s10829_s28, %s10825_s27 }
  0x29   : > { %s12908_s6 = smov (%p11015_p7, %s41_s6), 0  ;;  %p12847_p12 = scmp.lt.s32.totalorder %s10865_s15, 4 }
  0x2a   : > { %12869 = sst [smem:[#allocation32_spill]] %s12908_s6  ;;  %p128_p10 = por %p126_p9, %p59_p8 }
  0x2b   : > { %s116_s19 = ssub.s32 %s10857_s13, %s12908_s6  ;;  %p11036_p0 = por %p132_p11, %p65_p1 }
  0x2c   : > { %p117_p13 = scmp.eq.s32.totalorder %s116_s19, 0  ;;  %s11042_s18 = sand.u32 1, %s10833_s29  }
  0x2d   : > { %s12870_s22 = scalar_select %p11036_p0, 1, 0 }
  0x2e   : > { %s11045_s24 = scalar_select %p117_p13, %s10833_s29, %s119_s8  }
  0x2f   : > { %12871 = sst [smem:[#allocation33_spill]] %s12870_s22  ;;  %s10247_s25 = smul.u32 3072, %s11042_s18 }
  0x30   : > { %12872 = sst [smem:[#allocation34_spill]] %s11045_s24  ;;  %s10248_s21 = smul.u32 3072, %s10857_s13 }
  0x31   : > { %p11051_p3 = pnand %p12847_p12, %p128_p10  ;;  %s12874_s3 = sld [smem:[#allocation40_spill]] }
  0x32   : > { %s355_s12 = scalar_lea.vmem [#allocation10], %s10247_s25  ;;  %s12875_s2 = sld [smem:[#allocation39_spill]] }
  0x33   : > { %s363_s26 = sshll.u32 %s355_s12, 4  ;;  %s12876_s22 = sand.u32 1, %s10865_s15   ;;  %s364_s26 = int_to_ptr.vmem [resolvable:$true] %s363_s26 }
  0x34   : > { %s11063_s28 = scalar_lea.sflag [#allocation11], %s12876_s22  ;;  %s10873_s1 = smov 768  }
  0x35   : > { %s12877_s7 = sld [smem:[#allocation42_spill]]  ;;  %s10876_s19 = smov [#allocation16]  }
  0x36   : > { %s44_s8 = sadd.s32 1, %s10861_s14  ;;  %p58_p5 = scmp.ne.s32.totalorder %s10845_s10, %s10841_s9 }
  0x37   : > { %s360_s6 = scalar_lea.hbm %s12874_s3, %s10248_s21  ;;  %s10874_s21 = smov 48  }
  0x38   : > { %s361_s11 = sshll.u32 %s360_s6, 4  ;;  %s289_s29 = sshll.u32 %s12875_s2, 4  ;;  %s362_s11 = int_to_ptr.hbm [resolvable:$true] %s361_s11  ;;  %s290_s29 = int_to_ptr.hbm [resolvable:$true] %s289_s29 }
  0x39   : > { %10295 = dma.hbm_to_vmem [thread:$0]  (!%p11051_p3), %s362_s11, 49152, %s364_s26, %s11063_s28, %s10873_s1, %s10873_s1, %s10874_s21  }
  0x3a   : > { %s10875_s6 = smov [#allocation9]   ;;  %s317_s11 = sshll.u32 %s10876_s19, 4  ;;  %s318_s11 = int_to_ptr.vmem [resolvable:$true] %s317_s11 }
  0x3b   : > { %s291_s12 = sshll.u32 %s10875_s6, 4  ;;  %s315_s22 = sshll.u32 %s12877_s7, 4  ;;  %s292_s12 = int_to_ptr.vmem [resolvable:$true] %s291_s12  ;;  %s316_s22 = int_to_ptr.hbm [resolvable:$true] %s315_s22 }
  0x3c   : > { %10282 = dma.hbm_to_vmem [thread:$0]  (!%p11000_p6), %s290_s29, 64, %s292_s12, [#allocation8]  }
  0x3d   : > { %10288 = dma.hbm_to_vmem [thread:$0]  (!%p11000_p6), %s316_s22, 16, %s318_s11, [#allocation17]  }
  0x3e   : > { %s6969_s26 = sadd.s32 4294967294, %s10865_s15   ;;  %s51_s1 = sadd.s32 1, %s10845_s10 }
  0x3f   : > { %s12910_s8 = smov (!%p11015_p7, %s44_s8), %s10861_s14  ;;  %p64_p9 = scmp.ne.s32.totalorder %s10841_s9, %s10837_s30 }
  0x40   : > { %p46_p10 = scmp.ge.s32.totalorder %s12910_s8, 2  ;;  %p256_p11 = scmp.eq.s32.totalorder %s6969_s26, 3 }
  0x41   : > { %p11087_p13 = por %p59_p8, %p58_p5  ;;  %p11093_p12 = por %p65_p1, %p64_p9 }
  0x42   : > { %s12912_s8 = smov (%p46_p10, %s12910_s8), 0  ;;  %p11101_p6 = por %p250_p2, %p58_p5 }
  0x43   : > { %12880 = sst [smem:[#allocation35_spill]] %s12912_s8  ;;  %p11105_p7 = por %p256_p11, %p64_p9 }
  0x44   : > { %s48_s6 = ssub.s32 %s10861_s14, %s12912_s8  ;;  %s328_s12 = sand.u32 1, %s10845_s10  }
  0x45   : > { %p49_p8 = scmp.eq.s32.totalorder %s48_s6, 0  ;;  %s6976_s24 = sshll.u32 %s328_s12, 4 }
  0x46   : > { %s9603_s25 = sshll.u32 %s10861_s14, 4  ;;  %s12884_s0 = sld [smem:[#allocation37_spill]] }
  0x47   : > { %s11114_s22 = scalar_select %p49_p8, %s10845_s10, %s51_s1  }
  0x48   : > { %s332_s3 = scalar_lea.vmem [#allocation4], %s6976_s24  ;;  %p12885_p2 = scmp.lt.s32.totalorder %s10865_s15, 4 }
  0x49   : > { %12883 = sst [smem:[#allocation36_spill]] %s11114_s22  ;;  %s341_s7 = sshll.u32 %s332_s3, 4  ;;  %s342_s7 = int_to_ptr.vmem [resolvable:$true] %s341_s7 }
  0x4a   : > { %p10290_p5 = pnand %p12885_p2, %p11087_p13  ;;  %s6981_s6 = sshll.u32 %s11042_s18, 10 }
  0x4b   : > { %s329_s8 = scalar_lea.sflag [#allocation5], %s328_s12  ;;  %s10877_s1 = smov 128  }
  0x4c   : > { %s338_s26 = scalar_lea.hbm %s12884_s0, %s9603_s25  ;;  %s10878_s14 = smov 8  }
  0x4d   : > { %s339_s2 = sshll.u32 %s338_s26, 4  ;;  %s9604_s22 = sshll.u32 %s10857_s13, 10  ;;  %s340_s2 = int_to_ptr.hbm [resolvable:$true] %s339_s2 }
  0x4e   : > { %10292 = dma.hbm_to_vmem [thread:$0]  (!%p10290_p5), %s340_s2, 256, %s342_s7, %s329_s8, %s10877_s1, %s10877_s1, %s10878_s14  }
  0x4f   : > { %s377_s25 = scalar_lea.vmem [#allocation12], %s6981_s6  ;;  %s382_s11 = scalar_lea.hbm %s12834_s4, %s9604_s22 }
  0x50   : > { %s385_s24 = sshll.u32 %s377_s25, 4  ;;  %s383_s26 = sshll.u32 %s382_s11, 4  ;;  %s386_s24 = int_to_ptr.vmem [resolvable:$true] %s385_s24  ;;  %s384_s26 = int_to_ptr.hbm [resolvable:$true] %s383_s26 }
  0x51   : > { %s6984_s29 = sshll.u32 %s11042_s18, 2  ;;  %s12886_s0 = smov 16  }
  0x52   : > { %s12887_s10 = smov 256   ;;  %s6985_s12 = sshll.u32 %s10857_s13, 2 }
  0x53   : > { %10298 = dma.hbm_to_vmem [thread:$0]  (!%p11051_p3), %s384_s26, 16384, %s386_s24, %s11063_s28, %s12887_s10, %s12887_s10, %s12886_s0  }
  0x54   : > { %s403_s14 = scalar_lea.hbm %s12835_s5, %s6985_s12  ;;  %s399_s8 = scalar_lea.vmem [#allocation13], %s6984_s29 }
  0x55   : > { %s407_s6 = sshll.u32 %s399_s8, 4  ;;  %s405_s1 = sshll.u32 %s403_s14, 4  ;;  %s408_s6 = int_to_ptr.vmem [resolvable:$true] %s407_s6  ;;  %s406_s1 = int_to_ptr.hbm [resolvable:$true] %s405_s1 }
  0x56   : > { %s12888_s22 = sand.u32 1, %s10865_s15   ;;  %416 = sbr.rel (%p10992_p4) target bundleno = 2119 (0x847), region = 52 }
  0x57   : > { %s396_s25 = scalar_lea.sflag [#allocation14], %s12888_s22  ;;  %s11146_s0 = sand.u32 (!%p10992_p4), 1, %s10841_s9  }
  0x58   : > { %10301 = dma.hbm_to_vmem [thread:$0]  (!%p11051_p3), %s406_s1, 64, %s408_s6, %s396_s25  }
  0x59   : > { %s6987_s28 = sshll.u32 (!%p10992_p4), %s11146_s0, 4  ;;  %s419_s10 = scalar_lea.sflag (!%p10992_p4), [#allocation5], %s11146_s0 }
  0x5a   : > { %s11150_s18 = scalar_lea.vmem (!%p10992_p4), [#allocation4], %s6987_s28 }
  0x5b   : > { %10796 = dma.done.wait (%p11093_p12), %s419_s10, 256  }
  0x5c   : > { %10798 = vsyncadd (%p11093_p12), %s419_s10, 4294967040 }
  0x5d   : > { %10800 = dma.done.wait (%p65_p1), [#allocation8], 8256  }
  0x5e   : > { %10802 = vsyncadd (%p65_p1), [#allocation8], 4294959040  ;;  %s12889_s20 = sld [smem:[#allocation26_spill]]  ;;  %s438_s24 = sand.u32 1, %s10983_s16  }
  0x5f   : > { %s439_s11 = scalar_lea.sflag [#allocation11], %s438_s24 }
  0x64   : > { %s440_s3 = sand.u32 1, %s12889_s20  }
  0x65   : > { %s10249_s19 = smul.u32 3072, %s440_s3 }
  0x67   : > { %s11162_s26 = scalar_lea.vmem [#allocation10], %s10249_s19 }
  0x68   : > { %10804 = dma.done.wait (%p11036_p0), %s439_s11, 65536  }
  0x69   : > { %10806 = vsyncadd (%p11036_p0), %s439_s11, 4294901760  ;;  %s6990_s23 = sshll.u32 %s440_s3, 10  ;;  %s6991_s29 = sshll.u32 %s440_s3, 2 }
  0x6a   : > { %s11168_s12 = scalar_lea.vmem [#allocation12], %s6990_s23  ;;  %s459_s2 = scalar_lea.sflag [#allocation14], %s438_s24 }
  0x6b   : > { %s11170_s7 = scalar_lea.vmem [#allocation13], %s6991_s29 }
  0x6c   : > { %10808 = dma.done.wait (%p11036_p0), %s459_s2, 64  }
  0x6d   : > { %10810 = vsyncadd (%p11036_p0), %s459_s2, 4294967232 }
  0x6e   : > { %10812 = dma.done.wait (%p65_p1), [#allocation14], 4096  }
  0x6f   : > { %10814 = vsyncadd (%p65_p1), [#allocation14], 4294963200 }
  0x70   : > { %10816 = dma.done.wait (%p65_p1), [#allocation17], 16  }
  0x71   : > { %10818 = vsyncadd (%p65_p1), [#allocation17], 4294967280  ;;  %s6994_s14 = sshll.u32 %s11146_s0, 1  ;;  %s12891_s6 = sld [smem:[#allocation29_spill]] }
  0x72   : > { %s11185_s8 = scalar_lea.vmem [#allocation18], %s6994_s14 }
  0x77   : > { %p6995_p4 = scmp.ne.s32.totalorder %s12891_s6, 0 }
  0x79   : > { %527 = sbr.rel (%p6995_p4) target bundleno = 340 (0x154), region = 88 }
  0x7e   : > { %v7118_v0 = vld [vmem:[#allocation7 + $0xe0] sm:$0xf]  ;;  %v9637_v1 = vld [vmem:[#allocation7 + $0xec] sm:$0xf0]  ;;  %v9635_v5 = vld [vmem:[#allocation7 + $0xe4] sm:$0xf] }
  0x7f   : > { %v7246_v2 = vld [vmem:[#allocation7 + $0x1e0] sm:$0xf]  ;;  %v7119_v3 = vor.u32 %v9637_v1, %v7118_v0  ;;  %v9669_v4 = vld [vmem:[#allocation7 + $0x1ec] sm:$0xf0]  ;;  %v7120_v6 = vld [vmem:[#allocation7 + $0xf0] sm:$0xf0] }
  0x80   : > { %v7247_v7 = vor.u32 %v9669_v4, %v7246_v2  ;;  %v7123_v8 = vor.u32 %v9635_v5, %v7120_v6  ;;  %v9667_v9 = vld [vmem:[#allocation7 + $0x1e4] sm:$0xf]  ;;  %v7248_v10 = vld [vmem:[#allocation7 + $0x1f0] sm:$0xf0]  ;;  %v7102_v11 = vld [vmem:[#allocation7 + $0xc0] sm:$0xf] }
  0x81   : > { %934 = vmatpush.bf16.msra.mxu0 %v7119_v3  ;;  %v7251_v12 = vor.u32 %v9667_v9, %v7248_v10  ;;  %v9633_v13 = vld [vmem:[#allocation7 + $0xcc] sm:$0xf0]  ;;  %v7230_v14 = vld [vmem:[#allocation7 + $0x1c0] sm:$0xf]  ;;  %v9631_v18 = vld [vmem:[#allocation7 + $0xc4] sm:$0xf] }
  0x82   : > { %v9665_v15 = vld [vmem:[#allocation7 + $0x1cc] sm:$0xf0]  ;;  %948 = vmatpush.bf16.msra.mxu1 %v7247_v7  ;;  %962 = vmatpush.bf16.msra.mxu2 %v7123_v8  ;;  %v7103_v16 = vor.u32 %v9633_v13, %v7102_v11  ;;  %v7104_v19 = vld [vmem:[#allocation7 + $0xd0] sm:$0xf0]  ;;  %v9663_v20 = vld [vmem:[#allocation7 + $0x1c4] sm:$0xf] }
  0x83   : > { %v7231_v17 = vor.u32 %v9665_v15, %v7230_v14  ;;  %976 = vmatpush.bf16.msra.mxu3 %v7251_v12  ;;  %v7107_v21 = vor.u32 %v9631_v18, %v7104_v19  ;;  %v7232_v22 = vld [vmem:[#allocation7 + $0x1d0] sm:$0xf0]  ;;  %v7086_v23 = vld [vmem:[#allocation7 + $0xa0] sm:$0xf]  ;;  %v9629_v24 = vld [vmem:[#allocation7 + $0xac] sm:$0xf0] }
  0x84   : > { %v7235_v25 = vor.u32 %v9663_v20, %v7232_v22  ;;  %v7214_v26 = vld [vmem:[#allocation7 + $0x1a0] sm:$0xf]  ;;  %v9661_v27 = vld [vmem:[#allocation7 + $0x1ac] sm:$0xf0]  ;;  %v9627_v28 = vld [vmem:[#allocation7 + $0xa4] sm:$0xf]  ;;  %v7087_v29 = vor.u32 %v9629_v24, %v7086_v23 }
  0x85   : > { %935 = vmatpush.bf16.msra.mxu0 %v7103_v16  ;;  %v7088_v30 = vld [vmem:[#allocation7 + $0xb0] sm:$0xf0]  ;;  %v9659_v31 = vld [vmem:[#allocation7 + $0x1a4] sm:$0xf]  ;;  %v7215_v33 = vor.u32 %v9661_v27, %v7214_v26  ;;  %v7070_v35 = vld [vmem:[#allocation7 + $0x80] sm:$0xf] }
  0x86   : > { %v7216_v32 = vld [vmem:[#allocation7 + $0x1b0] sm:$0xf0]  ;;  %949 = vmatpush.bf16.msra.mxu1 %v7231_v17  ;;  %963 = vmatpush.bf16.msra.mxu2 %v7107_v21  ;;  %v7091_v34 = vor.u32 %v9627_v28, %v7088_v30  ;;  %v9625_v36 = vld [vmem:[#allocation7 + $0x8c] sm:$0xf0]  ;;  %v7198_v37 = vld [vmem:[#allocation7 + $0x180] sm:$0xf] }
  0x87   : > { %977 = vmatpush.bf16.msra.mxu3 %v7235_v25  ;;  %v7219_v38 = vor.u32 %v9659_v31, %v7216_v32  ;;  %v9657_v39 = vld [vmem:[#allocation7 + $0x18c] sm:$0xf0]  ;;  %v9623_v40 = vld [vmem:[#allocation7 + $0x84] sm:$0xf]  ;;  %v7072_v41 = vld [vmem:[#allocation7 + $0x90] sm:$0xf0]  ;;  %v7071_v44 = vor.u32 %v9625_v36, %v7070_v35 }
  0x88   : > { %v9655_v42 = vld [vmem:[#allocation7 + $0x184] sm:$0xf]  ;;  %v7200_v43 = vld [vmem:[#allocation7 + $0x190] sm:$0xf0]  ;;  %v7199_v45 = vor.u32 %v9657_v39, %v7198_v37  ;;  %v7075_v46 = vor.u32 %v9623_v40, %v7072_v41  ;;  %v7054_v47 = vld [vmem:[#allocation7 + $0x60] sm:$0xf] }
  0x89   : > { %936 = vmatpush.bf16.msra.mxu0 %v7087_v29  ;;  %v9621_v48 = vld [vmem:[#allocation7 + $0x6c] sm:$0xf0]  ;;  %v7182_v49 = vld [vmem:[#allocation7 + $0x160] sm:$0xf]  ;;  %v7203_v50 = vor.u32 %v9655_v42, %v7200_v43  ;;  %v9619_v52 = vld [vmem:[#allocation7 + $0x64] sm:$0xf] }
  0x8a   : > { %950 = vmatpush.bf16.msra.mxu1 %v7215_v33  ;;  %964 = vmatpush.bf16.msra.mxu2 %v7091_v34  ;;  %v9653_v51 = vld [vmem:[#allocation7 + $0x16c] sm:$0xf0]  ;;  %v7056_v53 = vld [vmem:[#allocation7 + $0x70] sm:$0xf0]  ;;  %v9651_v54 = vld [vmem:[#allocation7 + $0x164] sm:$0xf]  ;;  %v7055_v56 = vor.u32 %v9621_v48, %v7054_v47 }
  0x8b   : > { %978 = vmatpush.bf16.msra.mxu3 %v7219_v38  ;;  %v7184_v55 = vld [vmem:[#allocation7 + $0x170] sm:$0xf0]  ;;  %v7183_v57 = vor.u32 %v9653_v51, %v7182_v49  ;;  %v7059_v58 = vor.u32 %v9619_v52, %v7056_v53  ;;  %v7038_v59 = vld [vmem:[#allocation7 + $0x40] sm:$0xf]  ;;  %v9617_v60 = vld [vmem:[#allocation7 + $0x4c] sm:$0xf0] }
  0x8c   : > { %v7166_v61 = vld [vmem:[#allocation7 + $0x140] sm:$0xf]  ;;  %v7187_v62 = vor.u32 %v9651_v54, %v7184_v55  ;;  %v9649_v63 = vld [vmem:[#allocation7 + $0x14c] sm:$0xf0]  ;;  %v9615_v0 = vld [vmem:[#allocation7 + $0x44] sm:$0xf]  ;;  %v7039_v4 = vor.u32 %v9617_v60, %v7038_v59 }
  0x8d   : > { %937 = vmatpush.bf16.msra.mxu0 %v7071_v44  ;;  %v7040_v1 = vld [vmem:[#allocation7 + $0x50] sm:$0xf0]  ;;  %v9647_v2 = vld [vmem:[#allocation7 + $0x144] sm:$0xf]  ;;  %v7167_v5 = vor.u32 %v9649_v63, %v7166_v61  ;;  %v7022_v7 = vld [vmem:[#allocation7 + $0x20] sm:$0xf] }
  0x8e   : > { %951 = vmatpush.bf16.msra.mxu1 %v7199_v45  ;;  %965 = vmatpush.bf16.msra.mxu2 %v7075_v46  ;;  %v7168_v3 = vld [vmem:[#allocation7 + $0x150] sm:$0xf0]  ;;  %v7043_v6 = vor.u32 %v9615_v0, %v7040_v1  ;;  %v9613_v8 = vld [vmem:[#allocation7 + $0x2c] sm:$0xf0]  ;;  %v7150_v9 = vld [vmem:[#allocation7 + $0x120] sm:$0xf] }
  0x8f   : > { %979 = vmatpush.bf16.msra.mxu3 %v7203_v50  ;;  %v7171_v10 = vor.u32 %v9647_v2, %v7168_v3  ;;  %v9645_v11 = vld [vmem:[#allocation7 + $0x12c] sm:$0xf0]  ;;  %v9611_v12 = vld [vmem:[#allocation7 + $0x24] sm:$0xf]  ;;  %v7024_v13 = vld [vmem:[#allocation7 + $0x30] sm:$0xf0]  ;;  %v7023_v16 = vor.u32 %v9613_v8, %v7022_v7 }
  0x90   : > { %v9643_v14 = vld [vmem:[#allocation7 + $0x124] sm:$0xf]  ;;  %v7152_v15 = vld [vmem:[#allocation7 + $0x130] sm:$0xf0]  ;;  %v7006_v17 = vld [vmem:[#allocation7] sm:$0xf]  ;;  %v7151_v20 = vor.u32 %v9645_v11, %v7150_v9  ;;  %v7027_v21 = vor.u32 %v9611_v12, %v7024_v13 }
  0x91   : > { %938 = vmatpush.bf16.msra.mxu0 %v7055_v56  ;;  %v9609_v18 = vld [vmem:[#allocation7 + $0xc] sm:$0xf0]  ;;  %v7134_v19 = vld [vmem:[#allocation7 + $0x100] sm:$0xf]  ;;  %v9607_v23 = vld [vmem:[#allocation7 + $0x4] sm:$0xf]  ;;  %v7155_v25 = vor.u32 %v9643_v14, %v7152_v15 }
  0x92   : > { %952 = vmatpush.bf16.msra.mxu1 %v7183_v57  ;;  %966 = vmatpush.bf16.msra.mxu2 %v7059_v58  ;;  %v9641_v22 = vld [vmem:[#allocation7 + $0x10c] sm:$0xf0]  ;;  %v7008_v24 = vld [vmem:[#allocation7 + $0x10] sm:$0xf0]  ;;  %v9639_v26 = vld [vmem:[#allocation7 + $0x104] sm:$0xf]  ;;  %v7007_v32 = vor.u32 %v9609_v18, %v7006_v17 }
  0x93   : > { %980 = vmatpush.bf16.msra.mxu3 %v7187_v62  ;;  %v7136_v27 = vld [vmem:[#allocation7 + $0x110] sm:$0xf0]  ;;  %v7126_v28 = vld [vmem:[#allocation7 + $0xe8] sm:$0xf]  ;;  %v9638_v29 = vld [vmem:[#allocation7 + $0xf4] sm:$0xf0]  ;;  %v7135_v36 = vor.u32 %v9641_v22, %v7134_v19  ;;  %v7011_v37 = vor.u32 %v9607_v23, %v7008_v24 }
  0x94   : > { %v7254_v30 = vld [vmem:[#allocation7 + $0x1e8] sm:$0xf]  ;;  %v9670_v31 = vld [vmem:[#allocation7 + $0x1f4] sm:$0xf0]  ;;  %v9636_v33 = vld [vmem:[#allocation7 + $0xec] sm:$0xf]  ;;  %v7139_v41 = vor.u32 %v9639_v26, %v7136_v27  ;;  %v7127_v42 = vor.u32 %v9638_v29, %v7126_v28 }
  0x95   : > { %939 = vmatpush.bf16.msra.mxu0 %v7039_v4  ;;  %v7128_v34 = vld [vmem:[#allocation7 + $0xf8] sm:$0xf0]  ;;  %v9668_v35 = vld [vmem:[#allocation7 + $0x1ec] sm:$0xf]  ;;  %v6998_v39 = vld [vmem:[%s11150_s18] sm:$0xf]  ;;  %v7255_v45 = vor.u32 %v9670_v31, %v7254_v30 }
  0x96   : > { %953 = vmatpush.bf16.msra.mxu1 %v7167_v5  ;;  %967 = vmatpush.bf16.msra.mxu2 %v7043_v6  ;;  %v7256_v38 = vld [vmem:[#allocation7 + $0x1f8] sm:$0xf0]  ;;  %v9606_v40 = vld [vmem:[%s11150_s18 + $0x4] sm:$0xf0]  ;;  %v7131_v46 = vor.u32 %v9636_v33, %v7128_v34  ;;  %v9605_v48 = vld [vmem:[%s11150_s18 + $0x4] sm:$0xf] }
  0x97   : > { %981 = vmatpush.bf16.msra.mxu3 %v7171_v10  ;;  %v7110_v43 = vld [vmem:[#allocation7 + $0xc8] sm:$0xf]  ;;  %v9634_v44 = vld [vmem:[#allocation7 + $0xd4] sm:$0xf0]  ;;  %v7000_v49 = vld [vmem:[%s11150_s18 + $0x8] sm:$0xf0]  ;;  %v7259_v50 = vor.u32 %v9668_v35, %v7256_v38  ;;  %v11192_v54 = vor.u32 %v9606_v40, %v6998_v39 }
  0x98   : > { %v7238_v47 = vld [vmem:[#allocation7 + $0x1c8] sm:$0xf]  ;;  %v9666_v51 = vld [vmem:[#allocation7 + $0x1d4] sm:$0xf0]  ;;  %v9632_v52 = vld [vmem:[#allocation7 + $0xcc] sm:$0xf]  ;;  %v11194_v57 = vor.u32 %v9605_v48, %v7000_v49  ;;  %v7111_v58 = vor.u32 %v9634_v44, %v7110_v43 }
  0x99   : > { %940 = vmatpush.bf16.msra.mxu0 %v7023_v16  ;;  %v7112_v53 = vld [vmem:[#allocation7 + $0xd8] sm:$0xf0]  ;;  %v9664_v55 = vld [vmem:[#allocation7 + $0x1cc] sm:$0xf]  ;;  %v7239_v59 = vor.u32 %v9666_v51, %v7238_v47  ;;  %v7094_v61 = vld [vmem:[#allocation7 + $0xa8] sm:$0xf] }
  0x9a   : > { %954 = vmatpush.bf16.msra.mxu1 %v7151_v20  ;;  %968 = vmatpush.bf16.msra.mxu2 %v7027_v21  ;;  %v7240_v56 = vld [vmem:[#allocation7 + $0x1d8] sm:$0xf0]  ;;  %v7115_v60 = vor.u32 %v9632_v52, %v7112_v53  ;;  %v9630_v62 = vld [vmem:[#allocation7 + $0xb4] sm:$0xf0]  ;;  %v7222_v63 = vld [vmem:[#allocation7 + $0x1a8] sm:$0xf] }
  0x9b   : > { %982 = vmatpush.bf16.msra.mxu3 %v7155_v25  ;;  %v7243_v0 = vor.u32 %v9664_v55, %v7240_v56  ;;  %v9662_v1 = vld [vmem:[#allocation7 + $0x1b4] sm:$0xf0]  ;;  %v9628_v2 = vld [vmem:[#allocation7 + $0xac] sm:$0xf]  ;;  %v7096_v3 = vld [vmem:[#allocation7 + $0xb8] sm:$0xf0]  ;;  %v7095_v6 = vor.u32 %v9630_v62, %v7094_v61 }
  0x9c   : > { %v9660_v4 = vld [vmem:[#allocation7 + $0x1ac] sm:$0xf]  ;;  %v7224_v5 = vld [vmem:[#allocation7 + $0x1b8] sm:$0xf0]  ;;  %v7223_v7 = vor.u32 %v9662_v1, %v7222_v63  ;;  %v7099_v8 = vor.u32 %v9628_v2, %v7096_v3  ;;  %v7078_v9 = vld [vmem:[#allocation7 + $0x88] sm:$0xf] }
  0x9d   : > { %941 = vmatpush.bf16.msra.mxu0 %v7007_v32  ;;  %v9626_v10 = vld [vmem:[#allocation7 + $0x94] sm:$0xf0]  ;;  %v7206_v11 = vld [vmem:[#allocation7 + $0x188] sm:$0xf]  ;;  %v7227_v12 = vor.u32 %v9660_v4, %v7224_v5  ;;  %v9624_v14 = vld [vmem:[#allocation7 + $0x8c] sm:$0xf] }
  0x9e   : > { %955 = vmatpush.bf16.msra.mxu1 %v7135_v36  ;;  %969 = vmatpush.bf16.msra.mxu2 %v7011_v37  ;;  %v9658_v13 = vld [vmem:[#allocation7 + $0x194] sm:$0xf0]  ;;  %v7080_v15 = vld [vmem:[#allocation7 + $0x98] sm:$0xf0]  ;;  %v9656_v16 = vld [vmem:[#allocation7 + $0x18c] sm:$0xf]  ;;  %v7079_v18 = vor.u32 %v9626_v10, %v7078_v9 }
  0x9f   : > { %983 = vmatpush.bf16.msra.mxu3 %v7139_v41  ;;  %v7208_v17 = vld [vmem:[#allocation7 + $0x198] sm:$0xf0]  ;;  %v7207_v19 = vor.u32 %v9658_v13, %v7206_v11  ;;  %v7083_v20 = vor.u32 %v9624_v14, %v7080_v15  ;;  %v7062_v21 = vld [vmem:[#allocation7 + $0x68] sm:$0xf]  ;;  %v9622_v22 = vld [vmem:[#allocation7 + $0x74] sm:$0xf0] }
  0xa0   : > { %942 = vmatmul.bf16.vlgmr.msra.gmra.mxu0 %v11192_v54  ;;  %v7190_v23 = vld [vmem:[#allocation7 + $0x168] sm:$0xf]  ;;  %v7211_v24 = vor.u32 %v9656_v16, %v7208_v17  ;;  %v9654_v25 = vld [vmem:[#allocation7 + $0x174] sm:$0xf0]  ;;  %v9620_v26 = vld [vmem:[#allocation7 + $0x6c] sm:$0xf]  ;;  %v7063_v30 = vor.u32 %v9622_v22, %v7062_v21 }
  0xa1   : > { %990 = vmatpush.bf16.msrb.mxu0 %v7127_v42  ;;  %970 = vmatmul.bf16.vlgmr.msra.gmra.mxu2 %v11192_v54  ;;  %v7064_v27 = vld [vmem:[#allocation7 + $0x78] sm:$0xf0]  ;;  %v9652_v28 = vld [vmem:[#allocation7 + $0x16c] sm:$0xf]  ;;  %v7191_v31 = vor.u32 %v9654_v25, %v7190_v23  ;;  %v7046_v33 = vld [vmem:[#allocation7 + $0x48] sm:$0xf] }
  0xa2   : > { %1004 = vmatpush.bf16.msrb.mxu1 %v7255_v45  ;;  %1018 = vmatpush.bf16.msrb.mxu2 %v7131_v46  ;;  %v7192_v29 = vld [vmem:[#allocation7 + $0x178] sm:$0xf0]  ;;  %v7067_v32 = vor.u32 %v9620_v26, %v7064_v27  ;;  %v9618_v34 = vld [vmem:[#allocation7 + $0x54] sm:$0xf0]  ;;  %v7174_v35 = vld [vmem:[#allocation7 + $0x148] sm:$0xf] }
  0xa3   : > { %1032 = vmatpush.bf16.msrb.mxu3 %v7259_v50  ;;  %956 = vmatmul.bf16.vlgmr.msra.gmra.mxu1 %v11194_v57  ;;  %v7195_v36 = vor.u32 %v9652_v28, %v7192_v29  ;;  %v9650_v37 = vld [vmem:[#allocation7 + $0x154] sm:$0xf0]  ;;  %v9616_v38 = vld [vmem:[#allocation7 + $0x4c] sm:$0xf]  ;;  %v7048_v39 = vld [vmem:[#allocation7 + $0x58] sm:$0xf0]  ;;  %v7047_v42 = vor.u32 %v9618_v34, %v7046_v33 }
  0xa4   : > { %984 = vmatmul.bf16.vlgmr.msra.gmra.mxu3 %v11194_v57  ;;  %v9648_v40 = vld [vmem:[#allocation7 + $0x14c] sm:$0xf]  ;;  %v7176_v41 = vld [vmem:[#allocation7 + $0x158] sm:$0xf0]  ;;  %v7175_v43 = vor.u32 %v9650_v37, %v7174_v35  ;;  %v7051_v44 = vor.u32 %v9616_v38, %v7048_v39  ;;  %v7030_v45 = vld [vmem:[#allocation7 + $0x28] sm:$0xf] }
  0xa5   : > { %991 = vmatpush.bf16.msrb.mxu0 %v7111_v58  ;;  %v9614_v46 = vld [vmem:[#allocation7 + $0x34] sm:$0xf0]  ;;  %v7158_v47 = vld [vmem:[#allocation7 + $0x128] sm:$0xf]  ;;  %v7179_v48 = vor.u32 %v9648_v40, %v7176_v41  ;;  %v9612_v50 = vld [vmem:[#allocation7 + $0x2c] sm:$0xf] }
  0xa6   : > { %1005 = vmatpush.bf16.msrb.mxu1 %v7239_v59  ;;  %1019 = vmatpush.bf16.msrb.mxu2 %v7115_v60  ;;  %v9646_v49 = vld [vmem:[#allocation7 + $0x134] sm:$0xf0]  ;;  %v7032_v51 = vld [vmem:[#allocation7 + $0x38] sm:$0xf0]  ;;  %v9644_v52 = vld [vmem:[#allocation7 + $0x12c] sm:$0xf]  ;;  %v7031_v55 = vor.u32 %v9614_v46, %v7030_v45 }
  0xa7   : > { %1033 = vmatpush.bf16.msrb.mxu3 %v7243_v0  ;;  %v7160_v53 = vld [vmem:[#allocation7 + $0x138] sm:$0xf0]  ;;  %v7159_v56 = vor.u32 %v9646_v49, %v7158_v47  ;;  %v7035_v58 = vor.u32 %v9612_v50, %v7032_v51  ;;  %v7014_v59 = vld [vmem:[#allocation7 + $0x8] sm:$0xf]  ;;  %v9610_v60 = vld [vmem:[#allocation7 + $0x14] sm:$0xf0] }
  0xa8   : > { %v7142_v61 = vld [vmem:[#allocation7 + $0x108] sm:$0xf]  ;;  %v7163_v62 = vor.u32 %v9644_v52, %v7160_v53  ;;  %v9642_v63 = vld [vmem:[#allocation7 + $0x114] sm:$0xf0]  ;;  %v9608_v0 = vld [vmem:[#allocation7 + $0xc] sm:$0xf]  ;;  %v7015_v4 = vor.u32 %v9610_v60, %v7014_v59 }
  0xa9   : > { %992 = vmatpush.bf16.msrb.mxu0 %v7095_v6  ;;  %v7016_v1 = vld [vmem:[#allocation7 + $0x18] sm:$0xf0]  ;;  %v9640_v2 = vld [vmem:[#allocation7 + $0x10c] sm:$0xf]  ;;  %v7143_v5 = vor.u32 %v9642_v63, %v7142_v61 }
  0xaa   : > { %1006 = vmatpush.bf16.msrb.mxu1 %v7223_v7  ;;  %1020 = vmatpush.bf16.msrb.mxu2 %v7099_v8  ;;  %v7144_v3 = vld [vmem:[#allocation7 + $0x118] sm:$0xf0]  ;;  %v7019_v6 = vor.u32 %v9608_v0, %v7016_v1  ;;  %v594_v8 = vld [vmem:[#allocation9] sm:$0xf] }
  0xab   : > { %1034 = vmatpush.bf16.msrb.mxu3 %v7227_v12  ;;  %v7147_v7 = vor.u32 %v9640_v2, %v7144_v3  ;;  %v596_v9 = vperm.slane %v594_v8, 0  ;;  %v597_v13 = vperm.slane %v594_v8, 1  ;;  %v598_v29 = vperm.slane %v594_v8, 2 }
  0xac   : > { %v599_v34 = vperm.slane %v594_v8, 3 }
  0xad   : > { %993 = vmatpush.bf16.msrb.mxu0 %v7079_v18 }
  0xae   : > { %1007 = vmatpush.bf16.msrb.mxu1 %v7207_v19  ;;  %1021 = vmatpush.bf16.msrb.mxu2 %v7083_v20 }
  0xaf   : > { %1035 = vmatpush.bf16.msrb.mxu3 %v7211_v24 }
  0xb1   : > { %994 = vmatpush.bf16.msrb.mxu0 %v7063_v30 }
  0xb2   : > { %1008 = vmatpush.bf16.msrb.mxu1 %v7191_v31  ;;  %1022 = vmatpush.bf16.msrb.mxu2 %v7067_v32 }
  0xb3   : > { %1036 = vmatpush.bf16.msrb.mxu3 %v7195_v36 }
  0xb5   : > { %995 = vmatpush.bf16.msrb.mxu0 %v7047_v42 }
  0xb6   : > { %1009 = vmatpush.bf16.msrb.mxu1 %v7175_v43  ;;  %1023 = vmatpush.bf16.msrb.mxu2 %v7051_v44 }
  0xb7   : > { %1037 = vmatpush.bf16.msrb.mxu3 %v7179_v48 }
  0xb9   : > { %996 = vmatpush.bf16.msrb.mxu0 %v7031_v55 }
  0xba   : > { %1010 = vmatpush.bf16.msrb.mxu1 %v7159_v56  ;;  %1024 = vmatpush.bf16.msrb.mxu2 %v7035_v58 }
  0xbb   : > { %1038 = vmatpush.bf16.msrb.mxu3 %v7163_v62 }
  0xbd   : > { %997 = vmatpush.bf16.msrb.mxu0 %v7015_v4 }
  0xbe   : > { %1011 = vmatpush.bf16.msrb.mxu1 %v7143_v5  ;;  %1025 = vmatpush.bf16.msrb.mxu2 %v7019_v6 }
  0xbf   : > { %1039 = vmatpush.bf16.msrb.mxu3 %v7147_v7 }
  0xc0   : > { %998 = vmatmul.bf16.vlgmr.msrb.gmra.mxu0 %v11192_v54 }
  0xc1   : > { %1012 = vmatmul.bf16.vlgmr.msrb.gmra.mxu1 %v11194_v57  ;;  %1026 = vmatmul.bf16.vlgmr.msrb.gmra.mxu2 %v11192_v54 }
  0xc2   : > { %1040 = vmatmul.bf16.vlgmr.msrb.gmra.mxu3 %v11194_v57 }
 0x11d   : > { %v943_v10 = vpop.f32.mrf.mxu0 }
 0x11e   : > { %v944_v11 = vadd.f32 %v943_v10, %v596_v9 }
 0x120   : > { %v957_v12 = vpop.f32.mrf.mxu1 }
 0x121   : > { %v958_v14 = vadd.f32 %v957_v12, %v944_v11 }
 0x123   : > { %v1046_v16 = vmax.f32 %v958_v14, 0.0 }
 0x124   : > { %v971_v15 = vpop.f32.mrf.mxu2 }
 0x125   : > { %v972_v17 = vadd.f32 %v971_v15, %v597_v13  ;;  %1054 = vst [vmem:[#allocation2 + $0x30] sm:$0xff] %v1046_v16  ;;  %v945_v20 = vpop.f32.mrf.mxu0 }
 0x126   : > { %v946_v21 = vadd.f32 %v945_v20, %v596_v9 }
 0x127   : > { %v985_v18 = vpop.f32.mrf.mxu3 }
 0x128   : > { %v986_v19 = vadd.f32 %v985_v18, %v972_v17  ;;  %v959_v22 = vpop.f32.mrf.mxu1 }
 0x129   : > { %v960_v54 = vadd.f32 %v959_v22, %v946_v21 }
 0x12a   : > { %v1047_v23 = vmax.f32 %v986_v19, 0.0 }
 0x12b   : > { %v1050_v24 = vmax.f32 %v960_v54, 0.0 }
 0x12c   : > { %1055 = vst [vmem:[#allocation2] sm:$0xff] %v1047_v23  ;;  %v973_v57 = vpop.f32.mrf.mxu2 }
 0x12d   : > { %v974_v25 = vadd.f32 %v973_v57, %v597_v13  ;;  %1058 = vst [vmem:[#allocation2 + $0x8] sm:$0xff] %v1050_v24 }
 0x12f   : > { %v987_v26 = vpop.f32.mrf.mxu3 }
 0x130   : > { %v988_v27 = vadd.f32 %v987_v26, %v974_v25 }
 0x132   : > { %v1051_v28 = vmax.f32 %v988_v27, 0.0 }
 0x134   : > { %1059 = vst [vmem:[#allocation2 + $0x20] sm:$0xff] %v1051_v28 }
 0x13d   : > { %v999_v30 = vpop.f32.mrf.mxu0 }
 0x13e   : > { %v1000_v31 = vadd.f32 %v999_v30, %v598_v29  ;;  %v1013_v32 = vpop.f32.mrf.mxu1 }
 0x140   : > { %v1014_v33 = vadd.f32 %v1013_v32, %v1000_v31 }
 0x142   : > { %v1048_v35 = vmax.f32 %v1014_v33, 0.0 }
 0x144   : > { %1056 = vst [vmem:[#allocation2 + $0x18] sm:$0xff] %v1048_v35  ;;  %v1027_v36 = vpop.f32.mrf.mxu2 }
 0x145   : > { %v1028_v37 = vadd.f32 %v1027_v36, %v599_v34  ;;  %v1041_v38 = vpop.f32.mrf.mxu3  ;;  %v1001_v39 = vpop.f32.mrf.mxu0 }
 0x146   : > { %v1002_v40 = vadd.f32 %v1001_v39, %v598_v29  ;;  %v1015_v42 = vpop.f32.mrf.mxu1 }
 0x147   : > { %v1042_v41 = vadd.f32 %v1041_v38, %v1028_v37 }
 0x148   : > { %v1016_v43 = vadd.f32 %v1015_v42, %v1002_v40 }
 0x149   : > { %v1049_v44 = vmax.f32 %v1042_v41, 0.0 }
 0x14a   : > { %v1052_v45 = vmax.f32 %v1016_v43, 0.0 }
 0x14b   : > { %1057 = vst [vmem:[#allocation2 + $0x10] sm:$0xff] %v1049_v44 }
 0x14c   : > { %1060 = vst [vmem:[#allocation2 + $0x28] sm:$0xff] %v1052_v45  ;;  %v1029_v46 = vpop.f32.mrf.mxu2 }
 0x14d   : > { %v1030_v47 = vadd.f32 %v1029_v46, %v599_v34  ;;  %v1043_v48 = vpop.f32.mrf.mxu3 }
 0x14f   : > { %v1044_v49 = vadd.f32 %v1043_v48, %v1030_v47 }
 0x151   : > { %v1053_v50 = vmax.f32 %v1044_v49, 0.0 }
 0x153   : > { %1061 = vst [vmem:[#allocation2 + $0x38] sm:$0xff] %v1053_v50 }
 0x154 PF: > { %v7598_v51 = vld [vmem:[%s11162_s26 + $0x2a0] sm:$0xf]  ;;  %v9761_v52 = vld [vmem:[%s11162_s26 + $0x2cc] sm:$0xf0]  ;;  %s10879_s16 = smov 64   ;;  %vm4062_vm0 = vcmask 523264  }
 0x155   : > { %v7982_v53 = vld [vmem:[%s11162_s26 + $0x5a0] sm:$0xf]  ;;  %v7599_v55 = vor.u32 %v9761_v52, %v7598_v51  ;;  %v9857_v56 = vld [vmem:[%s11162_s26 + $0x5cc] sm:$0xf0]  ;;  %vm4098_vm1 = vcmask 1043456   ;;  %vm4082_vm2 = vcmask 64512  }
 0x156   : > { %v8366_v58 = vld [vmem:[%s11162_s26 + $0x8a0] sm:$0xf]  ;;  %v9953_v59 = vld [vmem:[%s11162_s26 + $0x8cc] sm:$0xf0]  ;;  %v7983_v60 = vor.u32 %v9857_v56, %v7982_v53  ;;  %vm4236_vm3 = vcmask 1048064   ;;  %s12892_s1 = sld [smem:[#allocation29_spill]] }
 0x157   : > { %v8367_v61 = vor.u32 %v9953_v59, %v8366_v58  ;;  %v8750_v62 = vld [vmem:[%s11162_s26 + $0xba0] sm:$0xf]  ;;  %v10049_v63 = vld [vmem:[%s11162_s26 + $0xbcc] sm:$0xf0]  ;;  %3378 = vmatpush.bf16.msra.mxu0 %v7599_v55 }
 0x158   : > { %v7550_v0 = vld [vmem:[%s11162_s26 + $0x240] sm:$0xf]  ;;  %v8751_v1 = vor.u32 %v10049_v63, %v8750_v62  ;;  %v9749_v2 = vld [vmem:[%s11162_s26 + $0x26c] sm:$0xf0]  ;;  %3392 = vmatpush.bf16.msra.mxu1 %v7983_v60 }
 0x159   : > { %v7934_v3 = vld [vmem:[%s11162_s26 + $0x540] sm:$0xf]  ;;  %v9845_v4 = vld [vmem:[%s11162_s26 + $0x56c] sm:$0xf0]  ;;  %3406 = vmatpush.bf16.msra.mxu2 %v8367_v61  ;;  %v7551_v5 = vor.u32 %v9749_v2, %v7550_v0 }
 0x15a   : > { %v7935_v6 = vor.u32 %v9845_v4, %v7934_v3  ;;  %v8318_v7 = vld [vmem:[%s11162_s26 + $0x840] sm:$0xf]  ;;  %v9941_v8 = vld [vmem:[%s11162_s26 + $0x86c] sm:$0xf0]  ;;  %3420 = vmatpush.bf16.msra.mxu3 %v8751_v1 }
 0x15b   : > { %v8702_v9 = vld [vmem:[%s11162_s26 + $0xb40] sm:$0xf]  ;;  %v8319_v10 = vor.u32 %v9941_v8, %v8318_v7  ;;  %v10037_v11 = vld [vmem:[%s11162_s26 + $0xb6c] sm:$0xf0]  ;;  %3379 = vmatpush.bf16.msra.mxu0 %v7551_v5 }
 0x15c   : > { %v7502_v12 = vld [vmem:[%s11162_s26 + $0x1e0] sm:$0xf]  ;;  %v9737_v13 = vld [vmem:[%s11162_s26 + $0x20c] sm:$0xf0]  ;;  %v8703_v14 = vor.u32 %v10037_v11, %v8702_v9  ;;  %3393 = vmatpush.bf16.msra.mxu1 %v7935_v6  ;;  %p9340_p1 = scmp.ne.s32.totalorder %s12892_s1, 1 }
 0x15d   : > { %v7886_v15 = vld [vmem:[%s11162_s26 + $0x4e0] sm:$0xf]  ;;  %v9833_v16 = vld [vmem:[%s11162_s26 + $0x50c] sm:$0xf0]  ;;  %v7503_v18 = vor.u32 %v9737_v13, %v7502_v12  ;;  %3407 = vmatpush.bf16.msra.mxu2 %v8319_v10 }
 0x15e   : > { %v8270_v17 = vld [vmem:[%s11162_s26 + $0x7e0] sm:$0xf]  ;;  %v9929_v19 = vld [vmem:[%s11162_s26 + $0x80c] sm:$0xf0]  ;;  %v7887_v22 = vor.u32 %v9833_v16, %v7886_v15  ;;  %3421 = vmatpush.bf16.msra.mxu3 %v8703_v14  ;;  %v9755_v15 = vld [vmem:[%s11162_s26 + $0x2a4] sm:$0xf] }
 0x15f   : > { %v8654_v20 = vld [vmem:[%s11162_s26 + $0xae0] sm:$0xf]  ;;  %v10025_v21 = vld [vmem:[%s11162_s26 + $0xb0c] sm:$0xf0]  ;;  %v8271_v23 = vor.u32 %v9929_v19, %v8270_v17  ;;  %3380 = vmatpush.bf16.msra.mxu0 %v7503_v18  ;;  %v7600_v16 = vld [vmem:[%s11162_s26 + $0x2d0] sm:$0xf0] }
 0x160   : > { %v7454_v54 = vld [vmem:[%s11162_s26 + $0x180] sm:$0xf]  ;;  %v9725_v57 = vld [vmem:[%s11162_s26 + $0x1ac] sm:$0xf0]  ;;  %v8655_v25 = vor.u32 %v10025_v21, %v8654_v20  ;;  %3394 = vmatpush.bf16.msra.mxu1 %v7887_v22  ;;  %v9851_v17 = vld [vmem:[%s11162_s26 + $0x5a4] sm:$0xf] }
 0x161   : > { %v7838_v24 = vld [vmem:[%s11162_s26 + $0x480] sm:$0xf]  ;;  %v9821_v26 = vld [vmem:[%s11162_s26 + $0x4ac] sm:$0xf0]  ;;  %v7455_v31 = vor.u32 %v9725_v57, %v7454_v54  ;;  %3408 = vmatpush.bf16.msra.mxu2 %v8271_v23  ;;  %v7984_v18 = vld [vmem:[%s11162_s26 + $0x5d0] sm:$0xf0] }
 0x162   : > { %v8222_v27 = vld [vmem:[%s11162_s26 + $0x780] sm:$0xf]  ;;  %v9917_v28 = vld [vmem:[%s11162_s26 + $0x7ac] sm:$0xf0]  ;;  %v7839_v32 = vor.u32 %v9821_v26, %v7838_v24  ;;  %3422 = vmatpush.bf16.msra.mxu3 %v8655_v25  ;;  %v9947_v19 = vld [vmem:[%s11162_s26 + $0x8a4] sm:$0xf]  ;;  %v7603_v26 = vor.u32 %v9755_v15, %v7600_v16 }
 0x163   : > { %v8606_v29 = vld [vmem:[%s11162_s26 + $0xa80] sm:$0xf]  ;;  %v10013_v30 = vld [vmem:[%s11162_s26 + $0xaac] sm:$0xf0]  ;;  %v8223_v33 = vor.u32 %v9917_v28, %v8222_v27  ;;  %3381 = vmatpush.bf16.msra.mxu0 %v7455_v31  ;;  %v8368_v21 = vld [vmem:[%s11162_s26 + $0x8d0] sm:$0xf0]  ;;  %v7987_v27 = vor.u32 %v9851_v17, %v7984_v18 }
 0x164   : > { %v7406_v34 = vld [vmem:[%s11162_s26 + $0x120] sm:$0xf]  ;;  %v9713_v35 = vld [vmem:[%s11162_s26 + $0x14c] sm:$0xf0]  ;;  %v8607_v37 = vor.u32 %v10013_v30, %v8606_v29  ;;  %3395 = vmatpush.bf16.msra.mxu1 %v7839_v32  ;;  %v10043_v24 = vld [vmem:[%s11162_s26 + $0xba4] sm:$0xf]  ;;  %v8371_v30 = vor.u32 %v9947_v19, %v8368_v21 }
 0x165   : > { %v7790_v36 = vld [vmem:[%s11162_s26 + $0x420] sm:$0xf]  ;;  %v9809_v38 = vld [vmem:[%s11162_s26 + $0x44c] sm:$0xf0]  ;;  %v7407_v43 = vor.u32 %v9713_v35, %v7406_v34  ;;  %3409 = vmatpush.bf16.msra.mxu2 %v8223_v33  ;;  %v8752_v25 = vld [vmem:[%s11162_s26 + $0xbd0] sm:$0xf0] }
 0x166   : > { %v8174_v39 = vld [vmem:[%s11162_s26 + $0x720] sm:$0xf]  ;;  %v9905_v40 = vld [vmem:[%s11162_s26 + $0x74c] sm:$0xf0]  ;;  %v7791_v44 = vor.u32 %v9809_v38, %v7790_v36  ;;  %3423 = vmatpush.bf16.msra.mxu3 %v8607_v37  ;;  %v9743_v28 = vld [vmem:[%s11162_s26 + $0x244] sm:$0xf]  ;;  %v8755_v35 = vor.u32 %v10043_v24, %v8752_v25 }
 0x167   : > { %v8558_v41 = vld [vmem:[%s11162_s26 + $0xa20] sm:$0xf]  ;;  %v10001_v42 = vld [vmem:[%s11162_s26 + $0xa4c] sm:$0xf0]  ;;  %v8175_v45 = vor.u32 %v9905_v40, %v8174_v39  ;;  %3382 = vmatpush.bf16.msra.mxu0 %v7407_v43  ;;  %v7552_v29 = vld [vmem:[%s11162_s26 + $0x270] sm:$0xf0] }
 0x168   : > { %v7358_v46 = vld [vmem:[%s11162_s26 + $0xc0] sm:$0xf]  ;;  %v9701_v47 = vld [vmem:[%s11162_s26 + $0xec] sm:$0xf0]  ;;  %v8559_v49 = vor.u32 %v10001_v42, %v8558_v41  ;;  %3396 = vmatpush.bf16.msra.mxu1 %v7791_v44  ;;  %v9839_v32 = vld [vmem:[%s11162_s26 + $0x544] sm:$0xf]  ;;  %v7555_v42 = vor.u32 %v9743_v28, %v7552_v29 }
 0x169   : > { %v7742_v48 = vld [vmem:[%s11162_s26 + $0x3c0] sm:$0xf]  ;;  %v9797_v50 = vld [vmem:[%s11162_s26 + $0x3ec] sm:$0xf0]  ;;  %v7359_v56 = vor.u32 %v9701_v47, %v7358_v46  ;;  %3410 = vmatpush.bf16.msra.mxu2 %v8175_v45  ;;  %v7936_v33 = vld [vmem:[%s11162_s26 + $0x570] sm:$0xf0] }
 0x16a   : > { %v8126_v51 = vld [vmem:[%s11162_s26 + $0x6c0] sm:$0xf]  ;;  %v9893_v52 = vld [vmem:[%s11162_s26 + $0x6ec] sm:$0xf0]  ;;  %v7743_v58 = vor.u32 %v9797_v50, %v7742_v48  ;;  %3424 = vmatpush.bf16.msra.mxu3 %v8559_v49  ;;  %v9935_v34 = vld [vmem:[%s11162_s26 + $0x844] sm:$0xf]  ;;  %v7939_v43 = vor.u32 %v9839_v32, %v7936_v33 }
 0x16b   : > { %v8510_v53 = vld [vmem:[%s11162_s26 + $0x9c0] sm:$0xf]  ;;  %v9989_v55 = vld [vmem:[%s11162_s26 + $0x9ec] sm:$0xf0]  ;;  %v8127_v59 = vor.u32 %v9893_v52, %v8126_v51  ;;  %3383 = vmatpush.bf16.msra.mxu0 %v7359_v56  ;;  %v8320_v36 = vld [vmem:[%s11162_s26 + $0x870] sm:$0xf0] }
 0x16c   : > { %v7310_v60 = vld [vmem:[%s11162_s26 + $0x60] sm:$0xf]  ;;  %v9689_v61 = vld [vmem:[%s11162_s26 + $0x8c] sm:$0xf0]  ;;  %v8511_v63 = vor.u32 %v9989_v55, %v8510_v53  ;;  %3397 = vmatpush.bf16.msra.mxu1 %v7743_v58  ;;  %v10031_v37 = vld [vmem:[%s11162_s26 + $0xb44] sm:$0xf]  ;;  %v8323_v48 = vor.u32 %v9935_v34, %v8320_v36 }
 0x16d   : > { %v7694_v62 = vld [vmem:[%s11162_s26 + $0x360] sm:$0xf]  ;;  %v9785_v0 = vld [vmem:[%s11162_s26 + $0x38c] sm:$0xf0]  ;;  %v7311_v5 = vor.u32 %v9689_v61, %v7310_v60  ;;  %3411 = vmatpush.bf16.msra.mxu2 %v8127_v59  ;;  %v8704_v38 = vld [vmem:[%s11162_s26 + $0xb70] sm:$0xf0] }
 0x16e   : > { %v8078_v1 = vld [vmem:[%s11162_s26 + $0x660] sm:$0xf]  ;;  %v9881_v2 = vld [vmem:[%s11162_s26 + $0x68c] sm:$0xf0]  ;;  %v7695_v8 = vor.u32 %v9785_v0, %v7694_v62  ;;  %3425 = vmatpush.bf16.msra.mxu3 %v8511_v63  ;;  %v9731_v39 = vld [vmem:[%s11162_s26 + $0x1e4] sm:$0xf]  ;;  %v8707_v52 = vor.u32 %v10031_v37, %v8704_v38 }
 0x16f   : > { %v8462_v3 = vld [vmem:[%s11162_s26 + $0x960] sm:$0xf]  ;;  %v9977_v4 = vld [vmem:[%s11162_s26 + $0x98c] sm:$0xf0]  ;;  %v8079_v9 = vor.u32 %v9881_v2, %v8078_v1  ;;  %3384 = vmatpush.bf16.msra.mxu0 %v7311_v5  ;;  %v1064_v40 = vld [vmem:[#allocation2 + $0x18] sm:$0xff] }
 0x170   : > { %v7262_v6 = vld [vmem:[%s11162_s26] sm:$0xf]  ;;  %v9677_v7 = vld [vmem:[%s11162_s26 + $0x2c] sm:$0xf0]  ;;  %v8463_v13 = vor.u32 %v9977_v4, %v8462_v3  ;;  %3398 = vmatpush.bf16.msra.mxu1 %v7695_v8  ;;  %v1068_v41 = vld [vmem:[#allocation2 + $0x28] sm:$0xff] }
 0x171   : > { %v7646_v10 = vld [vmem:[%s11162_s26 + $0x300] sm:$0xf]  ;;  %v9773_v11 = vld [vmem:[%s11162_s26 + $0x32c] sm:$0xf0]  ;;  %v7263_v20 = vor.u32 %v9677_v7, %v7262_v6  ;;  %3412 = vmatpush.bf16.msra.mxu2 %v8079_v9  ;;  %v7504_v44 = vld [vmem:[%s11162_s26 + $0x210] sm:$0xf0]  ;;  %v11288_v47 = vpack.c.bf16 %v1068_v41, %v1064_v40 }
 0x172   : > { %v8030_v12 = vld [vmem:[%s11162_s26 + $0x600] sm:$0xf]  ;;  %v9869_v14 = vld [vmem:[%s11162_s26 + $0x62c] sm:$0xf0]  ;;  %v7647_v54 = vor.u32 %v9773_v11, %v7646_v10  ;;  %3426 = vmatpush.bf16.msra.mxu3 %v8463_v13  ;;  %v9827_v45 = vld [vmem:[%s11162_s26 + $0x4e4] sm:$0xf]  ;;  %v7507_v62 = vor.u32 %v9731_v39, %v7504_v44 }
 0x173   : > { %v8414_v22 = vld [vmem:[%s11162_s26 + $0x900] sm:$0xf]  ;;  %v9965_v23 = vld [vmem:[%s11162_s26 + $0x92c] sm:$0xf0]  ;;  %v8031_v57 = vor.u32 %v9869_v14, %v8030_v12  ;;  %3385 = vmatpush.bf16.msra.mxu0 %v7263_v20  ;;  %v7888_v46 = vld [vmem:[%s11162_s26 + $0x510] sm:$0xf0] }
 0x174   : > { %v8415_v31 = vor.u32 %v9965_v23, %v8414_v22  ;;  %3399 = vmatpush.bf16.msra.mxu1 %v7647_v54  ;;  %v9923_v49 = vld [vmem:[%s11162_s26 + $0x7e4] sm:$0xf]  ;;  %v8272_v50 = vld [vmem:[%s11162_s26 + $0x810] sm:$0xf0]  ;;  %v1065_v51 = vld [vmem:[#allocation2 + $0x10] sm:$0xff]  ;;  %v7891_v63 = vor.u32 %v9827_v45, %v7888_v46 }
 0x175   : > { %3413 = vmatpush.bf16.msra.mxu2 %v8031_v57  ;;  %v10019_v53 = vld [vmem:[%s11162_s26 + $0xae4] sm:$0xf]  ;;  %v8656_v55 = vld [vmem:[%s11162_s26 + $0xb10] sm:$0xf0]  ;;  %v1062_v59 = vld [vmem:[#allocation2 + $0x30] sm:$0xff]  ;;  %v8275_v3 = vor.u32 %v9923_v49, %v8272_v50 }
 0x176   : > { %3427 = vmatpush.bf16.msra.mxu3 %v8415_v31  ;;  %v1069_v56 = vld [vmem:[#allocation2 + $0x38] sm:$0xff]  ;;  %v1066_v60 = vld [vmem:[#allocation2 + $0x8] sm:$0xff]  ;;  %v1063_v61 = vld [vmem:[#allocation2] sm:$0xff]  ;;  %v8659_v8 = vor.u32 %v10019_v53, %v8656_v55 }
 0x177   : > { %3434 = vmatpush.bf16.msrb.mxu0 %v7603_v26  ;;  %v11295_v58 = vpack.c.bf16 %v1069_v56, %v1065_v51  ;;  %v9719_v0 = vld [vmem:[%s11162_s26 + $0x184] sm:$0xf]  ;;  %v11298_v1 = vpack.c.bf16 %v1066_v60, %v1062_v59  ;;  %v1067_v2 = vld [vmem:[#allocation2 + $0x20] sm:$0xff]  ;;  %v7456_v4 = vld [vmem:[%s11162_s26 + $0x1b0] sm:$0xf0] }
 0x178   : > { %3448 = vmatpush.bf16.msrb.mxu1 %v7987_v27  ;;  %3414 = vmatmul.bf16.vlgmr.msra.gmra.mxu2 %v11288_v47  ;;  %v9815_v5 = vld [vmem:[%s11162_s26 + $0x484] sm:$0xf]  ;;  %v7840_v6 = vld [vmem:[%s11162_s26 + $0x4b0] sm:$0xf0]  ;;  %v11304_v7 = vpack.c.bf16 %v1067_v2, %v1063_v61  ;;  %v7459_v13 = vor.u32 %v9719_v0, %v7456_v4  ;;  %v7606_v61 = vld [vmem:[%s11162_s26 + $0x2a8] sm:$0xf] }
 0x179   : > { %3462 = vmatpush.bf16.msrb.mxu2 %v8371_v30  ;;  %3428 = vmatmul.bf16.vlgmr.msra.gmra.mxu3 %v11295_v58  ;;  %v9911_v9 = vld [vmem:[%s11162_s26 + $0x784] sm:$0xf]  ;;  %v8224_v10 = vld [vmem:[%s11162_s26 + $0x7b0] sm:$0xf0]  ;;  %v7843_v14 = vor.u32 %v9815_v5, %v7840_v6  ;;  %v9858_v0 = vld [vmem:[%s11162_s26 + $0x5d4] sm:$0xf0] }
 0x17a   : > { %3476 = vmatpush.bf16.msrb.mxu3 %v8755_v35  ;;  %3386 = vmatmul.bf16.vlgmr.msra.gmra.mxu0 %v11298_v1  ;;  %v10007_v11 = vld [vmem:[%s11162_s26 + $0xa84] sm:$0xf]  ;;  %v8608_v12 = vld [vmem:[%s11162_s26 + $0xab0] sm:$0xf0]  ;;  %v8227_v16 = vor.u32 %v9911_v9, %v8224_v10  ;;  %v8374_v2 = vld [vmem:[%s11162_s26 + $0x8a8] sm:$0xf] }
 0x17b   : > { %3435 = vmatpush.bf16.msrb.mxu0 %v7555_v42  ;;  %3400 = vmatmul.bf16.vlgmr.msra.gmra.mxu1 %v11304_v7  ;;  %v9707_v15 = vld [vmem:[%s11162_s26 + $0x124] sm:$0xf]  ;;  %v7408_v17 = vld [vmem:[%s11162_s26 + $0x150] sm:$0xf0]  ;;  %v8611_v20 = vor.u32 %v10007_v11, %v8608_v12  ;;  %v8758_v11 = vld [vmem:[%s11162_s26 + $0xba8] sm:$0xf] }
 0x17c   : > { %3449 = vmatpush.bf16.msrb.mxu1 %v7939_v43  ;;  %v9803_v18 = vld [vmem:[%s11162_s26 + $0x424] sm:$0xf]  ;;  %v7792_v19 = vld [vmem:[%s11162_s26 + $0x450] sm:$0xf0]  ;;  %v7411_v57 = vor.u32 %v9707_v15, %v7408_v17  ;;  %v10050_v12 = vld [vmem:[%s11162_s26 + $0xbd4] sm:$0xf0] }
 0x17d   : > { %3463 = vmatpush.bf16.msrb.mxu2 %v8323_v48  ;;  %v9899_v21 = vld [vmem:[%s11162_s26 + $0x724] sm:$0xf]  ;;  %v8176_v22 = vld [vmem:[%s11162_s26 + $0x750] sm:$0xf0]  ;;  %v7795_v24 = vor.u32 %v9803_v18, %v7792_v19  ;;  %v7558_v15 = vld [vmem:[%s11162_s26 + $0x248] sm:$0xf] }
 0x17e   : > { %3477 = vmatpush.bf16.msrb.mxu3 %v8707_v52  ;;  %v9995_v23 = vld [vmem:[%s11162_s26 + $0xa24] sm:$0xf]  ;;  %v8560_v54 = vld [vmem:[%s11162_s26 + $0xa50] sm:$0xf0]  ;;  %v8179_v26 = vor.u32 %v9899_v21, %v8176_v22  ;;  %v7942_v18 = vld [vmem:[%s11162_s26 + $0x548] sm:$0xf] }
 0x17f   : > { %3436 = vmatpush.bf16.msrb.mxu0 %v7507_v62  ;;  %v9695_v25 = vld [vmem:[%s11162_s26 + $0xc4] sm:$0xf]  ;;  %v7360_v27 = vld [vmem:[%s11162_s26 + $0xf0] sm:$0xf0]  ;;  %v8563_v30 = vor.u32 %v9995_v23, %v8560_v54  ;;  %v9762_v62 = vld [vmem:[%s11162_s26 + $0x2d4] sm:$0xf0] }
 0x180   : > { %3450 = vmatpush.bf16.msrb.mxu1 %v7891_v63  ;;  %v9791_v28 = vld [vmem:[%s11162_s26 + $0x3c4] sm:$0xf]  ;;  %v7744_v29 = vld [vmem:[%s11162_s26 + $0x3f0] sm:$0xf0]  ;;  %v7363_v35 = vor.u32 %v9695_v25, %v7360_v27  ;;  %v7990_v63 = vld [vmem:[%s11162_s26 + $0x5a8] sm:$0xf]  ;;  %v7607_v10 = vor.u32 %v9762_v62, %v7606_v61 }
 0x181   : > { %3464 = vmatpush.bf16.msrb.mxu2 %v8275_v3  ;;  %v9887_v31 = vld [vmem:[%s11162_s26 + $0x6c4] sm:$0xf]  ;;  %v8128_v32 = vld [vmem:[%s11162_s26 + $0x6f0] sm:$0xf0]  ;;  %v7747_v36 = vor.u32 %v9791_v28, %v7744_v29  ;;  %v9954_v3 = vld [vmem:[%s11162_s26 + $0x8d4] sm:$0xf0] }
 0x182   : > { %3478 = vmatpush.bf16.msrb.mxu3 %v8659_v8  ;;  %v9983_v33 = vld [vmem:[%s11162_s26 + $0x9c4] sm:$0xf]  ;;  %v8512_v34 = vld [vmem:[%s11162_s26 + $0x9f0] sm:$0xf0]  ;;  %v8131_v38 = vor.u32 %v9887_v31, %v8128_v32  ;;  %v9846_v19 = vld [vmem:[%s11162_s26 + $0x574] sm:$0xf0] }
 0x183   : > { %3437 = vmatpush.bf16.msrb.mxu0 %v7459_v13  ;;  %v9683_v37 = vld [vmem:[%s11162_s26 + $0x64] sm:$0xf]  ;;  %v7312_v39 = vld [vmem:[%s11162_s26 + $0x90] sm:$0xf0]  ;;  %v8515_v42 = vor.u32 %v9983_v33, %v8512_v34  ;;  %v7991_v13 = vor.u32 %v9858_v0, %v7990_v63  ;;  %v8326_v21 = vld [vmem:[%s11162_s26 + $0x848] sm:$0xf] }
 0x184   : > { %3451 = vmatpush.bf16.msrb.mxu1 %v7843_v14  ;;  %v9779_v40 = vld [vmem:[%s11162_s26 + $0x364] sm:$0xf]  ;;  %v7696_v41 = vld [vmem:[%s11162_s26 + $0x390] sm:$0xf0]  ;;  %v7315_v48 = vor.u32 %v9683_v37, %v7312_v39  ;;  %v8375_v14 = vor.u32 %v9954_v3, %v8374_v2  ;;  %v9942_v22 = vld [vmem:[%s11162_s26 + $0x874] sm:$0xf0] }
 0x185   : > { %3465 = vmatpush.bf16.msrb.mxu2 %v8227_v16  ;;  %v9875_v43 = vld [vmem:[%s11162_s26 + $0x664] sm:$0xf]  ;;  %v8080_v44 = vld [vmem:[%s11162_s26 + $0x690] sm:$0xf0]  ;;  %v7699_v49 = vor.u32 %v9779_v40, %v7696_v41  ;;  %v9750_v16 = vld [vmem:[%s11162_s26 + $0x274] sm:$0xf0]  ;;  %v8327_v27 = vor.u32 %v9942_v22, %v8326_v21 }
 0x186   : > { %3479 = vmatpush.bf16.msrb.mxu3 %v8611_v20  ;;  %v9971_v45 = vld [vmem:[%s11162_s26 + $0x964] sm:$0xf]  ;;  %v8464_v46 = vld [vmem:[%s11162_s26 + $0x990] sm:$0xf0]  ;;  %v8083_v53 = vor.u32 %v9875_v43, %v8080_v44  ;;  %v8759_v20 = vor.u32 %v10050_v12, %v8758_v11  ;;  %v7559_v23 = vor.u32 %v9750_v16, %v7558_v15  ;;  %v8710_v54 = vld [vmem:[%s11162_s26 + $0xb48] sm:$0xf] }
 0x187   : > { %3438 = vmatpush.bf16.msrb.mxu0 %v7411_v57  ;;  %v9671_v50 = vld [vmem:[%s11162_s26 + $0x4] sm:$0xf]  ;;  %v7264_v51 = vld [vmem:[%s11162_s26 + $0x30] sm:$0xf0]  ;;  %v8467_v60 = vor.u32 %v9971_v45, %v8464_v46  ;;  %v10038_v57 = vld [vmem:[%s11162_s26 + $0xb74] sm:$0xf0] }
 0x188   : > { %3452 = vmatpush.bf16.msrb.mxu1 %v7795_v24  ;;  %v9767_v52 = vld [vmem:[%s11162_s26 + $0x304] sm:$0xf]  ;;  %v7648_v55 = vld [vmem:[%s11162_s26 + $0x330] sm:$0xf0]  ;;  %v7267_v4 = vor.u32 %v9671_v50, %v7264_v51  ;;  %v7943_v24 = vor.u32 %v9846_v19, %v7942_v18  ;;  %v7510_v25 = vld [vmem:[%s11162_s26 + $0x1e8] sm:$0xf] }
 0x189   : > { %3466 = vmatpush.bf16.msrb.mxu2 %v8179_v26  ;;  %v9863_v56 = vld [vmem:[%s11162_s26 + $0x604] sm:$0xf]  ;;  %v8032_v59 = vld [vmem:[%s11162_s26 + $0x630] sm:$0xf0]  ;;  %v7651_v5 = vor.u32 %v9767_v52, %v7648_v55  ;;  %v9738_v26 = vld [vmem:[%s11162_s26 + $0x214] sm:$0xf0] }
 0x18a   : > { %3480 = vmatpush.bf16.msrb.mxu3 %v8563_v30  ;;  %v9959_v6 = vld [vmem:[%s11162_s26 + $0x904] sm:$0xf]  ;;  %v8416_v8 = vld [vmem:[%s11162_s26 + $0x930] sm:$0xf0]  ;;  %v8035_v9 = vor.u32 %v9863_v56, %v8032_v59  ;;  %v7894_v28 = vld [vmem:[%s11162_s26 + $0x4e8] sm:$0xf]  ;;  %v8711_v30 = vor.u32 %v10038_v57, %v8710_v54  ;;  %v7511_v33 = vor.u32 %v9738_v26, %v7510_v25 }
 0x18b   : > { %3439 = vmatpush.bf16.msrb.mxu0 %v7363_v35  ;;  %v8419_v17 = vor.u32 %v9959_v6, %v8416_v8  ;;  %v9834_v29 = vld [vmem:[%s11162_s26 + $0x514] sm:$0xf0]  ;;  %v8278_v31 = vld [vmem:[%s11162_s26 + $0x7e8] sm:$0xf] }
 0x18c   : > { %3453 = vmatpush.bf16.msrb.mxu1 %v7747_v36  ;;  %v9930_v32 = vld [vmem:[%s11162_s26 + $0x814] sm:$0xf0]  ;;  %v8662_v34 = vld [vmem:[%s11162_s26 + $0xae8] sm:$0xf]  ;;  %v7895_v36 = vor.u32 %v9834_v29, %v7894_v28 }
 0x18d   : > { %3467 = vmatpush.bf16.msrb.mxu2 %v8131_v38  ;;  %v10026_v35 = vld [vmem:[%s11162_s26 + $0xb14] sm:$0xf0]  ;;  %v7462_v37 = vld [vmem:[%s11162_s26 + $0x188] sm:$0xf]  ;;  %v8279_v39 = vor.u32 %v9930_v32, %v8278_v31  ;;  %v9756_v32 = vld [vmem:[%s11162_s26 + $0x2ac] sm:$0xf] }
 0x18e   : > { %3481 = vmatpush.bf16.msrb.mxu3 %v8515_v42  ;;  %v9726_v38 = vld [vmem:[%s11162_s26 + $0x1b4] sm:$0xf0]  ;;  %v7846_v40 = vld [vmem:[%s11162_s26 + $0x488] sm:$0xf]  ;;  %v8663_v42 = vor.u32 %v10026_v35, %v8662_v34  ;;  %v9852_v35 = vld [vmem:[%s11162_s26 + $0x5ac] sm:$0xf] }
 0x18f   : > { %3440 = vmatpush.bf16.msrb.mxu0 %v7315_v48  ;;  %v9822_v41 = vld [vmem:[%s11162_s26 + $0x4b4] sm:$0xf0]  ;;  %v8230_v43 = vld [vmem:[%s11162_s26 + $0x788] sm:$0xf]  ;;  %v7463_v45 = vor.u32 %v9726_v38, %v7462_v37  ;;  %v9948_v37 = vld [vmem:[%s11162_s26 + $0x8ac] sm:$0xf] }
 0x190   : > { %3454 = vmatpush.bf16.msrb.mxu1 %v7699_v49  ;;  %v9918_v44 = vld [vmem:[%s11162_s26 + $0x7b4] sm:$0xf0]  ;;  %v8614_v46 = vld [vmem:[%s11162_s26 + $0xa88] sm:$0xf]  ;;  %v7847_v49 = vor.u32 %v9822_v41, %v7846_v40 }
 0x191   : > { %3468 = vmatpush.bf16.msrb.mxu2 %v8083_v53  ;;  %v10014_v48 = vld [vmem:[%s11162_s26 + $0xab4] sm:$0xf0]  ;;  %v7414_v50 = vld [vmem:[%s11162_s26 + $0x128] sm:$0xf]  ;;  %v8231_v52 = vor.u32 %v9918_v44, %v8230_v43  ;;  %v10044_v44 = vld [vmem:[%s11162_s26 + $0xbac] sm:$0xf] }
 0x192   : > { %3482 = vmatpush.bf16.msrb.mxu3 %v8467_v60  ;;  %v9714_v51 = vld [vmem:[%s11162_s26 + $0x154] sm:$0xf0]  ;;  %v7798_v53 = vld [vmem:[%s11162_s26 + $0x428] sm:$0xf]  ;;  %v8615_v56 = vor.u32 %v10014_v48, %v8614_v46 }
 0x193   : > { %3441 = vmatpush.bf16.msrb.mxu0 %v7267_v4  ;;  %v9810_v55 = vld [vmem:[%s11162_s26 + $0x454] sm:$0xf0]  ;;  %v8182_v59 = vld [vmem:[%s11162_s26 + $0x728] sm:$0xf]  ;;  %v7415_v61 = vor.u32 %v9714_v51, %v7414_v50  ;;  %v7560_v50 = vld [vmem:[%s11162_s26 + $0x278] sm:$0xf0] }
 0x194   : > { %3455 = vmatpush.bf16.msrb.mxu1 %v7651_v5  ;;  %v9906_v60 = vld [vmem:[%s11162_s26 + $0x754] sm:$0xf0]  ;;  %v8566_v62 = vld [vmem:[%s11162_s26 + $0xa28] sm:$0xf]  ;;  %v7799_v0 = vor.u32 %v9810_v55, %v7798_v53  ;;  %v9840_v53 = vld [vmem:[%s11162_s26 + $0x54c] sm:$0xf] }
 0x195   : > { %3469 = vmatpush.bf16.msrb.mxu2 %v8035_v9  ;;  %v10002_v63 = vld [vmem:[%s11162_s26 + $0xa54] sm:$0xf0]  ;;  %v7366_v2 = vld [vmem:[%s11162_s26 + $0xc8] sm:$0xf]  ;;  %v8183_v4 = vor.u32 %v9906_v60, %v8182_v59  ;;  %v7944_v55 = vld [vmem:[%s11162_s26 + $0x578] sm:$0xf0] }
 0x196   : > { %3483 = vmatpush.bf16.msrb.mxu3 %v8419_v17  ;;  %3442 = vmatmul.bf16.vlgmr.msrb.gmra.mxu0 %v11298_v1  ;;  %v9702_v3 = vld [vmem:[%s11162_s26 + $0xf4] sm:$0xf0]  ;;  %v7750_v5 = vld [vmem:[%s11162_s26 + $0x3c8] sm:$0xf]  ;;  %v8567_v8 = vor.u32 %v10002_v63, %v8566_v62  ;;  %v9936_v59 = vld [vmem:[%s11162_s26 + $0x84c] sm:$0xf] }
 0x197   : > { %3490 = vmatpush.bf16.msra.mxu0 %v7607_v10  ;;  %3456 = vmatmul.bf16.vlgmr.msrb.gmra.mxu1 %v11304_v7  ;;  %v9798_v6 = vld [vmem:[%s11162_s26 + $0x3f4] sm:$0xf0]  ;;  %v8134_v9 = vld [vmem:[%s11162_s26 + $0x6c8] sm:$0xf]  ;;  %v7367_v11 = vor.u32 %v9702_v3, %v7366_v2  ;;  %v8328_v60 = vld [vmem:[%s11162_s26 + $0x878] sm:$0xf0] }
 0x198   : > { %3504 = vmatpush.bf16.msra.mxu1 %v7991_v13  ;;  %3470 = vmatmul.bf16.vlgmr.msrb.gmra.mxu2 %v11288_v47  ;;  %v9894_v10 = vld [vmem:[%s11162_s26 + $0x6f4] sm:$0xf0]  ;;  %v8518_v12 = vld [vmem:[%s11162_s26 + $0x9c8] sm:$0xf]  ;;  %v10032_v62 = vld [vmem:[%s11162_s26 + $0xb4c] sm:$0xf] }
 0x199   : > { %3518 = vmatpush.bf16.msra.mxu2 %v8375_v14  ;;  %3484 = vmatmul.bf16.vlgmr.msrb.gmra.mxu3 %v11295_v58  ;;  %v9990_v13 = vld [vmem:[%s11162_s26 + $0x9f4] sm:$0xf0]  ;;  %v7751_v14 = vor.u32 %v9798_v6, %v7750_v5  ;;  %v7318_v15 = vld [vmem:[%s11162_s26 + $0x68] sm:$0xf]  ;;  %v8135_v17 = vor.u32 %v9894_v10, %v8134_v9  ;;  %v8712_v63 = vld [vmem:[%s11162_s26 + $0xb78] sm:$0xf0] }
 0x19a   : > { %3532 = vmatpush.bf16.msra.mxu3 %v8759_v20  ;;  %v9690_v16 = vld [vmem:[%s11162_s26 + $0x94] sm:$0xf0]  ;;  %v7702_v18 = vld [vmem:[%s11162_s26 + $0x368] sm:$0xf]  ;;  %v8519_v20 = vor.u32 %v9990_v13, %v8518_v12  ;;  %v9732_v2 = vld [vmem:[%s11162_s26 + $0x1ec] sm:$0xf] }
 0x19b   : > { %3491 = vmatpush.bf16.msra.mxu0 %v7559_v23  ;;  %v9786_v19 = vld [vmem:[%s11162_s26 + $0x394] sm:$0xf0]  ;;  %v8086_v21 = vld [vmem:[%s11162_s26 + $0x668] sm:$0xf]  ;;  %v7319_v54 = vor.u32 %v9690_v16, %v7318_v15  ;;  %v7512_v3 = vld [vmem:[%s11162_s26 + $0x218] sm:$0xf0] }
 0x19c   : > { %3505 = vmatpush.bf16.msra.mxu1 %v7943_v24  ;;  %v9882_v22 = vld [vmem:[%s11162_s26 + $0x694] sm:$0xf0]  ;;  %v8470_v23 = vld [vmem:[%s11162_s26 + $0x968] sm:$0xf]  ;;  %v7703_v26 = vor.u32 %v9786_v19, %v7702_v18  ;;  %v9828_v5 = vld [vmem:[%s11162_s26 + $0x4ec] sm:$0xf] }
 0x19d   : > { %3519 = vmatpush.bf16.msra.mxu2 %v8327_v27  ;;  %v9978_v57 = vld [vmem:[%s11162_s26 + $0x994] sm:$0xf0]  ;;  %v7270_v24 = vld [vmem:[%s11162_s26 + $0x8] sm:$0xf]  ;;  %v7896_v6 = vld [vmem:[%s11162_s26 + $0x518] sm:$0xf0] }
 0x19e   : > { %3533 = vmatpush.bf16.msra.mxu3 %v8711_v30  ;;  %v9678_v25 = vld [vmem:[%s11162_s26 + $0x34] sm:$0xf0]  ;;  %v7654_v27 = vld [vmem:[%s11162_s26 + $0x308] sm:$0xf]  ;;  %v8087_v30 = vor.u32 %v9882_v22, %v8086_v21  ;;  %v8471_v34 = vor.u32 %v9978_v57, %v8470_v23  ;;  %v9924_v9 = vld [vmem:[%s11162_s26 + $0x7ec] sm:$0xf] }
 0x19f   : > { %3492 = vmatpush.bf16.msra.mxu0 %v7511_v33  ;;  %v9774_v28 = vld [vmem:[%s11162_s26 + $0x334] sm:$0xf0]  ;;  %v8038_v29 = vld [vmem:[%s11162_s26 + $0x608] sm:$0xf]  ;;  %v7608_v33 = vld [vmem:[%s11162_s26 + $0x2d8] sm:$0xf0]  ;;  %v7271_v38 = vor.u32 %v9678_v25, %v7270_v24 }
 0x1a0   : > { %3506 = vmatpush.bf16.msra.mxu1 %v7895_v36  ;;  %v9870_v31 = vld [vmem:[%s11162_s26 + $0x634] sm:$0xf0]  ;;  %v7992_v36 = vld [vmem:[%s11162_s26 + $0x5d8] sm:$0xf0]  ;;  %v8422_v40 = vld [vmem:[%s11162_s26 + $0x908] sm:$0xf]  ;;  %v7611_v43 = vor.u32 %v9756_v32, %v7608_v33 }
 0x1a1   : > { %3520 = vmatpush.bf16.msra.mxu2 %v8279_v39  ;;  %v8376_v39 = vld [vmem:[%s11162_s26 + $0x8d8] sm:$0xf0]  ;;  %v9966_v41 = vld [vmem:[%s11162_s26 + $0x934] sm:$0xf0]  ;;  %v8039_v46 = vor.u32 %v9870_v31, %v8038_v29  ;;  %v7995_v48 = vor.u32 %v9852_v35, %v7992_v36  ;;  %v10020_v12 = vld [vmem:[%s11162_s26 + $0xaec] sm:$0xf] }
 0x1a2   : > { %3534 = vmatpush.bf16.msra.mxu3 %v8663_v42  ;;  %v7655_v42 = vor.u32 %v9774_v28, %v7654_v27  ;;  %v8379_v51 = vor.u32 %v9948_v37, %v8376_v39  ;;  %v8280_v10 = vld [vmem:[%s11162_s26 + $0x818] sm:$0xf0]  ;;  %v9720_v15 = vld [vmem:[%s11162_s26 + $0x18c] sm:$0xf] }
 0x1a3   : > { %3493 = vmatpush.bf16.msra.mxu0 %v7463_v45  ;;  %v8760_v45 = vld [vmem:[%s11162_s26 + $0xbd8] sm:$0xf0]  ;;  %v9816_v18 = vld [vmem:[%s11162_s26 + $0x48c] sm:$0xf] }
 0x1a4   : > { %3507 = vmatpush.bf16.msra.mxu1 %v7847_v49  ;;  %v9744_v49 = vld [vmem:[%s11162_s26 + $0x24c] sm:$0xf]  ;;  %v8664_v13 = vld [vmem:[%s11162_s26 + $0xb18] sm:$0xf0] }
 0x1a5   : > { %3521 = vmatpush.bf16.msra.mxu2 %v8231_v52  ;;  %v8423_v52 = vor.u32 %v9966_v41, %v8422_v40  ;;  %v7464_v16 = vld [vmem:[%s11162_s26 + $0x1b8] sm:$0xf0]  ;;  %v9912_v21 = vld [vmem:[%s11162_s26 + $0x78c] sm:$0xf] }
 0x1a6   : > { %3535 = vmatpush.bf16.msra.mxu3 %v8615_v56  ;;  %v8763_v56 = vor.u32 %v10044_v44, %v8760_v45  ;;  %v7848_v19 = vld [vmem:[%s11162_s26 + $0x4b8] sm:$0xf0]  ;;  %v7467_v23 = vor.u32 %v9720_v15, %v7464_v16  ;;  %v9708_v25 = vld [vmem:[%s11162_s26 + $0x12c] sm:$0xf]  ;;  %v8382_v15 = vld [vmem:[%s11162_s26 + $0x8b0] sm:$0xf] }
 0x1a7   : > { %3494 = vmatpush.bf16.msra.mxu0 %v7415_v61  ;;  %v7563_v61 = vor.u32 %v9744_v49, %v7560_v50  ;;  %v8232_v22 = vld [vmem:[%s11162_s26 + $0x7b8] sm:$0xf0]  ;;  %v7851_v24 = vor.u32 %v9816_v18, %v7848_v19  ;;  %v9804_v28 = vld [vmem:[%s11162_s26 + $0x42c] sm:$0xf] }
 0x1a8   : > { %3508 = vmatpush.bf16.msra.mxu1 %v7799_v0  ;;  %v7947_v0 = vor.u32 %v9840_v53, %v7944_v55  ;;  %v8616_v57 = vld [vmem:[%s11162_s26 + $0xab8] sm:$0xf0]  ;;  %v8235_v27 = vor.u32 %v9912_v21, %v8232_v22  ;;  %v9900_v31 = vld [vmem:[%s11162_s26 + $0x72c] sm:$0xf]  ;;  %v8766_v22 = vld [vmem:[%s11162_s26 + $0xbb0] sm:$0xf] }
 0x1a9   : > { %3522 = vmatpush.bf16.msra.mxu2 %v8183_v4  ;;  %v8331_v4 = vor.u32 %v9936_v59, %v8328_v60  ;;  %v7800_v29 = vld [vmem:[%s11162_s26 + $0x458] sm:$0xf0]  ;;  %v9696_v37 = vld [vmem:[%s11162_s26 + $0xcc] sm:$0xf] }
 0x1aa   : > { %3536 = vmatpush.bf16.msra.mxu3 %v8567_v8  ;;  %v8715_v8 = vor.u32 %v10032_v62, %v8712_v63  ;;  %v8184_v32 = vld [vmem:[%s11162_s26 + $0x758] sm:$0xf0]  ;;  %v7803_v36 = vor.u32 %v9804_v28, %v7800_v29  ;;  %v9792_v40 = vld [vmem:[%s11162_s26 + $0x3cc] sm:$0xf]  ;;  %v7950_v28 = vld [vmem:[%s11162_s26 + $0x550] sm:$0xf] }
 0x1ab   : > { %3495 = vmatpush.bf16.msra.mxu0 %v7367_v11  ;;  %v7515_v11 = vor.u32 %v9732_v2, %v7512_v3  ;;  %v8568_v35 = vld [vmem:[%s11162_s26 + $0xa58] sm:$0xf0]  ;;  %v8187_v39 = vor.u32 %v9900_v31, %v8184_v32  ;;  %v9684_v50 = vld [vmem:[%s11162_s26 + $0x6c] sm:$0xf]  ;;  %v9847_v29 = vld [vmem:[%s11162_s26 + $0x57c] sm:$0xf0] }
 0x1ac   : > { %3509 = vmatpush.bf16.msra.mxu1 %v7751_v14  ;;  %v7899_v14 = vor.u32 %v9828_v5, %v7896_v6  ;;  %v7752_v41 = vld [vmem:[%s11162_s26 + $0x3f8] sm:$0xf0]  ;;  %v9780_v53 = vld [vmem:[%s11162_s26 + $0x36c] sm:$0xf]  ;;  %v8334_v31 = vld [vmem:[%s11162_s26 + $0x850] sm:$0xf] }
 0x1ad   : > { %3523 = vmatpush.bf16.msra.mxu2 %v8135_v17  ;;  %v8283_v17 = vor.u32 %v9924_v9, %v8280_v10  ;;  %v8136_v44 = vld [vmem:[%s11162_s26 + $0x6f8] sm:$0xf0]  ;;  %v7755_v49 = vor.u32 %v9792_v40, %v7752_v41  ;;  %v9876_v59 = vld [vmem:[%s11162_s26 + $0x66c] sm:$0xf]  ;;  %v7614_v10 = vld [vmem:[%s11162_s26 + $0x2b0] sm:$0xf] }
 0x1ae   : > { %3537 = vmatpush.bf16.msra.mxu3 %v8519_v20  ;;  %v8667_v20 = vor.u32 %v10020_v12, %v8664_v13  ;;  %v7704_v55 = vld [vmem:[%s11162_s26 + $0x398] sm:$0xf0]  ;;  %v9864_v6 = vld [vmem:[%s11162_s26 + $0x60c] sm:$0xf]  ;;  %v7998_v13 = vld [vmem:[%s11162_s26 + $0x5b0] sm:$0xf] }
 0x1af   : > { %3496 = vmatpush.bf16.msra.mxu0 %v7319_v54  ;;  %v10008_v54 = vld [vmem:[%s11162_s26 + $0xa8c] sm:$0xf]  ;;  %v8088_v60 = vld [vmem:[%s11162_s26 + $0x698] sm:$0xf0]  ;;  %v7707_v3 = vor.u32 %v9780_v53, %v7704_v55  ;;  %v9943_v32 = vld [vmem:[%s11162_s26 + $0x87c] sm:$0xf0] }
 0x1b0   : > { %3510 = vmatpush.bf16.msra.mxu1 %v7703_v26  ;;  %v7416_v26 = vld [vmem:[%s11162_s26 + $0x158] sm:$0xf0]  ;;  %v9960_v18 = vld [vmem:[%s11162_s26 + $0x90c] sm:$0xf]  ;;  %v7902_v40 = vld [vmem:[%s11162_s26 + $0x4f0] sm:$0xf] }
 0x1b1   : > { %3524 = vmatpush.bf16.msra.mxu2 %v8087_v30  ;;  %v8619_v30 = vor.u32 %v10008_v54, %v8616_v57  ;;  %v7419_v33 = vor.u32 %v9708_v25, %v7416_v26  ;;  %v8472_v63 = vld [vmem:[%s11162_s26 + $0x998] sm:$0xf0]  ;;  %v9751_v25 = vld [vmem:[%s11162_s26 + $0x27c] sm:$0xf0]  ;;  %v7854_v53 = vld [vmem:[%s11162_s26 + $0x490] sm:$0xf] }
 0x1b2   : > { %3538 = vmatpush.bf16.msra.mxu3 %v8471_v34  ;;  %v9996_v34 = vld [vmem:[%s11162_s26 + $0xa2c] sm:$0xf]  ;;  %v7272_v2 = vld [vmem:[%s11162_s26 + $0x38] sm:$0xf0]  ;;  %v9835_v41 = vld [vmem:[%s11162_s26 + $0x51c] sm:$0xf0] }
 0x1b3   : > { %3497 = vmatpush.bf16.msra.mxu0 %v7271_v38  ;;  %v7368_v38 = vld [vmem:[%s11162_s26 + $0xf8] sm:$0xf0]  ;;  %v9823_v55 = vld [vmem:[%s11162_s26 + $0x4bc] sm:$0xf0] }
 0x1b4   : > { %3511 = vmatpush.bf16.msra.mxu1 %v7655_v42  ;;  %v8571_v42 = vor.u32 %v9996_v34, %v8568_v35  ;;  %v7371_v45 = vor.u32 %v9696_v37, %v7368_v38  ;;  %v7656_v5 = vld [vmem:[%s11162_s26 + $0x338] sm:$0xf0]  ;;  %v8718_v34 = vld [vmem:[%s11162_s26 + $0xb50] sm:$0xf]  ;;  %v10039_v35 = vld [vmem:[%s11162_s26 + $0xb7c] sm:$0xf0] }
 0x1b5   : > { %3525 = vmatpush.bf16.msra.mxu2 %v8039_v46  ;;  %v9984_v46 = vld [vmem:[%s11162_s26 + $0x9cc] sm:$0xf]  ;;  %v8040_v9 = vld [vmem:[%s11162_s26 + $0x638] sm:$0xf0]  ;;  %v7518_v37 = vld [vmem:[%s11162_s26 + $0x1f0] sm:$0xf] }
 0x1b6   : > { %3539 = vmatpush.bf16.msra.mxu3 %v8423_v52  ;;  %3498 = vmatmul.bf16.vlgmr.msra.gmra.mxu0 %v11298_v1  ;;  %v8424_v19 = vld [vmem:[%s11162_s26 + $0x938] sm:$0xf0]  ;;  %v8043_v54 = vor.u32 %v9864_v6, %v8040_v9  ;;  %v9739_v38 = vld [vmem:[%s11162_s26 + $0x21c] sm:$0xf0]  ;;  %v8190_v9 = vld [vmem:[%s11162_s26 + $0x730] sm:$0xf] }
 0x1b7   : > { %3546 = vmatpush.bf16.msrb.mxu0 %v7611_v43  ;;  %3512 = vmatmul.bf16.vlgmr.msra.gmra.mxu1 %v11304_v7  ;;  %v9888_v43 = vld [vmem:[%s11162_s26 + $0x6cc] sm:$0xf]  ;;  %v9811_v6 = vld [vmem:[%s11162_s26 + $0x45c] sm:$0xf0] }
 0x1b8   : > { %3560 = vmatpush.bf16.msrb.mxu1 %v7995_v48  ;;  %3526 = vmatmul.bf16.vlgmr.msra.gmra.mxu2 %v11288_v47  ;;  %v8520_v48 = vld [vmem:[%s11162_s26 + $0x9f8] sm:$0xf0]  ;;  %v8139_v52 = vor.u32 %v9888_v43, %v8136_v44  ;;  %v8286_v43 = vld [vmem:[%s11162_s26 + $0x7f0] sm:$0xf]  ;;  %v9931_v44 = vld [vmem:[%s11162_s26 + $0x81c] sm:$0xf0] }
 0x1b9   : > { %3574 = vmatpush.bf16.msrb.mxu2 %v8379_v51  ;;  %3540 = vmatmul.bf16.vlgmr.msra.gmra.mxu3 %v11295_v58  ;;  %v7320_v51 = vld [vmem:[%s11162_s26 + $0x98] sm:$0xf0] }
 0x1ba   : > { %3588 = vmatpush.bf16.msrb.mxu3 %v8763_v56  ;;  %v8523_v56 = vor.u32 %v9984_v46, %v8520_v48  ;;  %v7323_v62 = vor.u32 %v9684_v50, %v7320_v51  ;;  %v8670_v46 = vld [vmem:[%s11162_s26 + $0xaf0] sm:$0xf]  ;;  %v10027_v48 = vld [vmem:[%s11162_s26 + $0xb1c] sm:$0xf0] }
 0x1bb   : > { %3547 = vmatpush.bf16.msrb.mxu0 %v7563_v61  ;;  %v9972_v61 = vld [vmem:[%s11162_s26 + $0x96c] sm:$0xf]  ;;  %v7470_v50 = vld [vmem:[%s11162_s26 + $0x190] sm:$0xf]  ;;  %v9727_v51 = vld [vmem:[%s11162_s26 + $0x1bc] sm:$0xf0] }
 0x1bc   : > { %3561 = vmatpush.bf16.msrb.mxu1 %v7947_v0  ;;  %v9672_v0 = vld [vmem:[%s11162_s26 + $0xc] sm:$0xf]  ;;  %v8475_v12 = vor.u32 %v9972_v61, %v8472_v63  ;;  %v7471_v61 = vor.u32 %v9727_v51, %v7470_v50  ;;  %v10015_v63 = vld [vmem:[%s11162_s26 + $0xabc] sm:$0xf0]  ;;  %v9949_v50 = vld [vmem:[%s11162_s26 + $0x8b4] sm:$0xf] }
 0x1bd   : > { %3575 = vmatpush.bf16.msrb.mxu2 %v8331_v4  ;;  %v9768_v4 = vld [vmem:[%s11162_s26 + $0x30c] sm:$0xf]  ;;  %v7275_v16 = vor.u32 %v9672_v0, %v7272_v2  ;;  %v7855_v0 = vor.u32 %v9823_v55, %v7854_v53  ;;  %v7422_v2 = vld [vmem:[%s11162_s26 + $0x130] sm:$0xf]  ;;  %v9967_v55 = vld [vmem:[%s11162_s26 + $0x93c] sm:$0xf0] }
 0x1be   : > { %3589 = vmatpush.bf16.msrb.mxu3 %v8715_v8  ;;  %v8091_v8 = vor.u32 %v9876_v59, %v8088_v60  ;;  %v8238_v59 = vld [vmem:[%s11162_s26 + $0x790] sm:$0xf]  ;;  %v9919_v60 = vld [vmem:[%s11162_s26 + $0x7bc] sm:$0xf0] }
 0x1bf   : > { %3548 = vmatpush.bf16.msrb.mxu0 %v7515_v11  ;;  %v9763_v11 = vld [vmem:[%s11162_s26 + $0x2dc] sm:$0xf0]  ;;  %v8430_v53 = vld [vmem:[%s11162_s26 + $0x910] sm:$0xf] }
 0x1c0   : > { %3562 = vmatpush.bf16.msrb.mxu1 %v7899_v14  ;;  %v9859_v14 = vld [vmem:[%s11162_s26 + $0x5dc] sm:$0xf0]  ;;  %v7615_v21 = vor.u32 %v9763_v11, %v7614_v10 }
 0x1c1   : > { %3576 = vmatpush.bf16.msrb.mxu2 %v8283_v17  ;;  %v9955_v17 = vld [vmem:[%s11162_s26 + $0x8dc] sm:$0xf0]  ;;  %v7999_v57 = vor.u32 %v9859_v14, %v7998_v13 }
 0x1c2   : > { %3590 = vmatpush.bf16.msrb.mxu3 %v8667_v20  ;;  %v7659_v20 = vor.u32 %v9768_v4, %v7656_v5  ;;  %v8383_v26 = vor.u32 %v9955_v17, %v8382_v15  ;;  %v8239_v4 = vor.u32 %v9919_v60, %v8238_v59  ;;  %v7806_v5 = vld [vmem:[%s11162_s26 + $0x430] sm:$0xf]  ;;  %v9907_v10 = vld [vmem:[%s11162_s26 + $0x75c] sm:$0xf0]  ;;  %v10045_v60 = vld [vmem:[%s11162_s26 + $0xbb4] sm:$0xf] }
 0x1c3   : > { %3549 = vmatpush.bf16.msrb.mxu0 %v7467_v23  ;;  %v10051_v23 = vld [vmem:[%s11162_s26 + $0xbdc] sm:$0xf0]  ;;  %v7807_v14 = vor.u32 %v9811_v6, %v7806_v5  ;;  %v7374_v15 = vld [vmem:[%s11162_s26 + $0xd0] sm:$0xf]  ;;  %v8191_v17 = vor.u32 %v9907_v10, %v8190_v9  ;;  %v9841_v5 = vld [vmem:[%s11162_s26 + $0x554] sm:$0xf] }
 0x1c4   : > { %3563 = vmatpush.bf16.msrb.mxu1 %v7851_v24  ;;  %v7566_v24 = vld [vmem:[%s11162_s26 + $0x250] sm:$0xf]  ;;  %v10003_v13 = vld [vmem:[%s11162_s26 + $0xa5c] sm:$0xf0]  ;;  %v7952_v6 = vld [vmem:[%s11162_s26 + $0x580] sm:$0xf0] }
 0x1c5   : > { %3577 = vmatpush.bf16.msrb.mxu2 %v8235_v27  ;;  %v8427_v27 = vor.u32 %v9960_v18, %v8424_v19  ;;  %v7758_v18 = vld [vmem:[%s11162_s26 + $0x3d0] sm:$0xf]  ;;  %v9799_v19 = vld [vmem:[%s11162_s26 + $0x3fc] sm:$0xf0]  ;;  %v9937_v9 = vld [vmem:[%s11162_s26 + $0x854] sm:$0xf] }
 0x1c6   : > { %3591 = vmatpush.bf16.msrb.mxu3 %v8619_v30  ;;  %v8767_v30 = vor.u32 %v10051_v23, %v8766_v22  ;;  %v9895_v22 = vld [vmem:[%s11162_s26 + $0x6fc] sm:$0xf0]  ;;  %v8336_v10 = vld [vmem:[%s11162_s26 + $0x880] sm:$0xf0] }
 0x1c7   : > { %3550 = vmatpush.bf16.msrb.mxu0 %v7419_v33  ;;  %v7567_v33 = vor.u32 %v9751_v25, %v7566_v24  ;;  %v7759_v24 = vor.u32 %v9799_v19, %v7758_v18  ;;  %v7326_v25 = vld [vmem:[%s11162_s26 + $0x70] sm:$0xf]  ;;  %v9829_v18 = vld [vmem:[%s11162_s26 + $0x4f4] sm:$0xf]  ;;  %v7904_v19 = vld [vmem:[%s11162_s26 + $0x520] sm:$0xf0] }
 0x1c8   : > { %3564 = vmatpush.bf16.msrb.mxu1 %v7803_v36  ;;  %v7951_v36 = vor.u32 %v9847_v29, %v7950_v28  ;;  %v7710_v28 = vld [vmem:[%s11162_s26 + $0x370] sm:$0xf]  ;;  %v9787_v29 = vld [vmem:[%s11162_s26 + $0x39c] sm:$0xf0] }
 0x1c9   : > { %3578 = vmatpush.bf16.msrb.mxu2 %v8187_v39  ;;  %v8335_v39 = vor.u32 %v9943_v32, %v8334_v31  ;;  %v8094_v31 = vld [vmem:[%s11162_s26 + $0x670] sm:$0xf]  ;;  %v9883_v32 = vld [vmem:[%s11162_s26 + $0x69c] sm:$0xf0] }
 0x1ca   : > { %3592 = vmatpush.bf16.msrb.mxu3 %v8571_v42  ;;  %v8719_v42 = vor.u32 %v10039_v35, %v8718_v34  ;;  %v9979_v35 = vld [vmem:[%s11162_s26 + $0x99c] sm:$0xf0] }
 0x1cb   : > { %3551 = vmatpush.bf16.msrb.mxu0 %v7371_v45  ;;  %v7519_v45 = vor.u32 %v9739_v38, %v7518_v37  ;;  %v9679_v37 = vld [vmem:[%s11162_s26 + $0x3c] sm:$0xf0]  ;;  %v7711_v38 = vor.u32 %v9787_v29, %v7710_v28  ;;  %v9817_v28 = vld [vmem:[%s11162_s26 + $0x494] sm:$0xf]  ;;  %v7856_v29 = vld [vmem:[%s11162_s26 + $0x4c0] sm:$0xf0] }
 0x1cc   : > { %3565 = vmatpush.bf16.msrb.mxu1 %v7755_v49  ;;  %v7903_v49 = vor.u32 %v9835_v41, %v7902_v40  ;;  %v9775_v40 = vld [vmem:[%s11162_s26 + $0x33c] sm:$0xf0]  ;;  %v8046_v41 = vld [vmem:[%s11162_s26 + $0x610] sm:$0xf] }
 0x1cd   : > { %3579 = vmatpush.bf16.msrb.mxu2 %v8139_v52  ;;  %v8287_v52 = vor.u32 %v9931_v44, %v8286_v43  ;;  %v9871_v43 = vld [vmem:[%s11162_s26 + $0x63c] sm:$0xf0]  ;;  %v9757_v44 = vld [vmem:[%s11162_s26 + $0x2b4] sm:$0xf] }
 0x1ce   : > { %3593 = vmatpush.bf16.msrb.mxu3 %v8523_v56  ;;  %v8671_v56 = vor.u32 %v10027_v48, %v8670_v46  ;;  %v9853_v48 = vld [vmem:[%s11162_s26 + $0x5b4] sm:$0xf] }
 0x1cf   : > { %3552 = vmatpush.bf16.msrb.mxu0 %v7323_v62  ;;  %v8622_v62 = vld [vmem:[%s11162_s26 + $0xa90] sm:$0xf] }
 0x1d0   : > { %3566 = vmatpush.bf16.msrb.mxu1 %v7707_v3  ;;  %v9715_v3 = vld [vmem:[%s11162_s26 + $0x15c] sm:$0xf0] }
 0x1d1   : > { %3580 = vmatpush.bf16.msrb.mxu2 %v8091_v8  ;;  %v8623_v8 = vor.u32 %v10015_v63, %v8622_v62  ;;  %v7423_v11 = vor.u32 %v9715_v3, %v7422_v2  ;;  %v8047_v62 = vor.u32 %v9871_v43, %v8046_v41  ;;  %v7568_v2 = vld [vmem:[%s11162_s26 + $0x280] sm:$0xf0]  ;;  %v9901_v43 = vld [vmem:[%s11162_s26 + $0x734] sm:$0xf] }
 0x1d2   : > { %3594 = vmatpush.bf16.msrb.mxu3 %v8475_v12  ;;  %v8574_v12 = vld [vmem:[%s11162_s26 + $0xa30] sm:$0xf]  ;;  %v7808_v41 = vld [vmem:[%s11162_s26 + $0x460] sm:$0xf0] }
 0x1d3   : > { %3553 = vmatpush.bf16.msrb.mxu0 %v7275_v16  ;;  %v9703_v16 = vld [vmem:[%s11162_s26 + $0xfc] sm:$0xf0] }
 0x1d4   : > { %3567 = vmatpush.bf16.msrb.mxu1 %v7659_v20  ;;  %v8575_v20 = vor.u32 %v10003_v13, %v8574_v12  ;;  %v7375_v23 = vor.u32 %v9703_v16, %v7374_v15  ;;  %v10033_v12 = vld [vmem:[%s11162_s26 + $0xb54] sm:$0xf]  ;;  %v8720_v13 = vld [vmem:[%s11162_s26 + $0xb80] sm:$0xf0] }
 0x1d5   : > { %3581 = vmatpush.bf16.msrb.mxu2 %v8043_v54  ;;  %v8526_v54 = vld [vmem:[%s11162_s26 + $0x9d0] sm:$0xf]  ;;  %v9733_v15 = vld [vmem:[%s11162_s26 + $0x1f4] sm:$0xf]  ;;  %v7520_v16 = vld [vmem:[%s11162_s26 + $0x220] sm:$0xf0] }
 0x1d6   : > { %3595 = vmatpush.bf16.msrb.mxu3 %v8427_v27  ;;  %3554 = vmatmul.bf16.vlgmr.msrb.gmra.mxu0 %v11298_v1 }
 0x1d7   : > { %3602 = vmatpush.bf16.msra.mxu0 %v7615_v21  ;;  %3568 = vmatmul.bf16.vlgmr.msrb.gmra.mxu1 %v11304_v7  ;;  %v8142_v21 = vld [vmem:[%s11162_s26 + $0x6d0] sm:$0xf] }
 0x1d8   : > { %3616 = vmatpush.bf16.msra.mxu1 %v7999_v57  ;;  %3582 = vmatmul.bf16.vlgmr.msrb.gmra.mxu2 %v11288_v47  ;;  %v9991_v57 = vld [vmem:[%s11162_s26 + $0x9fc] sm:$0xf0]  ;;  %v8143_v27 = vor.u32 %v9895_v22, %v8142_v21  ;;  %v9925_v21 = vld [vmem:[%s11162_s26 + $0x7f4] sm:$0xf]  ;;  %v8288_v22 = vld [vmem:[%s11162_s26 + $0x820] sm:$0xf0] }
 0x1d9   : > { %3630 = vmatpush.bf16.msra.mxu2 %v8383_v26  ;;  %3596 = vmatmul.bf16.vlgmr.msrb.gmra.mxu3 %v11295_v58  ;;  %v9691_v26 = vld [vmem:[%s11162_s26 + $0x9c] sm:$0xf0] }
 0x1da   : > { %3644 = vmatpush.bf16.msra.mxu3 %v8767_v30  ;;  %v8527_v30 = vor.u32 %v9991_v57, %v8526_v54  ;;  %v7327_v34 = vor.u32 %v9691_v26, %v7326_v25  ;;  %v10021_v54 = vld [vmem:[%s11162_s26 + $0xaf4] sm:$0xf]  ;;  %v8672_v57 = vld [vmem:[%s11162_s26 + $0xb20] sm:$0xf0] }
 0x1db   : > { %3603 = vmatpush.bf16.msra.mxu0 %v7567_v33  ;;  %v8478_v33 = vld [vmem:[%s11162_s26 + $0x970] sm:$0xf]  ;;  %v9721_v25 = vld [vmem:[%s11162_s26 + $0x194] sm:$0xf]  ;;  %v7472_v26 = vld [vmem:[%s11162_s26 + $0x1c0] sm:$0xf0] }
 0x1dc   : > { %3617 = vmatpush.bf16.msra.mxu1 %v7951_v36  ;;  %v7278_v36 = vld [vmem:[%s11162_s26 + $0x10] sm:$0xf]  ;;  %v8479_v46 = vor.u32 %v9979_v35, %v8478_v33  ;;  %v7475_v33 = vor.u32 %v9721_v25, %v7472_v26  ;;  %v8624_v35 = vld [vmem:[%s11162_s26 + $0xac0] sm:$0xf0] }
 0x1dd   : > { %3631 = vmatpush.bf16.msra.mxu2 %v8335_v39  ;;  %v7662_v39 = vld [vmem:[%s11162_s26 + $0x310] sm:$0xf]  ;;  %v7279_v51 = vor.u32 %v9679_v37, %v7278_v36  ;;  %v7859_v36 = vor.u32 %v9817_v28, %v7856_v29  ;;  %v9709_v37 = vld [vmem:[%s11162_s26 + $0x134] sm:$0xf]  ;;  %v8048_v26 = vld [vmem:[%s11162_s26 + $0x640] sm:$0xf0] }
 0x1de   : > { %3645 = vmatpush.bf16.msra.mxu3 %v8719_v42  ;;  %v8095_v42 = vor.u32 %v9883_v32, %v8094_v31  ;;  %v9913_v31 = vld [vmem:[%s11162_s26 + $0x794] sm:$0xf]  ;;  %v8240_v32 = vld [vmem:[%s11162_s26 + $0x7c0] sm:$0xf0]  ;;  %v9764_v28 = vld [vmem:[%s11162_s26 + $0x2e4] sm:$0xf0] }
 0x1df   : > { %3604 = vmatpush.bf16.msra.mxu0 %v7519_v45  ;;  %v7616_v45 = vld [vmem:[%s11162_s26 + $0x2e0] sm:$0xf0] }
 0x1e0   : > { %3618 = vmatpush.bf16.msra.mxu1 %v7903_v49  ;;  %v8000_v49 = vld [vmem:[%s11162_s26 + $0x5e0] sm:$0xf0]  ;;  %v7619_v59 = vor.u32 %v9757_v44, %v7616_v45 }
 0x1e1   : > { %3632 = vmatpush.bf16.msra.mxu2 %v8287_v52  ;;  %v8384_v52 = vld [vmem:[%s11162_s26 + $0x8e0] sm:$0xf0]  ;;  %v8003_v63 = vor.u32 %v9853_v48, %v8000_v49 }
 0x1e2   : > { %3646 = vmatpush.bf16.msra.mxu3 %v8671_v56  ;;  %v7663_v56 = vor.u32 %v9775_v40, %v7662_v39  ;;  %v8387_v3 = vor.u32 %v9949_v50, %v8384_v52  ;;  %v8243_v39 = vor.u32 %v9913_v31, %v8240_v32  ;;  %v9805_v40 = vld [vmem:[%s11162_s26 + $0x434] sm:$0xf]  ;;  %v8192_v44 = vld [vmem:[%s11162_s26 + $0x760] sm:$0xf0]  ;;  %v9860_v31 = vld [vmem:[%s11162_s26 + $0x5e4] sm:$0xf0] }
 0x1e3   : > { %3605 = vmatpush.bf16.msra.mxu0 %v7471_v61  ;;  %v8768_v61 = vld [vmem:[%s11162_s26 + $0xbe0] sm:$0xf0]  ;;  %v7811_v49 = vor.u32 %v9805_v40, %v7808_v41  ;;  %v9697_v50 = vld [vmem:[%s11162_s26 + $0xd4] sm:$0xf]  ;;  %v8195_v52 = vor.u32 %v9901_v43, %v8192_v44  ;;  %v8390_v32 = vld [vmem:[%s11162_s26 + $0x8b8] sm:$0xf] }
 0x1e4   : > { %3619 = vmatpush.bf16.msra.mxu1 %v7855_v0  ;;  %v9745_v0 = vld [vmem:[%s11162_s26 + $0x254] sm:$0xf]  ;;  %v8576_v48 = vld [vmem:[%s11162_s26 + $0xa60] sm:$0xf0]  ;;  %v10052_v40 = vld [vmem:[%s11162_s26 + $0xbe4] sm:$0xf0] }
 0x1e5   : > { %3633 = vmatpush.bf16.msra.mxu2 %v8239_v4  ;;  %v8431_v4 = vor.u32 %v9967_v55, %v8430_v53  ;;  %v9793_v53 = vld [vmem:[%s11162_s26 + $0x3d4] sm:$0xf]  ;;  %v7760_v55 = vld [vmem:[%s11162_s26 + $0x400] sm:$0xf0]  ;;  %v7574_v43 = vld [vmem:[%s11162_s26 + $0x258] sm:$0xf] }
 0x1e6   : > { %3647 = vmatpush.bf16.msra.mxu3 %v8623_v8  ;;  %v8771_v8 = vor.u32 %v10045_v60, %v8768_v61  ;;  %v8144_v60 = vld [vmem:[%s11162_s26 + $0x700] sm:$0xf0]  ;;  %v9752_v44 = vld [vmem:[%s11162_s26 + $0x284] sm:$0xf0] }
 0x1e7   : > { %3606 = vmatpush.bf16.msra.mxu0 %v7423_v11  ;;  %v7571_v11 = vor.u32 %v9745_v0, %v7568_v2 }
 0x1e8   : > { %3620 = vmatpush.bf16.msra.mxu1 %v7807_v14  ;;  %v7955_v14 = vor.u32 %v9841_v5, %v7952_v6  ;;  %v7328_v5 = vld [vmem:[%s11162_s26 + $0xa0] sm:$0xf0] }
 0x1e9   : > { %3634 = vmatpush.bf16.msra.mxu2 %v8191_v17  ;;  %v8339_v17 = vor.u32 %v9937_v9, %v8336_v10  ;;  %v9781_v9 = vld [vmem:[%s11162_s26 + $0x374] sm:$0xf]  ;;  %v7712_v10 = vld [vmem:[%s11162_s26 + $0x3a0] sm:$0xf0] }
 0x1ea   : > { %3648 = vmatpush.bf16.msra.mxu3 %v8575_v20  ;;  %v8723_v20 = vor.u32 %v10033_v12, %v8720_v13  ;;  %v9877_v13 = vld [vmem:[%s11162_s26 + $0x674] sm:$0xf] }
 0x1eb   : > { %3607 = vmatpush.bf16.msra.mxu0 %v7375_v23  ;;  %v7523_v23 = vor.u32 %v9733_v15, %v7520_v16  ;;  %v9973_v15 = vld [vmem:[%s11162_s26 + $0x974] sm:$0xf] }
 0x1ec   : > { %3621 = vmatpush.bf16.msra.mxu1 %v7759_v24  ;;  %v7907_v24 = vor.u32 %v9829_v18, %v7904_v19  ;;  %v8480_v18 = vld [vmem:[%s11162_s26 + $0x9a0] sm:$0xf0]  ;;  %v9673_v19 = vld [vmem:[%s11162_s26 + $0x14] sm:$0xf] }
 0x1ed   : > { %3635 = vmatpush.bf16.msra.mxu2 %v8143_v27  ;;  %v8291_v27 = vor.u32 %v9925_v21, %v8288_v22  ;;  %v7715_v22 = vor.u32 %v9781_v9, %v7712_v10  ;;  %v8483_v29 = vor.u32 %v9973_v15, %v8480_v18  ;;  %v8678_v9 = vld [vmem:[%s11162_s26 + $0xaf8] sm:$0xf]  ;;  %v10028_v10 = vld [vmem:[%s11162_s26 + $0xb24] sm:$0xf0] }
 0x1ee   : > { %3649 = vmatpush.bf16.msra.mxu3 %v8527_v30  ;;  %v8675_v30 = vor.u32 %v10021_v54, %v8672_v57  ;;  %v7664_v54 = vld [vmem:[%s11162_s26 + $0x340] sm:$0xf0]  ;;  %v9865_v57 = vld [vmem:[%s11162_s26 + $0x614] sm:$0xf]  ;;  %v7862_v15 = vld [vmem:[%s11162_s26 + $0x498] sm:$0xf] }
 0x1ef   : > { %3608 = vmatpush.bf16.msra.mxu0 %v7327_v34  ;;  %v10009_v34 = vld [vmem:[%s11162_s26 + $0xa94] sm:$0xf]  ;;  %v8051_v41 = vor.u32 %v9865_v57, %v8048_v26  ;;  %v8246_v18 = vld [vmem:[%s11162_s26 + $0x798] sm:$0xf] }
 0x1f0   : > { %3622 = vmatpush.bf16.msra.mxu1 %v7711_v38  ;;  %v7424_v38 = vld [vmem:[%s11162_s26 + $0x160] sm:$0xf0]  ;;  %v7430_v57 = vld [vmem:[%s11162_s26 + $0x138] sm:$0xf] }
 0x1f1   : > { %3636 = vmatpush.bf16.msra.mxu2 %v8095_v42  ;;  %v8627_v42 = vor.u32 %v10009_v34, %v8624_v35  ;;  %v7427_v45 = vor.u32 %v9709_v37, %v7424_v38  ;;  %v9956_v34 = vld [vmem:[%s11162_s26 + $0x8e4] sm:$0xf0]  ;;  %v9961_v35 = vld [vmem:[%s11162_s26 + $0x914] sm:$0xf] }
 0x1f2   : > { %3650 = vmatpush.bf16.msra.mxu3 %v8479_v46  ;;  %v9997_v46 = vld [vmem:[%s11162_s26 + $0xa34] sm:$0xf] }
 0x1f3   : > { %3609 = vmatpush.bf16.msra.mxu0 %v7279_v51  ;;  %v7376_v51 = vld [vmem:[%s11162_s26 + $0x100] sm:$0xf0] }
 0x1f4   : > { %3623 = vmatpush.bf16.msra.mxu1 %v7663_v56  ;;  %v8579_v56 = vor.u32 %v9997_v46, %v8576_v48  ;;  %v7379_v61 = vor.u32 %v9697_v50, %v7376_v51  ;;  %v7958_v48 = vld [vmem:[%s11162_s26 + $0x558] sm:$0xf] }
 0x1f5   : > { %3637 = vmatpush.bf16.msra.mxu2 %v8047_v62  ;;  %v9985_v62 = vld [vmem:[%s11162_s26 + $0x9d4] sm:$0xf]  ;;  %v8342_v51 = vld [vmem:[%s11162_s26 + $0x858] sm:$0xf] }
 0x1f6   : > { %3651 = vmatpush.bf16.msra.mxu3 %v8431_v4  ;;  %3610 = vmatmul.bf16.vlgmr.msra.gmra.mxu0 %v11298_v1  ;;  %v9685_v4 = vld [vmem:[%s11162_s26 + $0x74] sm:$0xf] }
 0x1f7   : > { %3658 = vmatpush.bf16.msrb.mxu0 %v7619_v59  ;;  %3624 = vmatmul.bf16.vlgmr.msra.gmra.mxu1 %v11304_v7  ;;  %v9889_v59 = vld [vmem:[%s11162_s26 + $0x6d4] sm:$0xf]  ;;  %v3387_v0 = vpop.f32.mrf.mxu0 }
 0x1f8   : > { %3672 = vmatpush.bf16.msrb.mxu1 %v8003_v63  ;;  %3638 = vmatmul.bf16.vlgmr.msra.gmra.mxu2 %v11288_v47  ;;  %v8528_v63 = vld [vmem:[%s11162_s26 + $0xa00] sm:$0xf0]  ;;  %v3401_v2 = vpop.f32.mrf.mxu1 }
 0x1f9   : > { %3686 = vmatpush.bf16.msrb.mxu2 %v8387_v3  ;;  %3652 = vmatmul.bf16.vlgmr.msra.gmra.mxu3 %v11295_v58  ;;  %v7763_v3 = vor.u32 %v9793_v53, %v7760_v55  ;;  %v3402_v6 = vadd.f32 %v3401_v2, %v3387_v0  ;;  %v8531_v12 = vor.u32 %v9985_v62, %v8528_v63  ;;  %v8726_v55 = vld [vmem:[%s11162_s26 + $0xb58] sm:$0xf]  ;;  %v9740_v62 = vld [vmem:[%s11162_s26 + $0x224] sm:$0xf0] }
 0x1fa   : > { %3700 = vmatpush.bf16.msrb.mxu3 %v8771_v8  ;;  %v8147_v8 = vor.u32 %v9889_v59, %v8144_v60  ;;  %v7575_v53 = vor.u32 %v9752_v44, %v7574_v43  ;;  %v7910_v0 = vld [vmem:[%s11162_s26 + $0x4f8] sm:$0xf]  ;;  %v9836_v2 = vld [vmem:[%s11162_s26 + $0x524] sm:$0xf0] }
 0x1fb   : > { %3659 = vmatpush.bf16.msrb.mxu0 %v7571_v11  ;;  %v3415_v11 = vpop.f32.mrf.mxu2  ;;  %v7766_v43 = vld [vmem:[%s11162_s26 + $0x3d8] sm:$0xf]  ;;  %v9800_v44 = vld [vmem:[%s11162_s26 + $0x404] sm:$0xf0] }
 0x1fc   : > { %3673 = vmatpush.bf16.msrb.mxu1 %v7955_v14  ;;  %v8096_v14 = vld [vmem:[%s11162_s26 + $0x6a0] sm:$0xf0]  ;;  %v3416_v16 = vadd.f32 %v3415_v11, %v3402_v6  ;;  %v3429_v21 = vpop.f32.mrf.mxu3  ;;  %v9932_v6 = vld [vmem:[%s11162_s26 + $0x824] sm:$0xf0]  ;;  %v7911_v11 = vor.u32 %v9836_v2, %v7910_v0  ;;  %v8102_v2 = vld [vmem:[%s11162_s26 + $0x678] sm:$0xf] }
 0x1fd   : > { %3687 = vmatpush.bf16.msrb.mxu2 %v8339_v17  ;;  %v7331_v17 = vor.u32 %v9685_v4, %v7328_v5  ;;  %v8099_v25 = vor.u32 %v9877_v13, %v8096_v14  ;;  %v8294_v5 = vld [vmem:[%s11162_s26 + $0x7f8] sm:$0xf]  ;;  %v9728_v13 = vld [vmem:[%s11162_s26 + $0x1c4] sm:$0xf0] }
 0x1fe   : > { %3701 = vmatpush.bf16.msrb.mxu3 %v8723_v20  ;;  %v7280_v20 = vld [vmem:[%s11162_s26 + $0x40] sm:$0xf0]  ;;  %v8295_v14 = vor.u32 %v9932_v6, %v8294_v5  ;;  %v8486_v5 = vld [vmem:[%s11162_s26 + $0x978] sm:$0xf] }
 0x1ff   : > { %3660 = vmatpush.bf16.msrb.mxu0 %v7523_v23  ;;  %v9769_v23 = vld [vmem:[%s11162_s26 + $0x314] sm:$0xf]  ;;  %v11634_v60 = vpop.f32.mrf.mxu0 }
 0x200   : > { %3674 = vmatpush.bf16.msrb.mxu1 %v7907_v24  ;;  %v11613_v24 = vadd.f32 %v3429_v21, %v3416_v16  ;;  %v7667_v37 = vor.u32 %v9769_v23, %v7664_v54  ;;  %v11641_v4 = vpop.f32.mrf.mxu1  ;;  %v9824_v16 = vld [vmem:[%s11162_s26 + $0x4c4] sm:$0xf0] }
 0x201   : > { %3688 = vmatpush.bf16.msrb.mxu2 %v8291_v27  ;;  %v7622_v27 = vld [vmem:[%s11162_s26 + $0x2b8] sm:$0xf]  ;;  %v10016_v23 = vld [vmem:[%s11162_s26 + $0xac4] sm:$0xf0]  ;;  %v7863_v54 = vor.u32 %v9824_v16, %v7862_v15 }
 0x202   : > { %3702 = vmatpush.bf16.msrb.mxu3 %v8675_v30  ;;  %v8006_v30 = vld [vmem:[%s11162_s26 + $0x5b8] sm:$0xf]  ;;  %v7623_v38 = vor.u32 %v9764_v28, %v7622_v27  ;;  %v9776_v15 = vld [vmem:[%s11162_s26 + $0x344] sm:$0xf0] }
 0x203   : > { %3661 = vmatpush.bf16.msrb.mxu0 %v7475_v33  ;;  %v7283_v33 = vor.u32 %v9673_v19, %v7280_v20  ;;  %v9920_v19 = vld [vmem:[%s11162_s26 + $0x7c4] sm:$0xf0]  ;;  %v11656_v20 = vpop.f32.mrf.mxu2  ;;  %v7814_v28 = vld [vmem:[%s11162_s26 + $0x438] sm:$0xf] }
 0x204   : > { %3675 = vmatpush.bf16.msrb.mxu1 %v7859_v36  ;;  %v8432_v36 = vld [vmem:[%s11162_s26 + $0x940] sm:$0xf0]  ;;  %v11662_v26 = vpop.f32.mrf.mxu3  ;;  %v8247_v27 = vor.u32 %v9920_v19, %v8246_v18  ;;  %v8054_v16 = vld [vmem:[%s11162_s26 + $0x618] sm:$0xf]  ;;  %v9872_v18 = vld [vmem:[%s11162_s26 + $0x644] sm:$0xf0] }
 0x205   : > { %3689 = vmatpush.bf16.msrb.mxu2 %v8243_v39  ;;  %v8774_v39 = vld [vmem:[%s11162_s26 + $0xbb8] sm:$0xf]  ;;  %v8435_v46 = vor.u32 %v9961_v35, %v8432_v36  ;;  %v10004_v36 = vld [vmem:[%s11162_s26 + $0xa64] sm:$0xf0]  ;;  %v9758_v19 = vld [vmem:[%s11162_s26 + $0x2bc] sm:$0xf] }
 0x206   : > { %3703 = vmatpush.bf16.msrb.mxu3 %v8627_v42  ;;  %v8007_v42 = vor.u32 %v9860_v31, %v8006_v30  ;;  %v8775_v50 = vor.u32 %v10052_v40, %v8774_v39  ;;  %v8582_v35 = vld [vmem:[%s11162_s26 + $0xa38] sm:$0xf]  ;;  %v9704_v40 = vld [vmem:[%s11162_s26 + $0x104] sm:$0xf0] }
 0x207   : > { %3662 = vmatpush.bf16.msrb.mxu0 %v7427_v45  ;;  %v8391_v45 = vor.u32 %v9956_v34, %v8390_v32  ;;  %v8198_v32 = vld [vmem:[%s11162_s26 + $0x738] sm:$0xf] }
 0x208   : > { %3676 = vmatpush.bf16.msrb.mxu1 %v7811_v49  ;;  %v9848_v49 = vld [vmem:[%s11162_s26 + $0x584] sm:$0xf0]  ;;  %v7382_v39 = vld [vmem:[%s11162_s26 + $0xd8] sm:$0xf] }
 0x209   : > { %3690 = vmatpush.bf16.msrb.mxu2 %v8195_v52  ;;  %v9944_v52 = vld [vmem:[%s11162_s26 + $0x884] sm:$0xf0]  ;;  %v7959_v59 = vor.u32 %v9848_v49, %v7958_v48  ;;  %v7383_v49 = vor.u32 %v9704_v40, %v7382_v39  ;;  %v9842_v40 = vld [vmem:[%s11162_s26 + $0x55c] sm:$0xf] }
 0x20a   : > { %3704 = vmatpush.bf16.msrb.mxu3 %v8579_v56  ;;  %v10040_v56 = vld [vmem:[%s11162_s26 + $0xb84] sm:$0xf0]  ;;  %v8343_v63 = vor.u32 %v9944_v52, %v8342_v51  ;;  %v7767_v52 = vor.u32 %v9800_v44, %v7766_v43  ;;  %v9938_v43 = vld [vmem:[%s11162_s26 + $0x85c] sm:$0xf]  ;;  %v8344_v44 = vld [vmem:[%s11162_s26 + $0x888] sm:$0xf0] }
 0x20b   : > { %3663 = vmatpush.bf16.msrb.mxu0 %v7379_v61  ;;  %v7526_v61 = vld [vmem:[%s11162_s26 + $0x1f8] sm:$0xf]  ;;  %v9896_v48 = vld [vmem:[%s11162_s26 + $0x704] sm:$0xf0] }
 0x20c   : > { %3677 = vmatpush.bf16.msrb.mxu1 %v7763_v3  ;;  %v8727_v3 = vor.u32 %v10040_v56, %v8726_v55  ;;  %v9992_v51 = vld [vmem:[%s11162_s26 + $0xa04] sm:$0xf0] }
 0x20d   : > { %3691 = vmatpush.bf16.msrb.mxu2 %v8147_v8  ;;  %v7527_v8 = vor.u32 %v9740_v62, %v7526_v61  ;;  %v9692_v55 = vld [vmem:[%s11162_s26 + $0xa4] sm:$0xf0]  ;;  %v7718_v61 = vld [vmem:[%s11162_s26 + $0x378] sm:$0xf] }
 0x20e   : > { %3705 = vmatpush.bf16.msrb.mxu3 %v8531_v12  ;;  %v7478_v12 = vld [vmem:[%s11162_s26 + $0x198] sm:$0xf]  ;;  %v9788_v62 = vld [vmem:[%s11162_s26 + $0x3a4] sm:$0xf0] }
 0x20f   : > { %3664 = vmatpush.bf16.msrb.mxu0 %v7331_v17  ;;  %v8679_v17 = vor.u32 %v10028_v10, %v8678_v9  ;;  %v7479_v21 = vor.u32 %v9728_v13, %v7478_v12  ;;  %v9980_v9 = vld [vmem:[%s11162_s26 + $0x9a4] sm:$0xf0]  ;;  %v7286_v10 = vld [vmem:[%s11162_s26 + $0x18] sm:$0xf]  ;;  %v7719_v13 = vor.u32 %v9788_v62, %v7718_v61  ;;  %v8296_v61 = vld [vmem:[%s11162_s26 + $0x828] sm:$0xf0] }
 0x210   : > { %3678 = vmatpush.bf16.msrb.mxu1 %v7715_v22  ;;  %v8630_v22 = vld [vmem:[%s11162_s26 + $0xa98] sm:$0xf] }
 0x211   : > { %3692 = vmatpush.bf16.msrb.mxu2 %v8099_v25  ;;  %v9716_v25 = vld [vmem:[%s11162_s26 + $0x164] sm:$0xf0]  ;;  %v8631_v30 = vor.u32 %v10016_v23, %v8630_v22  ;;  %v8487_v23 = vor.u32 %v9980_v9, %v8486_v5  ;;  %v7480_v5 = vld [vmem:[%s11162_s26 + $0x1c8] sm:$0xf0] }
 0x212   : > { %3706 = vmatpush.bf16.msrb.mxu3 %v8483_v29  ;;  %v9812_v29 = vld [vmem:[%s11162_s26 + $0x464] sm:$0xf0]  ;;  %v7431_v34 = vor.u32 %v9716_v25, %v7430_v57  ;;  %v8008_v57 = vld [vmem:[%s11162_s26 + $0x5e8] sm:$0xf0]  ;;  %v9950_v25 = vld [vmem:[%s11162_s26 + $0x8bc] sm:$0xf] }
 0x213   : > { %3665 = vmatpush.bf16.msrb.mxu0 %v7283_v33  ;;  %v3443_v31 = vpop.f32.mrf.mxu0  ;;  %v9908_v33 = vld [vmem:[%s11162_s26 + $0x764] sm:$0xf0]  ;;  %v7864_v9 = vld [vmem:[%s11162_s26 + $0x4c8] sm:$0xf0] }
 0x214   : > { %3679 = vmatpush.bf16.msrb.mxu1 %v7667_v37  ;;  %v3457_v37 = vpop.f32.mrf.mxu1 }
 0x215   : > { %3693 = vmatpush.bf16.msrb.mxu2 %v8051_v41  ;;  %v3458_v41 = vadd.f32 %v3457_v37, %v3443_v31  ;;  %v7576_v37 = vld [vmem:[%s11162_s26 + $0x288] sm:$0xf0] }
 0x216   : > { %3707 = vmatpush.bf16.msrb.mxu3 %v8435_v46  ;;  %3666 = vmatmul.bf16.vlgmr.msrb.gmra.mxu0 %v11298_v1  ;;  %v8150_v46 = vld [vmem:[%s11162_s26 + $0x6d8] sm:$0xf] }
 0x217   : > { %3714 = vmatpush.bf16.msra.mxu0 %v7623_v38  ;;  %3680 = vmatmul.bf16.vlgmr.msrb.gmra.mxu1 %v11304_v7  ;;  %v7815_v38 = vor.u32 %v9812_v29, %v7814_v28  ;;  %v8392_v28 = vld [vmem:[%s11162_s26 + $0x8e8] sm:$0xf0]  ;;  %v8438_v29 = vld [vmem:[%s11162_s26 + $0x918] sm:$0xf] }
 0x218   : > { %3728 = vmatpush.bf16.msra.mxu1 %v8007_v42  ;;  %3694 = vmatmul.bf16.vlgmr.msrb.gmra.mxu2 %v11288_v47  ;;  %v8199_v42 = vor.u32 %v9908_v33, %v8198_v32  ;;  %v8776_v33 = vld [vmem:[%s11162_s26 + $0xbe8] sm:$0xf0] }
 0x219   : > { %3742 = vmatpush.bf16.msra.mxu2 %v8391_v45  ;;  %3708 = vmatmul.bf16.vlgmr.msrb.gmra.mxu3 %v11295_v58  ;;  %v8583_v45 = vor.u32 %v10004_v36, %v8582_v35  ;;  %v9746_v36 = vld [vmem:[%s11162_s26 + $0x25c] sm:$0xf] }
 0x21a   : > { %3756 = vmatpush.bf16.msra.mxu3 %v8775_v50  ;;  %v8534_v50 = vld [vmem:[%s11162_s26 + $0x9d8] sm:$0xf] }
 0x21b   : > { %3715 = vmatpush.bf16.msra.mxu0 %v7575_v53  ;;  %v7334_v53 = vld [vmem:[%s11162_s26 + $0x78] sm:$0xf]  ;;  %v3471_v56 = vpop.f32.mrf.mxu2  ;;  %v8535_v0 = vor.u32 %v9992_v51, %v8534_v50  ;;  %v9734_v50 = vld [vmem:[%s11162_s26 + $0x1fc] sm:$0xf]  ;;  %v7528_v51 = vld [vmem:[%s11162_s26 + $0x228] sm:$0xf0] }
 0x21c   : > { %3729 = vmatpush.bf16.msra.mxu1 %v7959_v59  ;;  %v8151_v59 = vor.u32 %v9896_v48, %v8150_v46  ;;  %v3485_v6 = vpop.f32.mrf.mxu3  ;;  %v10034_v46 = vld [vmem:[%s11162_s26 + $0xb5c] sm:$0xf]  ;;  %v8728_v48 = vld [vmem:[%s11162_s26 + $0xb88] sm:$0xf0]  ;;  %v7531_v62 = vor.u32 %v9734_v50, %v7528_v51 }
 0x21d   : > { %3743 = vmatpush.bf16.msra.mxu2 %v8343_v63  ;;  %v3472_v63 = vadd.f32 %v3471_v56, %v3458_v41  ;;  %v7960_v41 = vld [vmem:[%s11162_s26 + $0x588] sm:$0xf0]  ;;  %v8731_v56 = vor.u32 %v10034_v46, %v8728_v48  ;;  %v9686_v50 = vld [vmem:[%s11162_s26 + $0x7c] sm:$0xf] }
 0x21e   : > { %3757 = vmatpush.bf16.msra.mxu3 %v8727_v3  ;;  %v9884_v3 = vld [vmem:[%s11162_s26 + $0x6a4] sm:$0xf0]  ;;  %v8536_v46 = vld [vmem:[%s11162_s26 + $0xa08] sm:$0xf0] }
 0x21f   : > { %3716 = vmatpush.bf16.msra.mxu0 %v7527_v8  ;;  %v7335_v8 = vor.u32 %v9692_v55, %v7334_v53  ;;  %v3486_v12 = vadd.f32 %v3485_v6, %v3472_v63  ;;  %v9830_v53 = vld [vmem:[%s11162_s26 + $0x4fc] sm:$0xf]  ;;  %v7912_v55 = vld [vmem:[%s11162_s26 + $0x528] sm:$0xf0] }
 0x220   : > { %3730 = vmatpush.bf16.msra.mxu1 %v7911_v11  ;;  %v9680_v11 = vld [vmem:[%s11162_s26 + $0x44] sm:$0xf0]  ;;  %v10022_v63 = vld [vmem:[%s11162_s26 + $0xafc] sm:$0xf]  ;;  %v7336_v51 = vld [vmem:[%s11162_s26 + $0xa8] sm:$0xf0] }
 0x221   : > { %3744 = vmatpush.bf16.msra.mxu2 %v8295_v14  ;;  %v7670_v14 = vld [vmem:[%s11162_s26 + $0x318] sm:$0xf]  ;;  %v11695_v22 = vpack.c.bf16 %v3486_v12, %v11613_v24  ;;  %v10046_v24 = vld [vmem:[%s11162_s26 + $0xbbc] sm:$0xf] }
 0x222   : > { %3758 = vmatpush.bf16.msra.mxu3 %v8679_v17  ;;  %v8103_v17 = vor.u32 %v9884_v3, %v8102_v2  ;;  %v7671_v31 = vor.u32 %v9776_v15, %v7670_v14  ;;  %v7915_v2 = vor.u32 %v9830_v53, %v7912_v55  ;;  %v9722_v3 = vld [vmem:[%s11162_s26 + $0x19c] sm:$0xf]  ;;  %v8248_v14 = vld [vmem:[%s11162_s26 + $0x7c8] sm:$0xf0] }
 0x223   : > { %3717 = vmatpush.bf16.msra.mxu0 %v7479_v21  ;;  %v7624_v21 = vld [vmem:[%s11162_s26 + $0x2e8] sm:$0xf0]  ;;  %v7483_v15 = vor.u32 %v9722_v3, %v7480_v5  ;;  %v9782_v53 = vld [vmem:[%s11162_s26 + $0x37c] sm:$0xf] }
 0x224   : > { %3731 = vmatpush.bf16.msra.mxu1 %v7863_v54  ;;  %v9854_v54 = vld [vmem:[%s11162_s26 + $0x5bc] sm:$0xf]  ;;  %v7627_v32 = vor.u32 %v9758_v19, %v7624_v21  ;;  %v7432_v21 = vld [vmem:[%s11162_s26 + $0x168] sm:$0xf0] }
 0x225   : > { %3745 = vmatpush.bf16.msra.mxu2 %v8247_v27  ;;  %v7287_v27 = vor.u32 %v9680_v11, %v7286_v10  ;;  %v8011_v35 = vor.u32 %v9854_v54, %v8008_v57  ;;  %v11729_v10 = vpop.f32.mrf.mxu0  ;;  %v11731_v11 = vpop.f32.mrf.mxu1  ;;  %v9710_v19 = vld [vmem:[%s11162_s26 + $0x13c] sm:$0xf]  ;;  %v7816_v57 = vld [vmem:[%s11162_s26 + $0x468] sm:$0xf0] }
 0x226   : > { %3759 = vmatpush.bf16.msra.mxu3 %v8631_v30  ;;  %v9968_v30 = vld [vmem:[%s11162_s26 + $0x944] sm:$0xf0]  ;;  %v9806_v54 = vld [vmem:[%s11162_s26 + $0x43c] sm:$0xf]  ;;  %v7720_v55 = vld [vmem:[%s11162_s26 + $0x3a8] sm:$0xf0] }
 0x227   : > { %3718 = vmatpush.bf16.msra.mxu0 %v7431_v34  ;;  %v8055_v34 = vor.u32 %v9872_v18, %v8054_v16  ;;  %v8439_v39 = vor.u32 %v9968_v30, %v8438_v29  ;;  %v10010_v16 = vld [vmem:[%s11162_s26 + $0xa9c] sm:$0xf]  ;;  %v8200_v29 = vld [vmem:[%s11162_s26 + $0x768] sm:$0xf0]  ;;  %v7435_v30 = vor.u32 %v9710_v19, %v7432_v21 }
 0x228   : > { %3732 = vmatpush.bf16.msra.mxu1 %v7815_v38  ;;  %v8395_v38 = vor.u32 %v9950_v25, %v8392_v28  ;;  %v11741_v25 = vpop.f32.mrf.mxu2  ;;  %v9902_v28 = vld [vmem:[%s11162_s26 + $0x73c] sm:$0xf]  ;;  %v7288_v5 = vld [vmem:[%s11162_s26 + $0x48] sm:$0xf0] }
 0x229   : > { %3746 = vmatpush.bf16.msra.mxu2 %v8199_v42  ;;  %v8779_v42 = vor.u32 %v10046_v24, %v8776_v33  ;;  %v11747_v24 = vpop.f32.mrf.mxu3  ;;  %v7819_v33 = vor.u32 %v9806_v54, %v7816_v57  ;;  %v9674_v3 = vld [vmem:[%s11162_s26 + $0x1c] sm:$0xf]  ;;  %v9861_v54 = vld [vmem:[%s11162_s26 + $0x5ec] sm:$0xf0]  ;;  %v8398_v57 = vld [vmem:[%s11162_s26 + $0x8c0] sm:$0xf] }
 0x22a   : > { %3760 = vmatpush.bf16.msra.mxu3 %v8583_v45  ;;  %v7579_v45 = vor.u32 %v9746_v36, %v7576_v37  ;;  %v8203_v36 = vor.u32 %v9902_v28, %v8200_v29  ;;  %v9794_v37 = vld [vmem:[%s11162_s26 + $0x3dc] sm:$0xf]  ;;  %v9957_v28 = vld [vmem:[%s11162_s26 + $0x8ec] sm:$0xf0] }
 0x22b   : > { %3719 = vmatpush.bf16.msra.mxu0 %v7383_v49  ;;  %v7963_v49 = vor.u32 %v9842_v40, %v7960_v41  ;;  %v9890_v40 = vld [vmem:[%s11162_s26 + $0x6dc] sm:$0xf]  ;;  %v8152_v41 = vld [vmem:[%s11162_s26 + $0x708] sm:$0xf0] }
 0x22c   : > { %3733 = vmatpush.bf16.msra.mxu1 %v7767_v52  ;;  %v8347_v52 = vor.u32 %v9938_v43, %v8344_v44  ;;  %v9962_v29 = vld [vmem:[%s11162_s26 + $0x91c] sm:$0xf] }
 0x22d   : > { %3747 = vmatpush.bf16.msra.mxu2 %v8151_v59  ;;  %v9926_v59 = vld [vmem:[%s11162_s26 + $0x7fc] sm:$0xf] }
 0x22e   : > { %3761 = vmatpush.bf16.msra.mxu3 %v8535_v0  ;;  %v8680_v0 = vld [vmem:[%s11162_s26 + $0xb28] sm:$0xf0]  ;;  %v8299_v6 = vor.u32 %v9926_v59, %v8296_v61  ;;  %v9878_v59 = vld [vmem:[%s11162_s26 + $0x67c] sm:$0xf] }
 0x22f   : > { %3720 = vmatpush.bf16.msra.mxu0 %v7335_v8  ;;  %v9818_v8 = vld [vmem:[%s11162_s26 + $0x49c] sm:$0xf]  ;;  %v8683_v12 = vor.u32 %v10022_v63, %v8680_v0  ;;  %v8104_v61 = vld [vmem:[%s11162_s26 + $0x6a8] sm:$0xf0]  ;;  %v7339_v0 = vor.u32 %v9686_v50, %v7336_v51  ;;  %v7534_v51 = vld [vmem:[%s11162_s26 + $0x200] sm:$0xf] }
 0x230   : > { %3734 = vmatpush.bf16.msra.mxu1 %v7719_v13  ;;  %v9914_v13 = vld [vmem:[%s11162_s26 + $0x79c] sm:$0xf]  ;;  %v7867_v18 = vor.u32 %v9818_v8, %v7864_v9  ;;  %v7723_v8 = vor.u32 %v9782_v53, %v7720_v55  ;;  %v7918_v55 = vld [vmem:[%s11162_s26 + $0x500] sm:$0xf] }
 0x231   : > { %3748 = vmatpush.bf16.msra.mxu2 %v8103_v17  ;;  %v8632_v17 = vld [vmem:[%s11162_s26 + $0xac8] sm:$0xf0]  ;;  %v9770_v9 = vld [vmem:[%s11162_s26 + $0x31c] sm:$0xf] }
 0x232   : > { %3762 = vmatpush.bf16.msra.mxu3 %v8487_v23  ;;  %v8251_v23 = vor.u32 %v9914_v13, %v8248_v14  ;;  %v9866_v13 = vld [vmem:[%s11162_s26 + $0x61c] sm:$0xf] }
 0x233   : > { %3721 = vmatpush.bf16.msra.mxu0 %v7287_v27  ;;  %v8635_v27 = vor.u32 %v10010_v16, %v8632_v17  ;;  %v8056_v16 = vld [vmem:[%s11162_s26 + $0x648] sm:$0xf0]  ;;  %v7630_v17 = vld [vmem:[%s11162_s26 + $0x2c0] sm:$0xf] }
 0x234   : > { %3735 = vmatpush.bf16.msra.mxu1 %v7671_v31  ;;  %v9998_v31 = vld [vmem:[%s11162_s26 + $0xa3c] sm:$0xf]  ;;  %v3513_v43 = vpop.f32.mrf.mxu1 }
 0x235   : > { %3749 = vmatpush.bf16.msra.mxu2 %v8055_v34  ;;  %v9698_v34 = vld [vmem:[%s11162_s26 + $0xdc] sm:$0xf] }
 0x236   : > { %3763 = vmatpush.bf16.msra.mxu3 %v8439_v39  ;;  %3722 = vmatmul.bf16.vlgmr.msra.gmra.mxu0 %v11298_v1 }
 0x237   : > { %3770 = vmatpush.bf16.msrb.mxu0 %v7627_v32  ;;  %3736 = vmatmul.bf16.vlgmr.msra.gmra.mxu1 %v11304_v7  ;;  %v8584_v32 = vld [vmem:[%s11162_s26 + $0xa68] sm:$0xf0] }
 0x238   : > { %3784 = vmatpush.bf16.msrb.mxu1 %v8011_v35  ;;  %3750 = vmatmul.bf16.vlgmr.msra.gmra.mxu2 %v11288_v47  ;;  %v7384_v35 = vld [vmem:[%s11162_s26 + $0x108] sm:$0xf0]  ;;  %v8587_v39 = vor.u32 %v9998_v31, %v8584_v32 }
 0x239   : > { %3798 = vmatpush.bf16.msrb.mxu2 %v8395_v38  ;;  %3764 = vmatmul.bf16.vlgmr.msra.gmra.mxu3 %v11295_v58  ;;  %v7768_v38 = vld [vmem:[%s11162_s26 + $0x408] sm:$0xf0]  ;;  %v7387_v44 = vor.u32 %v9698_v34, %v7384_v35  ;;  %v10053_v34 = vld [vmem:[%s11162_s26 + $0xbec] sm:$0xf0]  ;;  %v8059_v35 = vor.u32 %v9866_v13, %v8056_v16  ;;  %v7870_v13 = vld [vmem:[%s11162_s26 + $0x4a0] sm:$0xf] }
 0x23a   : > { %3812 = vmatpush.bf16.msrb.mxu3 %v8779_v42  ;;  %v3499_v42 = vpop.f32.mrf.mxu0  ;;  %v8254_v16 = vld [vmem:[%s11162_s26 + $0x7a0] sm:$0xf] }
 0x23b   : > { %3771 = vmatpush.bf16.msrb.mxu0 %v7579_v45  ;;  %v9986_v45 = vld [vmem:[%s11162_s26 + $0x9dc] sm:$0xf]  ;;  %v3514_v48 = vadd.f32 %v3513_v43, %v3499_v42  ;;  %v3527_v63 = vpop.f32.mrf.mxu2  ;;  %v9849_v42 = vld [vmem:[%s11162_s26 + $0x58c] sm:$0xf0] }
 0x23c   : > { %3785 = vmatpush.bf16.msrb.mxu1 %v7963_v49  ;;  %v7771_v49 = vor.u32 %v9794_v37, %v7768_v38  ;;  %v3541_v14 = vpop.f32.mrf.mxu3  ;;  %v7582_v37 = vld [vmem:[%s11162_s26 + $0x260] sm:$0xf]  ;;  %v9753_v38 = vld [vmem:[%s11162_s26 + $0x28c] sm:$0xf0] }
 0x23d   : > { %3799 = vmatpush.bf16.msrb.mxu2 %v8347_v52  ;;  %v8155_v52 = vor.u32 %v9890_v40, %v8152_v41  ;;  %v7966_v41 = vld [vmem:[%s11162_s26 + $0x560] sm:$0xf] }
 0x23e   : > { %3813 = vmatpush.bf16.msrb.mxu3 %v8731_v56  ;;  %v8539_v56 = vor.u32 %v9986_v45, %v8536_v46  ;;  %v9945_v45 = vld [vmem:[%s11162_s26 + $0x88c] sm:$0xf0]  ;;  %v7583_v46 = vor.u32 %v9753_v38, %v7582_v37  ;;  %v7967_v50 = vor.u32 %v9849_v42, %v7966_v41  ;;  %v8590_v37 = vld [vmem:[%s11162_s26 + $0xa40] sm:$0xf] }
 0x23f   : > { %3772 = vmatpush.bf16.msrb.mxu0 %v7531_v62  ;;  %v9974_v62 = vld [vmem:[%s11162_s26 + $0x97c] sm:$0xf]  ;;  %v10005_v38 = vld [vmem:[%s11162_s26 + $0xa6c] sm:$0xf0]  ;;  %v7390_v41 = vld [vmem:[%s11162_s26 + $0xe0] sm:$0xf] }
 0x240   : > { %3786 = vmatpush.bf16.msrb.mxu1 %v7915_v2  ;;  %v8488_v2 = vld [vmem:[%s11162_s26 + $0x9a8] sm:$0xf0]  ;;  %v9705_v42 = vld [vmem:[%s11162_s26 + $0x10c] sm:$0xf0] }
 0x241   : > { %3800 = vmatpush.bf16.msrb.mxu2 %v8299_v6  ;;  %v3528_v6 = vadd.f32 %v3527_v63, %v3514_v48  ;;  %v8491_v21 = vor.u32 %v9974_v62, %v8488_v2  ;;  %v8734_v48 = vld [vmem:[%s11162_s26 + $0xb60] sm:$0xf]  ;;  %v9933_v63 = vld [vmem:[%s11162_s26 + $0x82c] sm:$0xf0] }
 0x242   : > { %3814 = vmatpush.bf16.msrb.mxu3 %v8683_v12  ;;  %v7672_v12 = vld [vmem:[%s11162_s26 + $0x348] sm:$0xf0]  ;;  %v8302_v62 = vld [vmem:[%s11162_s26 + $0x800] sm:$0xf] }
 0x243   : > { %3773 = vmatpush.bf16.msrb.mxu0 %v7483_v15  ;;  %v8107_v15 = vor.u32 %v9878_v59, %v8104_v61  ;;  %v11773_v19 = vadd.f32 %v3541_v14, %v3528_v6  ;;  %v7675_v31 = vor.u32 %v9770_v9, %v7672_v12  ;;  %v11796_v61 = vpop.f32.mrf.mxu0  ;;  %v8686_v2 = vld [vmem:[%s11162_s26 + $0xb00] sm:$0xf]  ;;  %v9729_v9 = vld [vmem:[%s11162_s26 + $0x1cc] sm:$0xf0]  ;;  %v8303_v12 = vor.u32 %v9933_v63, %v8302_v62 }
 0x244   : > { %3787 = vmatpush.bf16.msrb.mxu1 %v7867_v18  ;;  %v9765_v18 = vld [vmem:[%s11162_s26 + $0x2ec] sm:$0xf0] }
 0x245   : > { %3801 = vmatpush.bf16.msrb.mxu2 %v8251_v23  ;;  %v8014_v23 = vld [vmem:[%s11162_s26 + $0x5c0] sm:$0xf]  ;;  %v7631_v32 = vor.u32 %v9765_v18, %v7630_v17  ;;  %v9825_v14 = vld [vmem:[%s11162_s26 + $0x4cc] sm:$0xf0] }
 0x246   : > { %3815 = vmatpush.bf16.msrb.mxu3 %v8635_v27  ;;  %v7291_v27 = vor.u32 %v9674_v3, %v7288_v5  ;;  %v10029_v3 = vld [vmem:[%s11162_s26 + $0xb2c] sm:$0xf0]  ;;  %v11804_v5 = vpop.f32.mrf.mxu1 }
 0x247   : > { %3774 = vmatpush.bf16.msrb.mxu0 %v7435_v30  ;;  %v8440_v30 = vld [vmem:[%s11162_s26 + $0x948] sm:$0xf0]  ;;  %v9921_v17 = vld [vmem:[%s11162_s26 + $0x7cc] sm:$0xf0] }
 0x248   : > { %3788 = vmatpush.bf16.msrb.mxu1 %v7819_v33  ;;  %v8782_v33 = vld [vmem:[%s11162_s26 + $0xbc0] sm:$0xf]  ;;  %v8443_v40 = vor.u32 %v9962_v29, %v8440_v30  ;;  %v11819_v29 = vpop.f32.mrf.mxu3  ;;  %v8255_v30 = vor.u32 %v9921_v17, %v8254_v16  ;;  %v9693_v62 = vld [vmem:[%s11162_s26 + $0xac] sm:$0xf0] }
 0x249   : > { %3802 = vmatpush.bf16.msrb.mxu2 %v8203_v36  ;;  %v8015_v36 = vor.u32 %v9861_v54, %v8014_v23  ;;  %v8783_v43 = vor.u32 %v10053_v34, %v8782_v33  ;;  %v10017_v23 = vld [vmem:[%s11162_s26 + $0xacc] sm:$0xf0]  ;;  %v11815_v54 = vpop.f32.mrf.mxu2  ;;  %v8206_v34 = vld [vmem:[%s11162_s26 + $0x740] sm:$0xf] }
 0x24a   : > { %3816 = vmatpush.bf16.msrb.mxu3 %v8587_v39  ;;  %v8399_v39 = vor.u32 %v9957_v28, %v8398_v57  ;;  %v7871_v57 = vor.u32 %v9825_v14, %v7870_v13  ;;  %v9717_v28 = vld [vmem:[%s11162_s26 + $0x16c] sm:$0xf0]  ;;  %v7294_v17 = vld [vmem:[%s11162_s26 + $0x20] sm:$0xf] }
 0x24b   : > { %3775 = vmatpush.bf16.msrb.mxu0 %v7387_v44  ;;  %v8350_v44 = vld [vmem:[%s11162_s26 + $0x860] sm:$0xf]  ;;  %v9981_v16 = vld [vmem:[%s11162_s26 + $0x9ac] sm:$0xf0] }
 0x24c   : > { %3789 = vmatpush.bf16.msrb.mxu1 %v7771_v49  ;;  %v10041_v49 = vld [vmem:[%s11162_s26 + $0xb8c] sm:$0xf0]  ;;  %v8351_v53 = vor.u32 %v9945_v45, %v8350_v44  ;;  %v7774_v44 = vld [vmem:[%s11162_s26 + $0x3e0] sm:$0xf] }
 0x24d   : > { %3803 = vmatpush.bf16.msrb.mxu2 %v8155_v52  ;;  %v9741_v52 = vld [vmem:[%s11162_s26 + $0x22c] sm:$0xf0]  ;;  %v8735_v59 = vor.u32 %v10041_v49, %v8734_v48  ;;  %v8591_v48 = vor.u32 %v10005_v38, %v8590_v37  ;;  %v8158_v49 = vld [vmem:[%s11162_s26 + $0x6e0] sm:$0xf]  ;;  %v9951_v37 = vld [vmem:[%s11162_s26 + $0x8c4] sm:$0xf] }
 0x24e   : > { %3817 = vmatpush.bf16.msrb.mxu3 %v8539_v56  ;;  %v9837_v56 = vld [vmem:[%s11162_s26 + $0x52c] sm:$0xf0] }
 0x24f   : > { %3776 = vmatpush.bf16.msrb.mxu0 %v7339_v0  ;;  %v7535_v0 = vor.u32 %v9741_v52, %v7534_v51  ;;  %v7919_v6 = vor.u32 %v9837_v56, %v7918_v55  ;;  %v9801_v45 = vld [vmem:[%s11162_s26 + $0x40c] sm:$0xf0]  ;;  %v7391_v52 = vor.u32 %v9705_v42, %v7390_v41  ;;  %v8446_v41 = vld [vmem:[%s11162_s26 + $0x920] sm:$0xf] }
 0x250   : > { %3790 = vmatpush.bf16.msrb.mxu1 %v7723_v8  ;;  %v7486_v8 = vld [vmem:[%s11162_s26 + $0x1a0] sm:$0xf]  ;;  %v9993_v55 = vld [vmem:[%s11162_s26 + $0xa0c] sm:$0xf0]  ;;  %v7775_v56 = vor.u32 %v9801_v45, %v7774_v44  ;;  %v10047_v45 = vld [vmem:[%s11162_s26 + $0xbc4] sm:$0xf] }
 0x251   : > { %3804 = vmatpush.bf16.msrb.mxu2 %v8107_v15  ;;  %v8687_v15 = vor.u32 %v10029_v3, %v8686_v2  ;;  %v7487_v18 = vor.u32 %v9729_v9, %v7486_v8  ;;  %v9789_v2 = vld [vmem:[%s11162_s26 + $0x3ac] sm:$0xf0]  ;;  %v8110_v8 = vld [vmem:[%s11162_s26 + $0x680] sm:$0xf] }
 0x252   : > { %3818 = vmatpush.bf16.msrb.mxu3 %v8491_v21  ;;  %v8638_v21 = vld [vmem:[%s11162_s26 + $0xaa0] sm:$0xf]  ;;  %v9885_v9 = vld [vmem:[%s11162_s26 + $0x6ac] sm:$0xf0] }
 0x253   : > { %3777 = vmatpush.bf16.msrb.mxu0 %v7291_v27  ;;  %v7438_v27 = vld [vmem:[%s11162_s26 + $0x140] sm:$0xf]  ;;  %v8639_v33 = vor.u32 %v10017_v23, %v8638_v21  ;;  %v9969_v42 = vld [vmem:[%s11162_s26 + $0x94c] sm:$0xf0] }
 0x254   : > { %3791 = vmatpush.bf16.msrb.mxu1 %v7675_v31  ;;  %v7822_v31 = vld [vmem:[%s11162_s26 + $0x440] sm:$0xf] }
 0x255   : > { %3805 = vmatpush.bf16.msrb.mxu2 %v8059_v35  ;;  %v9909_v35 = vld [vmem:[%s11162_s26 + $0x76c] sm:$0xf0]  ;;  %v7678_v23 = vld [vmem:[%s11162_s26 + $0x320] sm:$0xf] }
 0x256   : > { %3819 = vmatpush.bf16.msrb.mxu3 %v8443_v40  ;;  %3778 = vmatmul.bf16.vlgmr.msrb.gmra.mxu0 %v11298_v1 }
 0x257   : > { %3826 = vmatpush.bf16.msra.mxu0 %v7631_v32  ;;  %3792 = vmatmul.bf16.vlgmr.msrb.gmra.mxu1 %v11304_v7  ;;  %v9813_v32 = vld [vmem:[%s11162_s26 + $0x46c] sm:$0xf0] }
 0x258   : > { %3840 = vmatpush.bf16.msra.mxu1 %v8015_v36  ;;  %3806 = vmatmul.bf16.vlgmr.msrb.gmra.mxu2 %v11288_v47  ;;  %v7439_v36 = vor.u32 %v9717_v28, %v7438_v27  ;;  %v7823_v40 = vor.u32 %v9813_v32, %v7822_v31  ;;  %v8062_v27 = vld [vmem:[%s11162_s26 + $0x620] sm:$0xf]  ;;  %v9873_v31 = vld [vmem:[%s11162_s26 + $0x64c] sm:$0xf0]  ;;  %v9759_v32 = vld [vmem:[%s11162_s26 + $0x2c4] sm:$0xf] }
 0x259   : > { %3854 = vmatpush.bf16.msra.mxu2 %v8399_v39  ;;  %3820 = vmatmul.bf16.vlgmr.msrb.gmra.mxu3 %v11295_v58  ;;  %v3555_v39 = vpop.f32.mrf.mxu0 }
 0x25a   : > { %3868 = vmatpush.bf16.msra.mxu3 %v8783_v43  ;;  %v8207_v43 = vor.u32 %v9909_v35, %v8206_v34  ;;  %v9855_v35 = vld [vmem:[%s11162_s26 + $0x5c4] sm:$0xf] }
 0x25b   : > { %3827 = vmatpush.bf16.msra.mxu0 %v7583_v46  ;;  %v3569_v46 = vpop.f32.mrf.mxu1  ;;  %v3583_v3 = vpop.f32.mrf.mxu2 }
 0x25c   : > { %3841 = vmatpush.bf16.msra.mxu1 %v7967_v50  ;;  %v9897_v50 = vld [vmem:[%s11162_s26 + $0x70c] sm:$0xf0]  ;;  %v3570_v51 = vadd.f32 %v3569_v46, %v3555_v39  ;;  %v3597_v14 = vpop.f32.mrf.mxu3  ;;  %v8784_v46 = vld [vmem:[%s11162_s26 + $0xbf0] sm:$0xf0] }
 0x25d   : > { %3855 = vmatpush.bf16.msra.mxu2 %v8351_v53  ;;  %v8542_v53 = vld [vmem:[%s11162_s26 + $0x9e0] sm:$0xf]  ;;  %v8159_v63 = vor.u32 %v9897_v50, %v8158_v49  ;;  %v7584_v50 = vld [vmem:[%s11162_s26 + $0x290] sm:$0xf0] }
 0x25e   : > { %3869 = vmatpush.bf16.msra.mxu3 %v8735_v59  ;;  %v7342_v59 = vld [vmem:[%s11162_s26 + $0x80] sm:$0xf]  ;;  %v3584_v13 = vadd.f32 %v3583_v3, %v3570_v51 }
 0x25f   : > { %3828 = vmatpush.bf16.msra.mxu0 %v7535_v0  ;;  %v7726_v0 = vld [vmem:[%s11162_s26 + $0x380] sm:$0xf] }
 0x260   : > { %3842 = vmatpush.bf16.msra.mxu1 %v7919_v6  ;;  %v8543_v6 = vor.u32 %v9993_v55, %v8542_v53  ;;  %v7727_v21 = vor.u32 %v9789_v2, %v7726_v0  ;;  %v3598_v28 = vadd.f32 %v3597_v14, %v3584_v13  ;;  %v9843_v53 = vld [vmem:[%s11162_s26 + $0x564] sm:$0xf]  ;;  %v7968_v55 = vld [vmem:[%s11162_s26 + $0x590] sm:$0xf0] }
 0x261   : > { %3856 = vmatpush.bf16.msra.mxu2 %v8303_v12  ;;  %v8494_v12 = vld [vmem:[%s11162_s26 + $0x980] sm:$0xf]  ;;  %v10035_v0 = vld [vmem:[%s11162_s26 + $0xb64] sm:$0xf]  ;;  %v8736_v2 = vld [vmem:[%s11162_s26 + $0xb90] sm:$0xf0]  ;;  %v7971_v3 = vor.u32 %v9843_v53, %v7968_v55 }
 0x262   : > { %3870 = vmatpush.bf16.msra.mxu3 %v8687_v15  ;;  %v7343_v15 = vor.u32 %v9693_v62, %v7342_v59  ;;  %v8495_v34 = vor.u32 %v9981_v16, %v8494_v12  ;;  %v11855_v38 = vpack.c.bf16 %v3598_v28, %v11773_v19  ;;  %v9747_v19 = vld [vmem:[%s11162_s26 + $0x264] sm:$0xf]  ;;  %v8352_v62 = vld [vmem:[%s11162_s26 + $0x890] sm:$0xf0]  ;;  %v8739_v14 = vor.u32 %v10035_v0, %v8736_v2 }
 0x263   : > { %3829 = vmatpush.bf16.msra.mxu0 %v7487_v18  ;;  %v9681_v18 = vld [vmem:[%s11162_s26 + $0x4c] sm:$0xf0]  ;;  %v9939_v59 = vld [vmem:[%s11162_s26 + $0x864] sm:$0xf]  ;;  %v7920_v13 = vld [vmem:[%s11162_s26 + $0x530] sm:$0xf0] }
 0x264   : > { %3843 = vmatpush.bf16.msra.mxu1 %v7871_v57  ;;  %v9777_v57 = vld [vmem:[%s11162_s26 + $0x34c] sm:$0xf0]  ;;  %v7295_v39 = vor.u32 %v9681_v18, %v7294_v17  ;;  %v9831_v12 = vld [vmem:[%s11162_s26 + $0x504] sm:$0xf]  ;;  %v8304_v16 = vld [vmem:[%s11162_s26 + $0x830] sm:$0xf0] }
 0x265   : > { %3857 = vmatpush.bf16.msra.mxu2 %v8255_v30  ;;  %v8111_v30 = vor.u32 %v9885_v9, %v8110_v8  ;;  %v7536_v8 = vld [vmem:[%s11162_s26 + $0x230] sm:$0xf0]  ;;  %v8355_v9 = vor.u32 %v9939_v59, %v8352_v62  ;;  %v10023_v18 = vld [vmem:[%s11162_s26 + $0xb04] sm:$0xf] }
 0x266   : > { %3871 = vmatpush.bf16.msra.mxu3 %v8639_v33  ;;  %v7632_v33 = vld [vmem:[%s11162_s26 + $0x2f0] sm:$0xf0]  ;;  %v9699_v53 = vld [vmem:[%s11162_s26 + $0xe4] sm:$0xf] }
 0x267   : > { %3830 = vmatpush.bf16.msra.mxu0 %v7439_v36  ;;  %v8016_v36 = vld [vmem:[%s11162_s26 + $0x5f0] sm:$0xf0]  ;;  %v7635_v44 = vor.u32 %v9759_v32, %v7632_v33  ;;  %v9915_v33 = vld [vmem:[%s11162_s26 + $0x7a4] sm:$0xf] }
 0x268   : > { %3844 = vmatpush.bf16.msra.mxu1 %v7823_v40  ;;  %v8400_v40 = vld [vmem:[%s11162_s26 + $0x8f0] sm:$0xf0]  ;;  %v8019_v49 = vor.u32 %v9855_v35, %v8016_v36  ;;  %v10011_v36 = vld [vmem:[%s11162_s26 + $0xaa4] sm:$0xf] }
 0x269   : > { %3858 = vmatpush.bf16.msra.mxu2 %v8207_v43  ;;  %v7679_v43 = vor.u32 %v9777_v57, %v7678_v23  ;;  %v8403_v51 = vor.u32 %v9951_v37, %v8400_v40  ;;  %v7923_v23 = vor.u32 %v9831_v12, %v7920_v13  ;;  %v9723_v57 = vld [vmem:[%s11162_s26 + $0x1a4] sm:$0xf]  ;;  %v8640_v37 = vld [vmem:[%s11162_s26 + $0xad0] sm:$0xf0] }
 0x26a   : > { %3872 = vmatpush.bf16.msra.mxu3 %v8591_v48  ;;  %v8063_v48 = vor.u32 %v9873_v31, %v8062_v27  ;;  %v7488_v27 = vld [vmem:[%s11162_s26 + $0x1d0] sm:$0xf0]  ;;  %v9711_v40 = vld [vmem:[%s11162_s26 + $0x144] sm:$0xf] }
 0x26b   : > { %3831 = vmatpush.bf16.msra.mxu0 %v7391_v52  ;;  %v8447_v52 = vor.u32 %v9969_v42, %v8446_v41  ;;  %v7872_v31 = vld [vmem:[%s11162_s26 + $0x4d0] sm:$0xf0]  ;;  %v7491_v35 = vor.u32 %v9723_v57, %v7488_v27  ;;  %v9795_v59 = vld [vmem:[%s11162_s26 + $0x3e4] sm:$0xf]  ;;  %v11917_v27 = vpop.f32.mrf.mxu2 }
 0x26c   : > { %3845 = vmatpush.bf16.msra.mxu1 %v7775_v56  ;;  %v8787_v56 = vor.u32 %v10047_v45, %v8784_v46  ;;  %v7440_v41 = vld [vmem:[%s11162_s26 + $0x170] sm:$0xf0]  ;;  %v8643_v45 = vor.u32 %v10011_v36, %v8640_v37  ;;  %v9903_v46 = vld [vmem:[%s11162_s26 + $0x744] sm:$0xf] }
 0x26d   : > { %3859 = vmatpush.bf16.msra.mxu2 %v8159_v63  ;;  %v7587_v63 = vor.u32 %v9747_v19, %v7584_v50  ;;  %v9999_v19 = vld [vmem:[%s11162_s26 + $0xa44] sm:$0xf]  ;;  %v8592_v50 = vld [vmem:[%s11162_s26 + $0xa70] sm:$0xf0] }
 0x26e   : > { %3873 = vmatpush.bf16.msra.mxu3 %v8543_v6  ;;  %v9735_v6 = vld [vmem:[%s11162_s26 + $0x204] sm:$0xf]  ;;  %v7392_v55 = vld [vmem:[%s11162_s26 + $0x110] sm:$0xf0] }
 0x26f   : > { %3832 = vmatpush.bf16.msra.mxu0 %v7343_v15  ;;  %v9927_v15 = vld [vmem:[%s11162_s26 + $0x804] sm:$0xf]  ;;  %v7539_v17 = vor.u32 %v9735_v6, %v7536_v8  ;;  %v7776_v62 = vld [vmem:[%s11162_s26 + $0x410] sm:$0xf0]  ;;  %v7395_v6 = vor.u32 %v9699_v53, %v7392_v55 }
 0x270   : > { %3846 = vmatpush.bf16.msra.mxu1 %v7727_v21  ;;  %v8688_v21 = vld [vmem:[%s11162_s26 + $0xb30] sm:$0xf0]  ;;  %v8307_v28 = vor.u32 %v9927_v15, %v8304_v16  ;;  %v9891_v0 = vld [vmem:[%s11162_s26 + $0x6e4] sm:$0xf]  ;;  %v7779_v12 = vor.u32 %v9795_v59, %v7776_v62  ;;  %v8790_v59 = vld [vmem:[%s11162_s26 + $0xbc8] sm:$0xf] }
 0x271   : > { %3860 = vmatpush.bf16.msra.mxu2 %v8111_v30  ;;  %v9819_v30 = vld [vmem:[%s11162_s26 + $0x4a4] sm:$0xf]  ;;  %v8691_v32 = vor.u32 %v10023_v18, %v8688_v21  ;;  %v8160_v2 = vld [vmem:[%s11162_s26 + $0x710] sm:$0xf0]  ;;  %v10054_v62 = vld [vmem:[%s11162_s26 + $0xbf4] sm:$0xf0] }
 0x272   : > { %3874 = vmatpush.bf16.msra.mxu3 %v8495_v34  ;;  %v8256_v34 = vld [vmem:[%s11162_s26 + $0x7d0] sm:$0xf0]  ;;  %v9987_v8 = vld [vmem:[%s11162_s26 + $0x9e4] sm:$0xf]  ;;  %v8163_v15 = vor.u32 %v9891_v0, %v8160_v2  ;;  %v7590_v2 = vld [vmem:[%s11162_s26 + $0x268] sm:$0xf] }
 0x273   : > { %3833 = vmatpush.bf16.msra.mxu0 %v7295_v39  ;;  %v7875_v39 = vor.u32 %v9819_v30, %v7872_v31  ;;  %v8259_v42 = vor.u32 %v9915_v33, %v8256_v34  ;;  %v9687_v13 = vld [vmem:[%s11162_s26 + $0x84] sm:$0xf]  ;;  %v8496_v30 = vld [vmem:[%s11162_s26 + $0x9b0] sm:$0xf0]  ;;  %v11922_v33 = vpop.f32.mrf.mxu3 }
 0x274   : > { %3847 = vmatpush.bf16.msra.mxu1 %v7679_v43  ;;  %v9807_v43 = vld [vmem:[%s11162_s26 + $0x444] sm:$0xf]  ;;  %v7680_v37 = vld [vmem:[%s11162_s26 + $0x350] sm:$0xf0] }
 0x275   : > { %3861 = vmatpush.bf16.msra.mxu2 %v8063_v48  ;;  %v8208_v48 = vld [vmem:[%s11162_s26 + $0x770] sm:$0xf0]  ;;  %v9783_v16 = vld [vmem:[%s11162_s26 + $0x384] sm:$0xf] }
 0x276   : > { %3875 = vmatpush.bf16.msra.mxu3 %v8447_v52  ;;  %3834 = vmatmul.bf16.vlgmr.msra.gmra.mxu0 %v11298_v1  ;;  %v9879_v21 = vld [vmem:[%s11162_s26 + $0x684] sm:$0xf]  ;;  %v8448_v53 = vld [vmem:[%s11162_s26 + $0x950] sm:$0xf0] }
 0x277   : > { %3882 = vmatpush.bf16.msrb.mxu0 %v7635_v44  ;;  %3848 = vmatmul.bf16.vlgmr.msra.gmra.mxu1 %v11304_v7  ;;  %v7824_v44 = vld [vmem:[%s11162_s26 + $0x470] sm:$0xf0]  ;;  %v9975_v57 = vld [vmem:[%s11162_s26 + $0x984] sm:$0xf] }
 0x278   : > { %3896 = vmatpush.bf16.msrb.mxu1 %v8019_v49  ;;  %3862 = vmatmul.bf16.vlgmr.msra.gmra.mxu2 %v11288_v47  ;;  %v7443_v49 = vor.u32 %v9711_v40, %v7440_v41  ;;  %v7827_v52 = vor.u32 %v9807_v43, %v7824_v44  ;;  %v9675_v31 = vld [vmem:[%s11162_s26 + $0x24] sm:$0xf]  ;;  %v8064_v41 = vld [vmem:[%s11162_s26 + $0x650] sm:$0xf0]  ;;  %v9766_v43 = vld [vmem:[%s11162_s26 + $0x2f4] sm:$0xf0]  ;;  %v8499_v44 = vor.u32 %v9975_v57, %v8496_v30 }
 0x279   : > { %3910 = vmatpush.bf16.msrb.mxu2 %v8403_v51  ;;  %3876 = vmatmul.bf16.vlgmr.msra.gmra.mxu3 %v11295_v58  ;;  %v11898_v51 = vpop.f32.mrf.mxu0  ;;  %v9771_v36 = vld [vmem:[%s11162_s26 + $0x324] sm:$0xf]  ;;  %v10042_v57 = vld [vmem:[%s11162_s26 + $0xb94] sm:$0xf0]  ;;  %v7542_v30 = vld [vmem:[%s11162_s26 + $0x208] sm:$0xf] }
 0x27a   : > { %3924 = vmatpush.bf16.msrb.mxu3 %v8787_v56  ;;  %v8211_v56 = vor.u32 %v9903_v46, %v8208_v48  ;;  %v9862_v46 = vld [vmem:[%s11162_s26 + $0x5f4] sm:$0xf0]  ;;  %v8406_v48 = vld [vmem:[%s11162_s26 + $0x8c8] sm:$0xf]  ;;  %v7683_v55 = vor.u32 %v9771_v36, %v7680_v37 }
 0x27b   : > { %3883 = vmatpush.bf16.msrb.mxu0 %v7587_v63  ;;  %v8595_v63 = vor.u32 %v9999_v19, %v8592_v50  ;;  %v9958_v50 = vld [vmem:[%s11162_s26 + $0x8f4] sm:$0xf0]  ;;  %v7926_v36 = vld [vmem:[%s11162_s26 + $0x508] sm:$0xf] }
 0x27c   : > { %3897 = vmatpush.bf16.msrb.mxu1 %v7971_v3  ;;  %v11906_v3 = vpop.f32.mrf.mxu1  ;;  %v9838_v37 = vld [vmem:[%s11162_s26 + $0x534] sm:$0xf0] }
 0x27d   : > { %3911 = vmatpush.bf16.msrb.mxu2 %v8355_v9  ;;  %v8544_v9 = vld [vmem:[%s11162_s26 + $0xa10] sm:$0xf0] }
 0x27e   : > { %3925 = vmatpush.bf16.msrb.mxu3 %v8739_v14  ;;  %v7344_v14 = vld [vmem:[%s11162_s26 + $0xb0] sm:$0xf0]  ;;  %v8547_v18 = vor.u32 %v9987_v8, %v8544_v9  ;;  %v8407_v8 = vor.u32 %v9958_v50, %v8406_v48  ;;  %v7494_v48 = vld [vmem:[%s11162_s26 + $0x1a8] sm:$0xf] }
 0x27f   : > { %3884 = vmatpush.bf16.msrb.mxu0 %v7539_v17  ;;  %v7728_v17 = vld [vmem:[%s11162_s26 + $0x3b0] sm:$0xf0] }
 0x280   : > { %3898 = vmatpush.bf16.msrb.mxu1 %v7923_v23  ;;  %v8112_v23 = vld [vmem:[%s11162_s26 + $0x6b0] sm:$0xf0]  ;;  %v7731_v34 = vor.u32 %v9783_v16, %v7728_v17  ;;  %v8358_v16 = vld [vmem:[%s11162_s26 + $0x868] sm:$0xf]  ;;  %v9946_v17 = vld [vmem:[%s11162_s26 + $0x894] sm:$0xf0] }
 0x281   : > { %3912 = vmatpush.bf16.msrb.mxu2 %v8307_v28  ;;  %v7347_v28 = vor.u32 %v9687_v13, %v7344_v14  ;;  %v8115_v40 = vor.u32 %v9879_v21, %v8112_v23  ;;  %v9850_v13 = vld [vmem:[%s11162_s26 + $0x594] sm:$0xf0]  ;;  %v11946_v14 = vpop.f32.mrf.mxu2  ;;  %v8742_v23 = vld [vmem:[%s11162_s26 + $0xb68] sm:$0xf] }
 0x282   : > { %3926 = vmatpush.bf16.msrb.mxu3 %v8691_v32  ;;  %v7296_v32 = vld [vmem:[%s11162_s26 + $0x50] sm:$0xf0] }
 0x283   : > { %3885 = vmatpush.bf16.msrb.mxu0 %v7491_v35  ;;  %v11924_v35 = vpop.f32.mrf.mxu0  ;;  %v7299_v19 = vor.u32 %v9675_v31, %v7296_v32  ;;  %v9742_v31 = vld [vmem:[%s11162_s26 + $0x234] sm:$0xf0]  ;;  %v8359_v32 = vor.u32 %v9946_v17, %v8358_v16 }
 0x284   : > { %3899 = vmatpush.bf16.msrb.mxu1 %v7875_v39  ;;  %v9867_v39 = vld [vmem:[%s11162_s26 + $0x624] sm:$0xf]  ;;  %v9814_v16 = vld [vmem:[%s11162_s26 + $0x474] sm:$0xf0] }
 0x285   : > { %3913 = vmatpush.bf16.msrb.mxu2 %v8259_v42  ;;  %v7638_v42 = vld [vmem:[%s11162_s26 + $0x2c8] sm:$0xf] }
 0x286   : > { %3927 = vmatpush.bf16.msrb.mxu3 %v8643_v45  ;;  %v8022_v45 = vld [vmem:[%s11162_s26 + $0x5c8] sm:$0xf] }
 0x287   : > { %3886 = vmatpush.bf16.msrb.mxu0 %v7443_v49  ;;  %v11935_v49 = vpop.f32.mrf.mxu1  ;;  %v8023_v0 = vor.u32 %v9862_v46, %v8022_v45  ;;  %v7927_v46 = vor.u32 %v9838_v37, %v7926_v36  ;;  %v7398_v36 = vld [vmem:[%s11162_s26 + $0xe8] sm:$0xf]  ;;  %v9706_v37 = vld [vmem:[%s11162_s26 + $0x114] sm:$0xf0] }
 0x288   : > { %3900 = vmatpush.bf16.msrb.mxu1 %v7827_v52  ;;  %v9963_v52 = vld [vmem:[%s11162_s26 + $0x924] sm:$0xf] }
 0x289   : > { %3914 = vmatpush.bf16.msrb.mxu2 %v8211_v56  ;;  %v7639_v56 = vor.u32 %v9766_v43, %v7638_v42  ;;  %v8451_v9 = vor.u32 %v9963_v52, %v8448_v53  ;;  %v7543_v42 = vor.u32 %v9742_v31, %v7542_v30  ;;  %v8694_v43 = vld [vmem:[%s11162_s26 + $0xb08] sm:$0xf]  ;;  %v9826_v53 = vld [vmem:[%s11162_s26 + $0x4d4] sm:$0xf0] }
 0x28a   : > { %3928 = vmatpush.bf16.msrb.mxu3 %v8595_v63  ;;  %v8067_v63 = vor.u32 %v9867_v39, %v8064_v41  ;;  %v8743_v39 = vor.u32 %v10042_v57, %v8742_v23  ;;  %v9934_v41 = vld [vmem:[%s11162_s26 + $0x834] sm:$0xf0]  ;;  %v7878_v52 = vld [vmem:[%s11162_s26 + $0x4a8] sm:$0xf] }
 0x28b   : > { %3887 = vmatpush.bf16.msrb.mxu0 %v7395_v6  ;;  %v9754_v6 = vld [vmem:[%s11162_s26 + $0x294] sm:$0xf0]  ;;  %v8598_v30 = vld [vmem:[%s11162_s26 + $0xa48] sm:$0xf] }
 0x28c   : > { %3901 = vmatpush.bf16.msrb.mxu1 %v7779_v12  ;;  %v7974_v12 = vld [vmem:[%s11162_s26 + $0x568] sm:$0xf]  ;;  %v7591_v21 = vor.u32 %v9754_v6, %v7590_v2  ;;  %v11978_v2 = vpop.f32.mrf.mxu2  ;;  %v7879_v6 = vor.u32 %v9826_v53, %v7878_v52  ;;  %v9910_v23 = vld [vmem:[%s11162_s26 + $0x774] sm:$0xf0] }
 0x28d   : > { %3915 = vmatpush.bf16.msrb.mxu2 %v8163_v15  ;;  %v8791_v15 = vor.u32 %v10054_v62, %v8790_v59  ;;  %v9922_v59 = vld [vmem:[%s11162_s26 + $0x7d4] sm:$0xf0]  ;;  %v8550_v52 = vld [vmem:[%s11162_s26 + $0x9e8] sm:$0xf] }
 0x28e   : > { %3929 = vmatpush.bf16.msrb.mxu3 %v8547_v18  ;;  %v11950_v18 = vpop.f32.mrf.mxu3  ;;  %v10006_v31 = vld [vmem:[%s11162_s26 + $0xa74] sm:$0xf0]  ;;  %v7350_v53 = vld [vmem:[%s11162_s26 + $0x88] sm:$0xf] }
 0x28f   : > { %3888 = vmatpush.bf16.msrb.mxu0 %v7347_v28  ;;  %v7975_v28 = vor.u32 %v9850_v13, %v7974_v12  ;;  %v11967_v45 = vpop.f32.mrf.mxu1 }
 0x290   : > { %3902 = vmatpush.bf16.msrb.mxu1 %v7731_v34  ;;  %v11956_v34 = vpop.f32.mrf.mxu0 }
 0x291   : > { %3916 = vmatpush.bf16.msrb.mxu2 %v8115_v40  ;;  %v8310_v40 = vld [vmem:[%s11162_s26 + $0x808] sm:$0xf] }
 0x292   : > { %3930 = vmatpush.bf16.msrb.mxu3 %v8499_v44  ;;  %v10030_v44 = vld [vmem:[%s11162_s26 + $0xb34] sm:$0xf0]  ;;  %v8311_v50 = vor.u32 %v9934_v41, %v8310_v40  ;;  %v7782_v41 = vld [vmem:[%s11162_s26 + $0x3e8] sm:$0xf] }
 0x293   : > { %3889 = vmatpush.bf16.msrb.mxu0 %v7299_v19  ;;  %v9730_v19 = vld [vmem:[%s11162_s26 + $0x1d4] sm:$0xf0] }
 0x294   : > { %3903 = vmatpush.bf16.msrb.mxu1 %v7683_v55  ;;  %v8695_v55 = vor.u32 %v10030_v44, %v8694_v43  ;;  %v7495_v62 = vor.u32 %v9730_v19, %v7494_v48  ;;  %v8599_v44 = vor.u32 %v10006_v31, %v8598_v30  ;;  %v9898_v48 = vld [vmem:[%s11162_s26 + $0x714] sm:$0xf0]  ;;  %v7686_v30 = vld [vmem:[%s11162_s26 + $0x328] sm:$0xf] }
 0x295   : > { %3917 = vmatpush.bf16.msrb.mxu2 %v8067_v63  ;;  %v8646_v63 = vld [vmem:[%s11162_s26 + $0xaa8] sm:$0xf] }
 0x296   : > { %3931 = vmatpush.bf16.msrb.mxu3 %v8451_v9  ;;  %3890 = vmatmul.bf16.vlgmr.msrb.gmra.mxu0 %v11298_v1  ;;  %v9718_v9 = vld [vmem:[%s11162_s26 + $0x174] sm:$0xf0]  ;;  %v11982_v12 = vpop.f32.mrf.mxu3 }
 0x297   : > { %3938 = vmatpush.bf16.msra.mxu0 %v7639_v56  ;;  %3904 = vmatmul.bf16.vlgmr.msrb.gmra.mxu1 %v11304_v7  ;;  %v8262_v56 = vld [vmem:[%s11162_s26 + $0x7a8] sm:$0xf]  ;;  %v3681_v43 = vpop.f32.mrf.mxu1 }
 0x298   : > { %3952 = vmatpush.bf16.msra.mxu1 %v8023_v0  ;;  %3918 = vmatmul.bf16.vlgmr.msrb.gmra.mxu2 %v11288_v47  ;;  %v10018_v0 = vld [vmem:[%s11162_s26 + $0xad4] sm:$0xf0]  ;;  %v8263_v13 = vor.u32 %v9922_v59, %v8262_v56  ;;  %v3667_v57 = vpop.f32.mrf.mxu0 }
 0x299   : > { %3966 = vmatpush.bf16.msra.mxu2 %v8407_v8  ;;  %3932 = vmatmul.bf16.vlgmr.msrb.gmra.mxu3 %v11295_v58  ;;  %v7446_v8 = vld [vmem:[%s11162_s26 + $0x148] sm:$0xf]  ;;  %v8647_v17 = vor.u32 %v10018_v0, %v8646_v63  ;;  %v3682_v19 = vadd.f32 %v3681_v43, %v3667_v57  ;;  %v9790_v63 = vld [vmem:[%s11162_s26 + $0x3b4] sm:$0xf0] }
 0x29a   : > { %3980 = vmatpush.bf16.msra.mxu3 %v8791_v15  ;;  %v7830_v15 = vld [vmem:[%s11162_s26 + $0x448] sm:$0xf] }
 0x29b   : > { %3939 = vmatpush.bf16.msra.mxu0 %v7591_v21  ;;  %v8214_v21 = vld [vmem:[%s11162_s26 + $0x748] sm:$0xf]  ;;  %v3695_v0 = vpop.f32.mrf.mxu2 }
 0x29c   : > { %3953 = vmatpush.bf16.msra.mxu1 %v7975_v28  ;;  %v7447_v28 = vor.u32 %v9718_v9, %v7446_v8  ;;  %v8215_v40 = vor.u32 %v9910_v23, %v8214_v21  ;;  %v8118_v8 = vld [vmem:[%s11162_s26 + $0x688] sm:$0xf]  ;;  %v9886_v9 = vld [vmem:[%s11162_s26 + $0x6b4] sm:$0xf0] }
 0x29d   : > { %3967 = vmatpush.bf16.msra.mxu2 %v8359_v32  ;;  %v7831_v32 = vor.u32 %v9814_v16, %v7830_v15  ;;  %v7302_v57 = vld [vmem:[%s11162_s26 + $0x28] sm:$0xf] }
 0x29e   : > { %3981 = vmatpush.bf16.msra.mxu3 %v8743_v39  ;;  %v3626_v39 = vadd.f32 %v11935_v49, %v11924_v35  ;;  %v9994_v35 = vld [vmem:[%s11162_s26 + $0xa14] sm:$0xf0]  ;;  %v3709_v15 = vpop.f32.mrf.mxu3 }
 0x29f   : > { %3940 = vmatpush.bf16.msra.mxu0 %v7543_v42  ;;  %v9802_v42 = vld [vmem:[%s11162_s26 + $0x414] sm:$0xf0]  ;;  %v3683_v43 = vpop.f32.mrf.mxu1 }
 0x2a0   : > { %3954 = vmatpush.bf16.msra.mxu1 %v7927_v46  ;;  %v8166_v46 = vld [vmem:[%s11162_s26 + $0x6e8] sm:$0xf]  ;;  %v7783_v49 = vor.u32 %v9802_v42, %v7782_v41  ;;  %v3640_v56 = vadd.f32 %v11946_v14, %v3626_v39  ;;  %v3669_v21 = vpop.f32.mrf.mxu0  ;;  %v9778_v39 = vld [vmem:[%s11162_s26 + $0x354] sm:$0xf0]  ;;  %v7640_v41 = vld [vmem:[%s11162_s26 + $0x2f8] sm:$0xf0]  ;;  %v3460_v42 = vadd.f32 %v11731_v11, %v11729_v10  ;;  %v3404_v10 = vadd.f32 %v11641_v4, %v11634_v60 }
 0x2a1   : > { %3968 = vmatpush.bf16.msra.mxu2 %v8311_v50  ;;  %v7399_v50 = vor.u32 %v9706_v37, %v7398_v36  ;;  %v8167_v59 = vor.u32 %v9898_v48, %v8166_v46  ;;  %v8502_v14 = vld [vmem:[%s11162_s26 + $0x988] sm:$0xf]  ;;  %v8119_v37 = vor.u32 %v9886_v9, %v8118_v8  ;;  %v9874_v46 = vld [vmem:[%s11162_s26 + $0x654] sm:$0xf0]  ;;  %v3684_v48 = vadd.f32 %v3683_v43, %v3669_v21  ;;  %v9748_v9 = vld [vmem:[%s11162_s26 + $0x26c] sm:$0xf] }
 0x2a2   : > { %3982 = vmatpush.bf16.msra.mxu3 %v8695_v55  ;;  %v9694_v55 = vld [vmem:[%s11162_s26 + $0xb4] sm:$0xf0]  ;;  %v3654_v31 = vadd.f32 %v11950_v18, %v3640_v56  ;;  %v8070_v18 = vld [vmem:[%s11162_s26 + $0x628] sm:$0xf]  ;;  %v7687_v11 = vor.u32 %v9778_v39, %v7686_v30  ;;  %v3474_v60 = vadd.f32 %v11741_v25, %v3460_v42  ;;  %v7976_v21 = vld [vmem:[%s11162_s26 + $0x598] sm:$0xf0] }
 0x2a3   : > { %3941 = vmatpush.bf16.msra.mxu0 %v7495_v62  ;;  %v7734_v62 = vld [vmem:[%s11162_s26 + $0x388] sm:$0xf]  ;;  %v7351_v16 = vor.u32 %v9694_v55, %v7350_v53  ;;  %v9970_v55 = vld [vmem:[%s11162_s26 + $0x954] sm:$0xf0]  ;;  %v3697_v4 = vpop.f32.mrf.mxu2  ;;  %v9736_v42 = vld [vmem:[%s11162_s26 + $0x20c] sm:$0xf] }
 0x2a4   : > { %3955 = vmatpush.bf16.msra.mxu1 %v7879_v6  ;;  %v8551_v6 = vor.u32 %v9994_v35, %v8550_v52  ;;  %v7735_v23 = vor.u32 %v9790_v63, %v7734_v62  ;;  %v9952_v52 = vld [vmem:[%s11162_s26 + $0x8cc] sm:$0xf]  ;;  %v8408_v35 = vld [vmem:[%s11162_s26 + $0x8f8] sm:$0xf0]  ;;  %v8454_v53 = vld [vmem:[%s11162_s26 + $0x928] sm:$0xf]  ;;  %v3488_v39 = vadd.f32 %v11747_v24, %v3474_v60 }
 0x2a5   : > { %3969 = vmatpush.bf16.msra.mxu2 %v8263_v13  ;;  %v3696_v13 = vadd.f32 %v3695_v0, %v3682_v19  ;;  %v10048_v63 = vld [vmem:[%s11162_s26 + $0xbcc] sm:$0xf]  ;;  %v8792_v0 = vld [vmem:[%s11162_s26 + $0xbf8] sm:$0xf0]  ;;  %v8411_v8 = vor.u32 %v9952_v52, %v8408_v35 }
 0x2a6   : > { %3983 = vmatpush.bf16.msra.mxu3 %v8647_v17  ;;  %v9982_v17 = vld [vmem:[%s11162_s26 + $0x9b4] sm:$0xf0]  ;;  %v8795_v25 = vor.u32 %v10048_v63, %v8792_v0  ;;  %v7544_v43 = vld [vmem:[%s11162_s26 + $0x238] sm:$0xf0]  ;;  %v10024_v52 = vld [vmem:[%s11162_s26 + $0xb0c] sm:$0xf] }
 0x2a7   : > { %3942 = vmatpush.bf16.msra.mxu0 %v7447_v28  ;;  %v9682_v28 = vld [vmem:[%s11162_s26 + $0x54] sm:$0xf0]  ;;  %v3710_v36 = vadd.f32 %v3709_v15, %v3696_v13  ;;  %v7592_v13 = vld [vmem:[%s11162_s26 + $0x298] sm:$0xf0]  ;;  %v9844_v15 = vld [vmem:[%s11162_s26 + $0x56c] sm:$0xf] }
 0x2a8   : > { %3956 = vmatpush.bf16.msra.mxu1 %v7831_v32  ;;  %v3628_v32 = vadd.f32 %v11967_v45, %v11956_v34  ;;  %v9856_v34 = vld [vmem:[%s11162_s26 + $0x5cc] sm:$0xf]  ;;  %v7303_v19 = vor.u32 %v9682_v28, %v7302_v57  ;;  %v8360_v57 = vld [vmem:[%s11162_s26 + $0x898] sm:$0xf0]  ;;  %v3418_v28 = vadd.f32 %v11656_v20, %v3404_v10  ;;  %v7979_v20 = vor.u32 %v9844_v15, %v7976_v21 }
 0x2a9   : > { %3970 = vmatpush.bf16.msra.mxu2 %v8215_v40  ;;  %v9760_v40 = vld [vmem:[%s11162_s26 + $0x2cc] sm:$0xf]  ;;  %v12023_v45 = vpack.c.bf16 %v3710_v36, %v3654_v31  ;;  %v8696_v35 = vld [vmem:[%s11162_s26 + $0xb38] sm:$0xf0]  ;;  %v4308_v15 = vunpack.c.h.b16 %v11695_v22 }
 0x2aa   : > { %3984 = vmatpush.bf16.msra.mxu3 %v8599_v44  ;;  %v8503_v44 = vor.u32 %v9982_v17, %v8502_v14  ;;  %v3642_v56 = vadd.f32 %v11978_v2, %v3628_v32  ;;  %v3711_v2 = vpop.f32.mrf.mxu3  ;;  %v8455_v17 = vor.u32 %v9970_v55, %v8454_v53  ;;  %v7595_v32 = vor.u32 %v9748_v9, %v7592_v13  ;;  %v10036_v36 = vld [vmem:[%s11162_s26 + $0xb6c] sm:$0xf]  ;;  %v7880_v60 = vld [vmem:[%s11162_s26 + $0x4d8] sm:$0xf0] }
 0x2ab   : > { %3943 = vmatpush.bf16.msra.mxu0 %v7399_v50  ;;  %v8024_v50 = vld [vmem:[%s11162_s26 + $0x5f8] sm:$0xf0]  ;;  %v4173_v62 = vunpack.c.l.b16 %v12023_v45  ;;  %v3432_v24 = vadd.f32 %v11662_v26, %v3418_v28  ;;  %v9820_v63 = vld [vmem:[%s11162_s26 + $0x4ac] sm:$0xf]  ;;  %v8699_v0 = vor.u32 %v10024_v52, %v8696_v35 }
 0x2ac   : > { %3957 = vmatpush.bf16.msra.mxu1 %v7783_v49  ;;  %v7643_v49 = vor.u32 %v9760_v40, %v7640_v41  ;;  %v3656_v30 = vadd.f32 %v11982_v12, %v3642_v56  ;;  %v4168_v40 = vunpack.c.l.b16 %v11695_v22  ;;  %v8648_v9 = vld [vmem:[%s11162_s26 + $0xad8] sm:$0xf0] }
 0x2ad   : > { %3971 = vmatpush.bf16.msra.mxu2 %v8167_v59  ;;  %v8071_v59 = vor.u32 %v9874_v46, %v8070_v18  ;;  %v4174_v14 = vpack.c.b16 %v4173_v62, %v4173_v62  ;;  %v7928_v46 = vld [vmem:[%s11162_s26 + $0x538] sm:$0xf0]  ;;  %v12066_v26 = vpack.c.bf16 %v3488_v39, %v3432_v24  ;;  %v12096_v39 = vpack.c.b16 %v4308_v15, %v4308_v15  ;;  %v9676_v15 = vld [vmem:[%s11162_s26 + $0x2c] sm:$0xf] }
 0x2ae   : > { %3985 = vmatpush.bf16.msra.mxu3 %v8551_v6  ;;  %v8027_v6 = vor.u32 %v9856_v34, %v8024_v50  ;;  %v9928_v34 = vld [vmem:[%s11162_s26 + $0x80c] sm:$0xf]  ;;  %v4169_v10 = vpack.c.b16 %v4168_v40, %v4168_v40  ;;  %v7496_v62 = vld [vmem:[%s11162_s26 + $0x1d8] sm:$0xf0]  ;;  %v3516_v40 = vadd.f32 %v11804_v5, %v11796_v61 }
 0x2af   : > { %3944 = vmatpush.bf16.msra.mxu0 %v7351_v16  ;;  %v3698_v16 = vadd.f32 %v3697_v4, %v3684_v48  ;;  %4175 = vrot.lane.b32.xlu1 %v4174_v14, %s10879_s16  ;;  %v8312_v48 = vld [vmem:[%s11162_s26 + $0x838] sm:$0xf0]  ;;  %v9916_v4 = vld [vmem:[%s11162_s26 + $0x7ac] sm:$0xf]  ;;  %v4239_v28 = vunpack.c.l.b16 %v12066_v26 }
 0x2b0   : > { %3958 = vmatpush.bf16.msra.mxu1 %v7735_v23  ;;  %v9940_v23 = vld [vmem:[%s11162_s26 + $0x86c] sm:$0xf]  ;;  %v8315_v56 = vor.u32 %v9928_v34, %v8312_v48  ;;  %v7448_v21 = vld [vmem:[%s11162_s26 + $0x178] sm:$0xf0]  ;;  %v3530_v52 = vadd.f32 %v11815_v54, %v3516_v40 }
 0x2b1   : > { %3972 = vmatpush.bf16.msra.mxu2 %v8119_v37  ;;  %v3712_v31 = vadd.f32 %v3711_v2, %v3698_v16  ;;  %v8744_v37 = vld [vmem:[%s11162_s26 + $0xb98] sm:$0xf0]  ;;  %v8363_v12 = vor.u32 %v9940_v23, %v8360_v57  ;;  %v4365_v16 = vunpack.c.h.b16 %v12066_v26  ;;  %v7883_v2 = vor.u32 %v9820_v63, %v7880_v60  ;;  %v9808_v23 = vld [vmem:[%s11162_s26 + $0x44c] sm:$0xf] }
 0x2b2   : > { %3986 = vmatpush.bf16.msra.mxu3 %v8503_v44  ;;  %v9832_v44 = vld [vmem:[%s11162_s26 + $0x50c] sm:$0xf]  ;;  %v8747_v18 = vor.u32 %v10036_v36, %v8744_v37  ;;  %v8600_v37 = vld [vmem:[%s11162_s26 + $0xa78] sm:$0xf0]  ;;  %v4240_v24 = vpack.c.b16 %v4239_v28, %v4239_v28 }
 0x2b3   : > { %3945 = vmatpush.bf16.msra.mxu0 %v7303_v19  ;;  %v12050_v41 = vpack.c.bf16 %v3712_v31, %v3656_v30  ;;  %v7931_v55 = vor.u32 %v9832_v44, %v7928_v46  ;;  %v9904_v30 = vld [vmem:[%s11162_s26 + $0x74c] sm:$0xf]  ;;  %v8216_v31 = vld [vmem:[%s11162_s26 + $0x778] sm:$0xf0] }
 0x2b4   : > { %3959 = vmatpush.bf16.msra.mxu1 %v7687_v11  ;;  %v7547_v11 = vor.u32 %v9736_v42, %v7544_v43  ;;  %v10000_v36 = vld [vmem:[%s11162_s26 + $0xa4c] sm:$0xf]  ;;  %v7400_v43 = vld [vmem:[%s11162_s26 + $0x118] sm:$0xf0] }
 0x2b5   : > { %3973 = vmatpush.bf16.msra.mxu2 %v8071_v59  ;;  %v4367_v19 = vunpack.c.h.b16 %v12050_v41  ;;  %v4244_v50 = vunpack.c.l.b16 %v12050_v41  ;;  %v9724_v59 = vld [vmem:[%s11162_s26 + $0x1ac] sm:$0xf]  ;;  %v7784_v46 = vld [vmem:[%s11162_s26 + $0x418] sm:$0xf0] }
 0x2b6   : > { %3987 = vmatpush.bf16.msra.mxu3 %v8455_v17  ;;  %3946 = vmatmul.bf16.vlgmr.msra.gmra.mxu0 %v11298_v1  ;;  %v7499_v13 = vor.u32 %v9724_v59, %v7496_v62  ;;  %v9712_v17 = vld [vmem:[%s11162_s26 + $0x14c] sm:$0xf]  ;;  %v8168_v48 = vld [vmem:[%s11162_s26 + $0x718] sm:$0xf0] }
 0x2b7   : > { %3994 = vmatpush.bf16.msrb.mxu0 %v7643_v49  ;;  %3960 = vmatmul.bf16.vlgmr.msra.gmra.mxu1 %v11304_v7  ;;  %v12069_v49 = vpack.c.b16 %v4367_v19, %v4367_v19  ;;  %v4245_v53 = vpack.c.b16 %v4244_v50, %v4244_v50  ;;  %v9796_v44 = vld [vmem:[%s11162_s26 + $0x3ec] sm:$0xf]  ;;  %v8552_v19 = vld [vmem:[%s11162_s26 + $0xa18] sm:$0xf0] }
 0x2b8   : > { %4008 = vmatpush.bf16.msrb.mxu1 %v8027_v6  ;;  %3974 = vmatmul.bf16.vlgmr.msra.gmra.mxu2 %v11288_v47  ;;  %v8264_v6 = vld [vmem:[%s11162_s26 + $0x7d8] sm:$0xf0]  ;;  %v9892_v34 = vld [vmem:[%s11162_s26 + $0x6ec] sm:$0xf] }
 0x2b9   : > { %4022 = vmatpush.bf16.msrb.mxu2 %v8411_v8  ;;  %3988 = vmatmul.bf16.vlgmr.msra.gmra.mxu3 %v11295_v58  ;;  %v10012_v8 = vld [vmem:[%s11162_s26 + $0xaac] sm:$0xf]  ;;  %v8267_v14 = vor.u32 %v9916_v4, %v8264_v6  ;;  %v8171_v35 = vor.u32 %v9892_v34, %v8168_v48  ;;  %v7736_v59 = vld [vmem:[%s11162_s26 + $0x3b8] sm:$0xf0]  ;;  %v3723_v4 = vpop.f32.mrf.mxu0 }
 0x2ba   : > { %4036 = vmatpush.bf16.msrb.mxu3 %v8795_v25  ;;  %4170 = vrot.lane.b32.xlu1 %v4169_v10, %s10879_s16  ;;  %v8651_v57 = vor.u32 %v10012_v8, %v8648_v9  ;;  %v7832_v25 = vld [vmem:[%s11162_s26 + $0x478] sm:$0xf0]  ;;  %v9988_v5 = vld [vmem:[%s11162_s26 + $0x9ec] sm:$0xf]  ;;  %v3544_v8 = vadd.f32 %v11819_v29, %v3530_v52 }
 0x2bb   : > { %3995 = vmatpush.bf16.msrb.mxu0 %v7595_v32  ;;  %4485 = vrot.lane.b32.xlu2 %v12069_v49, %s10879_s16  ;;  %v3572_v32 = vadd.f32 %v11906_v3, %v11898_v51  ;;  %v7835_v42 = vor.u32 %v9808_v23, %v7832_v25  ;;  %v8219_v51 = vor.u32 %v9904_v30, %v8216_v31  ;;  %v9700_v3 = vld [vmem:[%s11162_s26 + $0xec] sm:$0xf]  ;;  %v8120_v63 = vld [vmem:[%s11162_s26 + $0x6b8] sm:$0xf0] }
 0x2bc   : > { %4009 = vmatpush.bf16.msrb.mxu1 %v7979_v20  ;;  %4246 = vrot.lane.b32.xlu0 %v4245_v53, %s10879_s16  ;;  %v12098_v20 = vpack.c.b16 %v4365_v16, %v4365_v16  ;;  %v7403_v50 = vor.u32 %v9700_v3, %v7400_v43  ;;  %v9688_v10 = vld [vmem:[%s11162_s26 + $0x8c] sm:$0xf]  ;;  %v8504_v60 = vld [vmem:[%s11162_s26 + $0x9b8] sm:$0xf0]  ;;  %v3765_v40 = vpop.f32.mrf.mxu3 }
 0x2bd   : > { %4023 = vmatpush.bf16.msrb.mxu2 %v8363_v12  ;;  %v7451_v12 = vor.u32 %v9712_v17, %v7448_v21  ;;  %v3586_v61 = vadd.f32 %v11917_v27, %v3572_v32  ;;  %v7787_v27 = vor.u32 %v9796_v44, %v7784_v46  ;;  %v9784_v53 = vld [vmem:[%s11162_s26 + $0x38c] sm:$0xf]  ;;  %v7304_v16 = vld [vmem:[%s11162_s26 + $0x58] sm:$0xf0]  ;;  %v3737_v17 = vpop.f32.mrf.mxu1 }
 0x2be   : > { %4037 = vmatpush.bf16.msrb.mxu3 %v8747_v18  ;;  %v8603_v18 = vor.u32 %v10000_v36, %v8600_v37  ;;  %v9880_v62 = vld [vmem:[%s11162_s26 + $0x68c] sm:$0xf]  ;;  %v7739_v9 = vor.u32 %v9784_v53, %v7736_v59  ;;  %v7688_v21 = vld [vmem:[%s11162_s26 + $0x358] sm:$0xf0]  ;;  %v7307_v29 = vor.u32 %v9676_v15, %v7304_v16  ;;  %v3751_v36 = vpop.f32.mrf.mxu2 }
 0x2bf   : > { %3996 = vmatpush.bf16.msrb.mxu0 %v7547_v11  ;;  %v7352_v11 = vld [vmem:[%s11162_s26 + $0xb8] sm:$0xf0]  ;;  %v3600_v54 = vadd.f32 %v11922_v33, %v3586_v61  ;;  %v9868_v23 = vld [vmem:[%s11162_s26 + $0x62c] sm:$0xf] }
 0x2c0   : > { %4010 = vmatpush.bf16.msrb.mxu1 %v7931_v55  ;;  %v8555_v55 = vor.u32 %v9988_v5, %v8552_v19  ;;  %v7355_v6 = vor.u32 %v9688_v10, %v7352_v11  ;;  %v9964_v25 = vld [vmem:[%s11162_s26 + $0x92c] sm:$0xf]  ;;  %v8456_v30 = vld [vmem:[%s11162_s26 + $0x958] sm:$0xf0] }
 0x2c1   : > { %4024 = vmatpush.bf16.msrb.mxu2 %v8315_v56  ;;  %v4310_v56 = vunpack.c.h.b16 %v12023_v45  ;;  %v12136_v28 = vpack.c.bf16 %v3600_v54, %v3544_v8  ;;  %v8459_v37 = vor.u32 %v9964_v25, %v8456_v30  ;;  %v3725_v3 = vpop.f32.mrf.mxu0  ;;  %v4786_v8 = vunpack.c.h.b16 %v11855_v38 }
 0x2c2   : > { %4038 = vmatpush.bf16.msrb.mxu3 %v8699_v0  ;;  %4422 = vrot.lane.b32.xlu1 %v12096_v39, %s10879_s16  ;;  %v9976_v0 = vld [vmem:[%s11162_s26 + $0x98c] sm:$0xf] }
 0x2c3   : > { %3997 = vmatpush.bf16.msrb.mxu0 %v7499_v13  ;;  %4483 = vrot.lane.b32.xlu2 %v12098_v20, %s10879_s16  ;;  %v8123_v13 = vor.u32 %v9880_v62, %v8120_v63  ;;  %v12131_v33 = vpack.c.b16 %v4310_v56, %v4310_v56  ;;  %v4843_v62 = vunpack.c.h.b16 %v12136_v28 }
 0x2c4   : > { %4011 = vmatpush.bf16.msrb.mxu1 %v7883_v2  ;;  %4241 = vrot.lane.b32.xlu0 %v4240_v24, %s10879_s16  ;;  %v9772_v2 = vld [vmem:[%s11162_s26 + $0x32c] sm:$0xf]  ;;  %v3767_v24 = vpop.f32.mrf.mxu3 }
 0x2c5   : > { %4025 = vmatpush.bf16.msrb.mxu2 %v8267_v14  ;;  %v8507_v14 = vor.u32 %v9976_v0, %v8504_v60  ;;  %v7691_v31 = vor.u32 %v9772_v2, %v7688_v21  ;;  %v3739_v44 = vpop.f32.mrf.mxu1  ;;  %v12165_v0 = vpack.c.b16 %v4843_v62, %v4843_v62 }
 0x2c6   : > { %4039 = vmatpush.bf16.msrb.mxu3 %v8651_v57  ;;  %v8072_v57 = vld [vmem:[%s11162_s26 + $0x658] sm:$0xf0]  ;;  %v3740_v19 = vadd.f32 %v3739_v44, %v3725_v3 }
 0x2c7   : > { %3998 = vmatpush.bf16.msrb.mxu0 %v7451_v12  ;;  %v8075_v32 = vor.u32 %v9868_v23, %v8072_v57  ;;  %v4717_v12 = vunpack.c.l.b16 %v12136_v28 }
 0x2c8   : > { %4012 = vmatpush.bf16.msrb.mxu1 %v7835_v42  ;;  %v4067_v42 = vsel %vm4062_vm0, %v12023_v45, 0  ;;  %v3753_v45 = vpop.f32.mrf.mxu2 }
 0x2c9   : > { %4026 = vmatpush.bf16.msrb.mxu2 %v8219_v51  ;;  %v4120_v51 = vsel %vm4062_vm0, %v12050_v41, 0  ;;  %v4718_v43 = vpack.c.b16 %v4717_v12, %v4717_v12  ;;  %v3738_v41 = vadd.f32 %v3737_v17, %v3723_v4 }
 0x2ca   : > { %4040 = vmatpush.bf16.msrb.mxu3 %v8603_v18 }
 0x2cb   : > { %3999 = vmatpush.bf16.msrb.mxu0 %v7403_v50  ;;  %v3752_v48 = vadd.f32 %v3751_v36, %v3738_v41 }
 0x2cc   : > { %4013 = vmatpush.bf16.msrb.mxu1 %v7787_v27  ;;  %4424 = vrot.lane.b32.xlu0 %v12131_v33, %s10879_s16 }
 0x2cd   : > { %4027 = vmatpush.bf16.msrb.mxu2 %v8171_v35  ;;  %v3754_v35 = vadd.f32 %v3753_v45, %v3740_v19  ;;  %v4316_v19 = vsel %vm4062_vm0, %v12131_v33, 0  ;;  %v4373_v33 = vsel %vm4062_vm0, %v12069_v49, 0 }
 0x2ce   : > { %4041 = vmatpush.bf16.msrb.mxu3 %v8555_v55 }
 0x2cf   : > { %4000 = vmatpush.bf16.msrb.mxu0 %v7355_v6  ;;  %v4647_v6 = vunpack.c.l.b16 %v11855_v38 }
 0x2d0   : > { %4014 = vmatpush.bf16.msrb.mxu1 %v7739_v9 }
 0x2d1   : > { %4028 = vmatpush.bf16.msrb.mxu2 %v8123_v13  ;;  %v4648_v9 = vpack.c.b16 %v4647_v6, %v4647_v6  ;;  %v12176_v13 = vpack.c.b16 %v4786_v8, %v4786_v8 }
 0x2d2   : > { %4042 = vmatpush.bf16.msrb.mxu3 %v8507_v14 }
 0x2d3   : > { %4001 = vmatpush.bf16.msrb.mxu0 %v7307_v29  ;;  %v3779_v18 = vpop.f32.mrf.mxu0 }
 0x2d4   : > { %4015 = vmatpush.bf16.msrb.mxu1 %v7691_v31  ;;  %4719 = vrot.lane.b32.xlu0 %v4718_v43, %s10879_s16  ;;  %v3793_v46 = vpop.f32.mrf.mxu1 }
 0x2d5   : > { %4029 = vmatpush.bf16.msrb.mxu2 %v8075_v32  ;;  %v3794_v34 = vadd.f32 %v3793_v46, %v3779_v18 }
 0x2d6   : > { %4043 = vmatpush.bf16.msrb.mxu3 %v8459_v37  ;;  %4002 = vmatmul.bf16.vlgmr.msrb.gmra.mxu0 %v11298_v1 }
 0x2d7   : > { %4076 = vmatpush.bf16.xpose.msra.mxu0 %v4067_v42  ;;  %4016 = vmatmul.bf16.vlgmr.msrb.gmra.mxu1 %v11304_v7  ;;  %v3766_v7 = vadd.f32 %v3765_v40, %v3752_v48 }
 0x2d8   : > { %4030 = vmatmul.bf16.vlgmr.msrb.gmra.mxu2 %v11288_v47 }
 0x2d9   : > { %4129 = vmatpush.bf16.xpose.msra.mxu2 %v4120_v51  ;;  %4044 = vmatmul.bf16.vlgmr.msrb.gmra.mxu3 %v11295_v58 }
 0x2db   : > { %v3807_v61 = vpop.f32.mrf.mxu2  ;;  %v3781_v47 = vpop.f32.mrf.mxu0 }
 0x2dc   : > { %v3808_v5 = vadd.f32 %v3807_v61, %v3794_v34  ;;  %v3821_v1 = vpop.f32.mrf.mxu3  ;;  %v3795_v50 = vpop.f32.mrf.mxu1 }
 0x2dd   : > { %v3796_v27 = vadd.f32 %v3795_v50, %v3781_v47 }
 0x2de   : > { %v3822_v58 = vadd.f32 %v3821_v1, %v3808_v5 }
 0x2e0   : > { %v12156_v52 = vpack.c.bf16 %v3822_v58, %v3766_v7 }
 0x2e2   : > { %v4652_v10 = vunpack.c.l.b16 %v12156_v52  ;;  %v4788_v15 = vunpack.c.h.b16 %v12156_v52  ;;  %v4548_v49 = vsel %vm4062_vm0, %v12156_v52, 0 }
 0x2e3   : > { %v3809_v11 = vpop.f32.mrf.mxu2 }
 0x2e4   : > { %v3810_v53 = vadd.f32 %v3809_v11, %v3796_v27  ;;  %v3823_v55 = vpop.f32.mrf.mxu3  ;;  %v4653_v56 = vpack.c.b16 %v4652_v10, %v4652_v10  ;;  %v12182_v2 = vpack.c.b16 %v4788_v15, %v4788_v15 }
 0x2e6   : > { %8796 = vmatmul.msk.bf16.vlgmr.msra.gmra.mxu0 %vm4062_vm0, %v11695_v22  ;;  %v3768_v22 = vadd.f32 %v3767_v24, %v3754_v35  ;;  %v3824_v59 = vadd.f32 %v3823_v55, %v3810_v53  ;;  %4654 = vrot.lane.b32.xlu1 %v4653_v56, %s10879_s16 }
 0x2e8   : > { %8798 = vmatmul.msk.bf16.vlgmr.msra.gmra.mxu2 %vm4062_vm0, %v12066_v26  ;;  %v12160_v26 = vpack.c.bf16 %v3824_v59, %v3768_v22 }
 0x2ea   : > { %v4722_v63 = vunpack.c.l.b16 %v12160_v26  ;;  %v4845_v54 = vunpack.c.h.b16 %v12160_v26  ;;  %v4599_v15 = vsel %vm4062_vm0, %v12160_v26, 0 }
 0x2ec   : > { %v4723_v60 = vpack.c.b16 %v4722_v63, %v4722_v63  ;;  %v12167_v4 = vpack.c.b16 %v4845_v54, %v4845_v54 }
 0x2ee   : > { %4961 = vrot.lane.b32.xlu1 %v12165_v0, %s10879_s16  ;;  %4724 = vrot.lane.b32.xlu2 %v4723_v60, %s10879_s16 }
 0x2ef   : > { %4963 = vrot.lane.b32.xlu0 %v12167_v4, %s10879_s16 }
 0x2f3   : > { %v3835_v16 = vpop.f32.mrf.mxu0 }
 0x2f4   : > { %v3849_v14 = vpop.f32.mrf.mxu1 }
 0x2f5   : > { %v3850_v31 = vadd.f32 %v3849_v14, %v3835_v16 }
 0x2f6   : > { %4649 = vrot.lane.b32.xlu2 %v4648_v9, %s10879_s16 }
 0x2f7   : > { %4900 = vrot.lane.b32.xlu0 %v12176_v13, %s10879_s16 }
 0x2fb   : > { %v3863_v17 = vpop.f32.mrf.mxu2  ;;  %v3837_v23 = vpop.f32.mrf.mxu0 }
 0x2fc   : > { %v3877_v21 = vpop.f32.mrf.mxu3  ;;  %v3851_v57 = vpop.f32.mrf.mxu1  ;;  %v3864_v37 = vadd.f32 %v3863_v17, %v3850_v31 }
 0x2fd   : > { %v3852_v43 = vadd.f32 %v3851_v57, %v3837_v23 }
 0x2fe   : > { %4902 = vrot.lane.b32.xlu2 %v12182_v2, %s10879_s16  ;;  %v3878_v3 = vadd.f32 %v3877_v21, %v3864_v37 }
 0x303   : > { %v3865_v29 = vpop.f32.mrf.mxu2 }
 0x304   : > { %v3879_v25 = vpop.f32.mrf.mxu3  ;;  %v3866_v41 = vadd.f32 %v3865_v29, %v3852_v43 }
 0x306   : > { %v3880_v47 = vadd.f32 %v3879_v25, %v3866_v41 }
 0x313   : > { %v3891_v30 = vpop.f32.mrf.mxu0 }
 0x314   : > { %v3905_v32 = vpop.f32.mrf.mxu1 }
 0x315   : > { %v3906_v36 = vadd.f32 %v3905_v32, %v3891_v30  ;;  %v4486_v55 = vpop.permute.xlu2 %4485 }
 0x316   : > { %v4491_v63 = vsel %vm4062_vm0, %v4486_v55, 0 }
 0x31b   : > { %v3919_v12 = vpop.f32.mrf.mxu2  ;;  %v3893_v51 = vpop.f32.mrf.mxu0 }
 0x31c   : > { %v3920_v40 = vadd.f32 %v3919_v12, %v3906_v36  ;;  %v3933_v42 = vpop.f32.mrf.mxu3  ;;  %v3907_v45 = vpop.f32.mrf.mxu1 }
 0x31d   : > { %v3908_v18 = vadd.f32 %v3907_v45, %v3893_v51  ;;  %v4794_v45 = vsel %vm4062_vm0, %v12182_v2, 0 }
 0x31e   : > { %v3934_v44 = vadd.f32 %v3933_v42, %v3920_v40 }
 0x320   : > { %v12186_v24 = vpack.c.bf16 %v3934_v44, %v3878_v3 }
 0x321   : > { %v4176_v61 = vpop.permute.xlu1 %4175 }
 0x322   : > { %v4100_v46 = vsel %vm4098_vm1, %v12186_v24, 0  ;;  %v4181_v1 = vsel %vm4062_vm0, %v4176_v61, 0 }
 0x323   : > { %v3921_v34 = vpop.f32.mrf.mxu2  ;;  %4109 = vmatpush.bf16.msra.mxu1 %v4100_v46  ;;  %4190 = vmatpush.bf16.xpose.msrb.mxu0 %v4181_v1 }
 0x324   : > { %v3922_v48 = vadd.f32 %v3921_v34, %v3908_v18  ;;  %v3935_v5 = vpop.f32.mrf.mxu3 }
 0x326   : > { %v3936_v7 = vadd.f32 %v3935_v5, %v3922_v48 }
 0x328   : > { %v12193_v58 = vpack.c.bf16 %v3936_v7, %v3880_v47 }
 0x32a   : > { %v4151_v50 = vsel %vm4098_vm1, %v12193_v58, 0  ;;  %v4280_v27 = vunpack.c.l.b16 %v12193_v58 }
 0x32b   : > { %4325 = vmatpush.bf16.xpose.msra.mxu0 %v4316_v19  ;;  %4160 = vmatpush.bf16.msra.mxu3 %v4151_v50 }
 0x32c   : > { %v4171_v35 = vpop.permute.xlu1 %4170  ;;  %v4281_v10 = vpack.c.b16 %v4280_v27, %v4280_v27 }
 0x32d   : > { %8800 = vmatmul.msk.bf16.vlgmr.msrb.gmra.mxu0 %vm4062_vm0, %v4171_v35 }
 0x32e   : > { %v4247_v11 = vpop.permute.xlu0 %4246  ;;  %4282 = vrot.lane.b32.xlu2 %v4281_v10, %s10879_s16 }
 0x32f   : > { %v4252_v53 = vsel %vm4062_vm0, %v4247_v11, 0 }
 0x330   : > { %4261 = vmatpush.bf16.xpose.msrb.mxu2 %v4252_v53 }
 0x333   : > { %v3947_v56 = vpop.f32.mrf.mxu0 }
 0x334   : > { %v3961_v22 = vpop.f32.mrf.mxu1  ;;  %v4423_v17 = vpop.permute.xlu1 %4422 }
 0x335   : > { %v3962_v62 = vadd.f32 %v3961_v22, %v3947_v56 }
 0x336   : > { %v4242_v59 = vpop.permute.xlu0 %4241 }
 0x337   : > { %8802 = vmatmul.msk.bf16.vlgmr.msrb.gmra.mxu2 %vm4062_vm0, %v4242_v59 }
 0x338   : > { %4382 = vmatpush.bf16.xpose.msra.mxu2 %v4373_v33 }
 0x33b   : > { %v3975_v54 = vpop.f32.mrf.mxu2  ;;  %v12214_v16 = vpop.f32.mrf.mxu0 }
 0x33c   : > { %v3976_v60 = vadd.f32 %v3975_v54, %v3962_v62  ;;  %v3989_v9 = vpop.f32.mrf.mxu3  ;;  %v12216_v14 = vpop.f32.mrf.mxu1 }
 0x33d   : > { %8804 = vmatmul.msk.bf16.vlgmr.msra.gmra.mxu0 %vm4062_vm0, %v12096_v39  ;;  %v4484_v39 = vpop.permute.xlu2 %4483 }
 0x33e   : > { %v4425_v6 = vpop.permute.xlu0 %4424  ;;  %v3990_v36 = vadd.f32 %v3989_v9, %v3976_v60 }
 0x33f   : > { %v4430_v8 = vsel %vm4062_vm0, %v4425_v6, 0 }
 0x340   : > { %4500 = vmatpush.bf16.xpose.msrb.mxu2 %v4491_v63  ;;  %4439 = vmatpush.bf16.xpose.msrb.mxu0 %v4430_v8 }
 0x343   : > { %v12219_v21 = vpop.f32.mrf.mxu2 }
 0x344   : > { %v12221_v23 = vpop.f32.mrf.mxu3 }
 0x346   : > { %v4720_v48 = vpop.permute.xlu0 %4719 }
 0x347   : > { %8806 = vmatmul.msk.bf16.vlgmr.msra.gmra.mxu2 %vm4062_vm0, %v12098_v20 }
 0x348   : > { %4557 = vmatpush.bf16.xpose.msra.mxu0 %v4548_v49  ;;  %4608 = vmatpush.bf16.xpose.msra.mxu2 %v4599_v15  ;;  %v4725_v29 = vpop.permute.xlu2 %4724 }
 0x349   : > { %v4730_v25 = vsel %vm4062_vm0, %v4725_v29, 0 }
 0x34d   : > { %8808 = vmatmul.msk.bf16.vlgmr.msrb.gmra.mxu0 %vm4062_vm0, %v4423_v17 }
 0x350   : > { %v4650_v43 = vpop.permute.xlu2 %4649 }
 0x353   : > { %v4003_v52 = vpop.f32.mrf.mxu0 }
 0x354   : > { %v4017_v57 = vpop.f32.mrf.mxu1 }
 0x355   : > { %v4018_v20 = vadd.f32 %v4017_v57, %v4003_v52 }
 0x357   : > { %8810 = vmatmul.msk.bf16.vlgmr.msrb.gmra.mxu2 %vm4062_vm0, %v4484_v39 }
 0x358   : > { %4739 = vmatpush.bf16.xpose.msrb.mxu2 %v4730_v25  ;;  %v4655_v42 = vpop.permute.xlu1 %4654  ;;  %v4903_v34 = vpop.permute.xlu2 %4902 }
 0x359   : > { %v4660_v51 = vsel %vm4062_vm0, %v4655_v42, 0  ;;  %v4908_v61 = vsel %vm4062_vm0, %v4903_v34, 0 }
 0x35a   : > { %4669 = vmatpush.bf16.xpose.msrb.mxu0 %v4660_v51 }
 0x35b   : > { %v4031_v26 = vpop.f32.mrf.mxu2  ;;  %v12225_v31 = vpop.f32.mrf.mxu0 }
 0x35c   : > { %v4032_v30 = vadd.f32 %v4031_v26, %v4018_v20  ;;  %v4045_v32 = vpop.f32.mrf.mxu3 }
 0x35d   : > { %8812 = vmatmul.msk.bf16.vlgmr.msra.gmra.mxu0 %vm4062_vm0, %v11855_v38  ;;  %v4851_v38 = vsel %vm4062_vm0, %v12167_v4, 0 }
 0x35e   : > { %v4046_v37 = vadd.f32 %v4045_v32, %v4032_v30 }
 0x360   : > { %v12227_v12 = vpack.c.bf16 %v4046_v37, %v3990_v36  ;;  %v4962_v50 = vpop.permute.xlu1 %4961 }
 0x361   : > { %v4964_v5 = vpop.permute.xlu0 %4963 }
 0x362   : > { %4803 = vmatpush.bf16.xpose.msra.mxu0 %v4794_v45  ;;  %v4969_v1 = vsel %vm4062_vm0, %v4964_v5, 0 }
 0x363   : > { %v12231_v40 = vpop.f32.mrf.mxu2  ;;  %v4078_v3 = vpop.f32.mrf.mxu0 }
 0x364   : > { %v4083_v44 = vsel %vm4082_vm2, %v4078_v3, -inf }
 0x365   : > { %4084 = vmax.xlane.f32.xlu2 %v4083_v44 }
 0x367   : > { %8814 = vmatmul.msk.bf16.vlgmr.msra.gmra.mxu2 %vm4062_vm0, %v12136_v28  ;;  %v4209_v28 = vunpack.c.l.b16 %v12186_v24 }
 0x368   : > { %4860 = vmatpush.bf16.xpose.msra.mxu2 %v4851_v38 }
 0x369   : > { %v4210_v4 = vpack.c.b16 %v4209_v28, %v4209_v28  ;;  %v4901_v19 = vpop.permute.xlu0 %4900 }
 0x36b   : > { %v4131_v18 = vpop.f32.mrf.mxu2  ;;  %v4080_v41 = vpop.f32.mrf.mxu0 }
 0x36c   : > { %v4135_v46 = vsel %vm4082_vm2, %v4131_v18, -inf }
 0x36d   : > { %4136 = vmax.xlane.f32.xlu1 %v4135_v46  ;;  %8816 = vmatmul.msk.bf16.vlgmr.msrb.gmra.mxu0 %vm4062_vm0, %v4650_v43  ;;  %v4400_v43 = vunpack.c.h.b16 %v12193_v58 }
 0x36e   : > { %4917 = vmatpush.bf16.xpose.msrb.mxu0 %v4908_v61 }
 0x373   : > { %v4133_v2 = vpop.f32.mrf.mxu2 }
 0x377   : > { %8818 = vmatmul.msk.bf16.vlgmr.msrb.gmra.mxu2 %vm4062_vm0, %v4720_v48 }
 0x378   : > { %4978 = vmatpush.bf16.xpose.msrb.mxu2 %v4969_v1 }
 0x37d   : > { %8820 = vmatmul.msk.bf16.vlgmr.msra.gmra.mxu0 %vm4062_vm0, %v12176_v13 }
 0x386   : > { %4211 = vrot.lane.b32.xlu1 %v4210_v4, %s10879_s16 }
 0x387   : > { %8822 = vmatmul.msk.bf16.vlgmr.msra.gmra.mxu2 %vm4062_vm0, %v12165_v0 }
 0x388   : > { %v4283_v47 = vpop.permute.xlu2 %4282 }
 0x389   : > { %v4288_v7 = vsel %vm4098_vm1, %v4283_v47, 0 }
 0x38a   : > { %4297 = vmatpush.bf16.msrb.mxu3 %v4288_v7 }
 0x38d   : > { %8824 = vmatmul.msk.bf16.vlgmr.msrb.gmra.mxu0 %vm4062_vm0, %v4901_v19 }
 0x397   : > { %8826 = vmatmul.msk.bf16.vlgmr.msrb.gmra.mxu2 %vm4062_vm0, %v4962_v50 }
 0x3aa   : > { %v12255_v27 = vpop.f32.mrf.mxu0 }
 0x3ab   : > { %v4196_v13 = vsel %vm4082_vm2, %v12255_v27, -inf }
 0x3ac   : > { %4197 = vmax.xlane.f32.xlu2 %v4196_v13 }
 0x3b2   : > { %v4194_v35 = vpop.f32.mrf.mxu0 }
 0x3ba   : > { %v12259_v10 = vpop.f32.mrf.mxu2  ;;  %v12261_v0 = vpop.f32.mrf.mxu0 }
 0x3bb   : > { %v4331_v11 = vsel %vm4082_vm2, %v12261_v0, -inf  ;;  %v4267_v25 = vsel %vm4082_vm2, %v12259_v10, -inf }
 0x3bc   : > { %4332 = vmax.xlane.f32.xlu2 %v4331_v11 }
 0x3c2   : > { %v4265_v53 = vpop.f32.mrf.mxu2  ;;  %v4329_v33 = vpop.f32.mrf.mxu0 }
 0x3c3   : > { %v4343_v33 = vunpack.c.h.b16 %v12186_v24 }
 0x3ca   : > { %v12265_v55 = vpop.f32.mrf.mxu2  ;;  %v12267_v56 = vpop.f32.mrf.mxu0 }
 0x3cb   : > { %v4445_v22 = vsel %vm4082_vm2, %v12267_v56, -inf  ;;  %v4388_v32 = vsel %vm4082_vm2, %v12265_v55, -inf }
 0x3cc   : > { %4446 = vmax.xlane.f32.xlu2 %v4445_v22 }
 0x3d2   : > { %v4386_v59 = vpop.f32.mrf.mxu2  ;;  %v4443_v62 = vpop.f32.mrf.mxu0 }
 0x3d8   : > { %v4085_v63 = vpop.xlane.xlu2 %4084 }
 0x3d9   : > { %v4086_v54 = vsub.f32 %v4078_v3, %v4085_v63 }
 0x3da   : > { %v12271_v6 = vpop.f32.mrf.mxu2  ;;  %v12273_v8 = vpop.f32.mrf.mxu0 }
 0x3db   : > { %v4087_v60 = vmul.f32 1.442695, %v4086_v54  ;;  %v4506_v47 = vsel %vm4082_vm2, %v12271_v6, -inf  ;;  %v4563_v50 = vsel %vm4082_vm2, %v12273_v8, -inf }
 0x3dd   : > { %10419 = vpow2.f32 %v4087_v60  ;;  %v12323_v60 = vpack.c.b16 %v4343_v33, %v4343_v33 }
 0x3e0   : > { %v4137_v49 = vpop.xlane.xlu1 %4136 }
 0x3e1   : > { %v4138_v9 = vsub.f32 %v4131_v18, %v4137_v49  ;;  %v4401_v18 = vpack.c.b16 %v4400_v43, %v4400_v43 }
 0x3e2   : > { %v4504_v52 = vpop.f32.mrf.mxu2  ;;  %v4561_v57 = vpop.f32.mrf.mxu0 }
 0x3e3   : > { %v4139_v15 = vmul.f32 1.442695, %v4138_v9  ;;  %v10420_v39 = vpop.eup %10419  ;;  %v4349_v52 = vsel %vm4098_vm1, %v12323_v60, 0 }
 0x3e4   : > { %v4089_v17 = vsel %vm4082_vm2, %v10420_v39, 0.0 }
 0x3e5   : > { %10421 = vpow2.f32 %v4139_v15  ;;  %4090 = vadd.xlane.f32.xlu0 %v4089_v17 }
 0x3ea   : > { %v12282_v26 = vpop.f32.mrf.mxu2  ;;  %v12284_v30 = vpop.f32.mrf.mxu0 }
 0x3eb   : > { %v12276_v29 = vpop.eup %10421  ;;  %v4614_v3 = vsel %vm4082_vm2, %v12282_v26, -inf }
 0x3ec   : > { %v4141_v20 = vsel %vm4082_vm2, %v12276_v29, 0.0 }
 0x3ed   : > { %4142 = vadd.xlane.f32.xlu1 %v4141_v20  ;;  %4268 = vmax.xlane.f32.xlu0 %v4267_v25 }
 0x3f2   : > { %v4612_v36 = vpop.f32.mrf.mxu2  ;;  %v4673_v37 = vpop.f32.mrf.mxu0 }
 0x3f5   : > { %4389 = vmax.xlane.f32.xlu1 %v4388_v32 }
 0x3f8   : > { %v4212_v42 = vpop.permute.xlu1 %4211 }
 0x3f9   : > { %v4217_v51 = vsel %vm4098_vm1, %v4212_v42, 0  ;;  %v4406_v42 = vsel %vm4098_vm1, %v4401_v18, 0 }
 0x3fa   : > { %4226 = vmatpush.bf16.msrb.mxu1 %v4217_v51  ;;  %v12292_v44 = vpop.f32.mrf.mxu2  ;;  %v12294_v45 = vpop.f32.mrf.mxu0 }
 0x3fb   : > { %v4745_v13 = vsel %vm4082_vm2, %v12292_v44, -inf  ;;  %v4809_v35 = vsel %vm4082_vm2, %v12294_v45, -inf }
 0x3fd   : > { %4615 = vmax.xlane.f32.xlu1 %v4614_v3 }
 0x401   : > { %4518 = vrot.lane.b32.xlu0 %v4401_v18, %s10879_s16 }
 0x402   : > { %v4743_v38 = vpop.f32.mrf.mxu2  ;;  %v4807_v41 = vpop.f32.mrf.mxu0 }
 0x40a   : > { %v12297_v46 = vpop.f32.mrf.mxu2  ;;  %v12299_v34 = vpop.f32.mrf.mxu0 }
 0x40b   : > { %v4866_v11 = vsel %vm4082_vm2, %v12297_v46, -inf }
 0x412   : > { %v4864_v48 = vpop.f32.mrf.mxu2  ;;  %v4921_v61 = vpop.f32.mrf.mxu0 }
 0x41a   : > { %v12301_v2 = vpop.f32.mrf.mxu2 }
 0x41b   : > { %v4984_v58 = vsel %vm4082_vm2, %v12301_v2, -inf }
 0x41c   : > { %4985 = vmax.xlane.f32.xlu2 %v4984_v58  ;;  %v4923_v58 = vsel %vm4082_vm2, %v12299_v34, -inf }
 0x41f   : > { %v4198_v5 = vpop.xlane.xlu2 %4197 }
 0x420   : > { %v4199_v1 = vsub.f32 %v12255_v27, %v4198_v5  ;;  %v4675_v27 = vsel %vm4082_vm2, %v12284_v30, -inf }
 0x422   : > { %v4982_v28 = vpop.f32.mrf.mxu2  ;;  %v4200_v4 = vmul.f32 1.442695, %v4199_v1  ;;  %v3964_v1 = vadd.f32 %v12216_v14, %v12214_v16  ;;  %v4688_v16 = vunpack.c.l.b16 %v12227_v12 }
 0x424   : > { %10423 = vpow2.f32 %v4200_v4 }
 0x42a   : > { %v12308_v7 = vpop.eup %10423 }
 0x42b   : > { %4507 = vmax.xlane.f32.xlu0 %v4506_v47  ;;  %v4202_v19 = vsel %vm4082_vm2, %v12308_v7, 0.0 }
 0x42c   : > { %4203 = vadd.xlane.f32.xlu1 %v4202_v19  ;;  %v4047_v19 = vpop.f32.mrf.mxu3 }
 0x42f   : > { %v4333_v59 = vpop.xlane.xlu2 %4332 }
 0x430   : > { %v4334_v15 = vsub.f32 %v12261_v0, %v4333_v59 }
 0x432   : > { %v4335_v57 = vmul.f32 1.442695, %v4334_v15 }
 0x433   : > { %4564 = vmax.xlane.f32.xlu0 %v4563_v50  ;;  %v3978_v50 = vadd.f32 %v12219_v21, %v3964_v1 }
 0x43b   : > { %4676 = vmax.xlane.f32.xlu0 %v4675_v27 }
 0x443   : > { %4746 = vmax.xlane.f32.xlu0 %v4745_v13  ;;  %v3992_v13 = vadd.f32 %v12221_v23, %v3978_v50 }
 0x44b   : > { %4810 = vmax.xlane.f32.xlu0 %v4809_v35 }
 0x453   : > { %4867 = vmax.xlane.f32.xlu0 %v4866_v11 }
 0x458   : > { %v4091_v53 = vpop.xlane.xlu0 %4090 }
 0x459   : > { %10425 = vrcp.f32 %v4091_v53 }
 0x45f   : > { %v10426_v22 = vpop.eup %10425 }
 0x460   : > { %v4143_v62 = vpop.xlane.xlu1 %4142  ;;  %v4093_v63 = vmul.f32 %v10426_v22, %v10420_v39  ;;  %v4269_v54 = vpop.xlane.xlu0 %4268 }
 0x461   : > { %10427 = vrcp.f32 %v4143_v62  ;;  %v4270_v49 = vsub.f32 %v12259_v10, %v4269_v54  ;;  %v4447_v39 = vpop.xlane.xlu2 %4446 }
 0x462   : > { %v4094_v9 = vpack.c.bf16 %v4093_v63, %v4093_v63  ;;  %v4448_v36 = vsub.f32 %v12267_v56, %v4447_v39 }
 0x463   : > { %v4271_v17 = vmul.f32 1.442695, %v4270_v49 }
 0x464   : > { %8797 = vmatmul.msk.bf16.vlgmr.msra.gmra.mxu1 %vm4082_vm2, %v4094_v9 }
 0x465   : > { %10429 = vpow2.f32 %v4271_v17  ;;  %4358 = vmatpush.bf16.msra.mxu1 %v4349_v52 }
 0x466   : > { %10431 = vpow2.f32 %v4335_v57 }
 0x467   : > { %v10428_v24 = vpop.eup %10427 }
 0x468   : > { %v4145_v20 = vmul.f32 %v10428_v24, %v12276_v29  ;;  %v4390_v25 = vpop.xlane.xlu1 %4389  ;;  %v4449_v29 = vmul.f32 1.442695, %v4448_v36 }
 0x469   : > { %v4391_v32 = vsub.f32 %v12265_v55, %v4390_v25 }
 0x46a   : > { %v4146_v10 = vpack.c.bf16 %v4145_v20, %v4145_v20 }
 0x46b   : > { %v4392_v0 = vmul.f32 1.442695, %v4391_v32  ;;  %v12333_v37 = vpop.eup %10429 }
 0x46c   : > { %8799 = vmatmul.msk.bf16.vlgmr.msra.gmra.mxu3 %vm4082_vm2, %v4146_v10  ;;  %v4273_v51 = vsel %vm4082_vm2, %v12333_v37, 0.0  ;;  %v12339_v55 = vpop.eup %10431 }
 0x46d   : > { %10433 = vpow2.f32 %v4392_v0  ;;  %4415 = vmatpush.bf16.msra.mxu3 %v4406_v42  ;;  %4274 = vadd.xlane.f32.xlu2 %v4273_v51  ;;  %v4337_v18 = vsel %vm4082_vm2, %v12339_v55, 0.0 }
 0x46e   : > { %10435 = vpow2.f32 %v4449_v29 }
 0x470   : > { %v4616_v3 = vpop.xlane.xlu1 %4615 }
 0x471   : > { %v4617_v56 = vsub.f32 %v12282_v26, %v4616_v3  ;;  %v4019_v26 = vpop.f32.mrf.mxu1 }
 0x472   : > { %v4020_v28 = vadd.f32 %v4019_v26, %v12225_v31 }
 0x473   : > { %v12341_v43 = vpop.eup %10433  ;;  %v4618_v41 = vmul.f32 1.442695, %v4617_v56  ;;  %v12369_v31 = vpop.permute.xlu0 %4518 }
 0x474   : > { %v4394_v38 = vsel %vm4082_vm2, %v12341_v43, 0.0  ;;  %v12348_v48 = vpop.eup %10435  ;;  %v4034_v4 = vadd.f32 %v12231_v40, %v4020_v28  ;;  %v4689_v40 = vpack.c.b16 %v4688_v16, %v4688_v16 }
 0x475   : > { %4395 = vadd.xlane.f32.xlu0 %v4394_v38  ;;  %4338 = vadd.xlane.f32.xlu2 %v4337_v18  ;;  %10437 = vpow2.f32 %v4618_v41  ;;  %v4451_v61 = vsel %vm4082_vm2, %v12348_v48, 0.0  ;;  %v4821_v38 = vunpack.c.h.b16 %v12227_v12 }
 0x476   : > { %v4048_v27 = vadd.f32 %v4047_v19, %v4034_v4  ;;  %v4524_v4 = vsel %vm4098_vm1, %v12369_v31, 0 }
 0x477   : > { %v12405_v26 = vpack.c.b16 %v4821_v38, %v4821_v38 }
 0x478   : > { %v12364_v35 = vpack.c.bf16 %v4048_v27, %v3992_v13 }
 0x47a   : > { %v4758_v11 = vunpack.c.l.b16 %v12364_v35 }
 0x47b   : > { %v12354_v5 = vpop.eup %10437 }
 0x47c   : > { %v4620_v47 = vsel %vm4082_vm2, %v12354_v5, 0.0  ;;  %v4759_v14 = vpack.c.b16 %v4758_v11, %v4758_v11 }
 0x47d   : > { %4452 = vadd.xlane.f32.xlu0 %v4451_v61  ;;  %4924 = vmax.xlane.f32.xlu2 %v4923_v58 }
 0x485   : > { %4621 = vadd.xlane.f32.xlu0 %v4620_v47 }
 0x48f   : > { %v4986_v51 = vpop.xlane.xlu2 %4985 }
 0x495   : > { %4760 = vrot.lane.b32.xlu2 %v4759_v14, %s10879_s16  ;;  %v4987_v14 = vsub.f32 %v12301_v2, %v4986_v51 }
 0x499   : > { %4690 = vrot.lane.b32.xlu0 %v4689_v40, %s10879_s16 }
 0x49e   : > { %v4508_v53 = vpop.xlane.xlu0 %4507 }
 0x49f   : > { %v4509_v21 = vsub.f32 %v12271_v6, %v4508_v53  ;;  %v4204_v23 = vpop.xlane.xlu1 %4203 }
 0x4a1   : > { %v4510_v33 = vmul.f32 1.442695, %v4509_v21  ;;  %v4988_v21 = vmul.f32 1.442695, %v4987_v14 }
 0x4a3   : > { %10439 = vpow2.f32 %v4510_v33 }
 0x4a4   : > { %10441 = vrcp.f32 %v4204_v23 }
 0x4a6   : > { %v4565_v22 = vpop.xlane.xlu0 %4564 }
 0x4a7   : > { %v4566_v49 = vsub.f32 %v12273_v8, %v4565_v22  ;;  %v4878_v22 = vunpack.c.h.b16 %v12364_v35 }
 0x4a9   : > { %v12373_v59 = vpop.eup %10439  ;;  %v4567_v6 = vmul.f32 1.442695, %v4566_v49 }
 0x4aa   : > { %v10442_v62 = vpop.eup %10441  ;;  %v4512_v63 = vsel %vm4082_vm2, %v12373_v59, 0.0 }
 0x4ab   : > { %v4206_v54 = vmul.f32 %v10442_v62, %v12308_v7  ;;  %4513 = vadd.xlane.f32.xlu1 %v4512_v63  ;;  %10443 = vpow2.f32 %v4567_v6  ;;  %v4879_v62 = vpack.c.b16 %v4878_v22, %v4878_v22 }
 0x4ad   : > { %v4207_v9 = vpack.c.bf16 %v4206_v54, %v4206_v54 }
 0x4ae   : > { %v4677_v15 = vpop.xlane.xlu0 %4676 }
 0x4af   : > { %8801 = vmatmul.msk.bf16.vlgmr.msrb.gmra.mxu1 %vm4082_vm2, %v4207_v9  ;;  %v4678_v29 = vsub.f32 %v12284_v30, %v4677_v15 }
 0x4b1   : > { %v12381_v57 = vpop.eup %10443  ;;  %v4679_v3 = vmul.f32 1.442695, %v4678_v29  ;;  %v4884_v29 = vsel %vm4098_vm1, %v4879_v62, 0 }
 0x4b2   : > { %v4569_v39 = vsel %vm4082_vm2, %v12381_v57, 0.0 }
 0x4b6   : > { %v4747_v17 = vpop.xlane.xlu0 %4746 }
 0x4b7   : > { %v4748_v52 = vsub.f32 %v12292_v44, %v4747_v17 }
 0x4b9   : > { %v4749_v24 = vmul.f32 1.442695, %v4748_v52 }
 0x4bb   : > { %10445 = vpow2.f32 %v4749_v24 }
 0x4be   : > { %v4811_v7 = vpop.xlane.xlu0 %4810  ;;  %4570 = vadd.xlane.f32.xlu2 %v4569_v39 }
 0x4bf   : > { %v4812_v8 = vsub.f32 %v12294_v45, %v4811_v7 }
 0x4c1   : > { %v4813_v20 = vmul.f32 1.442695, %v4812_v8  ;;  %v12386_v25 = vpop.eup %10445 }
 0x4c2   : > { %v4751_v44 = vsel %vm4082_vm2, %v12386_v25, 0.0 }
 0x4c3   : > { %10447 = vpow2.f32 %v4813_v20 }
 0x4c4   : > { %4457 = vrot.lane.b32.xlu1 %v12323_v60, %s10879_s16 }
 0x4c6   : > { %v4868_v32 = vpop.xlane.xlu0 %4867  ;;  %4752 = vadd.xlane.f32.xlu2 %v4751_v44 }
 0x4c7   : > { %v4869_v10 = vsub.f32 %v12297_v46, %v4868_v32 }
 0x4c9   : > { %v12393_v36 = vpop.eup %10447  ;;  %v4870_v0 = vmul.f32 1.442695, %v4869_v10 }
 0x4ca   : > { %v4815_v45 = vsel %vm4082_vm2, %v12393_v36, 0.0 }
 0x4cb   : > { %10449 = vpow2.f32 %v4870_v0  ;;  %4816 = vadd.xlane.f32.xlu0 %v4815_v45  ;;  %v4579_v45 = vsel %vm4098_vm1, %v12227_v12, 0 }
 0x4d1   : > { %v12397_v42 = vpop.eup %10449 }
 0x4d2   : > { %v4872_v60 = vsel %vm4082_vm2, %v12397_v42, 0.0 }
 0x4d3   : > { %4873 = vadd.xlane.f32.xlu2 %v4872_v60 }
 0x4e0   : > { %v4275_v56 = vpop.xlane.xlu2 %4274 }
 0x4e1   : > { %10451 = vrcp.f32 %v4275_v56  ;;  %v4111_v46 = vpop.f32.mrf.mxu1 }
 0x4e2   : > { %4115 = vst.msk [vmem:[#allocation3] sm:$0xff] %vm4062_vm0, %v4111_v46  ;;  %10453 = vpow2.f32 %v4679_v3 }
 0x4e7   : > { %v10452_v18 = vpop.eup %10451 }
 0x4e8   : > { %v4277_v41 = vmul.f32 %v10452_v18, %v12333_v37  ;;  %v4339_v61 = vpop.xlane.xlu2 %4338  ;;  %v12407_v1 = vpop.eup %10453 }
 0x4e9   : > { %10455 = vrcp.f32 %v4339_v61  ;;  %v4113_v58 = vpop.f32.mrf.mxu1  ;;  %v4396_v28 = vpop.xlane.xlu0 %4395  ;;  %v4681_v37 = vsel %vm4082_vm2, %v12407_v1, 0.0 }
 0x4ea   : > { %v4278_v30 = vpack.c.bf16 %v4277_v41, %v4277_v41  ;;  %10457 = vrcp.f32 %v4396_v28  ;;  %v4827_v41 = vsel %vm4098_vm1, %v12405_v26, 0 }
 0x4eb   : > { %4935 = vrot.lane.b32.xlu2 %v12405_v26, %s10879_s16 }
 0x4ec   : > { %8803 = vmatmul.msk.bf16.vlgmr.msrb.gmra.mxu3 %vm4082_vm2, %v4278_v30 }
 0x4ed   : > { %4533 = vmatpush.bf16.msrb.mxu3 %v4524_v4 }
 0x4ee   : > { %4682 = vadd.xlane.f32.xlu1 %v4681_v37 }
 0x4ef   : > { %v4162_v47 = vpop.f32.mrf.mxu3  ;;  %v10456_v19 = vpop.eup %10455 }
 0x4f0   : > { %4166 = vst.msk [vmem:[#allocation3 + $0x20] sm:$0xff] %vm4062_vm0, %v4162_v47  ;;  %v4341_v50 = vmul.f32 %v10456_v19, %v12339_v55  ;;  %v4925_v27 = vpop.xlane.xlu2 %4924  ;;  %v10458_v16 = vpop.eup %10457 }
 0x4f1   : > { %v4926_v13 = vsub.f32 %v12299_v34, %v4925_v27  ;;  %v4398_v40 = vmul.f32 %v10458_v16, %v12341_v43  ;;  %v4630_v34 = vsel %vm4098_vm1, %v12364_v35, 0  ;;  %v4453_v63 = vpop.xlane.xlu0 %4452 }
 0x4f2   : > { %v4342_v11 = vpack.c.bf16 %v4341_v50, %v4341_v50 }
 0x4f3   : > { %v4927_v31 = vmul.f32 1.442695, %v4926_v13  ;;  %v4399_v33 = vpack.c.bf16 %v4398_v40, %v4398_v40 }
 0x4f4   : > { %8805 = vmatmul.msk.bf16.vlgmr.msra.gmra.mxu1 %vm4082_vm2, %v4342_v11 }
 0x4f5   : > { %10459 = vpow2.f32 %v4927_v31 }
 0x4f6   : > { %10461 = vpow2.f32 %v4988_v21 }
 0x4f7   : > { %v4164_v53 = vpop.f32.mrf.mxu3 }
 0x4f8   : > { %v4761_v15 = vpop.permute.xlu2 %4760 }
 0x4f9   : > { %v4622_v6 = vpop.xlane.xlu0 %4621  ;;  %v4766_v52 = vsel %vm4098_vm1, %v4761_v15, 0 }
 0x4fb   : > { %v12422_v23 = vpop.eup %10459 }
 0x4fc   : > { %8807 = vmatmul.msk.bf16.vlgmr.msra.gmra.mxu3 %vm4082_vm2, %v4399_v33  ;;  %v4929_v2 = vsel %vm4082_vm2, %v12422_v23, 0.0  ;;  %v12429_v55 = vpop.eup %10461 }
 0x4fd   : > { %4639 = vmatpush.bf16.msra.mxu3 %v4630_v34  ;;  %4930 = vadd.xlane.f32.xlu1 %v4929_v2  ;;  %v4990_v43 = vsel %vm4082_vm2, %v12429_v55, 0.0 }
 0x505   : > { %4991 = vadd.xlane.f32.xlu1 %v4990_v43 }
 0x50b   : > { %v4691_v0 = vpop.permute.xlu0 %4690 }
 0x51e   : > { %v4514_v54 = vpop.xlane.xlu1 %4513  ;;  %4996 = vrot.lane.b32.xlu1 %v4879_v62, %s10879_s16 }
 0x51f   : > { %10463 = vrcp.f32 %v4514_v54 }
 0x520   : > { %10465 = vrcp.f32 %v4622_v6 }
 0x521   : > { %10467 = vrcp.f32 %v4453_v63 }
 0x525   : > { %v10464_v49 = vpop.eup %10463 }
 0x526   : > { %v4516_v9 = vmul.f32 %v10464_v49, %v12373_v59  ;;  %v10466_v24 = vpop.eup %10465 }
 0x527   : > { %v10468_v7 = vpop.eup %10467  ;;  %v4624_v8 = vmul.f32 %v10466_v24, %v12354_v5  ;;  %v4696_v5 = vsel %vm4098_vm1, %v4691_v0, 0  ;;  %v10145_v0 = vld [vmem:[%s11168_s12 + $0x2cc] sm:$0xf0] }
 0x528   : > { %v4517_v17 = vpack.c.bf16 %v4516_v9, %v4516_v9  ;;  %v4455_v59 = vmul.f32 %v10468_v7, %v12348_v48 }
 0x529   : > { %v4625_v10 = vpack.c.bf16 %v4624_v8, %v4624_v8 }
 0x52a   : > { %8811 = vmatmul.msk.bf16.vlgmr.msrb.gmra.mxu3 %vm4082_vm2, %v4517_v17  ;;  %v4456_v60 = vpack.c.bf16 %v4455_v59, %v4455_v59  ;;  %v10149_v59 = vld [vmem:[%s11168_s12 + $0x2ec] sm:$0xf0] }
 0x52b   : > { %4775 = vmatpush.bf16.msrb.mxu3 %v4766_v52 }
 0x52c   : > { %v4228_v35 = vpop.f32.mrf.mxu1 }
 0x52d   : > { %4233 = vrot.lane.b32.xlu1 %v4228_v35, %s10879_s16 }
 0x531   : > { %v4571_v39 = vpop.xlane.xlu2 %4570 }
 0x534   : > { %v4230_v20 = vpop.f32.mrf.mxu1 }
 0x535   : > { %v9198_v20 = vld [vmem:[%s11168_s12 + $0x2e0] sm:$0xf] }
 0x536   : > { %v4458_v44 = vpop.permute.xlu1 %4457 }
 0x537   : > { %v4463_v32 = vsel %vm4098_vm1, %v4458_v44, 0  ;;  %v9182_v44 = vld [vmem:[%s11168_s12 + $0x2c0] sm:$0xf] }
 0x538   : > { %4472 = vmatpush.bf16.msrb.mxu1 %v4463_v32 }
 0x539   : > { %v4753_v51 = vpop.xlane.xlu2 %4752 }
 0x53a   : > { %8815 = vmatmul.msk.bf16.vlgmr.msra.gmra.mxu3 %vm4082_vm2, %v4625_v10  ;;  %10469 = vrcp.f32 %v4753_v51  ;;  %v9199_v10 = vor.u32 %v10149_v59, %v9198_v20  ;;  %v10173_v20 = vld [vmem:[%s11168_s12 + $0x3ac] sm:$0xf0] }
 0x53b   : > { %4893 = vmatpush.bf16.msra.mxu3 %v4884_v29  ;;  %8809 = vmatmul.msk.bf16.vlgmr.msrb.gmra.mxu1 %vm4082_vm2, %v4456_v60  ;;  %10471 = vrcp.f32 %v4571_v39  ;;  %v10085_v60 = vld [vmem:[%s11168_s12 + $0xec] sm:$0xf0]  ;;  %v8926_v29 = vld [vmem:[%s11168_s12 + $0xc0] sm:$0xf] }
 0x53c   : > { %4588 = vmatpush.bf16.msra.mxu1 %v4579_v45  ;;  %v8942_v45 = vld [vmem:[%s11168_s12 + $0xe0] sm:$0xf]  ;;  %5830 = vmatpush.bf16.msra.mxu2 %v9199_v10  ;;  %v10083_v10 = vld [vmem:[%s11168_s12 + $0xe4] sm:$0xf] }
 0x53d   : > { %v8943_v51 = vor.u32 %v10085_v60, %v8942_v45  ;;  %v9054_v45 = vld [vmem:[%s11168_s12 + $0x1c0] sm:$0xf]  ;;  %v10113_v60 = vld [vmem:[%s11168_s12 + $0x1cc] sm:$0xf0] }
 0x53e   : > { %v4817_v37 = vpop.xlane.xlu0 %4816 }
 0x53f   : > { %5802 = vmatpush.bf16.msra.mxu0 %v8943_v51 }
 0x540   : > { %4705 = vmatpush.bf16.msrb.mxu1 %v4696_v5  ;;  %v10470_v48 = vpop.eup %10469  ;;  %v9183_v5 = vor.u32 %v10145_v0, %v9182_v44  ;;  %v8830_v44 = vld [vmem:[%s11168_s12] sm:$0xf] }
 0x541   : > { %v10472_v3 = vpop.eup %10471  ;;  %v4755_v56 = vmul.f32 %v10470_v48, %v12386_v25  ;;  %v10081_v48 = vld [vmem:[%s11168_s12 + $0xcc] sm:$0xf0] }
 0x542   : > { %v4573_v12 = vmul.f32 %v10472_v3, %v12381_v57  ;;  %v9166_v3 = vld [vmem:[%s11168_s12 + $0x2a0] sm:$0xf]  ;;  %5831 = vmatpush.bf16.msra.mxu2 %v9183_v5  ;;  %v9055_v5 = vor.u32 %v10113_v60, %v9054_v45 }
 0x543   : > { %v4756_v46 = vpack.c.bf16 %v4755_v56, %v4755_v56  ;;  %v10141_v56 = vld [vmem:[%s11168_s12 + $0x2ac] sm:$0xf0]  ;;  %v9214_v45 = vld [vmem:[%s11168_s12 + $0x300] sm:$0xf] }
 0x544   : > { %v4574_v18 = vpack.c.bf16 %v4573_v12, %v4573_v12  ;;  %v8927_v12 = vor.u32 %v10081_v48, %v8926_v29  ;;  %v8944_v29 = vld [vmem:[%s11168_s12 + $0xf0] sm:$0xf0]  ;;  %v9278_v48 = vld [vmem:[%s11168_s12 + $0x380] sm:$0xf] }
 0x546   : > { %v4874_v38 = vpop.xlane.xlu2 %4873  ;;  %5803 = vmatpush.bf16.msra.mxu0 %v8927_v12  ;;  %v9168_v12 = vld [vmem:[%s11168_s12 + $0x2b0] sm:$0xf0] }
 0x547   : > { %10473 = vrcp.f32 %v4874_v38  ;;  %v10077_v38 = vld [vmem:[%s11168_s12 + $0xac] sm:$0xf0] }
 0x54a   : > { %8819 = vmatmul.msk.bf16.vlgmr.msrb.gmra.mxu3 %vm4082_vm2, %v4756_v46  ;;  %v8910_v46 = vld [vmem:[%s11168_s12 + $0xa0] sm:$0xf] }
 0x54b   : > { %8813 = vmatmul.msk.bf16.vlgmr.msra.gmra.mxu1 %vm4082_vm2, %v4574_v18  ;;  %v9167_v18 = vor.u32 %v10141_v56, %v9166_v3  ;;  %v10169_v3 = vld [vmem:[%s11168_s12 + $0x38c] sm:$0xf0]  ;;  %v10139_v56 = vld [vmem:[%s11168_s12 + $0x2a4] sm:$0xf] }
 0x54c   : > { %4836 = vmatpush.bf16.msra.mxu1 %v4827_v41  ;;  %v9150_v41 = vld [vmem:[%s11168_s12 + $0x280] sm:$0xf] }
 0x54d   : > { %v10474_v61 = vpop.eup %10473  ;;  %5832 = vmatpush.bf16.msra.mxu2 %v9167_v18  ;;  %v9279_v18 = vor.u32 %v10169_v3, %v9278_v48 }
 0x54e   : > { %v4876_v58 = vmul.f32 %v10474_v61, %v12397_v42  ;;  %v4936_v4 = vpop.permute.xlu2 %4935  ;;  %v10137_v61 = vld [vmem:[%s11168_s12 + $0x28c] sm:$0xf0] }
 0x54f   : > { %v4941_v19 = vsel %vm4098_vm1, %v4936_v4, 0 }
 0x550   : > { %v4877_v30 = vpack.c.bf16 %v4876_v58, %v4876_v58  ;;  %v8911_v58 = vor.u32 %v10077_v38, %v8910_v46  ;;  %v8947_v38 = vor.u32 %v10083_v10, %v8944_v29  ;;  %v8990_v10 = vld [vmem:[%s11168_s12 + $0x140] sm:$0xf]  ;;  %v10059_v29 = vld [vmem:[%s11168_s12 + $0x24] sm:$0xf] }
 0x552   : > { %5804 = vmatpush.bf16.msra.mxu0 %v8911_v58  ;;  %v8928_v58 = vld [vmem:[%s11168_s12 + $0xd0] sm:$0xf0] }
 0x55a   : > { %8823 = vmatmul.msk.bf16.vlgmr.msra.gmra.mxu3 %vm4082_vm2, %v4877_v30 }
 0x561   : > { %v4683_v25 = vpop.xlane.xlu1 %4682 }
 0x562   : > { %10475 = vrcp.f32 %v4683_v25  ;;  %v9151_v25 = vor.u32 %v10137_v61, %v9150_v41  ;;  %v9171_v41 = vor.u32 %v10139_v56, %v9168_v12  ;;  %v10079_v61 = vld [vmem:[%s11168_s12 + $0xc4] sm:$0xf]  ;;  %v9328_v12 = vld [vmem:[%s11168_s12 + $0x3f0] sm:$0xf0] }
 0x563   : > { %10477 = vrcp.f32 %v4817_v37  ;;  %v10179_v56 = vld [vmem:[%s11168_s12 + $0x3e4] sm:$0xf] }
 0x564   : > { %5833 = vmatpush.bf16.msra.mxu2 %v9151_v25  ;;  %v9152_v25 = vld [vmem:[%s11168_s12 + $0x290] sm:$0xf0] }
 0x568   : > { %v10476_v57 = vpop.eup %10475 }
 0x569   : > { %v4685_v28 = vmul.f32 %v10476_v57, %v12407_v1  ;;  %v10478_v42 = vpop.eup %10477  ;;  %v9134_v57 = vld [vmem:[%s11168_s12 + $0x260] sm:$0xf] }
 0x56a   : > { %v4819_v27 = vmul.f32 %v10478_v42, %v12393_v36  ;;  %v9118_v42 = vld [vmem:[%s11168_s12 + $0x240] sm:$0xf] }
 0x56b   : > { %v4686_v47 = vpack.c.bf16 %v4685_v28, %v4685_v28  ;;  %v10133_v28 = vld [vmem:[%s11168_s12 + $0x26c] sm:$0xf0] }
 0x56c   : > { %v4820_v1 = vpack.c.bf16 %v4819_v27, %v4819_v27  ;;  %v9135_v4 = vor.u32 %v10133_v28, %v9134_v57  ;;  %v8931_v57 = vor.u32 %v10079_v61, %v8928_v58  ;;  %v8832_v58 = vld [vmem:[%s11168_s12 + $0x10] sm:$0xf0] }
 0x56d   : > { %8817 = vmatmul.msk.bf16.vlgmr.msrb.gmra.mxu1 %vm4082_vm2, %v4686_v47 }
 0x56e   : > { %4950 = vmatpush.bf16.msrb.mxu1 %v4941_v19  ;;  %5834 = vmatpush.bf16.msra.mxu2 %v9135_v4  ;;  %v10075_v4 = vld [vmem:[%s11168_s12 + $0xa4] sm:$0xf] }
 0x56f   : > { %v4299_v26 = vpop.f32.mrf.mxu3 }
 0x570   : > { %v4931_v11 = vpop.xlane.xlu1 %4930 }
 0x571   : > { %v4360_v50 = vpop.f32.mrf.mxu1  ;;  %10479 = vrcp.f32 %v4931_v11  ;;  %v8878_v11 = vld [vmem:[%s11168_s12 + $0x60] sm:$0xf] }
 0x572   : > { %4364 = vst.msk [vmem:[#allocation3 + $0x8] sm:$0xff] %vm4062_vm0, %v4360_v50  ;;  %v10073_v50 = vld [vmem:[%s11168_s12 + $0x8c] sm:$0xf0] }
 0x577   : > { %v4301_v13 = vpop.f32.mrf.mxu3  ;;  %v10480_v40 = vpop.eup %10479 }
 0x578   : > { %v4992_v31 = vpop.xlane.xlu1 %4991  ;;  %v4933_v53 = vmul.f32 %v10480_v40, %v12422_v23  ;;  %v10129_v13 = vld [vmem:[%s11168_s12 + $0x24c] sm:$0xf0] }
 0x579   : > { %v4362_v16 = vpop.f32.mrf.mxu1  ;;  %10481 = vrcp.f32 %v4992_v31  ;;  %v10125_v31 = vld [vmem:[%s11168_s12 + $0x22c] sm:$0xf0] }
 0x57a   : > { %v4934_v33 = vpack.c.bf16 %v4933_v53, %v4933_v53  ;;  %v10069_v16 = vld [vmem:[%s11168_s12 + $0x6c] sm:$0xf0] }
 0x57b   : > { %v8879_v40 = vor.u32 %v10069_v16, %v8878_v11  ;;  %v10165_v16 = vld [vmem:[%s11168_s12 + $0x36c] sm:$0xf0] }
 0x57d   : > { %8821 = vmatmul.msk.bf16.vlgmr.msra.gmra.mxu1 %vm4082_vm2, %v4820_v1  ;;  %v9119_v1 = vor.u32 %v10129_v13, %v9118_v42  ;;  %v9038_v42 = vld [vmem:[%s11168_s12 + $0x1a0] sm:$0xf] }
 0x57e   : > { %v9262_v13 = vld [vmem:[%s11168_s12 + $0x360] sm:$0xf] }
 0x57f   : > { %v4417_v14 = vpop.f32.mrf.mxu3  ;;  %v10482_v34 = vpop.eup %10481  ;;  %5835 = vmatpush.bf16.msra.mxu2 %v9119_v1  ;;  %v10071_v1 = vld [vmem:[%s11168_s12 + $0x84] sm:$0xf] }
 0x580   : > { %4421 = vst.msk [vmem:[#allocation3 + $0x28] sm:$0xff] %vm4062_vm0, %v4417_v14  ;;  %v4994_v36 = vmul.f32 %v10482_v34, %v12429_v55  ;;  %v9102_v14 = vld [vmem:[%s11168_s12 + $0x220] sm:$0xf] }
 0x581   : > { %v9103_v53 = vor.u32 %v10125_v31, %v9102_v14  ;;  %v9086_v34 = vld [vmem:[%s11168_s12 + $0x200] sm:$0xf]  ;;  %v8896_v14 = vld [vmem:[%s11168_s12 + $0x90] sm:$0xf0]  ;;  %v9263_v31 = vor.u32 %v10165_v16, %v9262_v13 }
 0x582   : > { %v4995_v22 = vpack.c.bf16 %v4994_v36, %v4994_v36  ;;  %v10121_v36 = vld [vmem:[%s11168_s12 + $0x20c] sm:$0xf0]  ;;  %v9056_v16 = vld [vmem:[%s11168_s12 + $0x1d0] sm:$0xf0] }
 0x583   : > { %5836 = vmatpush.bf16.msra.mxu2 %v9103_v53  ;;  %v10127_v53 = vld [vmem:[%s11168_s12 + $0x244] sm:$0xf] }
 0x587   : > { %v4419_v21 = vpop.f32.mrf.mxu3 }
 0x588   : > { %v8862_v21 = vld [vmem:[%s11168_s12 + $0x40] sm:$0xf] }
 0x58d   : > { %8825 = vmatmul.msk.bf16.vlgmr.msrb.gmra.mxu1 %vm4082_vm2, %v4934_v33  ;;  %v10065_v33 = vld [vmem:[%s11168_s12 + $0x4c] sm:$0xf0] }
 0x590   : > { %v4997_v2 = vpop.permute.xlu1 %4996 }
 0x591   : > { %v5002_v43 = vsel %vm4098_vm1, %v4997_v2, 0  ;;  %v9326_v2 = vld [vmem:[%s11168_s12 + $0x3e0] sm:$0xf] }
 0x592   : > { %5011 = vmatpush.bf16.msrb.mxu3 %v5002_v43  ;;  %v10181_v43 = vld [vmem:[%s11168_s12 + $0x3ec] sm:$0xf0] }
 0x595   : > { %8827 = vmatmul.msk.bf16.vlgmr.msrb.gmra.mxu3 %vm4082_vm2, %v4995_v22  ;;  %v10147_v22 = vld [vmem:[%s11168_s12 + $0x2e4] sm:$0xf] }
 0x59f   : > { %v4234_v62 = vpop.permute.xlu1 %4233 }
 0x5a0   : > { %4237 = vst.msk [vmem:[#allocation3] sm:$0xff] %vm4236_vm3, %v4234_v62  ;;  %v9200_v62 = vld [vmem:[%s11168_s12 + $0x2f0] sm:$0xf0] }
 0x5ad   : > { %v4535_v63 = vpop.f32.mrf.mxu3 }
 0x5b5   : > { %v4537_v23 = vpop.f32.mrf.mxu3 }
 0x5b6   : > { %v8863_v23 = vor.u32 %v10065_v33, %v8862_v21  ;;  %v9120_v21 = vld [vmem:[%s11168_s12 + $0x250] sm:$0xf0]  ;;  %v9022_v33 = vld [vmem:[%s11168_s12 + $0x180] sm:$0xf] }
 0x5b8   : > { %v4474_v54 = vpop.f32.mrf.mxu1 }
 0x5bd   : > { %v4641_v49 = vpop.f32.mrf.mxu3 }
 0x5be   : > { %4645 = vst.msk [vmem:[#allocation3 + $0x30] sm:$0xff] %vm4062_vm0, %v4641_v49  ;;  %v10177_v49 = vld [vmem:[%s11168_s12 + $0x3cc] sm:$0xf0] }
 0x5c0   : > { %v4476_v9 = vpop.f32.mrf.mxu1 }
 0x5c1   : > { %v9087_v9 = vor.u32 %v10121_v36, %v9086_v34  ;;  %v9123_v36 = vor.u32 %v10127_v53, %v9120_v21  ;;  %v10107_v53 = vld [vmem:[%s11168_s12 + $0x1a4] sm:$0xf]  ;;  %v9040_v21 = vld [vmem:[%s11168_s12 + $0x1b0] sm:$0xf0] }
 0x5c3   : > { %5837 = vmatpush.bf16.msra.mxu2 %v9087_v9  ;;  %v10123_v9 = vld [vmem:[%s11168_s12 + $0x224] sm:$0xf] }
 0x5c5   : > { %v4643_v15 = vpop.f32.mrf.mxu3 }
 0x5c6   : > { %v8846_v15 = vld [vmem:[%s11168_s12 + $0x20] sm:$0xf] }
 0x5c8   : > { %v4590_v55 = vpop.f32.mrf.mxu1 }
 0x5c9   : > { %4594 = vst.msk [vmem:[#allocation3 + $0x10] sm:$0xff] %vm4062_vm0, %v4590_v55  ;;  %v10061_v55 = vld [vmem:[%s11168_s12 + $0x2c] sm:$0xf0] }
 0x5ca   : > { %v8847_v59 = vor.u32 %v10061_v55, %v8846_v15  ;;  %v9104_v15 = vld [vmem:[%s11168_s12 + $0x230] sm:$0xf0] }
 0x5cb   : > { %v9107_v55 = vor.u32 %v10123_v9, %v9104_v15  ;;  %v10099_v9 = vld [vmem:[%s11168_s12 + $0x164] sm:$0xf]  ;;  %v9008_v15 = vld [vmem:[%s11168_s12 + $0x170] sm:$0xf0] }
 0x5cd   : > { %v4777_v6 = vpop.f32.mrf.mxu3 }
 0x5ce   : > { %4782 = vrot.lane.b32.xlu1 %v4777_v6, %s10879_s16 }
 0x5d0   : > { %v4592_v17 = vpop.f32.mrf.mxu1 }
 0x5d1   : > { %v9203_v17 = vor.u32 %v10147_v22, %v9200_v62  ;;  %v10161_v22 = vld [vmem:[%s11168_s12 + $0x34c] sm:$0xf0] }
 0x5d3   : > { %5886 = vmatpush.bf16.msrb.mxu2 %v9203_v17  ;;  %v10101_v17 = vld [vmem:[%s11168_s12 + $0x16c] sm:$0xf0] }
 0x5d5   : > { %v4779_v52 = vpop.f32.mrf.mxu3 }
 0x5d6   : > { %v10143_v52 = vld [vmem:[%s11168_s12 + $0x2c4] sm:$0xf] }
 0x5dd   : > { %v4895_v35 = vpop.f32.mrf.mxu3 }
 0x5de   : > { %4899 = vst.msk [vmem:[#allocation3 + $0x38] sm:$0xff] %vm4062_vm0, %v4895_v35  ;;  %v9070_v35 = vld [vmem:[%s11168_s12 + $0x1e0] sm:$0xf] }
 0x5e5   : > { %v4897_v24 = vpop.f32.mrf.mxu3 }
 0x5e6   : > { %v10117_v24 = vld [vmem:[%s11168_s12 + $0x1ec] sm:$0xf0] }
 0x5ea   : > { %v4707_v39 = vpop.f32.mrf.mxu1 }
 0x5eb   : > { %4712 = vrot.lane.b32.xlu0 %v4707_v39, %s10879_s16  ;;  %v9184_v39 = vld [vmem:[%s11168_s12 + $0x2d0] sm:$0xf0] }
 0x5ec   : > { %v9187_v51 = vor.u32 %v10143_v52, %v9184_v39  ;;  %v9230_v52 = vld [vmem:[%s11168_s12 + $0x320] sm:$0xf]  ;;  %v10063_v39 = vld [vmem:[%s11168_s12 + $0x44] sm:$0xf] }
 0x5ee   : > { %5887 = vmatpush.bf16.msrb.mxu2 %v9187_v51  ;;  %v10153_v51 = vld [vmem:[%s11168_s12 + $0x30c] sm:$0xf0] }
 0x5ef   : > { %v9215_v48 = vor.u32 %v10153_v51, %v9214_v45  ;;  %v9216_v51 = vld [vmem:[%s11168_s12 + $0x310] sm:$0xf0] }
 0x5f2   : > { %v4709_v7 = vpop.f32.mrf.mxu1  ;;  %5888 = vmatpush.bf16.msrb.mxu2 %v9171_v41  ;;  %v10055_v41 = vld [vmem:[%s11168_s12 + $0x4] sm:$0xf] }
 0x5f3   : > { %4304 = vrot.lane.b32.xlu0 %v4299_v26, %s10879_s16  ;;  %v8894_v26 = vld [vmem:[%s11168_s12 + $0x80] sm:$0xf]  ;;  %v9071_v7 = vor.u32 %v10117_v24, %v9070_v35  ;;  %v10157_v24 = vld [vmem:[%s11168_s12 + $0x32c] sm:$0xf0] }
 0x5f4   : > { %v8895_v27 = vor.u32 %v10073_v50, %v8894_v26 }
 0x5f5   : > { %5816 = vmatpush.bf16.msra.mxu1 %v9071_v7  ;;  %v8864_v7 = vld [vmem:[%s11168_s12 + $0x50] sm:$0xf0] }
 0x5f6   : > { %5805 = vmatpush.bf16.msra.mxu0 %v8895_v27  ;;  %v10109_v27 = vld [vmem:[%s11168_s12 + $0x1ac] sm:$0xf0] }
 0x5f7   : > { %v9039_v11 = vor.u32 %v10109_v27, %v9038_v42  ;;  %v9296_v42 = vld [vmem:[%s11168_s12 + $0x3b0] sm:$0xf0] }
 0x5f9   : > { %5817 = vmatpush.bf16.msra.mxu1 %v9055_v5  ;;  %v8848_v5 = vld [vmem:[%s11168_s12 + $0x30] sm:$0xf0] }
 0x5fa   : > { %v4838_v8 = vpop.f32.mrf.mxu1  ;;  %5806 = vmatpush.bf16.msra.mxu0 %v8879_v40  ;;  %v8899_v40 = vor.u32 %v10071_v1, %v8896_v14  ;;  %v8851_v3 = vor.u32 %v10059_v29, %v8848_v5  ;;  %v10167_v1 = vld [vmem:[%s11168_s12 + $0x384] sm:$0xf] }
 0x5fb   : > { %4842 = vst.msk [vmem:[#allocation3 + $0x18] sm:$0xff] %vm4062_vm0, %v4838_v8  ;;  %v9294_v8 = vld [vmem:[%s11168_s12 + $0x3a0] sm:$0xf] }
 0x5fc   : > { %v9295_v0 = vor.u32 %v10173_v20, %v9294_v8  ;;  %v9231_v8 = vor.u32 %v10157_v24, %v9230_v52  ;;  %v8867_v20 = vor.u32 %v10063_v39, %v8864_v7  ;;  %v9011_v52 = vor.u32 %v10099_v9, %v9008_v15  ;;  %v8870_v9 = vld [vmem:[%s11168_s12 + $0x48] sm:$0xf]  ;;  %v10066_v15 = vld [vmem:[%s11168_s12 + $0x54] sm:$0xf0] }
 0x5fd   : > { %5818 = vmatpush.bf16.msra.mxu1 %v9039_v11  ;;  %v10111_v11 = vld [vmem:[%s11168_s12 + $0x1c4] sm:$0xf] }
 0x5fe   : > { %5807 = vmatpush.bf16.msra.mxu0 %v8863_v23  ;;  %v10067_v23 = vld [vmem:[%s11168_s12 + $0x64] sm:$0xf]  ;;  %v9059_v14 = vor.u32 %v10111_v11, %v9056_v16  ;;  %v9142_v11 = vld [vmem:[%s11168_s12 + $0x268] sm:$0xf]  ;;  %v10134_v16 = vld [vmem:[%s11168_s12 + $0x274] sm:$0xf0] }
 0x602   : > { %v4840_v32 = vpop.f32.mrf.mxu1  ;;  %5808 = vmatpush.bf16.msra.mxu0 %v8847_v59  ;;  %v10119_v59 = vld [vmem:[%s11168_s12 + $0x204] sm:$0xf] }
 0x603   : > { %v10057_v32 = vld [vmem:[%s11168_s12 + $0xc] sm:$0xf0] }
 0x604   : > { %v8831_v46 = vor.u32 %v10057_v32, %v8830_v44  ;;  %v9088_v44 = vld [vmem:[%s11168_s12 + $0x210] sm:$0xf0] }
 0x605   : > { %v9091_v32 = vor.u32 %v10119_v59, %v9088_v44  ;;  %v9190_v59 = vld [vmem:[%s11168_s12 + $0x2c8] sm:$0xf]  ;;  %v10146_v44 = vld [vmem:[%s11168_s12 + $0x2d4] sm:$0xf0] }
 0x606   : > { %5809 = vmatpush.bf16.msra.mxu0 %v8831_v46  ;;  %v9331_v46 = vor.u32 %v10179_v56, %v9328_v12  ;;  %v9191_v5 = vor.u32 %v10146_v44, %v9190_v59  ;;  %v9174_v56 = vld [vmem:[%s11168_s12 + $0x2a8] sm:$0xf]  ;;  %v10142_v12 = vld [vmem:[%s11168_s12 + $0x2b4] sm:$0xf0]  ;;  %v10144_v44 = vld [vmem:[%s11168_s12 + $0x2cc] sm:$0xf] }
 0x607   : > { %v10182_v59 = vld [vmem:[%s11168_s12 + $0x3f4] sm:$0xf0] }
 0x60a   : > { %v4952_v30 = vpop.f32.mrf.mxu1  ;;  %5858 = vmatpush.bf16.msrb.mxu0 %v8947_v38  ;;  %v8974_v38 = vld [vmem:[%s11168_s12 + $0x120] sm:$0xf] }
 0x60b   : > { %4957 = vrot.lane.b32.xlu1 %v4952_v30, %s10879_s16  ;;  %v10135_v30 = vld [vmem:[%s11168_s12 + $0x284] sm:$0xf] }
 0x60c   : > { %v9155_v28 = vor.u32 %v10135_v30, %v9152_v25  ;;  %v10175_v30 = vld [vmem:[%s11168_s12 + $0x3c4] sm:$0xf]  ;;  %v9312_v25 = vld [vmem:[%s11168_s12 + $0x3d0] sm:$0xf0] }
 0x60e   : > { %5859 = vmatpush.bf16.msrb.mxu0 %v8931_v57  ;;  %5889 = vmatpush.bf16.msrb.mxu2 %v9155_v28  ;;  %v8835_v57 = vor.u32 %v10055_v41, %v8832_v58  ;;  %v9315_v28 = vor.u32 %v10175_v30, %v9312_v25  ;;  %v5022_v41 = vld [vmem:[#allocation3] sm:$0xff]  ;;  %v9175_v25 = vor.u32 %v10142_v12, %v9174_v56 }
 0x612   : > { %v4954_v37 = vpop.f32.mrf.mxu1 }
 0x613   : > { %4540 = vrot.lane.b32.xlu1 %v4535_v63, %s10879_s16  ;;  %v9327_v63 = vor.u32 %v10181_v43, %v9326_v2  ;;  %v8912_v37 = vld [vmem:[%s11168_s12 + $0xb0] sm:$0xf0]  ;;  %v10105_v2 = vld [vmem:[%s11168_s12 + $0x18c] sm:$0xf0]  ;;  %v9246_v43 = vld [vmem:[%s11168_s12 + $0x340] sm:$0xf] }
 0x614   : > { %v8915_v26 = vor.u32 %v10075_v4, %v8912_v37  ;;  %v9023_v62 = vor.u32 %v10105_v2, %v9022_v33  ;;  %v8958_v4 = vld [vmem:[%s11168_s12 + $0x100] sm:$0xf]  ;;  %v10089_v37 = vld [vmem:[%s11168_s12 + $0x10c] sm:$0xf0]  ;;  %v10163_v33 = vld [vmem:[%s11168_s12 + $0x364] sm:$0xf] }
 0x615   : > { %5844 = vmatpush.bf16.msra.mxu3 %v9327_v63  ;;  %v9247_v63 = vor.u32 %v10161_v22, %v9246_v43  ;;  %v10103_v22 = vld [vmem:[%s11168_s12 + $0x184] sm:$0xf] }
 0x616   : > { %5860 = vmatpush.bf16.msrb.mxu0 %v8915_v26  ;;  %5819 = vmatpush.bf16.msra.mxu1 %v9023_v62  ;;  %v9072_v26 = vld [vmem:[%s11168_s12 + $0x1f0] sm:$0xf0] }
 0x617   : > { %v9024_v62 = vld [vmem:[%s11168_s12 + $0x190] sm:$0xf0] }
 0x618   : > { %v5013_v47 = vpop.f32.mrf.mxu3 }
 0x619   : > { %5018 = vrot.lane.b32.xlu2 %v5013_v47, %s10879_s16  ;;  %v10131_v47 = vld [vmem:[%s11168_s12 + $0x264] sm:$0xf] }
 0x61a   : > { %5861 = vmatpush.bf16.msrb.mxu0 %v8899_v40 }
 0x620   : > { %v5015_v19 = vpop.f32.mrf.mxu3 }
 0x621   : > { %4479 = vrot.lane.b32.xlu2 %v4474_v54, %s10879_s16  ;;  %v9310_v54 = vld [vmem:[%s11168_s12 + $0x3c0] sm:$0xf]  ;;  %v9136_v19 = vld [vmem:[%s11168_s12 + $0x270] sm:$0xf0] }
 0x622   : > { %v9311_v6 = vor.u32 %v10177_v49, %v9310_v54  ;;  %v9139_v50 = vor.u32 %v10131_v47, %v9136_v19  ;;  %v8880_v54 = vld [vmem:[%s11168_s12 + $0x70] sm:$0xf0]  ;;  %v10115_v47 = vld [vmem:[%s11168_s12 + $0x1e4] sm:$0xf]  ;;  %v8959_v19 = vor.u32 %v10089_v37, %v8958_v4  ;;  %v10138_v37 = vld [vmem:[%s11168_s12 + $0x294] sm:$0xf0] }
 0x623   : > { %v8883_v49 = vor.u32 %v10067_v23, %v8880_v54  ;;  %v9075_v27 = vor.u32 %v10115_v47, %v9072_v26  ;;  %v10159_v23 = vld [vmem:[%s11168_s12 + $0x344] sm:$0xf]  ;;  %v9248_v54 = vld [vmem:[%s11168_s12 + $0x350] sm:$0xf0] }
 0x624   : > { %5845 = vmatpush.bf16.msra.mxu3 %v9311_v6  ;;  %5890 = vmatpush.bf16.msrb.mxu2 %v9139_v50  ;;  %v9006_v6 = vld [vmem:[%s11168_s12 + $0x160] sm:$0xf]  ;;  %v10171_v50 = vld [vmem:[%s11168_s12 + $0x3a4] sm:$0xf] }
 0x625   : > { %5862 = vmatpush.bf16.msrb.mxu0 %v8883_v49  ;;  %v9007_v35 = vor.u32 %v10101_v17, %v9006_v6  ;;  %v9299_v13 = vor.u32 %v10171_v50, %v9296_v42  ;;  %v9251_v49 = vor.u32 %v10159_v23, %v9248_v54  ;;  %v9206_v6 = vld [vmem:[%s11168_s12 + $0x2e8] sm:$0xf]  ;;  %v10150_v17 = vld [vmem:[%s11168_s12 + $0x2f4] sm:$0xf0]  ;;  %v10087_v47 = vld [vmem:[%s11168_s12 + $0x104] sm:$0xf] }
 0x627   : > { %5820 = vmatpush.bf16.msra.mxu1 %v9007_v35  ;;  %v9232_v35 = vld [vmem:[%s11168_s12 + $0x330] sm:$0xf0] }
 0x628   : > { %5846 = vmatpush.bf16.msra.mxu3 %v9295_v0  ;;  %5891 = vmatpush.bf16.msrb.mxu2 %v9123_v36  ;;  %v10097_v0 = vld [vmem:[%s11168_s12 + $0x14c] sm:$0xf0]  ;;  %v9264_v36 = vld [vmem:[%s11168_s12 + $0x370] sm:$0xf0] }
 0x629   : > { %5863 = vmatpush.bf16.msrb.mxu0 %v8867_v20  ;;  %v8991_v60 = vor.u32 %v10097_v0, %v8990_v10  ;;  %v9267_v2 = vor.u32 %v10163_v33, %v9264_v36  ;;  %v9207_v20 = vor.u32 %v10150_v17, %v9206_v6  ;;  %v10095_v10 = vld [vmem:[%s11168_s12 + $0x144] sm:$0xf]  ;;  %v8992_v0 = vld [vmem:[%s11168_s12 + $0x150] sm:$0xf0]  ;;  %v10130_v33 = vld [vmem:[%s11168_s12 + $0x254] sm:$0xf0] }
 0x62a   : > { %v8995_v45 = vor.u32 %v10095_v10, %v8992_v0  ;;  %v10122_v6 = vld [vmem:[%s11168_s12 + $0x214] sm:$0xf0]  ;;  %v10148_v17 = vld [vmem:[%s11168_s12 + $0x2ec] sm:$0xf]  ;;  %v9192_v10 = vld [vmem:[%s11168_s12 + $0x2d8] sm:$0xf0] }
 0x62b   : > { %5821 = vmatpush.bf16.msra.mxu1 %v8991_v60  ;;  %v10151_v60 = vld [vmem:[%s11168_s12 + $0x304] sm:$0xf]  ;;  %v8838_v0 = vld [vmem:[%s11168_s12 + $0x8] sm:$0xf]  ;;  %v9195_v12 = vor.u32 %v10144_v44, %v9192_v10  ;;  %v10162_v10 = vld [vmem:[%s11168_s12 + $0x354] sm:$0xf0] }
 0x62c   : > { %5847 = vmatpush.bf16.msra.mxu3 %v9279_v18  ;;  %5892 = vmatpush.bf16.msrb.mxu2 %v9107_v55  ;;  %v10093_v18 = vld [vmem:[%s11168_s12 + $0x12c] sm:$0xf0]  ;;  %v10155_v55 = vld [vmem:[%s11168_s12 + $0x324] sm:$0xf]  ;;  %v9219_v29 = vor.u32 %v10151_v60, %v9216_v51  ;;  %v9254_v44 = vld [vmem:[%s11168_s12 + $0x348] sm:$0xf] }
 0x62d   : > { %5864 = vmatpush.bf16.msrb.mxu0 %v8851_v3  ;;  %v8975_v61 = vor.u32 %v10093_v18, %v8974_v38  ;;  %v9235_v24 = vor.u32 %v10155_v55, %v9232_v35  ;;  %v10086_v3 = vld [vmem:[%s11168_s12 + $0xf4] sm:$0xf0]  ;;  %v8976_v38 = vld [vmem:[%s11168_s12 + $0x130] sm:$0xf0]  ;;  %v9094_v55 = vld [vmem:[%s11168_s12 + $0x208] sm:$0xf]  ;;  %v8871_v35 = vor.u32 %v10066_v15, %v8870_v9 }
 0x62e   : > { %v9270_v15 = vld [vmem:[%s11168_s12 + $0x368] sm:$0xf] }
 0x62f   : > { %5822 = vmatpush.bf16.msra.mxu1 %v8975_v61  ;;  %v8934_v61 = vld [vmem:[%s11168_s12 + $0xc8] sm:$0xf] }
 0x630   : > { %5848 = vmatpush.bf16.msra.mxu3 %v9263_v31  ;;  %5893 = vmatpush.bf16.msrb.mxu2 %v9091_v32  ;;  %v9280_v31 = vld [vmem:[%s11168_s12 + $0x390] sm:$0xf0] }
 0x631   : > { %5865 = vmatpush.bf16.msrb.mxu0 %v8835_v57  ;;  %v9283_v40 = vor.u32 %v10167_v1, %v9280_v31  ;;  %v10082_v57 = vld [vmem:[%s11168_s12 + $0xd4] sm:$0xf0]  ;;  %v9143_v31 = vor.u32 %v10134_v16, %v9142_v11 }
 0x632   : > { %v8935_v50 = vor.u32 %v10082_v57, %v8934_v61  ;;  %v9176_v61 = vld [vmem:[%s11168_s12 + $0x2b8] sm:$0xf0]  ;;  %v10118_v57 = vld [vmem:[%s11168_s12 + $0x1f4] sm:$0xf0] }
 0x633   : > { %5823 = vmatpush.bf16.msra.mxu1 %v8959_v19  ;;  %v8960_v19 = vld [vmem:[%s11168_s12 + $0x110] sm:$0xf0] }
 0x634   : > { %5849 = vmatpush.bf16.msra.mxu3 %v9247_v63  ;;  %v9027_v63 = vor.u32 %v10103_v22, %v9024_v62  ;;  %v8963_v26 = vor.u32 %v10087_v47, %v8960_v19  ;;  %v9110_v22 = vld [vmem:[%s11168_s12 + $0x228] sm:$0xf]  ;;  %v10126_v62 = vld [vmem:[%s11168_s12 + $0x234] sm:$0xf0] }
 0x635   : > { %v9302_v47 = vld [vmem:[%s11168_s12 + $0x3a8] sm:$0xf]  ;;  %v10174_v19 = vld [vmem:[%s11168_s12 + $0x3b4] sm:$0xf0] }
 0x637   : > { %5872 = vmatpush.bf16.msrb.mxu1 %v9075_v27  ;;  %v8918_v27 = vld [vmem:[%s11168_s12 + $0xa8] sm:$0xf] }
 0x638   : > { %5850 = vmatpush.bf16.msra.mxu3 %v9231_v8 }
 0x63b   : > { %5873 = vmatpush.bf16.msrb.mxu1 %v9059_v14 }
 0x63c   : > { %5851 = vmatpush.bf16.msra.mxu3 %v9215_v48  ;;  %v8950_v48 = vld [vmem:[%s11168_s12 + $0xe8] sm:$0xf] }
 0x63d   : > { %v8951_v30 = vor.u32 %v10086_v3, %v8950_v48  ;;  %v9318_v3 = vld [vmem:[%s11168_s12 + $0x3c8] sm:$0xf] }
 0x640   : > { %v4783_v34 = vpop.permute.xlu1 %4782  ;;  %5900 = vmatpush.bf16.msrb.mxu3 %v9331_v46  ;;  %v10091_v46 = vld [vmem:[%s11168_s12 + $0x124] sm:$0xf] }
 0x641   : > { %4785 = vst.msk [vmem:[#allocation3 + $0x30] sm:$0xff] %vm4236_vm3, %v4783_v34  ;;  %v9043_v34 = vor.u32 %v10107_v53, %v9040_v21  ;;  %v8979_v18 = vor.u32 %v10091_v46, %v8976_v38  ;;  %v10074_v53 = vld [vmem:[%s11168_s12 + $0x94] sm:$0xf0]  ;;  %v9126_v21 = vld [vmem:[%s11168_s12 + $0x248] sm:$0xf] }
 0x642   : > { %v9127_v36 = vor.u32 %v10130_v33, %v9126_v21  ;;  %v10178_v46 = vld [vmem:[%s11168_s12 + $0x3d4] sm:$0xf0]  ;;  %v10084_v38 = vld [vmem:[%s11168_s12 + $0xec] sm:$0xf]  ;;  %v9286_v33 = vld [vmem:[%s11168_s12 + $0x388] sm:$0xf] }
 0x643   : > { %5874 = vmatpush.bf16.msrb.mxu1 %v9043_v34 }
 0x644   : > { %5901 = vmatpush.bf16.msrb.mxu3 %v9315_v28  ;;  %v9158_v28 = vld [vmem:[%s11168_s12 + $0x288] sm:$0xf] }
 0x645   : > { %v9159_v42 = vor.u32 %v10138_v37, %v9158_v28 }
 0x647   : > { %5875 = vmatpush.bf16.msrb.mxu1 %v9027_v63 }
 0x648   : > { %5902 = vmatpush.bf16.msrb.mxu3 %v9299_v13  ;;  %v5028_v39 = vld [vmem:[#allocation3 + $0x30] sm:$0xff]  ;;  %v10078_v13 = vld [vmem:[%s11168_s12 + $0xb4] sm:$0xf0] }
 0x649   : > { %v8919_v14 = vor.u32 %v10078_v13, %v8918_v27  ;;  %v9160_v27 = vld [vmem:[%s11168_s12 + $0x298] sm:$0xf0]  ;;  %v9062_v13 = vld [vmem:[%s11168_s12 + $0x1c8] sm:$0xf] }
 0x64b   : > { %5876 = vmatpush.bf16.msrb.mxu1 %v9011_v52  ;;  %v9208_v52 = vld [vmem:[%s11168_s12 + $0x2f8] sm:$0xf0] }
 0x64c   : > { %5903 = vmatpush.bf16.msrb.mxu3 %v9283_v40  ;;  %v8902_v40 = vld [vmem:[%s11168_s12 + $0x88] sm:$0xf] }
 0x64d   : > { %v8903_v34 = vor.u32 %v10074_v53, %v8902_v40 }
 0x64f   : > { %5877 = vmatpush.bf16.msrb.mxu1 %v8995_v45  ;;  %v10058_v45 = vld [vmem:[%s11168_s12 + $0x14] sm:$0xf0] }
 0x650   : > { %5904 = vmatpush.bf16.msrb.mxu3 %v9267_v2  ;;  %v8886_v2 = vld [vmem:[%s11168_s12 + $0x68] sm:$0xf] }
 0x653   : > { %5878 = vmatpush.bf16.msrb.mxu1 %v8979_v18  ;;  %v8952_v18 = vld [vmem:[%s11168_s12 + $0xf8] sm:$0xf0] }
 0x654   : > { %5905 = vmatpush.bf16.msrb.mxu3 %v9251_v49  ;;  %v9111_v49 = vor.u32 %v10126_v62, %v9110_v22  ;;  %v8955_v28 = vor.u32 %v10084_v38, %v8952_v18  ;;  %v9144_v22 = vld [vmem:[%s11168_s12 + $0x278] sm:$0xf0]  ;;  %v9238_v38 = vld [vmem:[%s11168_s12 + $0x328] sm:$0xf]  ;;  %v10158_v18 = vld [vmem:[%s11168_s12 + $0x334] sm:$0xf0] }
 0x657   : > { %5879 = vmatpush.bf16.msrb.mxu1 %v8963_v26  ;;  %v10080_v26 = vld [vmem:[%s11168_s12 + $0xcc] sm:$0xf] }
 0x658   : > { %5906 = vmatpush.bf16.msrb.mxu3 %v9235_v24  ;;  %v9095_v24 = vor.u32 %v10122_v6, %v9094_v55  ;;  %v10166_v55 = vld [vmem:[%s11168_s12 + $0x374] sm:$0xf0]  ;;  %v10072_v6 = vld [vmem:[%s11168_s12 + $0x8c] sm:$0xf] }
 0x65c   : > { %5907 = vmatpush.bf16.msrb.mxu3 %v9219_v29 }
 0x65d   : > { %v4713_v43 = vpop.permute.xlu0 %4712 }
 0x65e   : > { %4715 = vst.msk [vmem:[#allocation3 + $0x10] sm:$0xff] %vm4236_vm3, %v4713_v43  ;;  %v10070_v43 = vld [vmem:[%s11168_s12 + $0x74] sm:$0xf0] }
 0x65f   : > { %v8887_v54 = vor.u32 %v10070_v43, %v8886_v2  ;;  %v8920_v2 = vld [vmem:[%s11168_s12 + $0xb8] sm:$0xf0]  ;;  %v10132_v43 = vld [vmem:[%s11168_s12 + $0x26c] sm:$0xf] }
 0x660   : > { %v9147_v9 = vor.u32 %v10132_v43, %v9144_v22 }
 0x665   : > { %v4305_v7 = vpop.permute.xlu0 %4304  ;;  %v5024_v8 = vld [vmem:[#allocation3 + $0x10] sm:$0xff] }
 0x666   : > { %4307 = vst.msk [vmem:[#allocation3 + $0x20] sm:$0xff] %vm4236_vm3, %v4305_v7  ;;  %v12607_v32 = vpack.c.bf16 %v5028_v39, %v5024_v8  ;;  %v8854_v39 = vld [vmem:[%s11168_s12 + $0x28] sm:$0xf]  ;;  %v9211_v7 = vor.u32 %v10148_v17, %v9208_v52  ;;  %v10062_v8 = vld [vmem:[%s11168_s12 + $0x34] sm:$0xf0] }
 0x667   : > { %v8904_v17 = vld [vmem:[%s11168_s12 + $0x98] sm:$0xf0]  ;;  %v10128_v52 = vld [vmem:[%s11168_s12 + $0x24c] sm:$0xf] }
 0x668   : > { %5838 = vmatmul.bf16.vlgmr.msra.gmra.mxu2 %v12607_v32 }
 0x669   : > { %5942 = vmatpush.bf16.msra.mxu2 %v9207_v20  ;;  %v9334_v20 = vld [vmem:[%s11168_s12 + $0x3e8] sm:$0xf] }
 0x66a   : > { %v9335_v48 = vor.u32 %v10182_v59, %v9334_v20  ;;  %v8907_v20 = vor.u32 %v10072_v6, %v8904_v17  ;;  %v10112_v17 = vld [vmem:[%s11168_s12 + $0x1cc] sm:$0xf] }
 0x66d   : > { %5943 = vmatpush.bf16.msra.mxu2 %v9191_v5  ;;  %v5026_v58 = vld [vmem:[#allocation3 + $0x20] sm:$0xff]  ;;  %v8855_v5 = vor.u32 %v10062_v8, %v8854_v39  ;;  %v9271_v39 = vor.u32 %v10166_v55, %v9270_v15  ;;  %v10106_v8 = vld [vmem:[%s11168_s12 + $0x194] sm:$0xf0] }
 0x66e   : > { %v12623_v4 = vpack.c.bf16 %v5026_v58, %v5022_v41  ;;  %v10140_v41 = vld [vmem:[%s11168_s12 + $0x2ac] sm:$0xf]  ;;  %v8839_v58 = vor.u32 %v10058_v45, %v8838_v0  ;;  %v8888_v45 = vld [vmem:[%s11168_s12 + $0x78] sm:$0xf0] }
 0x66f   : > { %v9179_v37 = vor.u32 %v10140_v41, %v9176_v61  ;;  %v10068_v0 = vld [vmem:[%s11168_s12 + $0x6c] sm:$0xf]  ;;  %v8872_v61 = vld [vmem:[%s11168_s12 + $0x58] sm:$0xf0] }
 0x670   : > { %5810 = vmatmul.bf16.vlgmr.msra.gmra.mxu0 %v12623_v4  ;;  %v10064_v41 = vld [vmem:[%s11168_s12 + $0x4c] sm:$0xf]  ;;  %v9304_v15 = vld [vmem:[%s11168_s12 + $0x3b8] sm:$0xf0] }
 0x671   : > { %5914 = vmatpush.bf16.msra.mxu0 %v8951_v30  ;;  %5944 = vmatpush.bf16.msra.mxu2 %v9175_v25  ;;  %v9319_v30 = vor.u32 %v10178_v46, %v9318_v3  ;;  %v9078_v25 = vld [vmem:[%s11168_s12 + $0x1e8] sm:$0xf]  ;;  %v10102_v3 = vld [vmem:[%s11168_s12 + $0x174] sm:$0xf0] }
 0x673   : > { %v5019_v1 = vpop.permute.xlu2 %5018 }
 0x674   : > { %5021 = vst.msk [vmem:[#allocation3 + $0x38] sm:$0xff] %vm4236_vm3, %v5019_v1  ;;  %v9079_v1 = vor.u32 %v10118_v57, %v9078_v25  ;;  %v9239_v57 = vor.u32 %v10158_v18, %v9238_v38 }
 0x675   : > { %5915 = vmatpush.bf16.msra.mxu0 %v8935_v50  ;;  %5945 = vmatpush.bf16.msra.mxu2 %v9159_v42  ;;  %v8936_v50 = vld [vmem:[%s11168_s12 + $0xd8] sm:$0xf0]  ;;  %v10136_v42 = vld [vmem:[%s11168_s12 + $0x28c] sm:$0xf] }
 0x676   : > { %v8939_v53 = vor.u32 %v10080_v26, %v8936_v50  ;;  %v9163_v21 = vor.u32 %v10136_v42, %v9160_v27  ;;  %v9222_v26 = vld [vmem:[%s11168_s12 + $0x308] sm:$0xf]  ;;  %v10154_v50 = vld [vmem:[%s11168_s12 + $0x314] sm:$0xf0]  ;;  %v10060_v42 = vld [vmem:[%s11168_s12 + $0x2c] sm:$0xf] }
 0x677   : > { %v8856_v27 = vld [vmem:[%s11168_s12 + $0x38] sm:$0xf0] }
 0x678   : > { %5894 = vmatmul.bf16.vlgmr.msrb.gmra.mxu2 %v12607_v32 }
 0x679   : > { %5916 = vmatpush.bf16.msra.mxu0 %v8919_v14  ;;  %5946 = vmatpush.bf16.msra.mxu2 %v9143_v31  ;;  %v9303_v14 = vor.u32 %v10174_v19, %v9302_v47  ;;  %v10114_v31 = vld [vmem:[%s11168_s12 + $0x1d4] sm:$0xf0] }
 0x67a   : > { %v9063_v62 = vor.u32 %v10114_v31, %v9062_v13  ;;  %v10098_v19 = vld [vmem:[%s11168_s12 + $0x154] sm:$0xf0]  ;;  %v10180_v13 = vld [vmem:[%s11168_s12 + $0x3ec] sm:$0xf]  ;;  %v8982_v31 = vld [vmem:[%s11168_s12 + $0x128] sm:$0xf] }
 0x67b   : > { %v4480_v63 = vpop.permute.xlu2 %4479  ;;  %v5029_v29 = vld [vmem:[#allocation3 + $0x38] sm:$0xff] }
 0x67c   : > { %4482 = vst.msk [vmem:[#allocation3 + $0x8] sm:$0xff] %vm4236_vm3, %v4480_v63 }
 0x67d   : > { %5917 = vmatpush.bf16.msra.mxu0 %v8903_v34  ;;  %5947 = vmatpush.bf16.msra.mxu2 %v9127_v36  ;;  %v4958_v23 = vpop.permute.xlu1 %4957  ;;  %v10170_v34 = vld [vmem:[%s11168_s12 + $0x394] sm:$0xf0]  ;;  %v10076_v36 = vld [vmem:[%s11168_s12 + $0xac] sm:$0xf] }
 0x67e   : > { %4960 = vst.msk [vmem:[#allocation3 + $0x18] sm:$0xff] %vm4236_vm3, %v4958_v23  ;;  %v9287_v63 = vor.u32 %v10170_v34, %v9286_v33  ;;  %v9046_v23 = vld [vmem:[%s11168_s12 + $0x1a8] sm:$0xf]  ;;  %v10056_v33 = vld [vmem:[%s11168_s12 + $0xc] sm:$0xf] }
 0x67f   : > { %v8840_v34 = vld [vmem:[%s11168_s12 + $0x18] sm:$0xf0] }
 0x680   : > { %5866 = vmatmul.bf16.vlgmr.msrb.gmra.mxu0 %v12623_v4  ;;  %v8843_v22 = vor.u32 %v10056_v33, %v8840_v34 }
 0x681   : > { %5918 = vmatpush.bf16.msra.mxu0 %v8887_v54  ;;  %5948 = vmatpush.bf16.msra.mxu2 %v9111_v49  ;;  %v10110_v54 = vld [vmem:[%s11168_s12 + $0x1b4] sm:$0xf0]  ;;  %v8923_v49 = vor.u32 %v10076_v36, %v8920_v2  ;;  %v10176_v36 = vld [vmem:[%s11168_s12 + $0x3cc] sm:$0xf]  ;;  %v9320_v2 = vld [vmem:[%s11168_s12 + $0x3d8] sm:$0xf0] }
 0x683   : > { %v5023_v11 = vld [vmem:[#allocation3 + $0x8] sm:$0xff] }
 0x685   : > { %5919 = vmatpush.bf16.msra.mxu0 %v8871_v35  ;;  %5949 = vmatpush.bf16.msra.mxu2 %v9095_v24  ;;  %v4541_v60 = vpop.permute.xlu1 %4540  ;;  %v5025_v51 = vld [vmem:[#allocation3 + $0x18] sm:$0xff]  ;;  %v9128_v35 = vld [vmem:[%s11168_s12 + $0x258] sm:$0xf0]  ;;  %v9047_v24 = vor.u32 %v10110_v54, %v9046_v23  ;;  %v9323_v23 = vor.u32 %v10176_v36, %v9320_v2  ;;  %v10116_v54 = vld [vmem:[%s11168_s12 + $0x1ec] sm:$0xf] }
 0x686   : > { %4543 = vst.msk [vmem:[#allocation3 + $0x28] sm:$0xff] %vm4236_vm3, %v4541_v60  ;;  %v12662_v56 = vpack.c.bf16 %v5029_v29, %v5025_v51  ;;  %v9131_v59 = vor.u32 %v10128_v52, %v9128_v35  ;;  %v10124_v60 = vld [vmem:[%s11168_s12 + $0x22c] sm:$0xf]  ;;  %v9112_v51 = vld [vmem:[%s11168_s12 + $0x238] sm:$0xf0] }
 0x687   : > { %v9115_v46 = vor.u32 %v10124_v60, %v9112_v51  ;;  %v9064_v52 = vld [vmem:[%s11168_s12 + $0x1d8] sm:$0xf0]  ;;  %v10168_v35 = vld [vmem:[%s11168_s12 + $0x38c] sm:$0xf] }
 0x688   : > { %5852 = vmatmul.bf16.vlgmr.msra.gmra.mxu3 %v12662_v56  ;;  %5950 = vmatmul.bf16.vlgmr.msra.gmra.mxu2 %v12607_v32  ;;  %v10160_v60 = vld [vmem:[%s11168_s12 + $0x34c] sm:$0xf]  ;;  %v9256_v51 = vld [vmem:[%s11168_s12 + $0x358] sm:$0xf0] }
 0x689   : > { %5998 = vmatpush.bf16.msrb.mxu2 %v9211_v7  ;;  %5920 = vmatpush.bf16.msra.mxu0 %v8855_v5  ;;  %v9030_v7 = vld [vmem:[%s11168_s12 + $0x188] sm:$0xf]  ;;  %v9255_v5 = vor.u32 %v10162_v10, %v9254_v44  ;;  %v9272_v44 = vld [vmem:[%s11168_s12 + $0x378] sm:$0xf0] }
 0x68a   : > { %5956 = vmatpush.bf16.msra.mxu3 %v9335_v48  ;;  %v9031_v29 = vor.u32 %v10106_v8, %v9030_v7  ;;  %v9014_v48 = vld [vmem:[%s11168_s12 + $0x168] sm:$0xf]  ;;  %v10108_v8 = vld [vmem:[%s11168_s12 + $0x1ac] sm:$0xf] }
 0x68b   : > { %v9015_v25 = vor.u32 %v10102_v3, %v9014_v48  ;;  %v10100_v48 = vld [vmem:[%s11168_s12 + $0x16c] sm:$0xf]  ;;  %v9016_v3 = vld [vmem:[%s11168_s12 + $0x178] sm:$0xf0] }
 0x68c   : > { %v9019_v38 = vor.u32 %v10100_v48, %v9016_v3 }
 0x68d   : > { %5999 = vmatpush.bf16.msrb.mxu2 %v9195_v12  ;;  %5921 = vmatpush.bf16.msra.mxu0 %v8839_v58  ;;  %v5027_v16 = vld [vmem:[#allocation3 + $0x28] sm:$0xff]  ;;  %v8891_v12 = vor.u32 %v10068_v0, %v8888_v45  ;;  %v10120_v58 = vld [vmem:[%s11168_s12 + $0x20c] sm:$0xf]  ;;  %v9032_v45 = vld [vmem:[%s11168_s12 + $0x198] sm:$0xf0] }
 0x68e   : > { %5957 = vmatpush.bf16.msra.mxu3 %v9319_v30  ;;  %v12681_v40 = vpack.c.bf16 %v5027_v16, %v5023_v11  ;;  %v9096_v30 = vld [vmem:[%s11168_s12 + $0x218] sm:$0xf0]  ;;  %v10104_v0 = vld [vmem:[%s11168_s12 + $0x18c] sm:$0xf] }
 0x68f   : > { %v9099_v47 = vor.u32 %v10120_v58, %v9096_v30  ;;  %v9336_v11 = vld [vmem:[%s11168_s12 + $0x3f8] sm:$0xf0]  ;;  %v10152_v58 = vld [vmem:[%s11168_s12 + $0x30c] sm:$0xf] }
 0x690   : > { %5824 = vmatmul.bf16.vlgmr.msra.gmra.mxu1 %v12681_v40  ;;  %5922 = vmatmul.bf16.vlgmr.msra.gmra.mxu0 %v12623_v4  ;;  %v9224_v30 = vld [vmem:[%s11168_s12 + $0x318] sm:$0xf0] }
 0x691   : > { %5970 = vmatpush.bf16.msrb.mxu0 %v8955_v28  ;;  %6000 = vmatpush.bf16.msrb.mxu2 %v9179_v37  ;;  %v8998_v28 = vld [vmem:[%s11168_s12 + $0x148] sm:$0xf]  ;;  %v8875_v37 = vor.u32 %v10064_v41, %v8872_v61  ;;  %v10096_v41 = vld [vmem:[%s11168_s12 + $0x14c] sm:$0xf]  ;;  %v9000_v61 = vld [vmem:[%s11168_s12 + $0x158] sm:$0xf0] }
 0x692   : > { %5928 = vmatpush.bf16.msra.mxu1 %v9079_v1  ;;  %5958 = vmatpush.bf16.msra.mxu3 %v9303_v14  ;;  %v8999_v16 = vor.u32 %v10098_v19, %v8998_v28  ;;  %v9223_v1 = vor.u32 %v10154_v50, %v9222_v26  ;;  %v8859_v14 = vor.u32 %v10060_v42, %v8856_v27  ;;  %v10092_v28 = vld [vmem:[%s11168_s12 + $0x12c] sm:$0xf]  ;;  %v8968_v26 = vld [vmem:[%s11168_s12 + $0x118] sm:$0xf0] }
 0x693   : > { %v10088_v19 = vld [vmem:[%s11168_s12 + $0x10c] sm:$0xf] }
 0x694   : > { %v8971_v50 = vor.u32 %v10088_v19, %v8968_v26 }
 0x695   : > { %5971 = vmatpush.bf16.msrb.mxu0 %v8939_v53  ;;  %6001 = vmatpush.bf16.msrb.mxu2 %v9163_v21  ;;  %v10094_v53 = vld [vmem:[%s11168_s12 + $0x134] sm:$0xf0]  ;;  %v9339_v21 = vor.u32 %v10180_v13, %v9336_v11 }
 0x696   : > { %5929 = vmatpush.bf16.msra.mxu1 %v9063_v62  ;;  %5959 = vmatpush.bf16.msra.mxu3 %v9287_v63  ;;  %v8983_v43 = vor.u32 %v10094_v53, %v8982_v31  ;;  %v8966_v62 = vld [vmem:[%s11168_s12 + $0x108] sm:$0xf]  ;;  %v10090_v63 = vld [vmem:[%s11168_s12 + $0x114] sm:$0xf0]  ;;  %v12768_v31 = vld [vmem:[%s11170_s7] sm:$0xf] }
 0x697   : > { %v8967_v55 = vor.u32 %v10090_v63, %v8966_v62  ;;  %v6044_v34 = vperm.slane %v12768_v31, 0 }
 0x698   : > { %5908 = vmatmul.bf16.vlgmr.msrb.gmra.mxu3 %v12662_v56 }
 0x699   : > { %5972 = vmatpush.bf16.msrb.mxu0 %v8923_v49  ;;  %6002 = vmatpush.bf16.msrb.mxu2 %v9147_v9  ;;  %v9080_v49 = vld [vmem:[%s11168_s12 + $0x1f8] sm:$0xf0]  ;;  %v10172_v9 = vld [vmem:[%s11168_s12 + $0x3ac] sm:$0xf] }
 0x69a   : > { %5930 = vmatpush.bf16.msra.mxu1 %v9047_v24  ;;  %5960 = vmatpush.bf16.msra.mxu3 %v9271_v39  ;;  %v9307_v6 = vor.u32 %v10172_v9, %v9304_v15  ;;  %v9288_v24 = vld [vmem:[%s11168_s12 + $0x398] sm:$0xf0]  ;;  %v9067_v39 = vor.u32 %v10112_v17, %v9064_v52 }
 0x69b   : > { %v9291_v7 = vor.u32 %v10168_v35, %v9288_v24  ;;  %v6027_v52 = vld [vmem:[#allocation2] sm:$0xff]  ;;  %v6045_v24 = vperm.slane %v12768_v31, 1 }
 0x69d   : > { %5973 = vmatpush.bf16.msrb.mxu0 %v8907_v20  ;;  %6003 = vmatpush.bf16.msrb.mxu2 %v9131_v59  ;;  %v9048_v20 = vld [vmem:[%s11168_s12 + $0x1b8] sm:$0xf0]  ;;  %v10164_v59 = vld [vmem:[%s11168_s12 + $0x36c] sm:$0xf] }
 0x69e   : > { %5931 = vmatpush.bf16.msra.mxu1 %v9031_v29  ;;  %5961 = vmatpush.bf16.msra.mxu3 %v9255_v5  ;;  %v9051_v10 = vor.u32 %v10108_v8, %v9048_v20  ;;  %v9035_v29 = vor.u32 %v10104_v0, %v9032_v45  ;;  %v9259_v5 = vor.u32 %v10160_v60, %v9256_v51 }
 0x6a0   : > { %5880 = vmatmul.bf16.vlgmr.msrb.gmra.mxu1 %v12681_v40 }
 0x6a1   : > { %5974 = vmatpush.bf16.msrb.mxu0 %v8891_v12  ;;  %6004 = vmatpush.bf16.msrb.mxu2 %v9115_v46  ;;  %v10156_v12 = vld [vmem:[%s11168_s12 + $0x32c] sm:$0xf]  ;;  %v9240_v46 = vld [vmem:[%s11168_s12 + $0x338] sm:$0xf0] }
 0x6a2   : > { %5932 = vmatpush.bf16.msra.mxu1 %v9015_v25  ;;  %5962 = vmatpush.bf16.msra.mxu3 %v9239_v57  ;;  %v9243_v18 = vor.u32 %v10156_v12, %v9240_v46  ;;  %v9003_v25 = vor.u32 %v10096_v41, %v9000_v61  ;;  %v9227_v57 = vor.u32 %v10152_v58, %v9224_v30  ;;  %v6028_v46 = vld [vmem:[#allocation2 + $0x18] sm:$0xff] }
 0x6a5   : > { %5975 = vmatpush.bf16.msrb.mxu0 %v8875_v37  ;;  %6005 = vmatpush.bf16.msrb.mxu2 %v9099_v47  ;;  %v8984_v37 = vld [vmem:[%s11168_s12 + $0x138] sm:$0xf0] }
 0x6a6   : > { %5933 = vmatpush.bf16.msra.mxu1 %v8999_v16  ;;  %5963 = vmatpush.bf16.msra.mxu3 %v9223_v1  ;;  %v8987_v47 = vor.u32 %v10092_v28, %v8984_v37 }
 0x6a8   : > { %6006 = vmatmul.bf16.vlgmr.msrb.gmra.mxu2 %v12607_v32  ;;  %v9083_v32 = vor.u32 %v10116_v54, %v9080_v49 }
 0x6a9   : > { %5976 = vmatpush.bf16.msrb.mxu0 %v8859_v14  ;;  %5964 = vmatmul.bf16.vlgmr.msra.gmra.mxu3 %v12662_v56 }
 0x6aa   : > { %6012 = vmatpush.bf16.msrb.mxu3 %v9339_v21  ;;  %5934 = vmatpush.bf16.msra.mxu1 %v8983_v43  ;;  %v6026_v21 = vld [vmem:[#allocation2 + $0x30] sm:$0xff] }
 0x6ad   : > { %5977 = vmatpush.bf16.msrb.mxu0 %v8843_v22 }
 0x6ae   : > { %6013 = vmatpush.bf16.msrb.mxu3 %v9323_v23  ;;  %5935 = vmatpush.bf16.msra.mxu1 %v8967_v55  ;;  %v6030_v23 = vld [vmem:[#allocation2 + $0x8] sm:$0xff] }
 0x6b0   : > { %5978 = vmatmul.bf16.vlgmr.msrb.gmra.mxu0 %v12623_v4  ;;  %v9275_v4 = vor.u32 %v10164_v59, %v9272_v44 }
 0x6b1   : > { %5936 = vmatmul.bf16.vlgmr.msra.gmra.mxu1 %v12681_v40 }
 0x6b2   : > { %5984 = vmatpush.bf16.msrb.mxu1 %v9083_v32  ;;  %6014 = vmatpush.bf16.msrb.mxu3 %v9307_v6 }
 0x6b6   : > { %5985 = vmatpush.bf16.msrb.mxu1 %v9067_v39  ;;  %6015 = vmatpush.bf16.msrb.mxu3 %v9291_v7 }
 0x6ba   : > { %5986 = vmatpush.bf16.msrb.mxu1 %v9051_v10  ;;  %6016 = vmatpush.bf16.msrb.mxu3 %v9275_v4  ;;  %v6031_v4 = vld [vmem:[#allocation2 + $0x20] sm:$0xff] }
 0x6be   : > { %5987 = vmatpush.bf16.msrb.mxu1 %v9035_v29  ;;  %6017 = vmatpush.bf16.msrb.mxu3 %v9259_v5 }
 0x6c2   : > { %5988 = vmatpush.bf16.msrb.mxu1 %v9019_v38  ;;  %6018 = vmatpush.bf16.msrb.mxu3 %v9243_v18  ;;  %v6046_v18 = vperm.slane %v12768_v31, 2 }
 0x6c6   : > { %5989 = vmatpush.bf16.msrb.mxu1 %v9003_v25  ;;  %6019 = vmatpush.bf16.msrb.mxu3 %v9227_v57 }
 0x6c9   : > { %6020 = vmatmul.bf16.vlgmr.msrb.gmra.mxu3 %v12662_v56 }
 0x6ca   : > { %5990 = vmatpush.bf16.msrb.mxu1 %v8987_v47  ;;  %v6032_v47 = vld [vmem:[#allocation2 + $0x28] sm:$0xff] }
 0x6ce   : > { %5991 = vmatpush.bf16.msrb.mxu1 %v8971_v50 }
 0x6d1   : > { %5992 = vmatmul.bf16.vlgmr.msrb.gmra.mxu1 %v12681_v40 }
 0x6eb   : > { %v5839_v27 = vpop.f32.mrf.mxu2 }
 0x6ed   : > { %v5811_v42 = vpop.f32.mrf.mxu0 }
 0x6f3   : > { %v5841_v14 = vpop.f32.mrf.mxu2 }
 0x6f5   : > { %v5813_v11 = vpop.f32.mrf.mxu0 }
 0x6fb   : > { %v5895_v63 = vpop.f32.mrf.mxu2 }
 0x6fd   : > { %v5867_v40 = vpop.f32.mrf.mxu0 }
 0x703   : > { %v5897_v39 = vpop.f32.mrf.mxu2 }
 0x705   : > { %v5869_v17 = vpop.f32.mrf.mxu0 }
 0x70b   : > { %v5853_v13 = vpop.f32.mrf.mxu3  ;;  %v5951_v51 = vpop.f32.mrf.mxu2 }
 0x70d   : > { %v5825_v16 = vpop.f32.mrf.mxu1  ;;  %v5923_v45 = vpop.f32.mrf.mxu0 }
 0x70e   : > { %v5826_v1 = vadd.f32 %v5825_v16, %v5811_v42 }
 0x710   : > { %v5840_v53 = vadd.f32 %v5839_v27, %v5826_v1 }
 0x712   : > { %v5854_v33 = vadd.f32 %v5853_v13, %v5840_v53 }
 0x713   : > { %v5855_v56 = vpop.f32.mrf.mxu3  ;;  %v5953_v57 = vpop.f32.mrf.mxu2 }
 0x714   : > { %v6034_v36 = vadd.f32 %v6026_v21, %v5854_v33  ;;  %v6047_v21 = vperm.slane %v12768_v31, 3 }
 0x715   : > { %v5827_v2 = vpop.f32.mrf.mxu1  ;;  %v5925_v61 = vpop.f32.mrf.mxu0 }
 0x716   : > { %v6052_v43 = vadd.f32 %v6044_v34, %v6034_v36  ;;  %v5828_v22 = vadd.f32 %v5827_v2, %v5813_v11 }
 0x718   : > { %6060 = vst [vmem:[#allocation2 + $0x30] sm:$0xff] %v6052_v43  ;;  %v5842_v62 = vadd.f32 %v5841_v14, %v5828_v22  ;;  %v6029_v14 = vld [vmem:[#allocation2 + $0x10] sm:$0xff] }
 0x71a   : > { %v5856_v54 = vadd.f32 %v5855_v56, %v5842_v62  ;;  %v6033_v62 = vld [vmem:[#allocation2 + $0x38] sm:$0xff] }
 0x71b   : > { %v5909_v49 = vpop.f32.mrf.mxu3 }
 0x71c   : > { %v6038_v9 = vadd.f32 %v6030_v23, %v5856_v54 }
 0x71d   : > { %v5881_v15 = vpop.f32.mrf.mxu1 }
 0x71e   : > { %v6056_v55 = vadd.f32 %v6044_v34, %v6038_v9  ;;  %v5882_v32 = vadd.f32 %v5881_v15, %v5867_v40 }
 0x720   : > { %6064 = vst [vmem:[#allocation2 + $0x8] sm:$0xff] %v6056_v55  ;;  %v5896_v6 = vadd.f32 %v5895_v63, %v5882_v32 }
 0x722   : > { %v5910_v35 = vadd.f32 %v5909_v49, %v5896_v6 }
 0x723   : > { %v5911_v8 = vpop.f32.mrf.mxu3 }
 0x724   : > { %v6035_v7 = vadd.f32 %v6027_v52, %v5910_v35 }
 0x725   : > { %v5883_v20 = vpop.f32.mrf.mxu1 }
 0x726   : > { %v6053_v59 = vadd.f32 %v6045_v24, %v6035_v7  ;;  %v5884_v44 = vadd.f32 %v5883_v20, %v5869_v17 }
 0x728   : > { %6061 = vst [vmem:[#allocation2] sm:$0xff] %v6053_v59  ;;  %v5898_v10 = vadd.f32 %v5897_v39, %v5884_v44 }
 0x72a   : > { %v5912_v0 = vadd.f32 %v5911_v8, %v5898_v10 }
 0x72b   : > { %v6007_v27 = vpop.f32.mrf.mxu2 }
 0x72c   : > { %v6039_v60 = vadd.f32 %v6031_v4, %v5912_v0  ;;  %v5965_v3 = vpop.f32.mrf.mxu3 }
 0x72d   : > { %v5979_v42 = vpop.f32.mrf.mxu0 }
 0x72e   : > { %v5937_v29 = vpop.f32.mrf.mxu1  ;;  %v6057_v5 = vadd.f32 %v6045_v24, %v6039_v60 }
 0x72f   : > { %v5938_v48 = vadd.f32 %v5937_v29, %v5923_v45 }
 0x730   : > { %6065 = vst [vmem:[#allocation2 + $0x20] sm:$0xff] %v6057_v5 }
 0x731   : > { %v5952_v12 = vadd.f32 %v5951_v51, %v5938_v48 }
 0x733   : > { %v5966_v38 = vadd.f32 %v5965_v3, %v5952_v12  ;;  %v6009_v43 = vpop.f32.mrf.mxu2 }
 0x734   : > { %v5967_v37 = vpop.f32.mrf.mxu3 }
 0x735   : > { %v6036_v41 = vadd.f32 %v6028_v46, %v5966_v38  ;;  %v5981_v34 = vpop.f32.mrf.mxu0 }
 0x736   : > { %v5939_v58 = vpop.f32.mrf.mxu1 }
 0x737   : > { %v6054_v30 = vadd.f32 %v6046_v18, %v6036_v41  ;;  %v5940_v25 = vadd.f32 %v5939_v58, %v5925_v61 }
 0x739   : > { %6062 = vst [vmem:[#allocation2 + $0x18] sm:$0xff] %v6054_v30  ;;  %v5954_v28 = vadd.f32 %v5953_v57, %v5940_v25 }
 0x73b   : > { %v5968_v19 = vadd.f32 %v5967_v37, %v5954_v28 }
 0x73d   : > { %v6040_v26 = vadd.f32 %v6032_v47, %v5968_v19 }
 0x73f   : > { %v6058_v50 = vadd.f32 %v6046_v18, %v6040_v26 }
 0x741   : > { %6066 = vst [vmem:[#allocation2 + $0x28] sm:$0xff] %v6058_v50 }
 0x74c   : > { %v6021_v16 = vpop.f32.mrf.mxu3 }
 0x74e   : > { %v5993_v13 = vpop.f32.mrf.mxu1 }
 0x74f   : > { %v5994_v11 = vadd.f32 %v5993_v13, %v5979_v42 }
 0x751   : > { %v6008_v1 = vadd.f32 %v6007_v27, %v5994_v11 }
 0x753   : > { %v6022_v53 = vadd.f32 %v6021_v16, %v6008_v1 }
 0x754   : > { %v6023_v40 = vpop.f32.mrf.mxu3 }
 0x755   : > { %v6037_v33 = vadd.f32 %v6029_v14, %v6022_v53 }
 0x756   : > { %v5995_v56 = vpop.f32.mrf.mxu1 }
 0x757   : > { %v6055_v36 = vadd.f32 %v6047_v21, %v6037_v33  ;;  %v5996_v2 = vadd.f32 %v5995_v56, %v5981_v34 }
 0x759   : > { %6063 = vst [vmem:[#allocation2 + $0x10] sm:$0xff] %v6055_v36  ;;  %v6010_v22 = vadd.f32 %v6009_v43, %v5996_v2 }
 0x75b   : > { %v6024_v63 = vadd.f32 %v6023_v40, %v6010_v22 }
 0x75d   : > { %v6041_v23 = vadd.f32 %v6033_v62, %v6024_v63  ;;  %6071 = sbr.rel (%p9340_p1) target bundleno = 2097 (0x831), region = 92 }
 0x75f   : > { %v6059_v54 = vadd.f32 %v6047_v21, %v6041_v23 }
 0x761   : > { %6067 = vst [vmem:[#allocation2 + $0x38] sm:$0xff] %v6059_v54 }
 0x762   : > { %v10190_v49 = vld [vmem:[#allocation15 + $0x38] sm:$0xff]  ;;  %v10189_v55 = vld [vmem:[#allocation15 + $0x30] sm:$0xff]  ;;  %v10188_v52 = vld [vmem:[#allocation15 + $0x28] sm:$0xff] }
 0x763   : > { %v10198_v9 = vld [vmem:[#allocation15 + $0x78] sm:$0xff]  ;;  %6369 = vmatpush.bf16.msra.mxu0 %v10190_v49  ;;  %v10197_v32 = vld [vmem:[#allocation15 + $0x70] sm:$0xff]  ;;  %v10196_v35 = vld [vmem:[#allocation15 + $0x68] sm:$0xff] }
 0x764   : > { %v10206_v31 = vld [vmem:[#allocation15 + $0xb8] sm:$0xff]  ;;  %6382 = vmatpush.bf16.msra.mxu1 %v10198_v9  ;;  %v10205_v6 = vld [vmem:[#allocation15 + $0xb0] sm:$0xff]  ;;  %v10204_v24 = vld [vmem:[#allocation15 + $0xa8] sm:$0xff] }
 0x765   : > { %v10214_v15 = vld [vmem:[#allocation15 + $0xf8] sm:$0xff]  ;;  %6395 = vmatpush.bf16.msra.mxu2 %v10206_v31  ;;  %v10213_v17 = vld [vmem:[#allocation15 + $0xf0] sm:$0xff]  ;;  %v10212_v39 = vld [vmem:[#allocation15 + $0xe8] sm:$0xff] }
 0x766   : > { %6408 = vmatpush.bf16.msra.mxu3 %v10214_v15  ;;  %v10187_v7 = vld [vmem:[#allocation15 + $0x20] sm:$0xff]  ;;  %v6074_v44 = vld [vmem:[#allocation2 + $0x18] sm:$0xff]  ;;  %v10186_v4 = vld [vmem:[#allocation15 + $0x18] sm:$0xff] }
 0x767   : > { %6370 = vmatpush.bf16.msra.mxu0 %v10189_v55  ;;  %v10195_v8 = vld [vmem:[#allocation15 + $0x60] sm:$0xff]  ;;  %v10194_v0 = vld [vmem:[#allocation15 + $0x58] sm:$0xff]  ;;  %v6092_v45 = vrot.slane %v6074_v44, 4  ;;  %v10185_v38 = vld [vmem:[#allocation15 + $0x10] sm:$0xff] }
 0x768   : > { %6383 = vmatpush.bf16.msra.mxu1 %v10197_v32  ;;  %v10203_v20 = vld [vmem:[#allocation15 + $0xa0] sm:$0xff]  ;;  %v10202_v51 = vld [vmem:[#allocation15 + $0x98] sm:$0xff]  ;;  %v10193_v18 = vld [vmem:[#allocation15 + $0x50] sm:$0xff] }
 0x769   : > { %6396 = vmatpush.bf16.msra.mxu2 %v10205_v6  ;;  %v10211_v59 = vld [vmem:[#allocation15 + $0xe0] sm:$0xff]  ;;  %v10210_v29 = vld [vmem:[#allocation15 + $0xd8] sm:$0xff]  ;;  %v6093_v48 = vadd.f32 %v6092_v45, %v6074_v44  ;;  %v10201_v25 = vld [vmem:[#allocation15 + $0x90] sm:$0xff] }
 0x76a   : > { %6409 = vmatpush.bf16.msra.mxu3 %v10213_v17  ;;  %v6075_v10 = vld [vmem:[#allocation2 + $0x10] sm:$0xff]  ;;  %v6073_v46 = vld [vmem:[#allocation2] sm:$0xff]  ;;  %v6076_v31 = vld [vmem:[#allocation2 + $0x8] sm:$0xff] }
 0x76b   : > { %6371 = vmatpush.bf16.msra.mxu0 %v10188_v52  ;;  %v6098_v60 = vrot.slane %v6075_v10, 4  ;;  %v6072_v5 = vld [vmem:[#allocation2 + $0x30] sm:$0xff]  ;;  %v6094_v41 = vrot.slane %v6093_v48, 2  ;;  %v6086_v30 = vrot.slane %v6073_v46, 4  ;;  %v10209_v57 = vld [vmem:[#allocation15 + $0xd0] sm:$0xff]  ;;  %v10222_v63 = vld [vmem:[#allocation15 + $0x38] sm:$0xff] }
 0x76c   : > { %6384 = vmatpush.bf16.msra.mxu1 %v10196_v35  ;;  %v6080_v12 = vrot.slane %v6072_v5, 4  ;;  %v10184_v26 = vld [vmem:[#allocation15 + $0x8] sm:$0xff]  ;;  %v10183_v34 = vld [vmem:[#allocation15] sm:$0xff]  ;;  %v10230_v23 = vld [vmem:[#allocation15 + $0x78] sm:$0xff] }
 0x76d   : > { %6397 = vmatpush.bf16.msra.mxu2 %v10204_v24  ;;  %v6099_v3 = vadd.f32 %v6098_v60, %v6075_v10  ;;  %v6095_v28 = vadd.f32 %v6094_v41, %v6093_v48  ;;  %v6087_v19 = vadd.f32 %v6086_v30, %v6073_v46  ;;  %v10192_v50 = vld [vmem:[#allocation15 + $0x48] sm:$0xff]  ;;  %v10191_v56 = vld [vmem:[#allocation15 + $0x40] sm:$0xff]  ;;  %v10238_v54 = vld [vmem:[#allocation15 + $0xb8] sm:$0xff] }
 0x76e   : > { %6410 = vmatpush.bf16.msra.mxu3 %v10212_v39  ;;  %v6081_v58 = vadd.f32 %v6080_v12, %v6072_v5  ;;  %v10200_v16 = vld [vmem:[#allocation15 + $0x88] sm:$0xff]  ;;  %v10199_v36 = vld [vmem:[#allocation15 + $0x80] sm:$0xff]  ;;  %v6077_v15 = vld [vmem:[#allocation2 + $0x20] sm:$0xff]  ;;  %v6422_v39 = vrot.slane %v6076_v31, 4 }
 0x76f   : > { %6372 = vmatpush.bf16.msra.mxu0 %v10187_v7  ;;  %v6100_v61 = vrot.slane %v6099_v3, 2  ;;  %v6096_v42 = vrot.slane %v6095_v28, 1  ;;  %v6088_v11 = vrot.slane %v6087_v19, 2  ;;  %v10208_v1 = vld [vmem:[#allocation15 + $0xc8] sm:$0xff]  ;;  %v10207_v62 = vld [vmem:[#allocation15 + $0xc0] sm:$0xff]  ;;  %v10246_v55 = vld [vmem:[#allocation15 + $0xf8] sm:$0xff] }
 0x770   : > { %6385 = vmatpush.bf16.msra.mxu1 %v10195_v8  ;;  %v6082_v47 = vrot.slane %v6081_v58, 2  ;;  %v6078_v32 = vld [vmem:[#allocation2 + $0x28] sm:$0xff]  ;;  %v6079_v6 = vld [vmem:[#allocation2 + $0x38] sm:$0xff]  ;;  %v6428_v7 = vrot.slane %v6077_v15, 4  ;;  %v6423_v45 = vadd.f32 %v6422_v39, %v6076_v31 }
 0x771   : > { %6398 = vmatpush.bf16.msra.mxu2 %v10203_v20  ;;  %v6101_v37 = vadd.f32 %v6100_v61, %v6099_v3  ;;  %v6097_v14 = vadd.f32 %v6096_v42, %v6095_v28  ;;  %v6089_v33 = vadd.f32 %v6088_v11, %v6087_v19  ;;  %v10221_v8 = vld [vmem:[#allocation15 + $0x30] sm:$0xff]  ;;  %v6434_v44 = vrot.slane %v6078_v32, 4  ;;  %v10236_v3 = vld [vmem:[#allocation15 + $0xa8] sm:$0xff]  ;;  %v10227_v41 = vld [vmem:[#allocation15 + $0x60] sm:$0xff] }
 0x772   : > { %6411 = vmatpush.bf16.msra.mxu3 %v10211_v59  ;;  %v6083_v13 = vadd.f32 %v6082_v47, %v6081_v58  ;;  %v10229_v20 = vld [vmem:[#allocation15 + $0x70] sm:$0xff]  ;;  %v6440_v10 = vrot.slane %v6079_v6, 4  ;;  %v6429_v60 = vadd.f32 %v6428_v7, %v6077_v15  ;;  %v10244_v12 = vld [vmem:[#allocation15 + $0xe8] sm:$0xff]  ;;  %v6424_v46 = vrot.slane %v6423_v45, 2  ;;  %v10235_v30 = vld [vmem:[#allocation15 + $0xa0] sm:$0xff] }
 0x773   : > { %6373 = vmatpush.bf16.msra.mxu0 %v10186_v4  ;;  %v6102_v27 = vrot.slane %v6101_v37, 1  ;;  %v6106_v2 = vmul.f32 0.125, %v6097_v14  ;;  %v6090_v40 = vrot.slane %v6089_v33, 1  ;;  %v10237_v4 = vld [vmem:[#allocation15 + $0xb0] sm:$0xff]  ;;  %v6435_v5 = vadd.f32 %v6434_v44, %v6078_v32  ;;  %v10226_v47 = vld [vmem:[#allocation15 + $0x58] sm:$0xff]  ;;  %v10231_v31 = vld [vmem:[#allocation15 + $0x80] sm:$0xff] }
 0x774   : > { %6386 = vmatpush.bf16.msra.mxu1 %v10194_v0  ;;  %v6084_v21 = vrot.slane %v6083_v13, 1  ;;  %v10245_v0 = vld [vmem:[#allocation15 + $0xf0] sm:$0xff]  ;;  %v6441_v48 = vadd.f32 %v6440_v10, %v6079_v6  ;;  %v10242_v42 = vld [vmem:[#allocation15 + $0xd8] sm:$0xff]  ;;  %v10239_v15 = vld [vmem:[#allocation15 + $0xc0] sm:$0xff] }
 0x775   : > { %6399 = vmatpush.bf16.msra.mxu2 %v10202_v51  ;;  %v6103_v53 = vadd.f32 %v6102_v27, %v6101_v37  ;;  %v6091_v9 = vadd.f32 %v6090_v40, %v6089_v33  ;;  %v6110_v17 = vpack.c.bf16 %v6106_v2, %v6106_v2  ;;  %v10220_v51 = vld [vmem:[#allocation15 + $0x28] sm:$0xff]  ;;  %v6436_v61 = vrot.slane %v6435_v5, 2  ;;  %v10218_v37 = vld [vmem:[#allocation15 + $0x18] sm:$0xff]  ;;  %v10217_v11 = vld [vmem:[#allocation15 + $0x10] sm:$0xff] }
 0x776   : > { %6412 = vmatpush.bf16.msra.mxu3 %v10210_v29  ;;  %v6085_v22 = vadd.f32 %v6084_v21, %v6083_v13  ;;  %v10228_v29 = vld [vmem:[#allocation15 + $0x68] sm:$0xff]  ;;  %v6442_v58 = vrot.slane %v6441_v48, 2  ;;  %v10241_v21 = vld [vmem:[#allocation15 + $0xd0] sm:$0xff] }
 0x777   : > { %6374 = vmatpush.bf16.msra.mxu0 %v10185_v38  ;;  %v6107_v43 = vmul.f32 0.125, %v6103_v53  ;;  %v6105_v35 = vmul.f32 0.125, %v6091_v9  ;;  %v6430_v38 = vrot.slane %v6429_v60, 2  ;;  %v6437_v19 = vadd.f32 %v6436_v61, %v6435_v5  ;;  %v10233_v53 = vld [vmem:[#allocation15 + $0x90] sm:$0xff]  ;;  %v10240_v40 = vld [vmem:[#allocation15 + $0xc8] sm:$0xff] }
 0x778   : > { %6387 = vmatpush.bf16.msra.mxu1 %v10193_v18  ;;  %v6104_v49 = vmul.f32 0.125, %v6085_v22  ;;  %v10219_v18 = vld [vmem:[#allocation15 + $0x20] sm:$0xff]  ;;  %v10232_v22 = vld [vmem:[#allocation15 + $0x88] sm:$0xff] }
 0x779   : > { %6400 = vmatpush.bf16.msra.mxu2 %v10201_v25  ;;  %v6111_v52 = vpack.c.bf16 %v6107_v43, %v6107_v43  ;;  %v6109_v59 = vpack.c.bf16 %v6105_v35, %v6105_v35  ;;  %v10243_v25 = vld [vmem:[#allocation15 + $0xe0] sm:$0xff]  ;;  %v6431_v28 = vadd.f32 %v6430_v38, %v6429_v60 }
 0x77a   : > { %6413 = vmatpush.bf16.msra.mxu3 %v10209_v57  ;;  %v6108_v24 = vpack.c.bf16 %v6104_v49, %v6104_v49  ;;  %v6425_v57 = vadd.f32 %v6424_v46, %v6423_v45  ;;  %v6518_v60 = vld [vmem:[#allocation16] sm:$0x1] }
 0x77b   : > { %6375 = vmatpush.bf16.msra.mxu0 %v10184_v26  ;;  %v6443_v26 = vadd.f32 %v6442_v58, %v6441_v48  ;;  %v6432_v13 = vrot.slane %v6431_v28, 1 }
 0x77c   : > { %6388 = vmatpush.bf16.msra.mxu1 %v10192_v50  ;;  %v10234_v50 = vld [vmem:[#allocation15 + $0x98] sm:$0xff]  ;;  %v6426_v27 = vrot.slane %v6425_v57, 1 }
 0x77d   : > { %6401 = vmatpush.bf16.msra.mxu2 %v10200_v16  ;;  %v10225_v16 = vld [vmem:[#allocation15 + $0x50] sm:$0xff]  ;;  %v6444_v14 = vrot.slane %v6443_v26, 1 }
 0x77e   : > { %6414 = vmatpush.bf16.msra.mxu3 %v10208_v1  ;;  %v6438_v1 = vrot.slane %v6437_v19, 1  ;;  %v6427_v33 = vadd.f32 %v6426_v27, %v6425_v57 }
 0x77f   : > { %6376 = vmatpush.bf16.msra.mxu0 %v10183_v34  ;;  %v6433_v34 = vadd.f32 %v6432_v13, %v6431_v28  ;;  %v6445_v43 = vadd.f32 %v6444_v14, %v6443_v26 }
 0x780   : > { %6389 = vmatpush.bf16.msra.mxu1 %v10191_v56  ;;  %v10216_v56 = vld [vmem:[#allocation15 + $0x8] sm:$0xff]  ;;  %v6439_v2 = vadd.f32 %v6438_v1, %v6437_v19 }
 0x781   : > { %6402 = vmatpush.bf16.msra.mxu2 %v10199_v36  ;;  %v10224_v36 = vld [vmem:[#allocation15 + $0x48] sm:$0xff]  ;;  %v6449_v9 = vmul.f32 0.125, %v6445_v43 }
 0x782   : > { %6415 = vmatpush.bf16.msra.mxu3 %v10207_v62  ;;  %6377 = vmatmul.bf16.vlgmr.msra.gmra.mxu0 %v6108_v24  ;;  %v6446_v62 = vmul.f32 0.125, %v6427_v33  ;;  %v6448_v49 = vmul.f32 0.125, %v6439_v2 }
 0x783   : > { %6711 = vmatpush.bf16.msrb.mxu0 %v10222_v63  ;;  %6390 = vmatmul.bf16.vlgmr.msra.gmra.mxu1 %v6109_v59  ;;  %v6447_v63 = vmul.f32 0.125, %v6433_v34 }
 0x784   : > { %6724 = vmatpush.bf16.msrb.mxu1 %v10230_v23  ;;  %6403 = vmatmul.bf16.vlgmr.msra.gmra.mxu2 %v6110_v17  ;;  %v10215_v23 = vld [vmem:[#allocation15] sm:$0xff]  ;;  %v6452_v6 = vpack.c.bf16 %v6448_v49, %v6448_v49  ;;  %v6453_v17 = vpack.c.bf16 %v6449_v9, %v6449_v9 }
 0x785   : > { %6737 = vmatpush.bf16.msrb.mxu2 %v10238_v54  ;;  %6416 = vmatmul.bf16.vlgmr.msra.gmra.mxu3 %v6111_v52  ;;  %v10223_v54 = vld [vmem:[#allocation15 + $0x40] sm:$0xff]  ;;  %v6451_v32 = vpack.c.bf16 %v6447_v63, %v6447_v63 }
 0x786   : > { %6750 = vmatpush.bf16.msrb.mxu3 %v10246_v55  ;;  %v6450_v55 = vpack.c.bf16 %v6446_v62, %v6446_v62  ;;  %v6176_v52 = vld [vmem:[#allocation16] sm:$0x1] }
 0x787   : > { %6712 = vmatpush.bf16.msrb.mxu0 %v10221_v8 }
 0x788   : > { %6725 = vmatpush.bf16.msrb.mxu1 %v10229_v20 }
 0x789   : > { %6738 = vmatpush.bf16.msrb.mxu2 %v10237_v4 }
 0x78a   : > { %6751 = vmatpush.bf16.msrb.mxu3 %v10245_v0 }
 0x78b   : > { %6713 = vmatpush.bf16.msrb.mxu0 %v10220_v51 }
 0x78c   : > { %6726 = vmatpush.bf16.msrb.mxu1 %v10228_v29 }
 0x78d   : > { %6739 = vmatpush.bf16.msrb.mxu2 %v10236_v3 }
 0x78e   : > { %6752 = vmatpush.bf16.msrb.mxu3 %v10244_v12 }
 0x78f   : > { %6714 = vmatpush.bf16.msrb.mxu0 %v10219_v18 }
 0x790   : > { %6727 = vmatpush.bf16.msrb.mxu1 %v10227_v41 }
 0x791   : > { %6740 = vmatpush.bf16.msrb.mxu2 %v10235_v30 }
 0x792   : > { %6753 = vmatpush.bf16.msrb.mxu3 %v10243_v25 }
 0x793   : > { %6715 = vmatpush.bf16.msrb.mxu0 %v10218_v37 }
 0x794   : > { %6728 = vmatpush.bf16.msrb.mxu1 %v10226_v47 }
 0x795   : > { %6741 = vmatpush.bf16.msrb.mxu2 %v10234_v50 }
 0x796   : > { %6754 = vmatpush.bf16.msrb.mxu3 %v10242_v42 }
 0x797   : > { %6716 = vmatpush.bf16.msrb.mxu0 %v10217_v11 }
 0x798   : > { %6729 = vmatpush.bf16.msrb.mxu1 %v10225_v16 }
 0x799   : > { %6742 = vmatpush.bf16.msrb.mxu2 %v10233_v53 }
 0x79a   : > { %6755 = vmatpush.bf16.msrb.mxu3 %v10241_v21 }
 0x79b   : > { %6717 = vmatpush.bf16.msrb.mxu0 %v10216_v56 }
 0x79c   : > { %6730 = vmatpush.bf16.msrb.mxu1 %v10224_v36 }
 0x79d   : > { %6743 = vmatpush.bf16.msrb.mxu2 %v10232_v22 }
 0x79e   : > { %6756 = vmatpush.bf16.msrb.mxu3 %v10240_v40 }
 0x79f   : > { %6718 = vmatpush.bf16.msrb.mxu0 %v10215_v23 }
 0x7a0   : > { %6731 = vmatpush.bf16.msrb.mxu1 %v10223_v54 }
 0x7a1   : > { %6744 = vmatpush.bf16.msrb.mxu2 %v10231_v31 }
 0x7a2   : > { %6757 = vmatpush.bf16.msrb.mxu3 %v10239_v15  ;;  %6719 = vmatmul.bf16.vlgmr.msrb.gmra.mxu0 %v6450_v55 }
 0x7a3   : > { %6732 = vmatmul.bf16.vlgmr.msrb.gmra.mxu1 %v6451_v32 }
 0x7a4   : > { %6745 = vmatmul.bf16.vlgmr.msrb.gmra.mxu2 %v6452_v6 }
 0x7a5   : > { %6758 = vmatmul.bf16.vlgmr.msrb.gmra.mxu3 %v6453_v17 }
 0x7ff   : > { %v6378_v35 = vpop.f32.mrf.mxu0 }
 0x800   : > { %v6391_v24 = vpop.f32.mrf.mxu1  ;;  %v6379_v39 = vadd.f32 %v6378_v35, %v6176_v52 }
 0x802   : > { %v6392_v7 = vadd.f32 %v6391_v24, %v6379_v39 }
 0x807   : > { %v6404_v8 = vpop.f32.mrf.mxu2  ;;  %v6380_v10 = vpop.f32.mrf.mxu0 }
 0x808   : > { %v6417_v20 = vpop.f32.mrf.mxu3  ;;  %v6405_v59 = vadd.f32 %v6404_v8, %v6392_v7  ;;  %v6393_v4 = vpop.f32.mrf.mxu1 }
 0x80a   : > { %v6418_v44 = vadd.f32 %v6417_v20, %v6405_v59 }
 0x80c   : > { %6421 = vst [vmem:[%s11185_s8] sm:$0x1] %v6418_v44 }
 0x80f   : > { %v6406_v0 = vpop.f32.mrf.mxu2 }
 0x810   : > { %v6419_v45 = vpop.f32.mrf.mxu3 }
 0x81f   : > { %v6720_v51 = vpop.f32.mrf.mxu0 }
 0x820   : > { %v6733_v29 = vpop.f32.mrf.mxu1  ;;  %v6721_v5 = vadd.f32 %v6720_v51, %v6518_v60 }
 0x822   : > { %v6734_v48 = vadd.f32 %v6733_v29, %v6721_v5 }
 0x827   : > { %v6746_v3 = vpop.f32.mrf.mxu2  ;;  %v6722_v38 = vpop.f32.mrf.mxu0 }
 0x828   : > { %v6759_v12 = vpop.f32.mrf.mxu3  ;;  %v6747_v46 = vadd.f32 %v6746_v3, %v6734_v48  ;;  %v6735_v18 = vpop.f32.mrf.mxu1 }
 0x82a   : > { %v6760_v41 = vadd.f32 %v6759_v12, %v6747_v46 }
 0x82c   : > { %9597 = vst [vmem:[%s11185_s8 + $0x1] sm:$0x1] %v6760_v41 }
 0x82f   : > { %v6748_v61 = vpop.f32.mrf.mxu2 }
 0x830   : > { %v6761_v58 = vpop.f32.mrf.mxu3 }
 0x831 PF: > { %s12893_s22 = sld [smem:[#allocation30_spill]]  ;;  %s6777_s27 = sshll.u32 %s11185_s8, 4  ;;  %s6778_s27 = int_to_ptr.vmem [resolvable:$true] %s6777_s27 }
 0x832   : > { %s12894_s18 = sld [smem:[#allocation43_spill]]  ;;  %s6766_s3 = scalar_lea.sflag [#allocation6], %s11146_s0 }
 0x837   : > { %s9599_s25 = sshll.u32 %s12893_s22, 1 }
 0x838   : > { %s6776_s20 = scalar_lea.hbm %s12894_s18, %s9599_s25  ;;  %s10743_s29 = scalar_lea.hbm %s12894_s18, 4 }
 0x839   : > { %s6779_s24 = sshll.u32 %s6776_s20, 4  ;;  %s6780_s24 = int_to_ptr.hbm [resolvable:$true] %s6779_s24 }
 0x83a   : > { %s10737_s19 = sshra.s32 %s6780_s24, 4  ;;  %s10738_s19 = int_to_ptr.hbm [resolvable:$true] %s10737_s19 }
 0x83b   : > { %s10739_s11 = scalar_lea.hbm %s10738_s19, 2  ;;  %p10744_p9 = scmp.lt.s32.totalorder %s10738_s19, %s12894_s18 }
 0x83c   : > { %p10740_p12 = scmp.ne.s32.totalorder %s10738_s19, %s10739_s11  ;;  %p10745_p10 = scmp.lt.s32.totalorder %s10743_s29, %s10739_s11 }
 0x83e   : > { %p10741_p0 = pnand %p10740_p12, %p11101_p6  ;;  %p10746_p11 = por %p10745_p10, %p10744_p9 }
 0x840   : > { %p10742_p3 = pneg %p10741_p0 }
 0x842   : > { %p10747_p13 = pnand %p10746_p11, %p10742_p3 }
 0x844   : > { %10750 = shalt.err (!%p10747_p13)
}
 0x845   : > { %s10880_s0 = smov 16   ;;  %s10881_s7 = smov 1  }
 0x846   : > { %10274 = dma.vmem_to_hbm [thread:$0]  (%p11101_p6), %s6778_s27, 32, %s6780_s24, %s6766_s3, %s10880_s0, %s10880_s0, %s10881_s7  }
 0x847 PF: > { %p10315_p8 = scmp.ge.s32.totalorder %s10865_s15, 2  ;;  %s6794_s14 = sand.u32 1, %s10837_s30  }
 0x848   : > { %s6795_s8 = scalar_lea.sflag [#allocation6], %s6794_s14 }
 0x849   : > { %p10303_p2 = pnand %p10315_p8, %p11105_p7 }
 0x84b   : > { %p10304_p5 = pneg %p10303_p2 }
 0x84d   : > { %10820 = dma.done.wait (%p10304_p5), %s6795_s8, 32  }
 0x84e   : > { %10822 = vsyncadd (%p10304_p5), %s6795_s8, 4294967264  ;;  %s32_s15 = sadd.s32 1, %s10865_s15   ;;  %s12895_s27 = sld [smem:[#allocation26_spill]] }
 0x84f   : > { %p29_p4 = scmp.ge.s32.totalorder %s32_s15, 6   ;;  %s12896_s28 = sld [smem:[#allocation27_spill]] }
 0x850   : > { %s12897_s29 = sld [smem:[#allocation34_spill]]  ;;  %s12903_s30 = smov %s10841_s9 }
 0x851   : > { %s12898_s17 = sld [smem:[#allocation28_spill]]  ;;  %s12905_s11 = smov %s10857_s13 }
 0x852   : > { %s12899_s10 = sld [smem:[#allocation36_spill]] }
 0x853   : > { %s12900_s12 = sld [smem:[#allocation31_spill]] }
 0x854   : > { %s12901_s6 = sld [smem:[#allocation32_spill]] }
 0x855   : > { %s12902_s14 = sld [smem:[#allocation35_spill]] }
 0x856   :  { %31 = sbr.rel (!%p29_p4) target bundleno = 23 (0x17), region = 159 }
 0x857   : > { %s12904_s9 = smov %s12898_s17 }
 0x85a   : > { %s12906_s13 = smov %s12901_s6 }
 0x85b   :  { %6801 = vsyncpa [#allocation5], 1 }
 0x85c   :  { %6803 = vsyncpa [#allocation5 + $0x1], 1 }
 0x85d   :  { %6804 = vsyncpa [#allocation8], 1 }
 0x85e   :  { %6805 = vsyncpa [#allocation11], 1 }
 0x85f   :  { %6807 = vsyncpa [#allocation11 + $0x1], 1 }
 0x860   :  { %6808 = vsyncpa [#allocation14], 1 }
 0x861   :  { %6810 = vsyncpa [#allocation14 + $0x1], 1 }
 0x862   :  { %6811 = vsyncpa [#allocation17], 1 }
 0x863   :  { %6812 = vsyncpa [#allocation6], 1 }
 0x864   :  { %6814 = vsyncpa [#allocation6 + $0x1], 1 }

</bundles_post_ra>
